<compile_context>
chip_gen: v7x
topology: tpu7x:2x2x1
jax: 0.10.0
libtpu: 0.0.40
codegen_flags: <defaults>
</compile_context>

<pallas_src>
import functools

import jax
import jax.numpy as jnp
from jax.experimental import pallas as pl
from jax.experimental.pallas import tpu as pltpu

# Tap order k = (oy + 1) * 3 + (ox + 1)  (== torch 3x3 kernel (ky, kx) index).
_TAPS = tuple((oy, ox) for oy in (-1, 0, 1) for ox in (-1, 0, 1))


# ---------------------------------------------------------------------------
# In-kernel helpers — activations are lane-dense (C, H*W) slabs (spatial on lanes)
# ---------------------------------------------------------------------------

def _tap_masks(xp, yp, H, W, dilation):
    """f32 (1, HW) boundary mask per 3x3 tap (None for the tap that never leaves the image)."""
    def f32(c):
        return jnp.where(c, 1.0, 0.0).astype(jnp.float32)

    masks = {}
    for oy, ox in _TAPS:
        parts = []
        if oy > 0:
            parts.append(f32(yp < H - dilation * oy))
        if oy < 0:
            parts.append(f32(yp >= -dilation * oy))
        if ox > 0:
            parts.append(f32(xp < W - dilation * ox))
        if ox < 0:
            parts.append(f32(xp >= -dilation * ox))
        if not parts:
            masks[(oy, ox)] = None
        else:
            m = parts[0]
            for q in parts[1:]:
                m = m * q
            masks[(oy, ox)] = m
    return masks


def _shifted_taps(src, masks, *, W, HW, dilation):
    """All 9 shifted + zero-padded views of `src` (C, HW): tap (oy, ox) at flat index p
    holds src[p + dilation*(oy*W + ox)] (0 outside the image).  Cyclic roll wraparound is
    always killed by the boundary mask."""
    taps = {}
    for oy, ox in _TAPS:
        k = dilation * (oy * W + ox)
        sh = src if k == 0 else pltpu.roll(src, shift=(-k) % HW, axis=1)
        m = masks[(oy, ox)]
        taps[(oy, ox)] = sh if m is None else sh * m
    return taps


def _conv3x3(srcs_ws, bias, masks, *, W, HW, dilation, relu):
    """3x3 'same' conv (optional dilation) on (C, HW) slabs.

    srcs_ws : list of (src_value (C_i, HW), w_ref (9, Cout, C_i)).  A conv over a channel
              concat is the sum of the per-source partial convs, so no concat is needed.
    bias    : (Cout, 1) value.     Returns (Cout, HW) float32.
    """
    acc = None
    for src, w_ref in srcs_ws:
        cin = src.shape[0]
        taps = _shifted_taps(src, masks, W=W, HW=HW, dilation=dilation)
        for k, tap in enumerate(_TAPS):
            wk = w_ref[k]                                   # (Cout, C_i)
            if cin == 1:                                    # rank-1 update; skip the MXU
                contrib = wk * taps[tap]                    # (Cout,1)*(1,HW) -> (Cout,HW)
            else:
                contrib = jnp.dot(wk, taps[tap], preferred_element_type=jnp.float32)
            acc = contrib if acc is None else acc + contrib
    acc = acc + bias
    return jnp.maximum(acc, 0.0) if relu else acc


def _maxpool2x2_replicated(a, xe, ye, *, W, HW):
    """2x2 max-pool whose result stays replicated over each 2x2 block at full resolution
    (== maxpool followed by nearest 2x upsample).  Downstream convs at the pooled
    resolution become dilation-2 convs on this replicated map — no lane gather needed."""
    nxt = pltpu.roll(a, shift=(HW - 1) % HW, axis=1)    # a[idx + 1]
    prv = pltpu.roll(a, shift=1, axis=1)                # a[idx - 1]
    hx = jnp.maximum(a, xe * nxt + (1.0 - xe) * prv)    # max over the x-pair
    dwn = pltpu.roll(hx, shift=(HW - W) % HW, axis=1)   # hx[idx + W]
    up_ = pltpu.roll(hx, shift=W, axis=1)               # hx[idx - W]
    return jnp.maximum(hx, ye * dwn + (1.0 - ye) * up_)


# ---------------------------------------------------------------------------
# Kernel bodies
# ---------------------------------------------------------------------------

def _unet_kernel(x_ref, xp_ref, yp_ref, xe_ref, ye_ref,
                 we1a, be1a, we1b, be1b, we2a, be2a, we2b, be2b,
                 wup, bup, wd1au, wd1ae, bd1a, wd1b, bd1b, wout, bout,
                 o_ref, *, H, W):
    """Whole UNet for one batch element in one grid step — no HBM between layers."""
    HW = H * W
    xp = xp_ref[...]
    yp = yp_ref[...]
    xe = xe_ref[...]
    ye = ye_ref[...]
    m1 = _tap_masks(xp, yp, H, W, 1)
    m2 = _tap_masks(xp, yp, H, W, 2)

    x = x_ref[...]                                                           # (1, HW)
    # encoder level 1
    e1 = _conv3x3([(x, we1a)], be1a[...], m1, W=W, HW=HW, dilation=1, relu=True)
    e1 = _conv3x3([(e1, we1b)], be1b[...], m1, W=W, HW=HW, dilation=1, relu=True)
    # 2x2 maxpool kept replicated at full resolution; level-2 convs run dilated by 2
    p = _maxpool2x2_replicated(e1, xe, ye, W=W, HW=HW)
    e2 = _conv3x3([(p, we2a)], be2a[...], m2, W=W, HW=HW, dilation=2, relu=True)
    e2 = _conv3x3([(e2, we2b)], be2b[...], m2, W=W, HW=HW, dilation=2, relu=True)
    # `e2` (replicated) already IS the nearest-2x upsample -> decoder at full resolution
    u = _conv3x3([(e2, wup)], bup[...], m1, W=W, HW=HW, dilation=1, relu=True)
    d = _conv3x3([(u, wd1au), (e1, wd1ae)], bd1a[...], m1, W=W, HW=HW,
                 dilation=1, relu=True)                                      # skip concat
    d = _conv3x3([(d, wd1b)], bd1b[...], m1, W=W, HW=HW, dilation=1, relu=True)
    # 1x1 head to 3 channels
    o_ref[...] = jnp.dot(wout[...], d, preferred_element_type=jnp.float32) + bout[...]


def _convlstm_cell(x, h_ref, c_ref, wx, wh, b, masks, *, W, HW):
    """gates = conv3x3(cat([x, h]), 4*hid); i,f,o = sigmoid, g = tanh;
    c' = f*c + i*g; h' = o*tanh(c').  h/c live in VMEM scratch refs."""
    xt = _shifted_taps(x, masks, W=W, HW=HW, dilation=1)
    ht = _shifted_taps(h_ref[...], masks, W=W, HW=HW, dilation=1)

    def gate(gi):
        acc = None
        for k, tap in enumerate(_TAPS):
            gx = jnp.dot(wx[gi, k], xt[tap], preferred_element_type=jnp.float32)
            gh = jnp.dot(wh[gi, k], ht[tap], preferred_element_type=jnp.float32)
            acc = gx + gh if acc is None else acc + gx + gh
        return acc + b[gi]

    i = jax.nn.sigmoid(gate(0))
    f = jax.nn.sigmoid(gate(1))
    o = jax.nn.sigmoid(gate(2))
    g = jnp.tanh(gate(3))
    c_new = f * c_ref[...] + i * g
    h_new = o * jnp.tanh(c_new)
    c_ref[...] = c_new
    h_ref[...] = h_new
    return h_new


def _bilstm_kernel(seq_ref, xp_ref, yp_ref, wfx, wfh, bf, wbx, wbh, bb,
                   wlf, wlb, bl, o_ref, h_f, c_f, h_b, c_b, *, T, H, W):
    """One grid step = one timestep of BOTH ConvLSTM directions + the fusing last_conv.
    The whole sequence block stays resident in VMEM (constant block index -> one DMA)."""
    HW = H * W
    t = pl.program_id(0)

    @pl.when(t == 0)
    def _init():
        h_f[...] = jnp.zeros_like(h_f)
        c_f[...] = jnp.zeros_like(c_f)
        h_b[...] = jnp.zeros_like(h_b)
        c_b[...] = jnp.zeros_like(c_b)

    m1 = _tap_masks(xp_ref[...], yp_ref[...], H, W, 1)

    x_fwd = seq_ref[t]                  # (3, HW)
    x_bwd = seq_ref[T - 1 - t]          # backward direction consumes the flipped sequence

    h_fn = _convlstm_cell(x_fwd, h_f, c_f, wfx, wfh, bf, m1, W=W, HW=HW)
    h_bn = _convlstm_cell(x_bwd, h_b, c_b, wbx, wbh, bb, m1, W=W, HW=HW)

    # last_conv on the channel-concat [h_fwd(t), h_bwd(t)] == sum of the partial convs
    hft = _shifted_taps(h_fn, m1, W=W, HW=HW, dilation=1)
    hbt = _shifted_taps(h_bn, m1, W=W, HW=HW, dilation=1)
    acc = None
    for k, tap in enumerate(_TAPS):
        s = (jnp.dot(wlf[k], hft[tap], preferred_element_type=jnp.float32)
             + jnp.dot(wlb[k], hbt[tap], preferred_element_type=jnp.float32))
        acc = s if acc is None else acc + s
    o_ref[...] = acc + bl[...]


# ---------------------------------------------------------------------------
# pallas_call wrappers
# ---------------------------------------------------------------------------

def _resident_spec(a):
    nd = a.ndim
    return pl.BlockSpec(a.shape, lambda *_: (0,) * nd)   # fetched once, stays in VMEM


def _unet_forward(x, xp, yp, xe, ye, u, *, H, W):
    """x: (B, 1, H*W) -> (B, 3, H*W); the whole UNet fused into one call, grid=(B,)."""
    B = x.shape[0]
    HW = H * W
    consts = [xp, yp, xe, ye,
              u["e1a_w"], u["e1a_b"], u["e1b_w"], u["e1b_b"],
              u["e2a_w"], u["e2a_b"], u["e2b_w"], u["e2b_b"],
              u["up_w"], u["up_b"],
              u["d1a_wu"], u["d1a_we"], u["d1a_b"],
              u["d1b_w"], u["d1b_b"],
              u["out_w"], u["out_b"]]
    kernel = functools.partial(_unet_kernel, H=H, W=W)
    return pl.pallas_call(
        kernel,
        out_shape=jax.ShapeDtypeStruct((B, 3, HW), jnp.float32),
        grid_spec=pltpu.PrefetchScalarGridSpec(
            num_scalar_prefetch=0,
            grid=(B,),
            in_specs=[pl.BlockSpec((None, 1, HW), lambda b: (b, 0, 0))]
                     + [_resident_spec(a) for a in consts],
            out_specs=pl.BlockSpec((None, 3, HW), lambda b: (b, 0, 0)),
        ),
        compiler_params=pltpu.CompilerParams(
            dimension_semantics=("parallel",),
            vmem_limit_bytes=32 * 1024 * 1024),
    )(x, *consts)


def _bilstm_fuse(seq, xp, yp, lp, *, H, W, hid=3):
    """seq: (T, 3, H*W) -> (T, 3, H*W).  One call over the whole time loop of BOTH
    ConvLSTM directions plus the fusing last_conv; h/c states in VMEM scratch."""
    T = seq.shape[0]
    HW = H * W
    consts = [xp, yp,
              lp["f_wx"], lp["f_wh"], lp["f_b"],
              lp["b_wx"], lp["b_wh"], lp["b_b"],
              lp["last_wf"], lp["last_wb"], lp["last_b"]]
    kernel = functools.partial(_bilstm_kernel, T=T, H=H, W=W)
    return pl.pallas_call(
        kernel,
        out_shape=jax.ShapeDtypeStruct((T, 3, HW), jnp.float32),
        grid_spec=pltpu.PrefetchScalarGridSpec(
            num_scalar_prefetch=0,
            grid=(T,),
            in_specs=[pl.BlockSpec((T, 3, HW), lambda t: (0, 0, 0))]   # resident sequence
                     + [_resident_spec(a) for a in consts],
            out_specs=pl.BlockSpec((None, 3, HW), lambda t: (t, 0, 0)),
            scratch_shapes=[pltpu.VMEM((hid, HW), jnp.float32)] * 4,   # h_f, c_f, h_b, c_b
        ),
        compiler_params=pltpu.CompilerParams(
            dimension_semantics=("arbitrary",),                        # recurrence: keep sequential
            vmem_limit_bytes=32 * 1024 * 1024),
    )(seq, *consts)


# ---------------------------------------------------------------------------
# Model forward (NCHW boundary, like the PyTorch module)
# ---------------------------------------------------------------------------

def _spatial_aux(H, W):
    idx = jnp.arange(H * W, dtype=jnp.int32).reshape(1, H * W)
    xp = idx % W
    yp = idx // W
    xe = (xp % 2 == 0).astype(jnp.float32)
    ye = (yp % 2 == 0).astype(jnp.float32)
    return xp, yp, xe, ye


def rnn_unet_config1_forward(x_nchw, params):
    """x_nchw: (B, 1, H, W) -> (out_unet, out), both (B, 3, H, W)."""
    B, C, H, W = x_nchw.shape
    assert C == 1 and H % 2 == 0 and W % 2 == 0
    HW = H * W
    xp, yp, xe, ye = _spatial_aux(H, W)

    x = x_nchw.reshape(B, 1, HW)                                    # free reshape, no transpose
    out_unet = _unet_forward(x, xp, yp, xe, ye, params["unet"], H=H, W=W)    # (B, 3, HW)

    # bidirectional ConvLSTM over time dim = B (batch 1) + fusing last_conv
    out = _bilstm_fuse(out_unet, xp, yp, params["lstm"], H=H, W=W)           # (B, 3, HW)

    return out_unet.reshape(B, 3, H, W), out.reshape(B, 3, H, W)


# ---------------------------------------------------------------------------
# Deterministic parameter init (per-tap layout (9, Cout, Cin); from torch OIHW:
# w.permute(2, 3, 0, 1).reshape(9, Cout, Cin); concat-input convs split per source)
# ---------------------------------------------------------------------------

def init_params(key):
    ks = iter(jax.random.split(key, 64))

    def conv_tap(cin, cout, scale=0.1):
        return scale * jax.random.normal(next(ks), (9, cout, cin), jnp.float32)

    def bias(n):
        return jnp.zeros((n, 1), jnp.float32)

    base, hid = 8, 3
    unet = {
        "e1a_w": conv_tap(1, base),          "e1a_b": bias(base),
        "e1b_w": conv_tap(base, base),       "e1b_b": bias(base),
        "e2a_w": conv_tap(base, 2 * base),   "e2a_b": bias(2 * base),
        "e2b_w": conv_tap(2 * base, 2 * base), "e2b_b": bias(2 * base),
        "up_w": conv_tap(2 * base, base),    "up_b": bias(base),
        # d1a acts on channel-concat [u(8), e1(8)]: stored split per source
        "d1a_wu": conv_tap(base, base), "d1a_we": conv_tap(base, base), "d1a_b": bias(base),
        "d1b_w": conv_tap(base, base),       "d1b_b": bias(base),
        "out_w": 0.1 * jax.random.normal(next(ks), (3, base), jnp.float32),  # 1x1 head
        "out_b": bias(3),
    }

    def gate_tap(cin, cout, scale=0.1):
        # ConvLSTM cell conv (torch: (4*hid, in+hid, 3, 3)) split per gate (i,f,o,g)
        # and per source (x | h): per-tap layout (4, 9, hid, C).
        return scale * jax.random.normal(next(ks), (4, 9, cout, cin), jnp.float32)

    lstm = {
        "f_wx": gate_tap(hid, hid), "f_wh": gate_tap(hid, hid),
        "f_b": jnp.zeros((4, hid, 1), jnp.float32),
        "b_wx": gate_tap(hid, hid), "b_wh": gate_tap(hid, hid),
        "b_b": jnp.zeros((4, hid, 1), jnp.float32),
        # last_conv: Conv2d(6, 3, 3, pad=1); input channels [fwd(3), bwd(3)] split per source
        "last_wf": conv_tap(hid, 3), "last_wb": conv_tap(hid, 3),
        "last_b": bias(3),
    }
    return {"unet": unet, "lstm": lstm}


# ---------------------------------------------------------------------------

if __name__ == "__main__":
    key = jax.random.PRNGKey(0)
    k_x, k_p = jax.random.split(key)

    B, H, W = 2, 16, 16
    x = jax.random.normal(k_x, (B, 1, H, W), jnp.float32)   # NCHW, in_channels=1
    params = init_params(k_p)

    fwd = jax.jit(rnn_unet_config1_forward)
    out_unet, out = fwd(x, params)
    jax.block_until_ready((out_unet, out))

    assert out_unet.shape == (B, 3, H, W), out_unet.shape
    assert out.shape == (B, 3, H, W), out.shape
    assert bool(jnp.isfinite(out_unet).all()) and bool(jnp.isfinite(out).all())
    print("KERNEL_OK")
</pallas_src>

<mosaic_0001>
module attributes {stable_mosaic.version = 11 : i64} {
  func.func @_unet_kernel(%arg0: i32, %arg1: memref<1x1x256xf32, #tpu.memory_space<vmem>>, %arg2: memref<1x256xi32, #tpu.memory_space<vmem>>, %arg3: memref<1x256xi32, #tpu.memory_space<vmem>>, %arg4: memref<1x256xf32, #tpu.memory_space<vmem>>, %arg5: memref<1x256xf32, #tpu.memory_space<vmem>>, %arg6: memref<9x8x1xf32, #tpu.memory_space<vmem>>, %arg7: memref<8x1xf32, #tpu.memory_space<vmem>>, %arg8: memref<9x8x8xf32, #tpu.memory_space<vmem>>, %arg9: memref<8x1xf32, #tpu.memory_space<vmem>>, %arg10: memref<9x16x8xf32, #tpu.memory_space<vmem>>, %arg11: memref<16x1xf32, #tpu.memory_space<vmem>>, %arg12: memref<9x16x16xf32, #tpu.memory_space<vmem>>, %arg13: memref<16x1xf32, #tpu.memory_space<vmem>>, %arg14: memref<9x8x16xf32, #tpu.memory_space<vmem>>, %arg15: memref<8x1xf32, #tpu.memory_space<vmem>>, %arg16: memref<9x8x8xf32, #tpu.memory_space<vmem>>, %arg17: memref<9x8x8xf32, #tpu.memory_space<vmem>>, %arg18: memref<8x1xf32, #tpu.memory_space<vmem>>, %arg19: memref<9x8x8xf32, #tpu.memory_space<vmem>>, %arg20: memref<8x1xf32, #tpu.memory_space<vmem>>, %arg21: memref<3x8xf32, #tpu.memory_space<vmem>>, %arg22: memref<3x1xf32, #tpu.memory_space<vmem>>, %arg23: memref<1x3x256xf32, #tpu.memory_space<vmem>>) attributes {dimension_semantics = [#tpu.dimension_semantics<parallel>], iteration_bounds = array<i64: 2>, scalar_prefetch = 0 : i64, scratch_operands = 0 : i64, tpu.core_type = #tpu.core_type<tc>, window_params = [{transform_indices = @transform_0, window_bounds = array<i64: 1, 1, 256>}, {pipeline_mode = #tpu.pipeline_mode<synchronous>, transform_indices = @transform_1, window_bounds = array<i64: 1, 256>}, {pipeline_mode = #tpu.pipeline_mode<synchronous>, transform_indices = @transform_2, window_bounds = array<i64: 1, 256>}, {pipeline_mode = #tpu.pipeline_mode<synchronous>, transform_indices = @transform_3, window_bounds = array<i64: 1, 256>}, {pipeline_mode = #tpu.pipeline_mode<synchronous>, transform_indices = @transform_4, window_bounds = array<i64: 1, 256>}, {pipeline_mode = #tpu.pipeline_mode<synchronous>, transform_indices = @transform_5, window_bounds = array<i64: 9, 8, 1>}, {pipeline_mode = #tpu.pipeline_mode<synchronous>, transform_indices = @transform_6, window_bounds = array<i64: 8, 1>}, {pipeline_mode = #tpu.pipeline_mode<synchronous>, transform_indices = @transform_7, window_bounds = array<i64: 9, 8, 8>}, {pipeline_mode = #tpu.pipeline_mode<synchronous>, transform_indices = @transform_8, window_bounds = array<i64: 8, 1>}, {pipeline_mode = #tpu.pipeline_mode<synchronous>, transform_indices = @transform_9, window_bounds = array<i64: 9, 16, 8>}, {pipeline_mode = #tpu.pipeline_mode<synchronous>, transform_indices = @transform_10, window_bounds = array<i64: 16, 1>}, {pipeline_mode = #tpu.pipeline_mode<synchronous>, transform_indices = @transform_11, window_bounds = array<i64: 9, 16, 16>}, {pipeline_mode = #tpu.pipeline_mode<synchronous>, transform_indices = @transform_12, window_bounds = array<i64: 16, 1>}, {pipeline_mode = #tpu.pipeline_mode<synchronous>, transform_indices = @transform_13, window_bounds = array<i64: 9, 8, 16>}, {pipeline_mode = #tpu.pipeline_mode<synchronous>, transform_indices = @transform_14, window_bounds = array<i64: 8, 1>}, {pipeline_mode = #tpu.pipeline_mode<synchronous>, transform_indices = @transform_15, window_bounds = array<i64: 9, 8, 8>}, {pipeline_mode = #tpu.pipeline_mode<synchronous>, transform_indices = @transform_16, window_bounds = array<i64: 9, 8, 8>}, {pipeline_mode = #tpu.pipeline_mode<synchronous>, transform_indices = @transform_17, window_bounds = array<i64: 8, 1>}, {pipeline_mode = #tpu.pipeline_mode<synchronous>, transform_indices = @transform_18, window_bounds = array<i64: 9, 8, 8>}, {pipeline_mode = #tpu.pipeline_mode<synchronous>, transform_indices = @transform_19, window_bounds = array<i64: 8, 1>}, {pipeline_mode = #tpu.pipeline_mode<synchronous>, transform_indices = @transform_20, window_bounds = array<i64: 3, 8>}, {pipeline_mode = #tpu.pipeline_mode<synchronous>, transform_indices = @transform_21, window_bounds = array<i64: 3, 1>}, {transform_indices = @transform_22, window_bounds = array<i64: 1, 3, 256>}]} {
    %c0 = arith.constant 0 : index
    %c0_0 = arith.constant 0 : index
    %0 = vector.load %arg2[%c0, %c0_0] : memref<1x256xi32, #tpu.memory_space<vmem>>, vector<1x256xi32>
    %c0_1 = arith.constant 0 : index
    %c0_2 = arith.constant 0 : index
    %1 = vector.load %arg3[%c0_1, %c0_2] : memref<1x256xi32, #tpu.memory_space<vmem>>, vector<1x256xi32>
    %c0_3 = arith.constant 0 : index
    %c0_4 = arith.constant 0 : index
    %2 = vector.load %arg4[%c0_3, %c0_4] : memref<1x256xf32, #tpu.memory_space<vmem>>, vector<1x256xf32>
    %c0_5 = arith.constant 0 : index
    %c0_6 = arith.constant 0 : index
    %3 = vector.load %arg5[%c0_5, %c0_6] : memref<1x256xf32, #tpu.memory_space<vmem>>, vector<1x256xf32>
    %c1_i32 = arith.constant 1 : i32
    %4 = vector.broadcast %c1_i32 : i32 to vector<1x256xi32>
    %5 = arith.cmpi sge, %1, %4 : vector<1x256xi32>
    %cst = arith.constant 1.000000e+00 : f32
    %cst_7 = arith.constant 0.000000e+00 : f32
    %6 = vector.broadcast %cst : f32 to vector<1x256xf32>
    %7 = vector.broadcast %cst_7 : f32 to vector<1x256xf32>
    %8 = arith.select %5, %6, %7 : vector<1x256xi1>, vector<1x256xf32>
    %c1_i32_8 = arith.constant 1 : i32
    %9 = vector.broadcast %c1_i32_8 : i32 to vector<1x256xi32>
    %10 = arith.cmpi sge, %0, %9 : vector<1x256xi32>
    %cst_9 = arith.constant 1.000000e+00 : f32
    %cst_10 = arith.constant 0.000000e+00 : f32
    %11 = vector.broadcast %cst_9 : f32 to vector<1x256xf32>
    %12 = vector.broadcast %cst_10 : f32 to vector<1x256xf32>
    %13 = arith.select %10, %11, %12 : vector<1x256xi1>, vector<1x256xf32>
    %14 = arith.mulf %8, %13 : vector<1x256xf32>
    %c1_i32_11 = arith.constant 1 : i32
    %15 = vector.broadcast %c1_i32_11 : i32 to vector<1x256xi32>
    %16 = arith.cmpi sge, %1, %15 : vector<1x256xi32>
    %cst_12 = arith.constant 1.000000e+00 : f32
    %cst_13 = arith.constant 0.000000e+00 : f32
    %17 = vector.broadcast %cst_12 : f32 to vector<1x256xf32>
    %18 = vector.broadcast %cst_13 : f32 to vector<1x256xf32>
    %19 = arith.select %16, %17, %18 : vector<1x256xi1>, vector<1x256xf32>
    %c1_i32_14 = arith.constant 1 : i32
    %20 = vector.broadcast %c1_i32_14 : i32 to vector<1x256xi32>
    %21 = arith.cmpi sge, %1, %20 : vector<1x256xi32>
    %cst_15 = arith.constant 1.000000e+00 : f32
    %cst_16 = arith.constant 0.000000e+00 : f32
    %22 = vector.broadcast %cst_15 : f32 to vector<1x256xf32>
    %23 = vector.broadcast %cst_16 : f32 to vector<1x256xf32>
    %24 = arith.select %21, %22, %23 : vector<1x256xi1>, vector<1x256xf32>
    %c15_i32 = arith.constant 15 : i32
    %25 = vector.broadcast %c15_i32 : i32 to vector<1x256xi32>
    %26 = arith.cmpi slt, %0, %25 : vector<1x256xi32>
    %cst_17 = arith.constant 1.000000e+00 : f32
    %cst_18 = arith.constant 0.000000e+00 : f32
    %27 = vector.broadcast %cst_17 : f32 to vector<1x256xf32>
    %28 = vector.broadcast %cst_18 : f32 to vector<1x256xf32>
    %29 = arith.select %26, %27, %28 : vector<1x256xi1>, vector<1x256xf32>
    %30 = arith.mulf %24, %29 : vector<1x256xf32>
    %c1_i32_19 = arith.constant 1 : i32
    %31 = vector.broadcast %c1_i32_19 : i32 to vector<1x256xi32>
    %32 = arith.cmpi sge, %0, %31 : vector<1x256xi32>
    %cst_20 = arith.constant 1.000000e+00 : f32
    %cst_21 = arith.constant 0.000000e+00 : f32
    %33 = vector.broadcast %cst_20 : f32 to vector<1x256xf32>
    %34 = vector.broadcast %cst_21 : f32 to vector<1x256xf32>
    %35 = arith.select %32, %33, %34 : vector<1x256xi1>, vector<1x256xf32>
    %c15_i32_22 = arith.constant 15 : i32
    %36 = vector.broadcast %c15_i32_22 : i32 to vector<1x256xi32>
    %37 = arith.cmpi slt, %0, %36 : vector<1x256xi32>
    %cst_23 = arith.constant 1.000000e+00 : f32
    %cst_24 = arith.constant 0.000000e+00 : f32
    %38 = vector.broadcast %cst_23 : f32 to vector<1x256xf32>
    %39 = vector.broadcast %cst_24 : f32 to vector<1x256xf32>
    %40 = arith.select %37, %38, %39 : vector<1x256xi1>, vector<1x256xf32>
    %c15_i32_25 = arith.constant 15 : i32
    %41 = vector.broadcast %c15_i32_25 : i32 to vector<1x256xi32>
    %42 = arith.cmpi slt, %1, %41 : vector<1x256xi32>
    %cst_26 = arith.constant 1.000000e+00 : f32
    %cst_27 = arith.constant 0.000000e+00 : f32
    %43 = vector.broadcast %cst_26 : f32 to vector<1x256xf32>
    %44 = vector.broadcast %cst_27 : f32 to vector<1x256xf32>
    %45 = arith.select %42, %43, %44 : vector<1x256xi1>, vector<1x256xf32>
    %c1_i32_28 = arith.constant 1 : i32
    %46 = vector.broadcast %c1_i32_28 : i32 to vector<1x256xi32>
    %47 = arith.cmpi sge, %0, %46 : vector<1x256xi32>
    %cst_29 = arith.constant 1.000000e+00 : f32
    %cst_30 = arith.constant 0.000000e+00 : f32
    %48 = vector.broadcast %cst_29 : f32 to vector<1x256xf32>
    %49 = vector.broadcast %cst_30 : f32 to vector<1x256xf32>
    %50 = arith.select %47, %48, %49 : vector<1x256xi1>, vector<1x256xf32>
    %51 = arith.mulf %45, %50 : vector<1x256xf32>
    %c15_i32_31 = arith.constant 15 : i32
    %52 = vector.broadcast %c15_i32_31 : i32 to vector<1x256xi32>
    %53 = arith.cmpi slt, %1, %52 : vector<1x256xi32>
    %cst_32 = arith.constant 1.000000e+00 : f32
    %cst_33 = arith.constant 0.000000e+00 : f32
    %54 = vector.broadcast %cst_32 : f32 to vector<1x256xf32>
    %55 = vector.broadcast %cst_33 : f32 to vector<1x256xf32>
    %56 = arith.select %53, %54, %55 : vector<1x256xi1>, vector<1x256xf32>
    %c15_i32_34 = arith.constant 15 : i32
    %57 = vector.broadcast %c15_i32_34 : i32 to vector<1x256xi32>
    %58 = arith.cmpi slt, %1, %57 : vector<1x256xi32>
    %cst_35 = arith.constant 1.000000e+00 : f32
    %cst_36 = arith.constant 0.000000e+00 : f32
    %59 = vector.broadcast %cst_35 : f32 to vector<1x256xf32>
    %60 = vector.broadcast %cst_36 : f32 to vector<1x256xf32>
    %61 = arith.select %58, %59, %60 : vector<1x256xi1>, vector<1x256xf32>
    %c15_i32_37 = arith.constant 15 : i32
    %62 = vector.broadcast %c15_i32_37 : i32 to vector<1x256xi32>
    %63 = arith.cmpi slt, %0, %62 : vector<1x256xi32>
    %cst_38 = arith.constant 1.000000e+00 : f32
    %cst_39 = arith.constant 0.000000e+00 : f32
    %64 = vector.broadcast %cst_38 : f32 to vector<1x256xf32>
    %65 = vector.broadcast %cst_39 : f32 to vector<1x256xf32>
    %66 = arith.select %63, %64, %65 : vector<1x256xi1>, vector<1x256xf32>
    %67 = arith.mulf %61, %66 : vector<1x256xf32>
    %c2_i32 = arith.constant 2 : i32
    %68 = vector.broadcast %c2_i32 : i32 to vector<1x256xi32>
    %69 = arith.cmpi sge, %1, %68 : vector<1x256xi32>
    %cst_40 = arith.constant 1.000000e+00 : f32
    %cst_41 = arith.constant 0.000000e+00 : f32
    %70 = vector.broadcast %cst_40 : f32 to vector<1x256xf32>
    %71 = vector.broadcast %cst_41 : f32 to vector<1x256xf32>
    %72 = arith.select %69, %70, %71 : vector<1x256xi1>, vector<1x256xf32>
    %c2_i32_42 = arith.constant 2 : i32
    %73 = vector.broadcast %c2_i32_42 : i32 to vector<1x256xi32>
    %74 = arith.cmpi sge, %0, %73 : vector<1x256xi32>
    %cst_43 = arith.constant 1.000000e+00 : f32
    %cst_44 = arith.constant 0.000000e+00 : f32
    %75 = vector.broadcast %cst_43 : f32 to vector<1x256xf32>
    %76 = vector.broadcast %cst_44 : f32 to vector<1x256xf32>
    %77 = arith.select %74, %75, %76 : vector<1x256xi1>, vector<1x256xf32>
    %78 = arith.mulf %72, %77 : vector<1x256xf32>
    %c2_i32_45 = arith.constant 2 : i32
    %79 = vector.broadcast %c2_i32_45 : i32 to vector<1x256xi32>
    %80 = arith.cmpi sge, %1, %79 : vector<1x256xi32>
    %cst_46 = arith.constant 1.000000e+00 : f32
    %cst_47 = arith.constant 0.000000e+00 : f32
    %81 = vector.broadcast %cst_46 : f32 to vector<1x256xf32>
    %82 = vector.broadcast %cst_47 : f32 to vector<1x256xf32>
    %83 = arith.select %80, %81, %82 : vector<1x256xi1>, vector<1x256xf32>
    %c2_i32_48 = arith.constant 2 : i32
    %84 = vector.broadcast %c2_i32_48 : i32 to vector<1x256xi32>
    %85 = arith.cmpi sge, %1, %84 : vector<1x256xi32>
    %cst_49 = arith.constant 1.000000e+00 : f32
    %cst_50 = arith.constant 0.000000e+00 : f32
    %86 = vector.broadcast %cst_49 : f32 to vector<1x256xf32>
    %87 = vector.broadcast %cst_50 : f32 to vector<1x256xf32>
    %88 = arith.select %85, %86, %87 : vector<1x256xi1>, vector<1x256xf32>
    %c14_i32 = arith.constant 14 : i32
    %89 = vector.broadcast %c14_i32 : i32 to vector<1x256xi32>
    %90 = arith.cmpi slt, %0, %89 : vector<1x256xi32>
    %cst_51 = arith.constant 1.000000e+00 : f32
    %cst_52 = arith.constant 0.000000e+00 : f32
    %91 = vector.broadcast %cst_51 : f32 to vector<1x256xf32>
    %92 = vector.broadcast %cst_52 : f32 to vector<1x256xf32>
    %93 = arith.select %90, %91, %92 : vector<1x256xi1>, vector<1x256xf32>
    %94 = arith.mulf %88, %93 : vector<1x256xf32>
    %c2_i32_53 = arith.constant 2 : i32
    %95 = vector.broadcast %c2_i32_53 : i32 to vector<1x256xi32>
    %96 = arith.cmpi sge, %0, %95 : vector<1x256xi32>
    %cst_54 = arith.constant 1.000000e+00 : f32
    %cst_55 = arith.constant 0.000000e+00 : f32
    %97 = vector.broadcast %cst_54 : f32 to vector<1x256xf32>
    %98 = vector.broadcast %cst_55 : f32 to vector<1x256xf32>
    %99 = arith.select %96, %97, %98 : vector<1x256xi1>, vector<1x256xf32>
    %c14_i32_56 = arith.constant 14 : i32
    %100 = vector.broadcast %c14_i32_56 : i32 to vector<1x256xi32>
    %101 = arith.cmpi slt, %0, %100 : vector<1x256xi32>
    %cst_57 = arith.constant 1.000000e+00 : f32
    %cst_58 = arith.constant 0.000000e+00 : f32
    %102 = vector.broadcast %cst_57 : f32 to vector<1x256xf32>
    %103 = vector.broadcast %cst_58 : f32 to vector<1x256xf32>
    %104 = arith.select %101, %102, %103 : vector<1x256xi1>, vector<1x256xf32>
    %c14_i32_59 = arith.constant 14 : i32
    %105 = vector.broadcast %c14_i32_59 : i32 to vector<1x256xi32>
    %106 = arith.cmpi slt, %1, %105 : vector<1x256xi32>
    %cst_60 = arith.constant 1.000000e+00 : f32
    %cst_61 = arith.constant 0.000000e+00 : f32
    %107 = vector.broadcast %cst_60 : f32 to vector<1x256xf32>
    %108 = vector.broadcast %cst_61 : f32 to vector<1x256xf32>
    %109 = arith.select %106, %107, %108 : vector<1x256xi1>, vector<1x256xf32>
    %c2_i32_62 = arith.constant 2 : i32
    %110 = vector.broadcast %c2_i32_62 : i32 to vector<1x256xi32>
    %111 = arith.cmpi sge, %0, %110 : vector<1x256xi32>
    %cst_63 = arith.constant 1.000000e+00 : f32
    %cst_64 = arith.constant 0.000000e+00 : f32
    %112 = vector.broadcast %cst_63 : f32 to vector<1x256xf32>
    %113 = vector.broadcast %cst_64 : f32 to vector<1x256xf32>
    %114 = arith.select %111, %112, %113 : vector<1x256xi1>, vector<1x256xf32>
    %115 = arith.mulf %109, %114 : vector<1x256xf32>
    %c14_i32_65 = arith.constant 14 : i32
    %116 = vector.broadcast %c14_i32_65 : i32 to vector<1x256xi32>
    %117 = arith.cmpi slt, %1, %116 : vector<1x256xi32>
    %cst_66 = arith.constant 1.000000e+00 : f32
    %cst_67 = arith.constant 0.000000e+00 : f32
    %118 = vector.broadcast %cst_66 : f32 to vector<1x256xf32>
    %119 = vector.broadcast %cst_67 : f32 to vector<1x256xf32>
    %120 = arith.select %117, %118, %119 : vector<1x256xi1>, vector<1x256xf32>
    %c14_i32_68 = arith.constant 14 : i32
    %121 = vector.broadcast %c14_i32_68 : i32 to vector<1x256xi32>
    %122 = arith.cmpi slt, %1, %121 : vector<1x256xi32>
    %cst_69 = arith.constant 1.000000e+00 : f32
    %cst_70 = arith.constant 0.000000e+00 : f32
    %123 = vector.broadcast %cst_69 : f32 to vector<1x256xf32>
    %124 = vector.broadcast %cst_70 : f32 to vector<1x256xf32>
    %125 = arith.select %122, %123, %124 : vector<1x256xi1>, vector<1x256xf32>
    %c14_i32_71 = arith.constant 14 : i32
    %126 = vector.broadcast %c14_i32_71 : i32 to vector<1x256xi32>
    %127 = arith.cmpi slt, %0, %126 : vector<1x256xi32>
    %cst_72 = arith.constant 1.000000e+00 : f32
    %cst_73 = arith.constant 0.000000e+00 : f32
    %128 = vector.broadcast %cst_72 : f32 to vector<1x256xf32>
    %129 = vector.broadcast %cst_73 : f32 to vector<1x256xf32>
    %130 = arith.select %127, %128, %129 : vector<1x256xi1>, vector<1x256xf32>
    %131 = arith.mulf %125, %130 : vector<1x256xf32>
    %c0_74 = arith.constant 0 : index
    %c0_75 = arith.constant 0 : index
    %c0_76 = arith.constant 0 : index
    %132 = vector.load %arg1[%c0_74, %c0_75, %c0_76] : memref<1x1x256xf32, #tpu.memory_space<vmem>>, vector<1x1x256xf32>
    %133 = vector.shape_cast %132 : vector<1x1x256xf32> to vector<1x256xf32>
    %c0_77 = arith.constant 0 : index
    %c0_78 = arith.constant 0 : index
    %134 = vector.load %arg7[%c0_77, %c0_78] : memref<8x1xf32, #tpu.memory_space<vmem>>, vector<8x1xf32>
    %c17_i32 = arith.constant 17 : i32
    %135 = tpu.dynamic_rotate %133 by %c17_i32 dim 1 : vector<1x256xf32>, i32 -> vector<1x256xf32>
    %136 = arith.mulf %135, %14 : vector<1x256xf32>
    %c16_i32 = arith.constant 16 : i32
    %137 = tpu.dynamic_rotate %133 by %c16_i32 dim 1 : vector<1x256xf32>, i32 -> vector<1x256xf32>
    %138 = arith.mulf %137, %19 : vector<1x256xf32>
    %c15_i32_79 = arith.constant 15 : i32
    %139 = tpu.dynamic_rotate %133 by %c15_i32_79 dim 1 : vector<1x256xf32>, i32 -> vector<1x256xf32>
    %140 = arith.mulf %139, %30 : vector<1x256xf32>
    %c1_i32_80 = arith.constant 1 : i32
    %141 = tpu.dynamic_rotate %133 by %c1_i32_80 dim 1 : vector<1x256xf32>, i32 -> vector<1x256xf32>
    %142 = arith.mulf %141, %35 : vector<1x256xf32>
    %c255_i32 = arith.constant 255 : i32
    %143 = tpu.dynamic_rotate %133 by %c255_i32 dim 1 : vector<1x256xf32>, i32 -> vector<1x256xf32>
    %144 = arith.mulf %143, %40 : vector<1x256xf32>
    %c241_i32 = arith.constant 241 : i32
    %145 = tpu.dynamic_rotate %133 by %c241_i32 dim 1 : vector<1x256xf32>, i32 -> vector<1x256xf32>
    %146 = arith.mulf %145, %51 : vector<1x256xf32>
    %c240_i32 = arith.constant 240 : i32
    %147 = tpu.dynamic_rotate %133 by %c240_i32 dim 1 : vector<1x256xf32>, i32 -> vector<1x256xf32>
    %148 = arith.mulf %147, %56 : vector<1x256xf32>
    %c239_i32 = arith.constant 239 : i32
    %149 = tpu.dynamic_rotate %133 by %c239_i32 dim 1 : vector<1x256xf32>, i32 -> vector<1x256xf32>
    %150 = arith.mulf %149, %67 : vector<1x256xf32>
    %c0_81 = arith.constant 0 : index
    %c0_82 = arith.constant 0 : index
    %c0_83 = arith.constant 0 : index
    %151 = vector.load %arg6[%c0_81, %c0_82, %c0_83] : memref<9x8x1xf32, #tpu.memory_space<vmem>>, vector<1x8x1xf32>
    %152 = vector.shape_cast %151 : vector<1x8x1xf32> to vector<8x1xf32>
    %153 = vector.broadcast %152 : vector<8x1xf32> to vector<8x256xf32>
    %154 = vector.broadcast %136 : vector<1x256xf32> to vector<8x256xf32>
    %155 = arith.mulf %153, %154 : vector<8x256xf32>
    %c1 = arith.constant 1 : index
    %c0_84 = arith.constant 0 : index
    %c0_85 = arith.constant 0 : index
    %156 = vector.load %arg6[%c1, %c0_84, %c0_85] : memref<9x8x1xf32, #tpu.memory_space<vmem>>, vector<1x8x1xf32>
    %157 = vector.shape_cast %156 : vector<1x8x1xf32> to vector<8x1xf32>
    %158 = vector.broadcast %157 : vector<8x1xf32> to vector<8x256xf32>
    %159 = vector.broadcast %138 : vector<1x256xf32> to vector<8x256xf32>
    %160 = arith.mulf %158, %159 : vector<8x256xf32>
    %161 = arith.addf %155, %160 : vector<8x256xf32>
    %c2 = arith.constant 2 : index
    %c0_86 = arith.constant 0 : index
    %c0_87 = arith.constant 0 : index
    %162 = vector.load %arg6[%c2, %c0_86, %c0_87] : memref<9x8x1xf32, #tpu.memory_space<vmem>>, vector<1x8x1xf32>
    %163 = vector.shape_cast %162 : vector<1x8x1xf32> to vector<8x1xf32>
    %164 = vector.broadcast %163 : vector<8x1xf32> to vector<8x256xf32>
    %165 = vector.broadcast %140 : vector<1x256xf32> to vector<8x256xf32>
    %166 = arith.mulf %164, %165 : vector<8x256xf32>
    %167 = arith.addf %161, %166 : vector<8x256xf32>
    %c3 = arith.constant 3 : index
    %c0_88 = arith.constant 0 : index
    %c0_89 = arith.constant 0 : index
    %168 = vector.load %arg6[%c3, %c0_88, %c0_89] : memref<9x8x1xf32, #tpu.memory_space<vmem>>, vector<1x8x1xf32>
    %169 = vector.shape_cast %168 : vector<1x8x1xf32> to vector<8x1xf32>
    %170 = vector.broadcast %169 : vector<8x1xf32> to vector<8x256xf32>
    %171 = vector.broadcast %142 : vector<1x256xf32> to vector<8x256xf32>
    %172 = arith.mulf %170, %171 : vector<8x256xf32>
    %173 = arith.addf %167, %172 : vector<8x256xf32>
    %c4 = arith.constant 4 : index
    %c0_90 = arith.constant 0 : index
    %c0_91 = arith.constant 0 : index
    %174 = vector.load %arg6[%c4, %c0_90, %c0_91] : memref<9x8x1xf32, #tpu.memory_space<vmem>>, vector<1x8x1xf32>
    %175 = vector.shape_cast %174 : vector<1x8x1xf32> to vector<8x1xf32>
    %176 = vector.broadcast %175 : vector<8x1xf32> to vector<8x256xf32>
    %177 = vector.broadcast %133 : vector<1x256xf32> to vector<8x256xf32>
    %178 = arith.mulf %176, %177 : vector<8x256xf32>
    %179 = arith.addf %173, %178 : vector<8x256xf32>
    %c5 = arith.constant 5 : index
    %c0_92 = arith.constant 0 : index
    %c0_93 = arith.constant 0 : index
    %180 = vector.load %arg6[%c5, %c0_92, %c0_93] : memref<9x8x1xf32, #tpu.memory_space<vmem>>, vector<1x8x1xf32>
    %181 = vector.shape_cast %180 : vector<1x8x1xf32> to vector<8x1xf32>
    %182 = vector.broadcast %181 : vector<8x1xf32> to vector<8x256xf32>
    %183 = vector.broadcast %144 : vector<1x256xf32> to vector<8x256xf32>
    %184 = arith.mulf %182, %183 : vector<8x256xf32>
    %185 = arith.addf %179, %184 : vector<8x256xf32>
    %c6 = arith.constant 6 : index
    %c0_94 = arith.constant 0 : index
    %c0_95 = arith.constant 0 : index
    %186 = vector.load %arg6[%c6, %c0_94, %c0_95] : memref<9x8x1xf32, #tpu.memory_space<vmem>>, vector<1x8x1xf32>
    %187 = vector.shape_cast %186 : vector<1x8x1xf32> to vector<8x1xf32>
    %188 = vector.broadcast %187 : vector<8x1xf32> to vector<8x256xf32>
    %189 = vector.broadcast %146 : vector<1x256xf32> to vector<8x256xf32>
    %190 = arith.mulf %188, %189 : vector<8x256xf32>
    %191 = arith.addf %185, %190 : vector<8x256xf32>
    %c7 = arith.constant 7 : index
    %c0_96 = arith.constant 0 : index
    %c0_97 = arith.constant 0 : index
    %192 = vector.load %arg6[%c7, %c0_96, %c0_97] : memref<9x8x1xf32, #tpu.memory_space<vmem>>, vector<1x8x1xf32>
    %193 = vector.shape_cast %192 : vector<1x8x1xf32> to vector<8x1xf32>
    %194 = vector.broadcast %193 : vector<8x1xf32> to vector<8x256xf32>
    %195 = vector.broadcast %148 : vector<1x256xf32> to vector<8x256xf32>
    %196 = arith.mulf %194, %195 : vector<8x256xf32>
    %197 = arith.addf %191, %196 : vector<8x256xf32>
    %c8 = arith.constant 8 : index
    %c0_98 = arith.constant 0 : index
    %c0_99 = arith.constant 0 : index
    %198 = vector.load %arg6[%c8, %c0_98, %c0_99] : memref<9x8x1xf32, #tpu.memory_space<vmem>>, vector<1x8x1xf32>
    %199 = vector.shape_cast %198 : vector<1x8x1xf32> to vector<8x1xf32>
    %200 = vector.broadcast %199 : vector<8x1xf32> to vector<8x256xf32>
    %201 = vector.broadcast %150 : vector<1x256xf32> to vector<8x256xf32>
    %202 = arith.mulf %200, %201 : vector<8x256xf32>
    %203 = arith.addf %197, %202 : vector<8x256xf32>
    %204 = vector.broadcast %134 : vector<8x1xf32> to vector<8x256xf32>
    %205 = arith.addf %203, %204 : vector<8x256xf32>
    %cst_100 = arith.constant 0.000000e+00 : f32
    %206 = vector.broadcast %cst_100 : f32 to vector<8x256xf32>
    %207 = arith.maximumf %205, %206 : vector<8x256xf32>
    %c0_101 = arith.constant 0 : index
    %c0_102 = arith.constant 0 : index
    %208 = vector.load %arg9[%c0_101, %c0_102] : memref<8x1xf32, #tpu.memory_space<vmem>>, vector<8x1xf32>
    %c17_i32_103 = arith.constant 17 : i32
    %209 = tpu.dynamic_rotate %207 by %c17_i32_103 dim 1 : vector<8x256xf32>, i32 -> vector<8x256xf32>
    %210 = vector.broadcast %14 : vector<1x256xf32> to vector<8x256xf32>
    %211 = arith.mulf %209, %210 : vector<8x256xf32>
    %c16_i32_104 = arith.constant 16 : i32
    %212 = tpu.dynamic_rotate %207 by %c16_i32_104 dim 1 : vector<8x256xf32>, i32 -> vector<8x256xf32>
    %213 = vector.broadcast %19 : vector<1x256xf32> to vector<8x256xf32>
    %214 = arith.mulf %212, %213 : vector<8x256xf32>
    %c15_i32_105 = arith.constant 15 : i32
    %215 = tpu.dynamic_rotate %207 by %c15_i32_105 dim 1 : vector<8x256xf32>, i32 -> vector<8x256xf32>
    %216 = vector.broadcast %30 : vector<1x256xf32> to vector<8x256xf32>
    %217 = arith.mulf %215, %216 : vector<8x256xf32>
    %c1_i32_106 = arith.constant 1 : i32
    %218 = tpu.dynamic_rotate %207 by %c1_i32_106 dim 1 : vector<8x256xf32>, i32 -> vector<8x256xf32>
    %219 = vector.broadcast %35 : vector<1x256xf32> to vector<8x256xf32>
    %220 = arith.mulf %218, %219 : vector<8x256xf32>
    %c255_i32_107 = arith.constant 255 : i32
    %221 = tpu.dynamic_rotate %207 by %c255_i32_107 dim 1 : vector<8x256xf32>, i32 -> vector<8x256xf32>
    %222 = vector.broadcast %40 : vector<1x256xf32> to vector<8x256xf32>
    %223 = arith.mulf %221, %222 : vector<8x256xf32>
    %c241_i32_108 = arith.constant 241 : i32
    %224 = tpu.dynamic_rotate %207 by %c241_i32_108 dim 1 : vector<8x256xf32>, i32 -> vector<8x256xf32>
    %225 = vector.broadcast %51 : vector<1x256xf32> to vector<8x256xf32>
    %226 = arith.mulf %224, %225 : vector<8x256xf32>
    %c240_i32_109 = arith.constant 240 : i32
    %227 = tpu.dynamic_rotate %207 by %c240_i32_109 dim 1 : vector<8x256xf32>, i32 -> vector<8x256xf32>
    %228 = vector.broadcast %56 : vector<1x256xf32> to vector<8x256xf32>
    %229 = arith.mulf %227, %228 : vector<8x256xf32>
    %c239_i32_110 = arith.constant 239 : i32
    %230 = tpu.dynamic_rotate %207 by %c239_i32_110 dim 1 : vector<8x256xf32>, i32 -> vector<8x256xf32>
    %231 = vector.broadcast %67 : vector<1x256xf32> to vector<8x256xf32>
    %232 = arith.mulf %230, %231 : vector<8x256xf32>
    %c0_111 = arith.constant 0 : index
    %c0_112 = arith.constant 0 : index
    %c0_113 = arith.constant 0 : index
    %233 = vector.load %arg8[%c0_111, %c0_112, %c0_113] : memref<9x8x8xf32, #tpu.memory_space<vmem>>, vector<1x8x8xf32>
    %234 = vector.shape_cast %233 : vector<1x8x8xf32> to vector<8x8xf32>
    %cst_114 = arith.constant dense<0.000000e+00> : vector<8x256xf32>
    %235 = tpu.matmul %234, %211, %cst_114 {dimension_numbers = #tpu.dot_dimension_numbers<[1], [0], [0], [1], [0, 0, 1, 1], [], []>} : vector<8x8xf32>, vector<8x256xf32>, vector<8x256xf32> -> vector<8x256xf32>
    %c1_115 = arith.constant 1 : index
    %c0_116 = arith.constant 0 : index
    %c0_117 = arith.constant 0 : index
    %236 = vector.load %arg8[%c1_115, %c0_116, %c0_117] : memref<9x8x8xf32, #tpu.memory_space<vmem>>, vector<1x8x8xf32>
    %237 = vector.shape_cast %236 : vector<1x8x8xf32> to vector<8x8xf32>
    %cst_118 = arith.constant dense<0.000000e+00> : vector<8x256xf32>
    %238 = tpu.matmul %237, %214, %cst_118 {dimension_numbers = #tpu.dot_dimension_numbers<[1], [0], [0], [1], [0, 0, 1, 1], [], []>} : vector<8x8xf32>, vector<8x256xf32>, vector<8x256xf32> -> vector<8x256xf32>
    %239 = arith.addf %235, %238 : vector<8x256xf32>
    %c2_119 = arith.constant 2 : index
    %c0_120 = arith.constant 0 : index
    %c0_121 = arith.constant 0 : index
    %240 = vector.load %arg8[%c2_119, %c0_120, %c0_121] : memref<9x8x8xf32, #tpu.memory_space<vmem>>, vector<1x8x8xf32>
    %241 = vector.shape_cast %240 : vector<1x8x8xf32> to vector<8x8xf32>
    %cst_122 = arith.constant dense<0.000000e+00> : vector<8x256xf32>
    %242 = tpu.matmul %241, %217, %cst_122 {dimension_numbers = #tpu.dot_dimension_numbers<[1], [0], [0], [1], [0, 0, 1, 1], [], []>} : vector<8x8xf32>, vector<8x256xf32>, vector<8x256xf32> -> vector<8x256xf32>
    %243 = arith.addf %239, %242 : vector<8x256xf32>
    %c3_123 = arith.constant 3 : index
    %c0_124 = arith.constant 0 : index
    %c0_125 = arith.constant 0 : index
    %244 = vector.load %arg8[%c3_123, %c0_124, %c0_125] : memref<9x8x8xf32, #tpu.memory_space<vmem>>, vector<1x8x8xf32>
    %245 = vector.shape_cast %244 : vector<1x8x8xf32> to vector<8x8xf32>
    %cst_126 = arith.constant dense<0.000000e+00> : vector<8x256xf32>
    %246 = tpu.matmul %245, %220, %cst_126 {dimension_numbers = #tpu.dot_dimension_numbers<[1], [0], [0], [1], [0, 0, 1, 1], [], []>} : vector<8x8xf32>, vector<8x256xf32>, vector<8x256xf32> -> vector<8x256xf32>
    %247 = arith.addf %243, %246 : vector<8x256xf32>
    %c4_127 = arith.constant 4 : index
    %c0_128 = arith.constant 0 : index
    %c0_129 = arith.constant 0 : index
    %248 = vector.load %arg8[%c4_127, %c0_128, %c0_129] : memref<9x8x8xf32, #tpu.memory_space<vmem>>, vector<1x8x8xf32>
    %249 = vector.shape_cast %248 : vector<1x8x8xf32> to vector<8x8xf32>
    %cst_130 = arith.constant dense<0.000000e+00> : vector<8x256xf32>
    %250 = tpu.matmul %249, %207, %cst_130 {dimension_numbers = #tpu.dot_dimension_numbers<[1], [0], [0], [1], [0, 0, 1, 1], [], []>} : vector<8x8xf32>, vector<8x256xf32>, vector<8x256xf32> -> vector<8x256xf32>
    %251 = arith.addf %247, %250 : vector<8x256xf32>
    %c5_131 = arith.constant 5 : index
    %c0_132 = arith.constant 0 : index
    %c0_133 = arith.constant 0 : index
    %252 = vector.load %arg8[%c5_131, %c0_132, %c0_133] : memref<9x8x8xf32, #tpu.memory_space<vmem>>, vector<1x8x8xf32>
    %253 = vector.shape_cast %252 : vector<1x8x8xf32> to vector<8x8xf32>
    %cst_134 = arith.constant dense<0.000000e+00> : vector<8x256xf32>
    %254 = tpu.matmul %253, %223, %cst_134 {dimension_numbers = #tpu.dot_dimension_numbers<[1], [0], [0], [1], [0, 0, 1, 1], [], []>} : vector<8x8xf32>, vector<8x256xf32>, vector<8x256xf32> -> vector<8x256xf32>
    %255 = arith.addf %251, %254 : vector<8x256xf32>
    %c6_135 = arith.constant 6 : index
    %c0_136 = arith.constant 0 : index
    %c0_137 = arith.constant 0 : index
    %256 = vector.load %arg8[%c6_135, %c0_136, %c0_137] : memref<9x8x8xf32, #tpu.memory_space<vmem>>, vector<1x8x8xf32>
    %257 = vector.shape_cast %256 : vector<1x8x8xf32> to vector<8x8xf32>
    %cst_138 = arith.constant dense<0.000000e+00> : vector<8x256xf32>
    %258 = tpu.matmul %257, %226, %cst_138 {dimension_numbers = #tpu.dot_dimension_numbers<[1], [0], [0], [1], [0, 0, 1, 1], [], []>} : vector<8x8xf32>, vector<8x256xf32>, vector<8x256xf32> -> vector<8x256xf32>
    %259 = arith.addf %255, %258 : vector<8x256xf32>
    %c7_139 = arith.constant 7 : index
    %c0_140 = arith.constant 0 : index
    %c0_141 = arith.constant 0 : index
    %260 = vector.load %arg8[%c7_139, %c0_140, %c0_141] : memref<9x8x8xf32, #tpu.memory_space<vmem>>, vector<1x8x8xf32>
    %261 = vector.shape_cast %260 : vector<1x8x8xf32> to vector<8x8xf32>
    %cst_142 = arith.constant dense<0.000000e+00> : vector<8x256xf32>
    %262 = tpu.matmul %261, %229, %cst_142 {dimension_numbers = #tpu.dot_dimension_numbers<[1], [0], [0], [1], [0, 0, 1, 1], [], []>} : vector<8x8xf32>, vector<8x256xf32>, vector<8x256xf32> -> vector<8x256xf32>
    %263 = arith.addf %259, %262 : vector<8x256xf32>
    %c8_143 = arith.constant 8 : index
    %c0_144 = arith.constant 0 : index
    %c0_145 = arith.constant 0 : index
    %264 = vector.load %arg8[%c8_143, %c0_144, %c0_145] : memref<9x8x8xf32, #tpu.memory_space<vmem>>, vector<1x8x8xf32>
    %265 = vector.shape_cast %264 : vector<1x8x8xf32> to vector<8x8xf32>
    %cst_146 = arith.constant dense<0.000000e+00> : vector<8x256xf32>
    %266 = tpu.matmul %265, %232, %cst_146 {dimension_numbers = #tpu.dot_dimension_numbers<[1], [0], [0], [1], [0, 0, 1, 1], [], []>} : vector<8x8xf32>, vector<8x256xf32>, vector<8x256xf32> -> vector<8x256xf32>
    %267 = arith.addf %263, %266 : vector<8x256xf32>
    %268 = vector.broadcast %208 : vector<8x1xf32> to vector<8x256xf32>
    %269 = arith.addf %267, %268 : vector<8x256xf32>
    %cst_147 = arith.constant 0.000000e+00 : f32
    %270 = vector.broadcast %cst_147 : f32 to vector<8x256xf32>
    %271 = arith.maximumf %269, %270 : vector<8x256xf32>
    %c255_i32_148 = arith.constant 255 : i32
    %272 = tpu.dynamic_rotate %271 by %c255_i32_148 dim 1 : vector<8x256xf32>, i32 -> vector<8x256xf32>
    %c1_i32_149 = arith.constant 1 : i32
    %273 = tpu.dynamic_rotate %271 by %c1_i32_149 dim 1 : vector<8x256xf32>, i32 -> vector<8x256xf32>
    %274 = vector.broadcast %2 : vector<1x256xf32> to vector<8x256xf32>
    %275 = arith.mulf %274, %272 : vector<8x256xf32>
    %cst_150 = arith.constant 1.000000e+00 : f32
    %276 = vector.broadcast %cst_150 : f32 to vector<1x256xf32>
    %277 = arith.subf %276, %2 : vector<1x256xf32>
    %278 = vector.broadcast %277 : vector<1x256xf32> to vector<8x256xf32>
    %279 = arith.mulf %278, %273 : vector<8x256xf32>
    %280 = arith.addf %275, %279 : vector<8x256xf32>
    %281 = arith.maximumf %271, %280 : vector<8x256xf32>
    %c240_i32_151 = arith.constant 240 : i32
    %282 = tpu.dynamic_rotate %281 by %c240_i32_151 dim 1 : vector<8x256xf32>, i32 -> vector<8x256xf32>
    %c16_i32_152 = arith.constant 16 : i32
    %283 = tpu.dynamic_rotate %281 by %c16_i32_152 dim 1 : vector<8x256xf32>, i32 -> vector<8x256xf32>
    %284 = vector.broadcast %3 : vector<1x256xf32> to vector<8x256xf32>
    %285 = arith.mulf %284, %282 : vector<8x256xf32>
    %cst_153 = arith.constant 1.000000e+00 : f32
    %286 = vector.broadcast %cst_153 : f32 to vector<1x256xf32>
    %287 = arith.subf %286, %3 : vector<1x256xf32>
    %288 = vector.broadcast %287 : vector<1x256xf32> to vector<8x256xf32>
    %289 = arith.mulf %288, %283 : vector<8x256xf32>
    %290 = arith.addf %285, %289 : vector<8x256xf32>
    %291 = arith.maximumf %281, %290 : vector<8x256xf32>
    %c0_154 = arith.constant 0 : index
    %c0_155 = arith.constant 0 : index
    %292 = vector.load %arg11[%c0_154, %c0_155] : memref<16x1xf32, #tpu.memory_space<vmem>>, vector<16x1xf32>
    %c34_i32 = arith.constant 34 : i32
    %293 = tpu.dynamic_rotate %291 by %c34_i32 dim 1 : vector<8x256xf32>, i32 -> vector<8x256xf32>
    %294 = vector.broadcast %78 : vector<1x256xf32> to vector<8x256xf32>
    %295 = arith.mulf %293, %294 : vector<8x256xf32>
    %c32_i32 = arith.constant 32 : i32
    %296 = tpu.dynamic_rotate %291 by %c32_i32 dim 1 : vector<8x256xf32>, i32 -> vector<8x256xf32>
    %297 = vector.broadcast %83 : vector<1x256xf32> to vector<8x256xf32>
    %298 = arith.mulf %296, %297 : vector<8x256xf32>
    %c30_i32 = arith.constant 30 : i32
    %299 = tpu.dynamic_rotate %291 by %c30_i32 dim 1 : vector<8x256xf32>, i32 -> vector<8x256xf32>
    %300 = vector.broadcast %94 : vector<1x256xf32> to vector<8x256xf32>
    %301 = arith.mulf %299, %300 : vector<8x256xf32>
    %c2_i32_156 = arith.constant 2 : i32
    %302 = tpu.dynamic_rotate %291 by %c2_i32_156 dim 1 : vector<8x256xf32>, i32 -> vector<8x256xf32>
    %303 = vector.broadcast %99 : vector<1x256xf32> to vector<8x256xf32>
    %304 = arith.mulf %302, %303 : vector<8x256xf32>
    %c254_i32 = arith.constant 254 : i32
    %305 = tpu.dynamic_rotate %291 by %c254_i32 dim 1 : vector<8x256xf32>, i32 -> vector<8x256xf32>
    %306 = vector.broadcast %104 : vector<1x256xf32> to vector<8x256xf32>
    %307 = arith.mulf %305, %306 : vector<8x256xf32>
    %c226_i32 = arith.constant 226 : i32
    %308 = tpu.dynamic_rotate %291 by %c226_i32 dim 1 : vector<8x256xf32>, i32 -> vector<8x256xf32>
    %309 = vector.broadcast %115 : vector<1x256xf32> to vector<8x256xf32>
    %310 = arith.mulf %308, %309 : vector<8x256xf32>
    %c224_i32 = arith.constant 224 : i32
    %311 = tpu.dynamic_rotate %291 by %c224_i32 dim 1 : vector<8x256xf32>, i32 -> vector<8x256xf32>
    %312 = vector.broadcast %120 : vector<1x256xf32> to vector<8x256xf32>
    %313 = arith.mulf %311, %312 : vector<8x256xf32>
    %c222_i32 = arith.constant 222 : i32
    %314 = tpu.dynamic_rotate %291 by %c222_i32 dim 1 : vector<8x256xf32>, i32 -> vector<8x256xf32>
    %315 = vector.broadcast %131 : vector<1x256xf32> to vector<8x256xf32>
    %316 = arith.mulf %314, %315 : vector<8x256xf32>
    %c0_157 = arith.constant 0 : index
    %c0_158 = arith.constant 0 : index
    %c0_159 = arith.constant 0 : index
    %317 = vector.load %arg10[%c0_157, %c0_158, %c0_159] : memref<9x16x8xf32, #tpu.memory_space<vmem>>, vector<1x16x8xf32>
    %318 = vector.shape_cast %317 : vector<1x16x8xf32> to vector<16x8xf32>
    %cst_160 = arith.constant dense<0.000000e+00> : vector<16x256xf32>
    %319 = tpu.matmul %318, %295, %cst_160 {dimension_numbers = #tpu.dot_dimension_numbers<[1], [0], [0], [1], [0, 0, 1, 1], [], []>} : vector<16x8xf32>, vector<8x256xf32>, vector<16x256xf32> -> vector<16x256xf32>
    %c1_161 = arith.constant 1 : index
    %c0_162 = arith.constant 0 : index
    %c0_163 = arith.constant 0 : index
    %320 = vector.load %arg10[%c1_161, %c0_162, %c0_163] : memref<9x16x8xf32, #tpu.memory_space<vmem>>, vector<1x16x8xf32>
    %321 = vector.shape_cast %320 : vector<1x16x8xf32> to vector<16x8xf32>
    %cst_164 = arith.constant dense<0.000000e+00> : vector<16x256xf32>
    %322 = tpu.matmul %321, %298, %cst_164 {dimension_numbers = #tpu.dot_dimension_numbers<[1], [0], [0], [1], [0, 0, 1, 1], [], []>} : vector<16x8xf32>, vector<8x256xf32>, vector<16x256xf32> -> vector<16x256xf32>
    %323 = arith.addf %319, %322 : vector<16x256xf32>
    %c2_165 = arith.constant 2 : index
    %c0_166 = arith.constant 0 : index
    %c0_167 = arith.constant 0 : index
    %324 = vector.load %arg10[%c2_165, %c0_166, %c0_167] : memref<9x16x8xf32, #tpu.memory_space<vmem>>, vector<1x16x8xf32>
    %325 = vector.shape_cast %324 : vector<1x16x8xf32> to vector<16x8xf32>
    %cst_168 = arith.constant dense<0.000000e+00> : vector<16x256xf32>
    %326 = tpu.matmul %325, %301, %cst_168 {dimension_numbers = #tpu.dot_dimension_numbers<[1], [0], [0], [1], [0, 0, 1, 1], [], []>} : vector<16x8xf32>, vector<8x256xf32>, vector<16x256xf32> -> vector<16x256xf32>
    %327 = arith.addf %323, %326 : vector<16x256xf32>
    %c3_169 = arith.constant 3 : index
    %c0_170 = arith.constant 0 : index
    %c0_171 = arith.constant 0 : index
    %328 = vector.load %arg10[%c3_169, %c0_170, %c0_171] : memref<9x16x8xf32, #tpu.memory_space<vmem>>, vector<1x16x8xf32>
    %329 = vector.shape_cast %328 : vector<1x16x8xf32> to vector<16x8xf32>
    %cst_172 = arith.constant dense<0.000000e+00> : vector<16x256xf32>
    %330 = tpu.matmul %329, %304, %cst_172 {dimension_numbers = #tpu.dot_dimension_numbers<[1], [0], [0], [1], [0, 0, 1, 1], [], []>} : vector<16x8xf32>, vector<8x256xf32>, vector<16x256xf32> -> vector<16x256xf32>
    %331 = arith.addf %327, %330 : vector<16x256xf32>
    %c4_173 = arith.constant 4 : index
    %c0_174 = arith.constant 0 : index
    %c0_175 = arith.constant 0 : index
    %332 = vector.load %arg10[%c4_173, %c0_174, %c0_175] : memref<9x16x8xf32, #tpu.memory_space<vmem>>, vector<1x16x8xf32>
    %333 = vector.shape_cast %332 : vector<1x16x8xf32> to vector<16x8xf32>
    %cst_176 = arith.constant dense<0.000000e+00> : vector<16x256xf32>
    %334 = tpu.matmul %333, %291, %cst_176 {dimension_numbers = #tpu.dot_dimension_numbers<[1], [0], [0], [1], [0, 0, 1, 1], [], []>} : vector<16x8xf32>, vector<8x256xf32>, vector<16x256xf32> -> vector<16x256xf32>
    %335 = arith.addf %331, %334 : vector<16x256xf32>
    %c5_177 = arith.constant 5 : index
    %c0_178 = arith.constant 0 : index
    %c0_179 = arith.constant 0 : index
    %336 = vector.load %arg10[%c5_177, %c0_178, %c0_179] : memref<9x16x8xf32, #tpu.memory_space<vmem>>, vector<1x16x8xf32>
    %337 = vector.shape_cast %336 : vector<1x16x8xf32> to vector<16x8xf32>
    %cst_180 = arith.constant dense<0.000000e+00> : vector<16x256xf32>
    %338 = tpu.matmul %337, %307, %cst_180 {dimension_numbers = #tpu.dot_dimension_numbers<[1], [0], [0], [1], [0, 0, 1, 1], [], []>} : vector<16x8xf32>, vector<8x256xf32>, vector<16x256xf32> -> vector<16x256xf32>
    %339 = arith.addf %335, %338 : vector<16x256xf32>
    %c6_181 = arith.constant 6 : index
    %c0_182 = arith.constant 0 : index
    %c0_183 = arith.constant 0 : index
    %340 = vector.load %arg10[%c6_181, %c0_182, %c0_183] : memref<9x16x8xf32, #tpu.memory_space<vmem>>, vector<1x16x8xf32>
    %341 = vector.shape_cast %340 : vector<1x16x8xf32> to vector<16x8xf32>
    %cst_184 = arith.constant dense<0.000000e+00> : vector<16x256xf32>
    %342 = tpu.matmul %341, %310, %cst_184 {dimension_numbers = #tpu.dot_dimension_numbers<[1], [0], [0], [1], [0, 0, 1, 1], [], []>} : vector<16x8xf32>, vector<8x256xf32>, vector<16x256xf32> -> vector<16x256xf32>
    %343 = arith.addf %339, %342 : vector<16x256xf32>
    %c7_185 = arith.constant 7 : index
    %c0_186 = arith.constant 0 : index
    %c0_187 = arith.constant 0 : index
    %344 = vector.load %arg10[%c7_185, %c0_186, %c0_187] : memref<9x16x8xf32, #tpu.memory_space<vmem>>, vector<1x16x8xf32>
    %345 = vector.shape_cast %344 : vector<1x16x8xf32> to vector<16x8xf32>
    %cst_188 = arith.constant dense<0.000000e+00> : vector<16x256xf32>
    %346 = tpu.matmul %345, %313, %cst_188 {dimension_numbers = #tpu.dot_dimension_numbers<[1], [0], [0], [1], [0, 0, 1, 1], [], []>} : vector<16x8xf32>, vector<8x256xf32>, vector<16x256xf32> -> vector<16x256xf32>
    %347 = arith.addf %343, %346 : vector<16x256xf32>
    %c8_189 = arith.constant 8 : index
    %c0_190 = arith.constant 0 : index
    %c0_191 = arith.constant 0 : index
    %348 = vector.load %arg10[%c8_189, %c0_190, %c0_191] : memref<9x16x8xf32, #tpu.memory_space<vmem>>, vector<1x16x8xf32>
    %349 = vector.shape_cast %348 : vector<1x16x8xf32> to vector<16x8xf32>
    %cst_192 = arith.constant dense<0.000000e+00> : vector<16x256xf32>
    %350 = tpu.matmul %349, %316, %cst_192 {dimension_numbers = #tpu.dot_dimension_numbers<[1], [0], [0], [1], [0, 0, 1, 1], [], []>} : vector<16x8xf32>, vector<8x256xf32>, vector<16x256xf32> -> vector<16x256xf32>
    %351 = arith.addf %347, %350 : vector<16x256xf32>
    %352 = vector.broadcast %292 : vector<16x1xf32> to vector<16x256xf32>
    %353 = arith.addf %351, %352 : vector<16x256xf32>
    %cst_193 = arith.constant 0.000000e+00 : f32
    %354 = vector.broadcast %cst_193 : f32 to vector<16x256xf32>
    %355 = arith.maximumf %353, %354 : vector<16x256xf32>
    %c0_194 = arith.constant 0 : index
    %c0_195 = arith.constant 0 : index
    %356 = vector.load %arg13[%c0_194, %c0_195] : memref<16x1xf32, #tpu.memory_space<vmem>>, vector<16x1xf32>
    %c34_i32_196 = arith.constant 34 : i32
    %357 = tpu.dynamic_rotate %355 by %c34_i32_196 dim 1 : vector<16x256xf32>, i32 -> vector<16x256xf32>
    %358 = vector.broadcast %78 : vector<1x256xf32> to vector<16x256xf32>
    %359 = arith.mulf %357, %358 : vector<16x256xf32>
    %c32_i32_197 = arith.constant 32 : i32
    %360 = tpu.dynamic_rotate %355 by %c32_i32_197 dim 1 : vector<16x256xf32>, i32 -> vector<16x256xf32>
    %361 = vector.broadcast %83 : vector<1x256xf32> to vector<16x256xf32>
    %362 = arith.mulf %360, %361 : vector<16x256xf32>
    %c30_i32_198 = arith.constant 30 : i32
    %363 = tpu.dynamic_rotate %355 by %c30_i32_198 dim 1 : vector<16x256xf32>, i32 -> vector<16x256xf32>
    %364 = vector.broadcast %94 : vector<1x256xf32> to vector<16x256xf32>
    %365 = arith.mulf %363, %364 : vector<16x256xf32>
    %c2_i32_199 = arith.constant 2 : i32
    %366 = tpu.dynamic_rotate %355 by %c2_i32_199 dim 1 : vector<16x256xf32>, i32 -> vector<16x256xf32>
    %367 = vector.broadcast %99 : vector<1x256xf32> to vector<16x256xf32>
    %368 = arith.mulf %366, %367 : vector<16x256xf32>
    %c254_i32_200 = arith.constant 254 : i32
    %369 = tpu.dynamic_rotate %355 by %c254_i32_200 dim 1 : vector<16x256xf32>, i32 -> vector<16x256xf32>
    %370 = vector.broadcast %104 : vector<1x256xf32> to vector<16x256xf32>
    %371 = arith.mulf %369, %370 : vector<16x256xf32>
    %c226_i32_201 = arith.constant 226 : i32
    %372 = tpu.dynamic_rotate %355 by %c226_i32_201 dim 1 : vector<16x256xf32>, i32 -> vector<16x256xf32>
    %373 = vector.broadcast %115 : vector<1x256xf32> to vector<16x256xf32>
    %374 = arith.mulf %372, %373 : vector<16x256xf32>
    %c224_i32_202 = arith.constant 224 : i32
    %375 = tpu.dynamic_rotate %355 by %c224_i32_202 dim 1 : vector<16x256xf32>, i32 -> vector<16x256xf32>
    %376 = vector.broadcast %120 : vector<1x256xf32> to vector<16x256xf32>
    %377 = arith.mulf %375, %376 : vector<16x256xf32>
    %c222_i32_203 = arith.constant 222 : i32
    %378 = tpu.dynamic_rotate %355 by %c222_i32_203 dim 1 : vector<16x256xf32>, i32 -> vector<16x256xf32>
    %379 = vector.broadcast %131 : vector<1x256xf32> to vector<16x256xf32>
    %380 = arith.mulf %378, %379 : vector<16x256xf32>
    %c0_204 = arith.constant 0 : index
    %c0_205 = arith.constant 0 : index
    %c0_206 = arith.constant 0 : index
    %381 = vector.load %arg12[%c0_204, %c0_205, %c0_206] : memref<9x16x16xf32, #tpu.memory_space<vmem>>, vector<1x16x16xf32>
    %382 = vector.shape_cast %381 : vector<1x16x16xf32> to vector<16x16xf32>
    %cst_207 = arith.constant dense<0.000000e+00> : vector<16x256xf32>
    %383 = tpu.matmul %382, %359, %cst_207 {dimension_numbers = #tpu.dot_dimension_numbers<[1], [0], [0], [1], [0, 0, 1, 1], [], []>} : vector<16x16xf32>, vector<16x256xf32>, vector<16x256xf32> -> vector<16x256xf32>
    %c1_208 = arith.constant 1 : index
    %c0_209 = arith.constant 0 : index
    %c0_210 = arith.constant 0 : index
    %384 = vector.load %arg12[%c1_208, %c0_209, %c0_210] : memref<9x16x16xf32, #tpu.memory_space<vmem>>, vector<1x16x16xf32>
    %385 = vector.shape_cast %384 : vector<1x16x16xf32> to vector<16x16xf32>
    %cst_211 = arith.constant dense<0.000000e+00> : vector<16x256xf32>
    %386 = tpu.matmul %385, %362, %cst_211 {dimension_numbers = #tpu.dot_dimension_numbers<[1], [0], [0], [1], [0, 0, 1, 1], [], []>} : vector<16x16xf32>, vector<16x256xf32>, vector<16x256xf32> -> vector<16x256xf32>
    %387 = arith.addf %383, %386 : vector<16x256xf32>
    %c2_212 = arith.constant 2 : index
    %c0_213 = arith.constant 0 : index
    %c0_214 = arith.constant 0 : index
    %388 = vector.load %arg12[%c2_212, %c0_213, %c0_214] : memref<9x16x16xf32, #tpu.memory_space<vmem>>, vector<1x16x16xf32>
    %389 = vector.shape_cast %388 : vector<1x16x16xf32> to vector<16x16xf32>
    %cst_215 = arith.constant dense<0.000000e+00> : vector<16x256xf32>
    %390 = tpu.matmul %389, %365, %cst_215 {dimension_numbers = #tpu.dot_dimension_numbers<[1], [0], [0], [1], [0, 0, 1, 1], [], []>} : vector<16x16xf32>, vector<16x256xf32>, vector<16x256xf32> -> vector<16x256xf32>
    %391 = arith.addf %387, %390 : vector<16x256xf32>
    %c3_216 = arith.constant 3 : index
    %c0_217 = arith.constant 0 : index
    %c0_218 = arith.constant 0 : index
    %392 = vector.load %arg12[%c3_216, %c0_217, %c0_218] : memref<9x16x16xf32, #tpu.memory_space<vmem>>, vector<1x16x16xf32>
    %393 = vector.shape_cast %392 : vector<1x16x16xf32> to vector<16x16xf32>
    %cst_219 = arith.constant dense<0.000000e+00> : vector<16x256xf32>
    %394 = tpu.matmul %393, %368, %cst_219 {dimension_numbers = #tpu.dot_dimension_numbers<[1], [0], [0], [1], [0, 0, 1, 1], [], []>} : vector<16x16xf32>, vector<16x256xf32>, vector<16x256xf32> -> vector<16x256xf32>
    %395 = arith.addf %391, %394 : vector<16x256xf32>
    %c4_220 = arith.constant 4 : index
    %c0_221 = arith.constant 0 : index
    %c0_222 = arith.constant 0 : index
    %396 = vector.load %arg12[%c4_220, %c0_221, %c0_222] : memref<9x16x16xf32, #tpu.memory_space<vmem>>, vector<1x16x16xf32>
    %397 = vector.shape_cast %396 : vector<1x16x16xf32> to vector<16x16xf32>
    %cst_223 = arith.constant dense<0.000000e+00> : vector<16x256xf32>
    %398 = tpu.matmul %397, %355, %cst_223 {dimension_numbers = #tpu.dot_dimension_numbers<[1], [0], [0], [1], [0, 0, 1, 1], [], []>} : vector<16x16xf32>, vector<16x256xf32>, vector<16x256xf32> -> vector<16x256xf32>
    %399 = arith.addf %395, %398 : vector<16x256xf32>
    %c5_224 = arith.constant 5 : index
    %c0_225 = arith.constant 0 : index
    %c0_226 = arith.constant 0 : index
    %400 = vector.load %arg12[%c5_224, %c0_225, %c0_226] : memref<9x16x16xf32, #tpu.memory_space<vmem>>, vector<1x16x16xf32>
    %401 = vector.shape_cast %400 : vector<1x16x16xf32> to vector<16x16xf32>
    %cst_227 = arith.constant dense<0.000000e+00> : vector<16x256xf32>
    %402 = tpu.matmul %401, %371, %cst_227 {dimension_numbers = #tpu.dot_dimension_numbers<[1], [0], [0], [1], [0, 0, 1, 1], [], []>} : vector<16x16xf32>, vector<16x256xf32>, vector<16x256xf32> -> vector<16x256xf32>
    %403 = arith.addf %399, %402 : vector<16x256xf32>
    %c6_228 = arith.constant 6 : index
    %c0_229 = arith.constant 0 : index
    %c0_230 = arith.constant 0 : index
    %404 = vector.load %arg12[%c6_228, %c0_229, %c0_230] : memref<9x16x16xf32, #tpu.memory_space<vmem>>, vector<1x16x16xf32>
    %405 = vector.shape_cast %404 : vector<1x16x16xf32> to vector<16x16xf32>
    %cst_231 = arith.constant dense<0.000000e+00> : vector<16x256xf32>
    %406 = tpu.matmul %405, %374, %cst_231 {dimension_numbers = #tpu.dot_dimension_numbers<[1], [0], [0], [1], [0, 0, 1, 1], [], []>} : vector<16x16xf32>, vector<16x256xf32>, vector<16x256xf32> -> vector<16x256xf32>
    %407 = arith.addf %403, %406 : vector<16x256xf32>
    %c7_232 = arith.constant 7 : index
    %c0_233 = arith.constant 0 : index
    %c0_234 = arith.constant 0 : index
    %408 = vector.load %arg12[%c7_232, %c0_233, %c0_234] : memref<9x16x16xf32, #tpu.memory_space<vmem>>, vector<1x16x16xf32>
    %409 = vector.shape_cast %408 : vector<1x16x16xf32> to vector<16x16xf32>
    %cst_235 = arith.constant dense<0.000000e+00> : vector<16x256xf32>
    %410 = tpu.matmul %409, %377, %cst_235 {dimension_numbers = #tpu.dot_dimension_numbers<[1], [0], [0], [1], [0, 0, 1, 1], [], []>} : vector<16x16xf32>, vector<16x256xf32>, vector<16x256xf32> -> vector<16x256xf32>
    %411 = arith.addf %407, %410 : vector<16x256xf32>
    %c8_236 = arith.constant 8 : index
    %c0_237 = arith.constant 0 : index
    %c0_238 = arith.constant 0 : index
    %412 = vector.load %arg12[%c8_236, %c0_237, %c0_238] : memref<9x16x16xf32, #tpu.memory_space<vmem>>, vector<1x16x16xf32>
    %413 = vector.shape_cast %412 : vector<1x16x16xf32> to vector<16x16xf32>
    %cst_239 = arith.constant dense<0.000000e+00> : vector<16x256xf32>
    %414 = tpu.matmul %413, %380, %cst_239 {dimension_numbers = #tpu.dot_dimension_numbers<[1], [0], [0], [1], [0, 0, 1, 1], [], []>} : vector<16x16xf32>, vector<16x256xf32>, vector<16x256xf32> -> vector<16x256xf32>
    %415 = arith.addf %411, %414 : vector<16x256xf32>
    %416 = vector.broadcast %356 : vector<16x1xf32> to vector<16x256xf32>
    %417 = arith.addf %415, %416 : vector<16x256xf32>
    %cst_240 = arith.constant 0.000000e+00 : f32
    %418 = vector.broadcast %cst_240 : f32 to vector<16x256xf32>
    %419 = arith.maximumf %417, %418 : vector<16x256xf32>
    %c0_241 = arith.constant 0 : index
    %c0_242 = arith.constant 0 : index
    %420 = vector.load %arg15[%c0_241, %c0_242] : memref<8x1xf32, #tpu.memory_space<vmem>>, vector<8x1xf32>
    %c17_i32_243 = arith.constant 17 : i32
    %421 = tpu.dynamic_rotate %419 by %c17_i32_243 dim 1 : vector<16x256xf32>, i32 -> vector<16x256xf32>
    %422 = vector.broadcast %14 : vector<1x256xf32> to vector<16x256xf32>
    %423 = arith.mulf %421, %422 : vector<16x256xf32>
    %c16_i32_244 = arith.constant 16 : i32
    %424 = tpu.dynamic_rotate %419 by %c16_i32_244 dim 1 : vector<16x256xf32>, i32 -> vector<16x256xf32>
    %425 = vector.broadcast %19 : vector<1x256xf32> to vector<16x256xf32>
    %426 = arith.mulf %424, %425 : vector<16x256xf32>
    %c15_i32_245 = arith.constant 15 : i32
    %427 = tpu.dynamic_rotate %419 by %c15_i32_245 dim 1 : vector<16x256xf32>, i32 -> vector<16x256xf32>
    %428 = vector.broadcast %30 : vector<1x256xf32> to vector<16x256xf32>
    %429 = arith.mulf %427, %428 : vector<16x256xf32>
    %c1_i32_246 = arith.constant 1 : i32
    %430 = tpu.dynamic_rotate %419 by %c1_i32_246 dim 1 : vector<16x256xf32>, i32 -> vector<16x256xf32>
    %431 = vector.broadcast %35 : vector<1x256xf32> to vector<16x256xf32>
    %432 = arith.mulf %430, %431 : vector<16x256xf32>
    %c255_i32_247 = arith.constant 255 : i32
    %433 = tpu.dynamic_rotate %419 by %c255_i32_247 dim 1 : vector<16x256xf32>, i32 -> vector<16x256xf32>
    %434 = vector.broadcast %40 : vector<1x256xf32> to vector<16x256xf32>
    %435 = arith.mulf %433, %434 : vector<16x256xf32>
    %c241_i32_248 = arith.constant 241 : i32
    %436 = tpu.dynamic_rotate %419 by %c241_i32_248 dim 1 : vector<16x256xf32>, i32 -> vector<16x256xf32>
    %437 = vector.broadcast %51 : vector<1x256xf32> to vector<16x256xf32>
    %438 = arith.mulf %436, %437 : vector<16x256xf32>
    %c240_i32_249 = arith.constant 240 : i32
    %439 = tpu.dynamic_rotate %419 by %c240_i32_249 dim 1 : vector<16x256xf32>, i32 -> vector<16x256xf32>
    %440 = vector.broadcast %56 : vector<1x256xf32> to vector<16x256xf32>
    %441 = arith.mulf %439, %440 : vector<16x256xf32>
    %c239_i32_250 = arith.constant 239 : i32
    %442 = tpu.dynamic_rotate %419 by %c239_i32_250 dim 1 : vector<16x256xf32>, i32 -> vector<16x256xf32>
    %443 = vector.broadcast %67 : vector<1x256xf32> to vector<16x256xf32>
    %444 = arith.mulf %442, %443 : vector<16x256xf32>
    %c0_251 = arith.constant 0 : index
    %c0_252 = arith.constant 0 : index
    %c0_253 = arith.constant 0 : index
    %445 = vector.load %arg14[%c0_251, %c0_252, %c0_253] : memref<9x8x16xf32, #tpu.memory_space<vmem>>, vector<1x8x16xf32>
    %446 = vector.shape_cast %445 : vector<1x8x16xf32> to vector<8x16xf32>
    %cst_254 = arith.constant dense<0.000000e+00> : vector<8x256xf32>
    %447 = tpu.matmul %446, %423, %cst_254 {dimension_numbers = #tpu.dot_dimension_numbers<[1], [0], [0], [1], [0, 0, 1, 1], [], []>} : vector<8x16xf32>, vector<16x256xf32>, vector<8x256xf32> -> vector<8x256xf32>
    %c1_255 = arith.constant 1 : index
    %c0_256 = arith.constant 0 : index
    %c0_257 = arith.constant 0 : index
    %448 = vector.load %arg14[%c1_255, %c0_256, %c0_257] : memref<9x8x16xf32, #tpu.memory_space<vmem>>, vector<1x8x16xf32>
    %449 = vector.shape_cast %448 : vector<1x8x16xf32> to vector<8x16xf32>
    %cst_258 = arith.constant dense<0.000000e+00> : vector<8x256xf32>
    %450 = tpu.matmul %449, %426, %cst_258 {dimension_numbers = #tpu.dot_dimension_numbers<[1], [0], [0], [1], [0, 0, 1, 1], [], []>} : vector<8x16xf32>, vector<16x256xf32>, vector<8x256xf32> -> vector<8x256xf32>
    %451 = arith.addf %447, %450 : vector<8x256xf32>
    %c2_259 = arith.constant 2 : index
    %c0_260 = arith.constant 0 : index
    %c0_261 = arith.constant 0 : index
    %452 = vector.load %arg14[%c2_259, %c0_260, %c0_261] : memref<9x8x16xf32, #tpu.memory_space<vmem>>, vector<1x8x16xf32>
    %453 = vector.shape_cast %452 : vector<1x8x16xf32> to vector<8x16xf32>
    %cst_262 = arith.constant dense<0.000000e+00> : vector<8x256xf32>
    %454 = tpu.matmul %453, %429, %cst_262 {dimension_numbers = #tpu.dot_dimension_numbers<[1], [0], [0], [1], [0, 0, 1, 1], [], []>} : vector<8x16xf32>, vector<16x256xf32>, vector<8x256xf32> -> vector<8x256xf32>
    %455 = arith.addf %451, %454 : vector<8x256xf32>
    %c3_263 = arith.constant 3 : index
    %c0_264 = arith.constant 0 : index
    %c0_265 = arith.constant 0 : index
    %456 = vector.load %arg14[%c3_263, %c0_264, %c0_265] : memref<9x8x16xf32, #tpu.memory_space<vmem>>, vector<1x8x16xf32>
    %457 = vector.shape_cast %456 : vector<1x8x16xf32> to vector<8x16xf32>
    %cst_266 = arith.constant dense<0.000000e+00> : vector<8x256xf32>
    %458 = tpu.matmul %457, %432, %cst_266 {dimension_numbers = #tpu.dot_dimension_numbers<[1], [0], [0], [1], [0, 0, 1, 1], [], []>} : vector<8x16xf32>, vector<16x256xf32>, vector<8x256xf32> -> vector<8x256xf32>
    %459 = arith.addf %455, %458 : vector<8x256xf32>
    %c4_267 = arith.constant 4 : index
    %c0_268 = arith.constant 0 : index
    %c0_269 = arith.constant 0 : index
    %460 = vector.load %arg14[%c4_267, %c0_268, %c0_269] : memref<9x8x16xf32, #tpu.memory_space<vmem>>, vector<1x8x16xf32>
    %461 = vector.shape_cast %460 : vector<1x8x16xf32> to vector<8x16xf32>
    %cst_270 = arith.constant dense<0.000000e+00> : vector<8x256xf32>
    %462 = tpu.matmul %461, %419, %cst_270 {dimension_numbers = #tpu.dot_dimension_numbers<[1], [0], [0], [1], [0, 0, 1, 1], [], []>} : vector<8x16xf32>, vector<16x256xf32>, vector<8x256xf32> -> vector<8x256xf32>
    %463 = arith.addf %459, %462 : vector<8x256xf32>
    %c5_271 = arith.constant 5 : index
    %c0_272 = arith.constant 0 : index
    %c0_273 = arith.constant 0 : index
    %464 = vector.load %arg14[%c5_271, %c0_272, %c0_273] : memref<9x8x16xf32, #tpu.memory_space<vmem>>, vector<1x8x16xf32>
    %465 = vector.shape_cast %464 : vector<1x8x16xf32> to vector<8x16xf32>
    %cst_274 = arith.constant dense<0.000000e+00> : vector<8x256xf32>
    %466 = tpu.matmul %465, %435, %cst_274 {dimension_numbers = #tpu.dot_dimension_numbers<[1], [0], [0], [1], [0, 0, 1, 1], [], []>} : vector<8x16xf32>, vector<16x256xf32>, vector<8x256xf32> -> vector<8x256xf32>
    %467 = arith.addf %463, %466 : vector<8x256xf32>
    %c6_275 = arith.constant 6 : index
    %c0_276 = arith.constant 0 : index
    %c0_277 = arith.constant 0 : index
    %468 = vector.load %arg14[%c6_275, %c0_276, %c0_277] : memref<9x8x16xf32, #tpu.memory_space<vmem>>, vector<1x8x16xf32>
    %469 = vector.shape_cast %468 : vector<1x8x16xf32> to vector<8x16xf32>
    %cst_278 = arith.constant dense<0.000000e+00> : vector<8x256xf32>
    %470 = tpu.matmul %469, %438, %cst_278 {dimension_numbers = #tpu.dot_dimension_numbers<[1], [0], [0], [1], [0, 0, 1, 1], [], []>} : vector<8x16xf32>, vector<16x256xf32>, vector<8x256xf32> -> vector<8x256xf32>
    %471 = arith.addf %467, %470 : vector<8x256xf32>
    %c7_279 = arith.constant 7 : index
    %c0_280 = arith.constant 0 : index
    %c0_281 = arith.constant 0 : index
    %472 = vector.load %arg14[%c7_279, %c0_280, %c0_281] : memref<9x8x16xf32, #tpu.memory_space<vmem>>, vector<1x8x16xf32>
    %473 = vector.shape_cast %472 : vector<1x8x16xf32> to vector<8x16xf32>
    %cst_282 = arith.constant dense<0.000000e+00> : vector<8x256xf32>
    %474 = tpu.matmul %473, %441, %cst_282 {dimension_numbers = #tpu.dot_dimension_numbers<[1], [0], [0], [1], [0, 0, 1, 1], [], []>} : vector<8x16xf32>, vector<16x256xf32>, vector<8x256xf32> -> vector<8x256xf32>
    %475 = arith.addf %471, %474 : vector<8x256xf32>
    %c8_283 = arith.constant 8 : index
    %c0_284 = arith.constant 0 : index
    %c0_285 = arith.constant 0 : index
    %476 = vector.load %arg14[%c8_283, %c0_284, %c0_285] : memref<9x8x16xf32, #tpu.memory_space<vmem>>, vector<1x8x16xf32>
    %477 = vector.shape_cast %476 : vector<1x8x16xf32> to vector<8x16xf32>
    %cst_286 = arith.constant dense<0.000000e+00> : vector<8x256xf32>
    %478 = tpu.matmul %477, %444, %cst_286 {dimension_numbers = #tpu.dot_dimension_numbers<[1], [0], [0], [1], [0, 0, 1, 1], [], []>} : vector<8x16xf32>, vector<16x256xf32>, vector<8x256xf32> -> vector<8x256xf32>
    %479 = arith.addf %475, %478 : vector<8x256xf32>
    %480 = vector.broadcast %420 : vector<8x1xf32> to vector<8x256xf32>
    %481 = arith.addf %479, %480 : vector<8x256xf32>
    %cst_287 = arith.constant 0.000000e+00 : f32
    %482 = vector.broadcast %cst_287 : f32 to vector<8x256xf32>
    %483 = arith.maximumf %481, %482 : vector<8x256xf32>
    %c0_288 = arith.constant 0 : index
    %c0_289 = arith.constant 0 : index
    %484 = vector.load %arg18[%c0_288, %c0_289] : memref<8x1xf32, #tpu.memory_space<vmem>>, vector<8x1xf32>
    %c17_i32_290 = arith.constant 17 : i32
    %485 = tpu.dynamic_rotate %483 by %c17_i32_290 dim 1 : vector<8x256xf32>, i32 -> vector<8x256xf32>
    %486 = vector.broadcast %14 : vector<1x256xf32> to vector<8x256xf32>
    %487 = arith.mulf %485, %486 : vector<8x256xf32>
    %c16_i32_291 = arith.constant 16 : i32
    %488 = tpu.dynamic_rotate %483 by %c16_i32_291 dim 1 : vector<8x256xf32>, i32 -> vector<8x256xf32>
    %489 = vector.broadcast %19 : vector<1x256xf32> to vector<8x256xf32>
    %490 = arith.mulf %488, %489 : vector<8x256xf32>
    %c15_i32_292 = arith.constant 15 : i32
    %491 = tpu.dynamic_rotate %483 by %c15_i32_292 dim 1 : vector<8x256xf32>, i32 -> vector<8x256xf32>
    %492 = vector.broadcast %30 : vector<1x256xf32> to vector<8x256xf32>
    %493 = arith.mulf %491, %492 : vector<8x256xf32>
    %c1_i32_293 = arith.constant 1 : i32
    %494 = tpu.dynamic_rotate %483 by %c1_i32_293 dim 1 : vector<8x256xf32>, i32 -> vector<8x256xf32>
    %495 = vector.broadcast %35 : vector<1x256xf32> to vector<8x256xf32>
    %496 = arith.mulf %494, %495 : vector<8x256xf32>
    %c255_i32_294 = arith.constant 255 : i32
    %497 = tpu.dynamic_rotate %483 by %c255_i32_294 dim 1 : vector<8x256xf32>, i32 -> vector<8x256xf32>
    %498 = vector.broadcast %40 : vector<1x256xf32> to vector<8x256xf32>
    %499 = arith.mulf %497, %498 : vector<8x256xf32>
    %c241_i32_295 = arith.constant 241 : i32
    %500 = tpu.dynamic_rotate %483 by %c241_i32_295 dim 1 : vector<8x256xf32>, i32 -> vector<8x256xf32>
    %501 = vector.broadcast %51 : vector<1x256xf32> to vector<8x256xf32>
    %502 = arith.mulf %500, %501 : vector<8x256xf32>
    %c240_i32_296 = arith.constant 240 : i32
    %503 = tpu.dynamic_rotate %483 by %c240_i32_296 dim 1 : vector<8x256xf32>, i32 -> vector<8x256xf32>
    %504 = vector.broadcast %56 : vector<1x256xf32> to vector<8x256xf32>
    %505 = arith.mulf %503, %504 : vector<8x256xf32>
    %c239_i32_297 = arith.constant 239 : i32
    %506 = tpu.dynamic_rotate %483 by %c239_i32_297 dim 1 : vector<8x256xf32>, i32 -> vector<8x256xf32>
    %507 = vector.broadcast %67 : vector<1x256xf32> to vector<8x256xf32>
    %508 = arith.mulf %506, %507 : vector<8x256xf32>
    %c0_298 = arith.constant 0 : index
    %c0_299 = arith.constant 0 : index
    %c0_300 = arith.constant 0 : index
    %509 = vector.load %arg16[%c0_298, %c0_299, %c0_300] : memref<9x8x8xf32, #tpu.memory_space<vmem>>, vector<1x8x8xf32>
    %510 = vector.shape_cast %509 : vector<1x8x8xf32> to vector<8x8xf32>
    %cst_301 = arith.constant dense<0.000000e+00> : vector<8x256xf32>
    %511 = tpu.matmul %510, %487, %cst_301 {dimension_numbers = #tpu.dot_dimension_numbers<[1], [0], [0], [1], [0, 0, 1, 1], [], []>} : vector<8x8xf32>, vector<8x256xf32>, vector<8x256xf32> -> vector<8x256xf32>
    %c1_302 = arith.constant 1 : index
    %c0_303 = arith.constant 0 : index
    %c0_304 = arith.constant 0 : index
    %512 = vector.load %arg16[%c1_302, %c0_303, %c0_304] : memref<9x8x8xf32, #tpu.memory_space<vmem>>, vector<1x8x8xf32>
    %513 = vector.shape_cast %512 : vector<1x8x8xf32> to vector<8x8xf32>
    %cst_305 = arith.constant dense<0.000000e+00> : vector<8x256xf32>
    %514 = tpu.matmul %513, %490, %cst_305 {dimension_numbers = #tpu.dot_dimension_numbers<[1], [0], [0], [1], [0, 0, 1, 1], [], []>} : vector<8x8xf32>, vector<8x256xf32>, vector<8x256xf32> -> vector<8x256xf32>
    %515 = arith.addf %511, %514 : vector<8x256xf32>
    %c2_306 = arith.constant 2 : index
    %c0_307 = arith.constant 0 : index
    %c0_308 = arith.constant 0 : index
    %516 = vector.load %arg16[%c2_306, %c0_307, %c0_308] : memref<9x8x8xf32, #tpu.memory_space<vmem>>, vector<1x8x8xf32>
    %517 = vector.shape_cast %516 : vector<1x8x8xf32> to vector<8x8xf32>
    %cst_309 = arith.constant dense<0.000000e+00> : vector<8x256xf32>
    %518 = tpu.matmul %517, %493, %cst_309 {dimension_numbers = #tpu.dot_dimension_numbers<[1], [0], [0], [1], [0, 0, 1, 1], [], []>} : vector<8x8xf32>, vector<8x256xf32>, vector<8x256xf32> -> vector<8x256xf32>
    %519 = arith.addf %515, %518 : vector<8x256xf32>
    %c3_310 = arith.constant 3 : index
    %c0_311 = arith.constant 0 : index
    %c0_312 = arith.constant 0 : index
    %520 = vector.load %arg16[%c3_310, %c0_311, %c0_312] : memref<9x8x8xf32, #tpu.memory_space<vmem>>, vector<1x8x8xf32>
    %521 = vector.shape_cast %520 : vector<1x8x8xf32> to vector<8x8xf32>
    %cst_313 = arith.constant dense<0.000000e+00> : vector<8x256xf32>
    %522 = tpu.matmul %521, %496, %cst_313 {dimension_numbers = #tpu.dot_dimension_numbers<[1], [0], [0], [1], [0, 0, 1, 1], [], []>} : vector<8x8xf32>, vector<8x256xf32>, vector<8x256xf32> -> vector<8x256xf32>
    %523 = arith.addf %519, %522 : vector<8x256xf32>
    %c4_314 = arith.constant 4 : index
    %c0_315 = arith.constant 0 : index
    %c0_316 = arith.constant 0 : index
    %524 = vector.load %arg16[%c4_314, %c0_315, %c0_316] : memref<9x8x8xf32, #tpu.memory_space<vmem>>, vector<1x8x8xf32>
    %525 = vector.shape_cast %524 : vector<1x8x8xf32> to vector<8x8xf32>
    %cst_317 = arith.constant dense<0.000000e+00> : vector<8x256xf32>
    %526 = tpu.matmul %525, %483, %cst_317 {dimension_numbers = #tpu.dot_dimension_numbers<[1], [0], [0], [1], [0, 0, 1, 1], [], []>} : vector<8x8xf32>, vector<8x256xf32>, vector<8x256xf32> -> vector<8x256xf32>
    %527 = arith.addf %523, %526 : vector<8x256xf32>
    %c5_318 = arith.constant 5 : index
    %c0_319 = arith.constant 0 : index
    %c0_320 = arith.constant 0 : index
    %528 = vector.load %arg16[%c5_318, %c0_319, %c0_320] : memref<9x8x8xf32, #tpu.memory_space<vmem>>, vector<1x8x8xf32>
    %529 = vector.shape_cast %528 : vector<1x8x8xf32> to vector<8x8xf32>
    %cst_321 = arith.constant dense<0.000000e+00> : vector<8x256xf32>
    %530 = tpu.matmul %529, %499, %cst_321 {dimension_numbers = #tpu.dot_dimension_numbers<[1], [0], [0], [1], [0, 0, 1, 1], [], []>} : vector<8x8xf32>, vector<8x256xf32>, vector<8x256xf32> -> vector<8x256xf32>
    %531 = arith.addf %527, %530 : vector<8x256xf32>
    %c6_322 = arith.constant 6 : index
    %c0_323 = arith.constant 0 : index
    %c0_324 = arith.constant 0 : index
    %532 = vector.load %arg16[%c6_322, %c0_323, %c0_324] : memref<9x8x8xf32, #tpu.memory_space<vmem>>, vector<1x8x8xf32>
    %533 = vector.shape_cast %532 : vector<1x8x8xf32> to vector<8x8xf32>
    %cst_325 = arith.constant dense<0.000000e+00> : vector<8x256xf32>
    %534 = tpu.matmul %533, %502, %cst_325 {dimension_numbers = #tpu.dot_dimension_numbers<[1], [0], [0], [1], [0, 0, 1, 1], [], []>} : vector<8x8xf32>, vector<8x256xf32>, vector<8x256xf32> -> vector<8x256xf32>
    %535 = arith.addf %531, %534 : vector<8x256xf32>
    %c7_326 = arith.constant 7 : index
    %c0_327 = arith.constant 0 : index
    %c0_328 = arith.constant 0 : index
    %536 = vector.load %arg16[%c7_326, %c0_327, %c0_328] : memref<9x8x8xf32, #tpu.memory_space<vmem>>, vector<1x8x8xf32>
    %537 = vector.shape_cast %536 : vector<1x8x8xf32> to vector<8x8xf32>
    %cst_329 = arith.constant dense<0.000000e+00> : vector<8x256xf32>
    %538 = tpu.matmul %537, %505, %cst_329 {dimension_numbers = #tpu.dot_dimension_numbers<[1], [0], [0], [1], [0, 0, 1, 1], [], []>} : vector<8x8xf32>, vector<8x256xf32>, vector<8x256xf32> -> vector<8x256xf32>
    %539 = arith.addf %535, %538 : vector<8x256xf32>
    %c8_330 = arith.constant 8 : index
    %c0_331 = arith.constant 0 : index
    %c0_332 = arith.constant 0 : index
    %540 = vector.load %arg16[%c8_330, %c0_331, %c0_332] : memref<9x8x8xf32, #tpu.memory_space<vmem>>, vector<1x8x8xf32>
    %541 = vector.shape_cast %540 : vector<1x8x8xf32> to vector<8x8xf32>
    %cst_333 = arith.constant dense<0.000000e+00> : vector<8x256xf32>
    %542 = tpu.matmul %541, %508, %cst_333 {dimension_numbers = #tpu.dot_dimension_numbers<[1], [0], [0], [1], [0, 0, 1, 1], [], []>} : vector<8x8xf32>, vector<8x256xf32>, vector<8x256xf32> -> vector<8x256xf32>
    %543 = arith.addf %539, %542 : vector<8x256xf32>
    %c17_i32_334 = arith.constant 17 : i32
    %544 = tpu.dynamic_rotate %271 by %c17_i32_334 dim 1 : vector<8x256xf32>, i32 -> vector<8x256xf32>
    %545 = vector.broadcast %14 : vector<1x256xf32> to vector<8x256xf32>
    %546 = arith.mulf %544, %545 : vector<8x256xf32>
    %c16_i32_335 = arith.constant 16 : i32
    %547 = tpu.dynamic_rotate %271 by %c16_i32_335 dim 1 : vector<8x256xf32>, i32 -> vector<8x256xf32>
    %548 = vector.broadcast %19 : vector<1x256xf32> to vector<8x256xf32>
    %549 = arith.mulf %547, %548 : vector<8x256xf32>
    %c15_i32_336 = arith.constant 15 : i32
    %550 = tpu.dynamic_rotate %271 by %c15_i32_336 dim 1 : vector<8x256xf32>, i32 -> vector<8x256xf32>
    %551 = vector.broadcast %30 : vector<1x256xf32> to vector<8x256xf32>
    %552 = arith.mulf %550, %551 : vector<8x256xf32>
    %c1_i32_337 = arith.constant 1 : i32
    %553 = tpu.dynamic_rotate %271 by %c1_i32_337 dim 1 : vector<8x256xf32>, i32 -> vector<8x256xf32>
    %554 = vector.broadcast %35 : vector<1x256xf32> to vector<8x256xf32>
    %555 = arith.mulf %553, %554 : vector<8x256xf32>
    %c255_i32_338 = arith.constant 255 : i32
    %556 = tpu.dynamic_rotate %271 by %c255_i32_338 dim 1 : vector<8x256xf32>, i32 -> vector<8x256xf32>
    %557 = vector.broadcast %40 : vector<1x256xf32> to vector<8x256xf32>
    %558 = arith.mulf %556, %557 : vector<8x256xf32>
    %c241_i32_339 = arith.constant 241 : i32
    %559 = tpu.dynamic_rotate %271 by %c241_i32_339 dim 1 : vector<8x256xf32>, i32 -> vector<8x256xf32>
    %560 = vector.broadcast %51 : vector<1x256xf32> to vector<8x256xf32>
    %561 = arith.mulf %559, %560 : vector<8x256xf32>
    %c240_i32_340 = arith.constant 240 : i32
    %562 = tpu.dynamic_rotate %271 by %c240_i32_340 dim 1 : vector<8x256xf32>, i32 -> vector<8x256xf32>
    %563 = vector.broadcast %56 : vector<1x256xf32> to vector<8x256xf32>
    %564 = arith.mulf %562, %563 : vector<8x256xf32>
    %c239_i32_341 = arith.constant 239 : i32
    %565 = tpu.dynamic_rotate %271 by %c239_i32_341 dim 1 : vector<8x256xf32>, i32 -> vector<8x256xf32>
    %566 = vector.broadcast %67 : vector<1x256xf32> to vector<8x256xf32>
    %567 = arith.mulf %565, %566 : vector<8x256xf32>
    %c0_342 = arith.constant 0 : index
    %c0_343 = arith.constant 0 : index
    %c0_344 = arith.constant 0 : index
    %568 = vector.load %arg17[%c0_342, %c0_343, %c0_344] : memref<9x8x8xf32, #tpu.memory_space<vmem>>, vector<1x8x8xf32>
    %569 = vector.shape_cast %568 : vector<1x8x8xf32> to vector<8x8xf32>
    %cst_345 = arith.constant dense<0.000000e+00> : vector<8x256xf32>
    %570 = tpu.matmul %569, %546, %cst_345 {dimension_numbers = #tpu.dot_dimension_numbers<[1], [0], [0], [1], [0, 0, 1, 1], [], []>} : vector<8x8xf32>, vector<8x256xf32>, vector<8x256xf32> -> vector<8x256xf32>
    %571 = arith.addf %543, %570 : vector<8x256xf32>
    %c1_346 = arith.constant 1 : index
    %c0_347 = arith.constant 0 : index
    %c0_348 = arith.constant 0 : index
    %572 = vector.load %arg17[%c1_346, %c0_347, %c0_348] : memref<9x8x8xf32, #tpu.memory_space<vmem>>, vector<1x8x8xf32>
    %573 = vector.shape_cast %572 : vector<1x8x8xf32> to vector<8x8xf32>
    %cst_349 = arith.constant dense<0.000000e+00> : vector<8x256xf32>
    %574 = tpu.matmul %573, %549, %cst_349 {dimension_numbers = #tpu.dot_dimension_numbers<[1], [0], [0], [1], [0, 0, 1, 1], [], []>} : vector<8x8xf32>, vector<8x256xf32>, vector<8x256xf32> -> vector<8x256xf32>
    %575 = arith.addf %571, %574 : vector<8x256xf32>
    %c2_350 = arith.constant 2 : index
    %c0_351 = arith.constant 0 : index
    %c0_352 = arith.constant 0 : index
    %576 = vector.load %arg17[%c2_350, %c0_351, %c0_352] : memref<9x8x8xf32, #tpu.memory_space<vmem>>, vector<1x8x8xf32>
    %577 = vector.shape_cast %576 : vector<1x8x8xf32> to vector<8x8xf32>
    %cst_353 = arith.constant dense<0.000000e+00> : vector<8x256xf32>
    %578 = tpu.matmul %577, %552, %cst_353 {dimension_numbers = #tpu.dot_dimension_numbers<[1], [0], [0], [1], [0, 0, 1, 1], [], []>} : vector<8x8xf32>, vector<8x256xf32>, vector<8x256xf32> -> vector<8x256xf32>
    %579 = arith.addf %575, %578 : vector<8x256xf32>
    %c3_354 = arith.constant 3 : index
    %c0_355 = arith.constant 0 : index
    %c0_356 = arith.constant 0 : index
    %580 = vector.load %arg17[%c3_354, %c0_355, %c0_356] : memref<9x8x8xf32, #tpu.memory_space<vmem>>, vector<1x8x8xf32>
    %581 = vector.shape_cast %580 : vector<1x8x8xf32> to vector<8x8xf32>
    %cst_357 = arith.constant dense<0.000000e+00> : vector<8x256xf32>
    %582 = tpu.matmul %581, %555, %cst_357 {dimension_numbers = #tpu.dot_dimension_numbers<[1], [0], [0], [1], [0, 0, 1, 1], [], []>} : vector<8x8xf32>, vector<8x256xf32>, vector<8x256xf32> -> vector<8x256xf32>
    %583 = arith.addf %579, %582 : vector<8x256xf32>
    %c4_358 = arith.constant 4 : index
    %c0_359 = arith.constant 0 : index
    %c0_360 = arith.constant 0 : index
    %584 = vector.load %arg17[%c4_358, %c0_359, %c0_360] : memref<9x8x8xf32, #tpu.memory_space<vmem>>, vector<1x8x8xf32>
    %585 = vector.shape_cast %584 : vector<1x8x8xf32> to vector<8x8xf32>
    %cst_361 = arith.constant dense<0.000000e+00> : vector<8x256xf32>
    %586 = tpu.matmul %585, %271, %cst_361 {dimension_numbers = #tpu.dot_dimension_numbers<[1], [0], [0], [1], [0, 0, 1, 1], [], []>} : vector<8x8xf32>, vector<8x256xf32>, vector<8x256xf32> -> vector<8x256xf32>
    %587 = arith.addf %583, %586 : vector<8x256xf32>
    %c5_362 = arith.constant 5 : index
    %c0_363 = arith.constant 0 : index
    %c0_364 = arith.constant 0 : index
    %588 = vector.load %arg17[%c5_362, %c0_363, %c0_364] : memref<9x8x8xf32, #tpu.memory_space<vmem>>, vector<1x8x8xf32>
    %589 = vector.shape_cast %588 : vector<1x8x8xf32> to vector<8x8xf32>
    %cst_365 = arith.constant dense<0.000000e+00> : vector<8x256xf32>
    %590 = tpu.matmul %589, %558, %cst_365 {dimension_numbers = #tpu.dot_dimension_numbers<[1], [0], [0], [1], [0, 0, 1, 1], [], []>} : vector<8x8xf32>, vector<8x256xf32>, vector<8x256xf32> -> vector<8x256xf32>
    %591 = arith.addf %587, %590 : vector<8x256xf32>
    %c6_366 = arith.constant 6 : index
    %c0_367 = arith.constant 0 : index
    %c0_368 = arith.constant 0 : index
    %592 = vector.load %arg17[%c6_366, %c0_367, %c0_368] : memref<9x8x8xf32, #tpu.memory_space<vmem>>, vector<1x8x8xf32>
    %593 = vector.shape_cast %592 : vector<1x8x8xf32> to vector<8x8xf32>
    %cst_369 = arith.constant dense<0.000000e+00> : vector<8x256xf32>
    %594 = tpu.matmul %593, %561, %cst_369 {dimension_numbers = #tpu.dot_dimension_numbers<[1], [0], [0], [1], [0, 0, 1, 1], [], []>} : vector<8x8xf32>, vector<8x256xf32>, vector<8x256xf32> -> vector<8x256xf32>
    %595 = arith.addf %591, %594 : vector<8x256xf32>
    %c7_370 = arith.constant 7 : index
    %c0_371 = arith.constant 0 : index
    %c0_372 = arith.constant 0 : index
    %596 = vector.load %arg17[%c7_370, %c0_371, %c0_372] : memref<9x8x8xf32, #tpu.memory_space<vmem>>, vector<1x8x8xf32>
    %597 = vector.shape_cast %596 : vector<1x8x8xf32> to vector<8x8xf32>
    %cst_373 = arith.constant dense<0.000000e+00> : vector<8x256xf32>
    %598 = tpu.matmul %597, %564, %cst_373 {dimension_numbers = #tpu.dot_dimension_numbers<[1], [0], [0], [1], [0, 0, 1, 1], [], []>} : vector<8x8xf32>, vector<8x256xf32>, vector<8x256xf32> -> vector<8x256xf32>
    %599 = arith.addf %595, %598 : vector<8x256xf32>
    %c8_374 = arith.constant 8 : index
    %c0_375 = arith.constant 0 : index
    %c0_376 = arith.constant 0 : index
    %600 = vector.load %arg17[%c8_374, %c0_375, %c0_376] : memref<9x8x8xf32, #tpu.memory_space<vmem>>, vector<1x8x8xf32>
    %601 = vector.shape_cast %600 : vector<1x8x8xf32> to vector<8x8xf32>
    %cst_377 = arith.constant dense<0.000000e+00> : vector<8x256xf32>
    %602 = tpu.matmul %601, %567, %cst_377 {dimension_numbers = #tpu.dot_dimension_numbers<[1], [0], [0], [1], [0, 0, 1, 1], [], []>} : vector<8x8xf32>, vector<8x256xf32>, vector<8x256xf32> -> vector<8x256xf32>
    %603 = arith.addf %599, %602 : vector<8x256xf32>
    %604 = vector.broadcast %484 : vector<8x1xf32> to vector<8x256xf32>
    %605 = arith.addf %603, %604 : vector<8x256xf32>
    %cst_378 = arith.constant 0.000000e+00 : f32
    %606 = vector.broadcast %cst_378 : f32 to vector<8x256xf32>
    %607 = arith.maximumf %605, %606 : vector<8x256xf32>
    %c0_379 = arith.constant 0 : index
    %c0_380 = arith.constant 0 : index
    %608 = vector.load %arg20[%c0_379, %c0_380] : memref<8x1xf32, #tpu.memory_space<vmem>>, vector<8x1xf32>
    %c17_i32_381 = arith.constant 17 : i32
    %609 = tpu.dynamic_rotate %607 by %c17_i32_381 dim 1 : vector<8x256xf32>, i32 -> vector<8x256xf32>
    %610 = vector.broadcast %14 : vector<1x256xf32> to vector<8x256xf32>
    %611 = arith.mulf %609, %610 : vector<8x256xf32>
    %c16_i32_382 = arith.constant 16 : i32
    %612 = tpu.dynamic_rotate %607 by %c16_i32_382 dim 1 : vector<8x256xf32>, i32 -> vector<8x256xf32>
    %613 = vector.broadcast %19 : vector<1x256xf32> to vector<8x256xf32>
    %614 = arith.mulf %612, %613 : vector<8x256xf32>
    %c15_i32_383 = arith.constant 15 : i32
    %615 = tpu.dynamic_rotate %607 by %c15_i32_383 dim 1 : vector<8x256xf32>, i32 -> vector<8x256xf32>
    %616 = vector.broadcast %30 : vector<1x256xf32> to vector<8x256xf32>
    %617 = arith.mulf %615, %616 : vector<8x256xf32>
    %c1_i32_384 = arith.constant 1 : i32
    %618 = tpu.dynamic_rotate %607 by %c1_i32_384 dim 1 : vector<8x256xf32>, i32 -> vector<8x256xf32>
    %619 = vector.broadcast %35 : vector<1x256xf32> to vector<8x256xf32>
    %620 = arith.mulf %618, %619 : vector<8x256xf32>
    %c255_i32_385 = arith.constant 255 : i32
    %621 = tpu.dynamic_rotate %607 by %c255_i32_385 dim 1 : vector<8x256xf32>, i32 -> vector<8x256xf32>
    %622 = vector.broadcast %40 : vector<1x256xf32> to vector<8x256xf32>
    %623 = arith.mulf %621, %622 : vector<8x256xf32>
    %c241_i32_386 = arith.constant 241 : i32
    %624 = tpu.dynamic_rotate %607 by %c241_i32_386 dim 1 : vector<8x256xf32>, i32 -> vector<8x256xf32>
    %625 = vector.broadcast %51 : vector<1x256xf32> to vector<8x256xf32>
    %626 = arith.mulf %624, %625 : vector<8x256xf32>
    %c240_i32_387 = arith.constant 240 : i32
    %627 = tpu.dynamic_rotate %607 by %c240_i32_387 dim 1 : vector<8x256xf32>, i32 -> vector<8x256xf32>
    %628 = vector.broadcast %56 : vector<1x256xf32> to vector<8x256xf32>
    %629 = arith.mulf %627, %628 : vector<8x256xf32>
    %c239_i32_388 = arith.constant 239 : i32
    %630 = tpu.dynamic_rotate %607 by %c239_i32_388 dim 1 : vector<8x256xf32>, i32 -> vector<8x256xf32>
    %631 = vector.broadcast %67 : vector<1x256xf32> to vector<8x256xf32>
    %632 = arith.mulf %630, %631 : vector<8x256xf32>
    %c0_389 = arith.constant 0 : index
    %c0_390 = arith.constant 0 : index
    %c0_391 = arith.constant 0 : index
    %633 = vector.load %arg19[%c0_389, %c0_390, %c0_391] : memref<9x8x8xf32, #tpu.memory_space<vmem>>, vector<1x8x8xf32>
    %634 = vector.shape_cast %633 : vector<1x8x8xf32> to vector<8x8xf32>
    %cst_392 = arith.constant dense<0.000000e+00> : vector<8x256xf32>
    %635 = tpu.matmul %634, %611, %cst_392 {dimension_numbers = #tpu.dot_dimension_numbers<[1], [0], [0], [1], [0, 0, 1, 1], [], []>} : vector<8x8xf32>, vector<8x256xf32>, vector<8x256xf32> -> vector<8x256xf32>
    %c1_393 = arith.constant 1 : index
    %c0_394 = arith.constant 0 : index
    %c0_395 = arith.constant 0 : index
    %636 = vector.load %arg19[%c1_393, %c0_394, %c0_395] : memref<9x8x8xf32, #tpu.memory_space<vmem>>, vector<1x8x8xf32>
    %637 = vector.shape_cast %636 : vector<1x8x8xf32> to vector<8x8xf32>
    %cst_396 = arith.constant dense<0.000000e+00> : vector<8x256xf32>
    %638 = tpu.matmul %637, %614, %cst_396 {dimension_numbers = #tpu.dot_dimension_numbers<[1], [0], [0], [1], [0, 0, 1, 1], [], []>} : vector<8x8xf32>, vector<8x256xf32>, vector<8x256xf32> -> vector<8x256xf32>
    %639 = arith.addf %635, %638 : vector<8x256xf32>
    %c2_397 = arith.constant 2 : index
    %c0_398 = arith.constant 0 : index
    %c0_399 = arith.constant 0 : index
    %640 = vector.load %arg19[%c2_397, %c0_398, %c0_399] : memref<9x8x8xf32, #tpu.memory_space<vmem>>, vector<1x8x8xf32>
    %641 = vector.shape_cast %640 : vector<1x8x8xf32> to vector<8x8xf32>
    %cst_400 = arith.constant dense<0.000000e+00> : vector<8x256xf32>
    %642 = tpu.matmul %641, %617, %cst_400 {dimension_numbers = #tpu.dot_dimension_numbers<[1], [0], [0], [1], [0, 0, 1, 1], [], []>} : vector<8x8xf32>, vector<8x256xf32>, vector<8x256xf32> -> vector<8x256xf32>
    %643 = arith.addf %639, %642 : vector<8x256xf32>
    %c3_401 = arith.constant 3 : index
    %c0_402 = arith.constant 0 : index
    %c0_403 = arith.constant 0 : index
    %644 = vector.load %arg19[%c3_401, %c0_402, %c0_403] : memref<9x8x8xf32, #tpu.memory_space<vmem>>, vector<1x8x8xf32>
    %645 = vector.shape_cast %644 : vector<1x8x8xf32> to vector<8x8xf32>
    %cst_404 = arith.constant dense<0.000000e+00> : vector<8x256xf32>
    %646 = tpu.matmul %645, %620, %cst_404 {dimension_numbers = #tpu.dot_dimension_numbers<[1], [0], [0], [1], [0, 0, 1, 1], [], []>} : vector<8x8xf32>, vector<8x256xf32>, vector<8x256xf32> -> vector<8x256xf32>
    %647 = arith.addf %643, %646 : vector<8x256xf32>
    %c4_405 = arith.constant 4 : index
    %c0_406 = arith.constant 0 : index
    %c0_407 = arith.constant 0 : index
    %648 = vector.load %arg19[%c4_405, %c0_406, %c0_407] : memref<9x8x8xf32, #tpu.memory_space<vmem>>, vector<1x8x8xf32>
    %649 = vector.shape_cast %648 : vector<1x8x8xf32> to vector<8x8xf32>
    %cst_408 = arith.constant dense<0.000000e+00> : vector<8x256xf32>
    %650 = tpu.matmul %649, %607, %cst_408 {dimension_numbers = #tpu.dot_dimension_numbers<[1], [0], [0], [1], [0, 0, 1, 1], [], []>} : vector<8x8xf32>, vector<8x256xf32>, vector<8x256xf32> -> vector<8x256xf32>
    %651 = arith.addf %647, %650 : vector<8x256xf32>
    %c5_409 = arith.constant 5 : index
    %c0_410 = arith.constant 0 : index
    %c0_411 = arith.constant 0 : index
    %652 = vector.load %arg19[%c5_409, %c0_410, %c0_411] : memref<9x8x8xf32, #tpu.memory_space<vmem>>, vector<1x8x8xf32>
    %653 = vector.shape_cast %652 : vector<1x8x8xf32> to vector<8x8xf32>
    %cst_412 = arith.constant dense<0.000000e+00> : vector<8x256xf32>
    %654 = tpu.matmul %653, %623, %cst_412 {dimension_numbers = #tpu.dot_dimension_numbers<[1], [0], [0], [1], [0, 0, 1, 1], [], []>} : vector<8x8xf32>, vector<8x256xf32>, vector<8x256xf32> -> vector<8x256xf32>
    %655 = arith.addf %651, %654 : vector<8x256xf32>
    %c6_413 = arith.constant 6 : index
    %c0_414 = arith.constant 0 : index
    %c0_415 = arith.constant 0 : index
    %656 = vector.load %arg19[%c6_413, %c0_414, %c0_415] : memref<9x8x8xf32, #tpu.memory_space<vmem>>, vector<1x8x8xf32>
    %657 = vector.shape_cast %656 : vector<1x8x8xf32> to vector<8x8xf32>
    %cst_416 = arith.constant dense<0.000000e+00> : vector<8x256xf32>
    %658 = tpu.matmul %657, %626, %cst_416 {dimension_numbers = #tpu.dot_dimension_numbers<[1], [0], [0], [1], [0, 0, 1, 1], [], []>} : vector<8x8xf32>, vector<8x256xf32>, vector<8x256xf32> -> vector<8x256xf32>
    %659 = arith.addf %655, %658 : vector<8x256xf32>
    %c7_417 = arith.constant 7 : index
    %c0_418 = arith.constant 0 : index
    %c0_419 = arith.constant 0 : index
    %660 = vector.load %arg19[%c7_417, %c0_418, %c0_419] : memref<9x8x8xf32, #tpu.memory_space<vmem>>, vector<1x8x8xf32>
    %661 = vector.shape_cast %660 : vector<1x8x8xf32> to vector<8x8xf32>
    %cst_420 = arith.constant dense<0.000000e+00> : vector<8x256xf32>
    %662 = tpu.matmul %661, %629, %cst_420 {dimension_numbers = #tpu.dot_dimension_numbers<[1], [0], [0], [1], [0, 0, 1, 1], [], []>} : vector<8x8xf32>, vector<8x256xf32>, vector<8x256xf32> -> vector<8x256xf32>
    %663 = arith.addf %659, %662 : vector<8x256xf32>
    %c8_421 = arith.constant 8 : index
    %c0_422 = arith.constant 0 : index
    %c0_423 = arith.constant 0 : index
    %664 = vector.load %arg19[%c8_421, %c0_422, %c0_423] : memref<9x8x8xf32, #tpu.memory_space<vmem>>, vector<1x8x8xf32>
    %665 = vector.shape_cast %664 : vector<1x8x8xf32> to vector<8x8xf32>
    %cst_424 = arith.constant dense<0.000000e+00> : vector<8x256xf32>
    %666 = tpu.matmul %665, %632, %cst_424 {dimension_numbers = #tpu.dot_dimension_numbers<[1], [0], [0], [1], [0, 0, 1, 1], [], []>} : vector<8x8xf32>, vector<8x256xf32>, vector<8x256xf32> -> vector<8x256xf32>
    %667 = arith.addf %663, %666 : vector<8x256xf32>
    %668 = vector.broadcast %608 : vector<8x1xf32> to vector<8x256xf32>
    %669 = arith.addf %667, %668 : vector<8x256xf32>
    %cst_425 = arith.constant 0.000000e+00 : f32
    %670 = vector.broadcast %cst_425 : f32 to vector<8x256xf32>
    %671 = arith.maximumf %669, %670 : vector<8x256xf32>
    %c0_426 = arith.constant 0 : index
    %c0_427 = arith.constant 0 : index
    %672 = vector.load %arg21[%c0_426, %c0_427] : memref<3x8xf32, #tpu.memory_space<vmem>>, vector<3x8xf32>
    %cst_428 = arith.constant dense<0.000000e+00> : vector<3x256xf32>
    %673 = tpu.matmul %672, %671, %cst_428 {dimension_numbers = #tpu.dot_dimension_numbers<[1], [0], [0], [1], [0, 0, 1, 1], [], []>} : vector<3x8xf32>, vector<8x256xf32>, vector<3x256xf32> -> vector<3x256xf32>
    %c0_429 = arith.constant 0 : index
    %c0_430 = arith.constant 0 : index
    %674 = vector.load %arg22[%c0_429, %c0_430] : memref<3x1xf32, #tpu.memory_space<vmem>>, vector<3x1xf32>
    %675 = vector.broadcast %674 : vector<3x1xf32> to vector<3x256xf32>
    %676 = arith.addf %673, %675 : vector<3x256xf32>
    %c0_431 = arith.constant 0 : index
    %c0_432 = arith.constant 0 : index
    %c0_433 = arith.constant 0 : index
    %677 = vector.load %arg23[%c0_431, %c0_432, %c0_433] : memref<1x3x256xf32, #tpu.memory_space<vmem>>, vector<1x3x256xf32>
    %678 = vector.shape_cast %677 : vector<1x3x256xf32> to vector<3x256xf32>
    %679 = vector.shape_cast %676 : vector<3x256xf32> to vector<1x3x256xf32>
    tpu.vector_store %arg23[%c0_431, %c0_432, %c0_433], %679 {strides = array<i32>} : memref<1x3x256xf32, #tpu.memory_space<vmem>>, vector<1x3x256xf32>,
    return
  }
  func.func @transform_0(%arg0: i32) -> (i32, i32, i32) {
    %c0_i32 = arith.constant 0 : i32
    %c0_i32_0 = arith.constant 0 : i32
    %c0_i32_1 = arith.constant 0 : i32
    return %arg0, %c0_i32, %c0_i32_0 : i32, i32, i32
  }
  func.func @transform_1(%arg0: i32) -> (i32, i32) {
    %c0_i32 = arith.constant 0 : i32
    %c0_i32_0 = arith.constant 0 : i32
    %c0_i32_1 = arith.constant 0 : i32
    return %c0_i32, %c0_i32_0 : i32, i32
  }
  func.func @transform_2(%arg0: i32) -> (i32, i32) {
    %c0_i32 = arith.constant 0 : i32
    %c0_i32_0 = arith.constant 0 : i32
    %c0_i32_1 = arith.constant 0 : i32
    return %c0_i32, %c0_i32_0 : i32, i32
  }
  func.func @transform_3(%arg0: i32) -> (i32, i32) {
    %c0_i32 = arith.constant 0 : i32
    %c0_i32_0 = arith.constant 0 : i32
    %c0_i32_1 = arith.constant 0 : i32
    return %c0_i32, %c0_i32_0 : i32, i32
  }
  func.func @transform_4(%arg0: i32) -> (i32, i32) {
    %c0_i32 = arith.constant 0 : i32
    %c0_i32_0 = arith.constant 0 : i32
    %c0_i32_1 = arith.constant 0 : i32
    return %c0_i32, %c0_i32_0 : i32, i32
  }
  func.func @transform_5(%arg0: i32) -> (i32, i32, i32) {
    %c0_i32 = arith.constant 0 : i32
    %c0_i32_0 = arith.constant 0 : i32
    %c0_i32_1 = arith.constant 0 : i32
    %c0_i32_2 = arith.constant 0 : i32
    return %c0_i32, %c0_i32_0, %c0_i32_1 : i32, i32, i32
  }
  func.func @transform_6(%arg0: i32) -> (i32, i32) {
    %c0_i32 = arith.constant 0 : i32
    %c0_i32_0 = arith.constant 0 : i32
    %c0_i32_1 = arith.constant 0 : i32
    return %c0_i32, %c0_i32_0 : i32, i32
  }
  func.func @transform_7(%arg0: i32) -> (i32, i32, i32) {
    %c0_i32 = arith.constant 0 : i32
    %c0_i32_0 = arith.constant 0 : i32
    %c0_i32_1 = arith.constant 0 : i32
    %c0_i32_2 = arith.constant 0 : i32
    return %c0_i32, %c0_i32_0, %c0_i32_1 : i32, i32, i32
  }
  func.func @transform_8(%arg0: i32) -> (i32, i32) {
    %c0_i32 = arith.constant 0 : i32
    %c0_i32_0 = arith.constant 0 : i32
    %c0_i32_1 = arith.constant 0 : i32
    return %c0_i32, %c0_i32_0 : i32, i32
  }
  func.func @transform_9(%arg0: i32) -> (i32, i32, i32) {
    %c0_i32 = arith.constant 0 : i32
    %c0_i32_0 = arith.constant 0 : i32
    %c0_i32_1 = arith.constant 0 : i32
    %c0_i32_2 = arith.constant 0 : i32
    return %c0_i32, %c0_i32_0, %c0_i32_1 : i32, i32, i32
  }
  func.func @transform_10(%arg0: i32) -> (i32, i32) {
    %c0_i32 = arith.constant 0 : i32
    %c0_i32_0 = arith.constant 0 : i32
    %c0_i32_1 = arith.constant 0 : i32
    return %c0_i32, %c0_i32_0 : i32, i32
  }
  func.func @transform_11(%arg0: i32) -> (i32, i32, i32) {
    %c0_i32 = arith.constant 0 : i32
    %c0_i32_0 = arith.constant 0 : i32
    %c0_i32_1 = arith.constant 0 : i32
    %c0_i32_2 = arith.constant 0 : i32
    return %c0_i32, %c0_i32_0, %c0_i32_1 : i32, i32, i32
  }
  func.func @transform_12(%arg0: i32) -> (i32, i32) {
    %c0_i32 = arith.constant 0 : i32
    %c0_i32_0 = arith.constant 0 : i32
    %c0_i32_1 = arith.constant 0 : i32
    return %c0_i32, %c0_i32_0 : i32, i32
  }
  func.func @transform_13(%arg0: i32) -> (i32, i32, i32) {
    %c0_i32 = arith.constant 0 : i32
    %c0_i32_0 = arith.constant 0 : i32
    %c0_i32_1 = arith.constant 0 : i32
    %c0_i32_2 = arith.constant 0 : i32
    return %c0_i32, %c0_i32_0, %c0_i32_1 : i32, i32, i32
  }
  func.func @transform_14(%arg0: i32) -> (i32, i32) {
    %c0_i32 = arith.constant 0 : i32
    %c0_i32_0 = arith.constant 0 : i32
    %c0_i32_1 = arith.constant 0 : i32
    return %c0_i32, %c0_i32_0 : i32, i32
  }
  func.func @transform_15(%arg0: i32) -> (i32, i32, i32) {
    %c0_i32 = arith.constant 0 : i32
    %c0_i32_0 = arith.constant 0 : i32
    %c0_i32_1 = arith.constant 0 : i32
    %c0_i32_2 = arith.constant 0 : i32
    return %c0_i32, %c0_i32_0, %c0_i32_1 : i32, i32, i32
  }
  func.func @transform_16(%arg0: i32) -> (i32, i32, i32) {
    %c0_i32 = arith.constant 0 : i32
    %c0_i32_0 = arith.constant 0 : i32
    %c0_i32_1 = arith.constant 0 : i32
    %c0_i32_2 = arith.constant 0 : i32
    return %c0_i32, %c0_i32_0, %c0_i32_1 : i32, i32, i32
  }
  func.func @transform_17(%arg0: i32) -> (i32, i32) {
    %c0_i32 = arith.constant 0 : i32
    %c0_i32_0 = arith.constant 0 : i32
    %c0_i32_1 = arith.constant 0 : i32
    return %c0_i32, %c0_i32_0 : i32, i32
  }
  func.func @transform_18(%arg0: i32) -> (i32, i32, i32) {
    %c0_i32 = arith.constant 0 : i32
    %c0_i32_0 = arith.constant 0 : i32
    %c0_i32_1 = arith.constant 0 : i32
    %c0_i32_2 = arith.constant 0 : i32
    return %c0_i32, %c0_i32_0, %c0_i32_1 : i32, i32, i32
  }
  func.func @transform_19(%arg0: i32) -> (i32, i32) {
    %c0_i32 = arith.constant 0 : i32
    %c0_i32_0 = arith.constant 0 : i32
    %c0_i32_1 = arith.constant 0 : i32
    return %c0_i32, %c0_i32_0 : i32, i32
  }
  func.func @transform_20(%arg0: i32) -> (i32, i32) {
    %c0_i32 = arith.constant 0 : i32
    %c0_i32_0 = arith.constant 0 : i32
    %c0_i32_1 = arith.constant 0 : i32
    return %c0_i32, %c0_i32_0 : i32, i32
  }
  func.func @transform_21(%arg0: i32) -> (i32, i32) {
    %c0_i32 = arith.constant 0 : i32
    %c0_i32_0 = arith.constant 0 : i32
    %c0_i32_1 = arith.constant 0 : i32
    return %c0_i32, %c0_i32_0 : i32, i32
  }
  func.func @transform_22(%arg0: i32) -> (i32, i32, i32) {
    %c0_i32 = arith.constant 0 : i32
    %c0_i32_0 = arith.constant 0 : i32
    %c0_i32_1 = arith.constant 0 : i32
    return %arg0, %c0_i32, %c0_i32_0 : i32, i32, i32
  }
}

module attributes {stable_mosaic.version = 11 : i64} {
  func.func @_bilstm_kernel(%arg0: i32, %arg1: memref<2x3x256xf32, #tpu.memory_space<vmem>>, %arg2: memref<1x256xi32, #tpu.memory_space<vmem>>, %arg3: memref<1x256xi32, #tpu.memory_space<vmem>>, %arg4: memref<4x9x3x3xf32, #tpu.memory_space<vmem>>, %arg5: memref<4x9x3x3xf32, #tpu.memory_space<vmem>>, %arg6: memref<4x3x1xf32, #tpu.memory_space<vmem>>, %arg7: memref<4x9x3x3xf32, #tpu.memory_space<vmem>>, %arg8: memref<4x9x3x3xf32, #tpu.memory_space<vmem>>, %arg9: memref<4x3x1xf32, #tpu.memory_space<vmem>>, %arg10: memref<9x3x3xf32, #tpu.memory_space<vmem>>, %arg11: memref<9x3x3xf32, #tpu.memory_space<vmem>>, %arg12: memref<3x1xf32, #tpu.memory_space<vmem>>, %arg13: memref<1x3x256xf32, #tpu.memory_space<vmem>>, %arg14: memref<3x256xf32, #tpu.memory_space<vmem>>, %arg15: memref<3x256xf32, #tpu.memory_space<vmem>>, %arg16: memref<3x256xf32, #tpu.memory_space<vmem>>, %arg17: memref<3x256xf32, #tpu.memory_space<vmem>>) attributes {dimension_semantics = [#tpu.dimension_semantics<arbitrary>], iteration_bounds = array<i64: 2>, scalar_prefetch = 0 : i64, scratch_operands = 4 : i64, tpu.core_type = #tpu.core_type<tc>, window_params = [{pipeline_mode = #tpu.pipeline_mode<synchronous>, transform_indices = @transform_0, window_bounds = array<i64: 2, 3, 256>}, {pipeline_mode = #tpu.pipeline_mode<synchronous>, transform_indices = @transform_1, window_bounds = array<i64: 1, 256>}, {pipeline_mode = #tpu.pipeline_mode<synchronous>, transform_indices = @transform_2, window_bounds = array<i64: 1, 256>}, {pipeline_mode = #tpu.pipeline_mode<synchronous>, transform_indices = @transform_3, window_bounds = array<i64: 4, 9, 3, 3>}, {pipeline_mode = #tpu.pipeline_mode<synchronous>, transform_indices = @transform_4, window_bounds = array<i64: 4, 9, 3, 3>}, {pipeline_mode = #tpu.pipeline_mode<synchronous>, transform_indices = @transform_5, window_bounds = array<i64: 4, 3, 1>}, {pipeline_mode = #tpu.pipeline_mode<synchronous>, transform_indices = @transform_6, window_bounds = array<i64: 4, 9, 3, 3>}, {pipeline_mode = #tpu.pipeline_mode<synchronous>, transform_indices = @transform_7, window_bounds = array<i64: 4, 9, 3, 3>}, {pipeline_mode = #tpu.pipeline_mode<synchronous>, transform_indices = @transform_8, window_bounds = array<i64: 4, 3, 1>}, {pipeline_mode = #tpu.pipeline_mode<synchronous>, transform_indices = @transform_9, window_bounds = array<i64: 9, 3, 3>}, {pipeline_mode = #tpu.pipeline_mode<synchronous>, transform_indices = @transform_10, window_bounds = array<i64: 9, 3, 3>}, {pipeline_mode = #tpu.pipeline_mode<synchronous>, transform_indices = @transform_11, window_bounds = array<i64: 3, 1>}, {transform_indices = @transform_12, window_bounds = array<i64: 1, 3, 256>}]} {
    %c0_i32 = arith.constant 0 : i32
    %0 = arith.cmpi eq, %arg0, %c0_i32 : i32
    %1 = arith.extui %0 : i1 to i32
    %c0_i32_0 = arith.constant 0 : i32
    %2 = arith.cmpi ne, %1, %c0_i32_0 : i32
    scf.if %2 {
      %cst_919 = arith.constant 0.000000e+00 : f32
      %947 = vector.broadcast %cst_919 : f32 to vector<3x256xf32>
      %c0_920 = arith.constant 0 : index
      %c0_921 = arith.constant 0 : index
      %948 = vector.load %arg14[%c0_920, %c0_921] : memref<3x256xf32, #tpu.memory_space<vmem>>, vector<3x256xf32>
      tpu.vector_store %arg14[%c0_920, %c0_921], %947 {strides = array<i32>} : memref<3x256xf32, #tpu.memory_space<vmem>>, vector<3x256xf32>,
      %cst_922 = arith.constant 0.000000e+00 : f32
      %949 = vector.broadcast %cst_922 : f32 to vector<3x256xf32>
      %c0_923 = arith.constant 0 : index
      %c0_924 = arith.constant 0 : index
      %950 = vector.load %arg15[%c0_923, %c0_924] : memref<3x256xf32, #tpu.memory_space<vmem>>, vector<3x256xf32>
      tpu.vector_store %arg15[%c0_923, %c0_924], %949 {strides = array<i32>} : memref<3x256xf32, #tpu.memory_space<vmem>>, vector<3x256xf32>,
      %cst_925 = arith.constant 0.000000e+00 : f32
      %951 = vector.broadcast %cst_925 : f32 to vector<3x256xf32>
      %c0_926 = arith.constant 0 : index
      %c0_927 = arith.constant 0 : index
      %952 = vector.load %arg16[%c0_926, %c0_927] : memref<3x256xf32, #tpu.memory_space<vmem>>, vector<3x256xf32>
      tpu.vector_store %arg16[%c0_926, %c0_927], %951 {strides = array<i32>} : memref<3x256xf32, #tpu.memory_space<vmem>>, vector<3x256xf32>,
      %cst_928 = arith.constant 0.000000e+00 : f32
      %953 = vector.broadcast %cst_928 : f32 to vector<3x256xf32>
      %c0_929 = arith.constant 0 : index
      %c0_930 = arith.constant 0 : index
      %954 = vector.load %arg17[%c0_929, %c0_930] : memref<3x256xf32, #tpu.memory_space<vmem>>, vector<3x256xf32>
      tpu.vector_store %arg17[%c0_929, %c0_930], %953 {strides = array<i32>} : memref<3x256xf32, #tpu.memory_space<vmem>>, vector<3x256xf32>,
    } else {
    }
    %c0 = arith.constant 0 : index
    %c0_1 = arith.constant 0 : index
    %3 = vector.load %arg2[%c0, %c0_1] : memref<1x256xi32, #tpu.memory_space<vmem>>, vector<1x256xi32>
    %c0_2 = arith.constant 0 : index
    %c0_3 = arith.constant 0 : index
    %4 = vector.load %arg3[%c0_2, %c0_3] : memref<1x256xi32, #tpu.memory_space<vmem>>, vector<1x256xi32>
    %c1_i32 = arith.constant 1 : i32
    %5 = vector.broadcast %c1_i32 : i32 to vector<1x256xi32>
    %6 = arith.cmpi sge, %4, %5 : vector<1x256xi32>
    %cst = arith.constant 1.000000e+00 : f32
    %cst_4 = arith.constant 0.000000e+00 : f32
    %7 = vector.broadcast %cst : f32 to vector<1x256xf32>
    %8 = vector.broadcast %cst_4 : f32 to vector<1x256xf32>
    %9 = arith.select %6, %7, %8 : vector<1x256xi1>, vector<1x256xf32>
    %c1_i32_5 = arith.constant 1 : i32
    %10 = vector.broadcast %c1_i32_5 : i32 to vector<1x256xi32>
    %11 = arith.cmpi sge, %3, %10 : vector<1x256xi32>
    %cst_6 = arith.constant 1.000000e+00 : f32
    %cst_7 = arith.constant 0.000000e+00 : f32
    %12 = vector.broadcast %cst_6 : f32 to vector<1x256xf32>
    %13 = vector.broadcast %cst_7 : f32 to vector<1x256xf32>
    %14 = arith.select %11, %12, %13 : vector<1x256xi1>, vector<1x256xf32>
    %15 = arith.mulf %9, %14 : vector<1x256xf32>
    %c1_i32_8 = arith.constant 1 : i32
    %16 = vector.broadcast %c1_i32_8 : i32 to vector<1x256xi32>
    %17 = arith.cmpi sge, %4, %16 : vector<1x256xi32>
    %cst_9 = arith.constant 1.000000e+00 : f32
    %cst_10 = arith.constant 0.000000e+00 : f32
    %18 = vector.broadcast %cst_9 : f32 to vector<1x256xf32>
    %19 = vector.broadcast %cst_10 : f32 to vector<1x256xf32>
    %20 = arith.select %17, %18, %19 : vector<1x256xi1>, vector<1x256xf32>
    %c1_i32_11 = arith.constant 1 : i32
    %21 = vector.broadcast %c1_i32_11 : i32 to vector<1x256xi32>
    %22 = arith.cmpi sge, %4, %21 : vector<1x256xi32>
    %cst_12 = arith.constant 1.000000e+00 : f32
    %cst_13 = arith.constant 0.000000e+00 : f32
    %23 = vector.broadcast %cst_12 : f32 to vector<1x256xf32>
    %24 = vector.broadcast %cst_13 : f32 to vector<1x256xf32>
    %25 = arith.select %22, %23, %24 : vector<1x256xi1>, vector<1x256xf32>
    %c15_i32 = arith.constant 15 : i32
    %26 = vector.broadcast %c15_i32 : i32 to vector<1x256xi32>
    %27 = arith.cmpi slt, %3, %26 : vector<1x256xi32>
    %cst_14 = arith.constant 1.000000e+00 : f32
    %cst_15 = arith.constant 0.000000e+00 : f32
    %28 = vector.broadcast %cst_14 : f32 to vector<1x256xf32>
    %29 = vector.broadcast %cst_15 : f32 to vector<1x256xf32>
    %30 = arith.select %27, %28, %29 : vector<1x256xi1>, vector<1x256xf32>
    %31 = arith.mulf %25, %30 : vector<1x256xf32>
    %c1_i32_16 = arith.constant 1 : i32
    %32 = vector.broadcast %c1_i32_16 : i32 to vector<1x256xi32>
    %33 = arith.cmpi sge, %3, %32 : vector<1x256xi32>
    %cst_17 = arith.constant 1.000000e+00 : f32
    %cst_18 = arith.constant 0.000000e+00 : f32
    %34 = vector.broadcast %cst_17 : f32 to vector<1x256xf32>
    %35 = vector.broadcast %cst_18 : f32 to vector<1x256xf32>
    %36 = arith.select %33, %34, %35 : vector<1x256xi1>, vector<1x256xf32>
    %c15_i32_19 = arith.constant 15 : i32
    %37 = vector.broadcast %c15_i32_19 : i32 to vector<1x256xi32>
    %38 = arith.cmpi slt, %3, %37 : vector<1x256xi32>
    %cst_20 = arith.constant 1.000000e+00 : f32
    %cst_21 = arith.constant 0.000000e+00 : f32
    %39 = vector.broadcast %cst_20 : f32 to vector<1x256xf32>
    %40 = vector.broadcast %cst_21 : f32 to vector<1x256xf32>
    %41 = arith.select %38, %39, %40 : vector<1x256xi1>, vector<1x256xf32>
    %c15_i32_22 = arith.constant 15 : i32
    %42 = vector.broadcast %c15_i32_22 : i32 to vector<1x256xi32>
    %43 = arith.cmpi slt, %4, %42 : vector<1x256xi32>
    %cst_23 = arith.constant 1.000000e+00 : f32
    %cst_24 = arith.constant 0.000000e+00 : f32
    %44 = vector.broadcast %cst_23 : f32 to vector<1x256xf32>
    %45 = vector.broadcast %cst_24 : f32 to vector<1x256xf32>
    %46 = arith.select %43, %44, %45 : vector<1x256xi1>, vector<1x256xf32>
    %c1_i32_25 = arith.constant 1 : i32
    %47 = vector.broadcast %c1_i32_25 : i32 to vector<1x256xi32>
    %48 = arith.cmpi sge, %3, %47 : vector<1x256xi32>
    %cst_26 = arith.constant 1.000000e+00 : f32
    %cst_27 = arith.constant 0.000000e+00 : f32
    %49 = vector.broadcast %cst_26 : f32 to vector<1x256xf32>
    %50 = vector.broadcast %cst_27 : f32 to vector<1x256xf32>
    %51 = arith.select %48, %49, %50 : vector<1x256xi1>, vector<1x256xf32>
    %52 = arith.mulf %46, %51 : vector<1x256xf32>
    %c15_i32_28 = arith.constant 15 : i32
    %53 = vector.broadcast %c15_i32_28 : i32 to vector<1x256xi32>
    %54 = arith.cmpi slt, %4, %53 : vector<1x256xi32>
    %cst_29 = arith.constant 1.000000e+00 : f32
    %cst_30 = arith.constant 0.000000e+00 : f32
    %55 = vector.broadcast %cst_29 : f32 to vector<1x256xf32>
    %56 = vector.broadcast %cst_30 : f32 to vector<1x256xf32>
    %57 = arith.select %54, %55, %56 : vector<1x256xi1>, vector<1x256xf32>
    %c15_i32_31 = arith.constant 15 : i32
    %58 = vector.broadcast %c15_i32_31 : i32 to vector<1x256xi32>
    %59 = arith.cmpi slt, %4, %58 : vector<1x256xi32>
    %cst_32 = arith.constant 1.000000e+00 : f32
    %cst_33 = arith.constant 0.000000e+00 : f32
    %60 = vector.broadcast %cst_32 : f32 to vector<1x256xf32>
    %61 = vector.broadcast %cst_33 : f32 to vector<1x256xf32>
    %62 = arith.select %59, %60, %61 : vector<1x256xi1>, vector<1x256xf32>
    %c15_i32_34 = arith.constant 15 : i32
    %63 = vector.broadcast %c15_i32_34 : i32 to vector<1x256xi32>
    %64 = arith.cmpi slt, %3, %63 : vector<1x256xi32>
    %cst_35 = arith.constant 1.000000e+00 : f32
    %cst_36 = arith.constant 0.000000e+00 : f32
    %65 = vector.broadcast %cst_35 : f32 to vector<1x256xf32>
    %66 = vector.broadcast %cst_36 : f32 to vector<1x256xf32>
    %67 = arith.select %64, %65, %66 : vector<1x256xi1>, vector<1x256xf32>
    %68 = arith.mulf %62, %67 : vector<1x256xf32>
    %69 = arith.index_cast %arg0 : i32 to index
    %c0_37 = arith.constant 0 : index
    %c0_38 = arith.constant 0 : index
    %70 = vector.load %arg1[%69, %c0_37, %c0_38] : memref<2x3x256xf32, #tpu.memory_space<vmem>>, vector<1x3x256xf32>
    %71 = vector.shape_cast %70 : vector<1x3x256xf32> to vector<3x256xf32>
    %c1_i32_39 = arith.constant 1 : i32
    %72 = arith.subi %c1_i32_39, %arg0 : i32
    %73 = arith.index_cast %72 : i32 to index
    %c0_40 = arith.constant 0 : index
    %c0_41 = arith.constant 0 : index
    %74 = vector.load %arg1[%73, %c0_40, %c0_41] : memref<2x3x256xf32, #tpu.memory_space<vmem>>, vector<1x3x256xf32>
    %75 = vector.shape_cast %74 : vector<1x3x256xf32> to vector<3x256xf32>
    %c17_i32 = arith.constant 17 : i32
    %76 = tpu.dynamic_rotate %71 by %c17_i32 dim 1 : vector<3x256xf32>, i32 -> vector<3x256xf32>
    %77 = vector.broadcast %15 : vector<1x256xf32> to vector<3x256xf32>
    %78 = arith.mulf %76, %77 : vector<3x256xf32>
    %c16_i32 = arith.constant 16 : i32
    %79 = tpu.dynamic_rotate %71 by %c16_i32 dim 1 : vector<3x256xf32>, i32 -> vector<3x256xf32>
    %80 = vector.broadcast %20 : vector<1x256xf32> to vector<3x256xf32>
    %81 = arith.mulf %79, %80 : vector<3x256xf32>
    %c15_i32_42 = arith.constant 15 : i32
    %82 = tpu.dynamic_rotate %71 by %c15_i32_42 dim 1 : vector<3x256xf32>, i32 -> vector<3x256xf32>
    %83 = vector.broadcast %31 : vector<1x256xf32> to vector<3x256xf32>
    %84 = arith.mulf %82, %83 : vector<3x256xf32>
    %c1_i32_43 = arith.constant 1 : i32
    %85 = tpu.dynamic_rotate %71 by %c1_i32_43 dim 1 : vector<3x256xf32>, i32 -> vector<3x256xf32>
    %86 = vector.broadcast %36 : vector<1x256xf32> to vector<3x256xf32>
    %87 = arith.mulf %85, %86 : vector<3x256xf32>
    %c255_i32 = arith.constant 255 : i32
    %88 = tpu.dynamic_rotate %71 by %c255_i32 dim 1 : vector<3x256xf32>, i32 -> vector<3x256xf32>
    %89 = vector.broadcast %41 : vector<1x256xf32> to vector<3x256xf32>
    %90 = arith.mulf %88, %89 : vector<3x256xf32>
    %c241_i32 = arith.constant 241 : i32
    %91 = tpu.dynamic_rotate %71 by %c241_i32 dim 1 : vector<3x256xf32>, i32 -> vector<3x256xf32>
    %92 = vector.broadcast %52 : vector<1x256xf32> to vector<3x256xf32>
    %93 = arith.mulf %91, %92 : vector<3x256xf32>
    %c240_i32 = arith.constant 240 : i32
    %94 = tpu.dynamic_rotate %71 by %c240_i32 dim 1 : vector<3x256xf32>, i32 -> vector<3x256xf32>
    %95 = vector.broadcast %57 : vector<1x256xf32> to vector<3x256xf32>
    %96 = arith.mulf %94, %95 : vector<3x256xf32>
    %c239_i32 = arith.constant 239 : i32
    %97 = tpu.dynamic_rotate %71 by %c239_i32 dim 1 : vector<3x256xf32>, i32 -> vector<3x256xf32>
    %98 = vector.broadcast %68 : vector<1x256xf32> to vector<3x256xf32>
    %99 = arith.mulf %97, %98 : vector<3x256xf32>
    %c0_44 = arith.constant 0 : index
    %c0_45 = arith.constant 0 : index
    %100 = vector.load %arg14[%c0_44, %c0_45] : memref<3x256xf32, #tpu.memory_space<vmem>>, vector<3x256xf32>
    %c17_i32_46 = arith.constant 17 : i32
    %101 = tpu.dynamic_rotate %100 by %c17_i32_46 dim 1 : vector<3x256xf32>, i32 -> vector<3x256xf32>
    %102 = vector.broadcast %15 : vector<1x256xf32> to vector<3x256xf32>
    %103 = arith.mulf %101, %102 : vector<3x256xf32>
    %c16_i32_47 = arith.constant 16 : i32
    %104 = tpu.dynamic_rotate %100 by %c16_i32_47 dim 1 : vector<3x256xf32>, i32 -> vector<3x256xf32>
    %105 = vector.broadcast %20 : vector<1x256xf32> to vector<3x256xf32>
    %106 = arith.mulf %104, %105 : vector<3x256xf32>
    %c15_i32_48 = arith.constant 15 : i32
    %107 = tpu.dynamic_rotate %100 by %c15_i32_48 dim 1 : vector<3x256xf32>, i32 -> vector<3x256xf32>
    %108 = vector.broadcast %31 : vector<1x256xf32> to vector<3x256xf32>
    %109 = arith.mulf %107, %108 : vector<3x256xf32>
    %c1_i32_49 = arith.constant 1 : i32
    %110 = tpu.dynamic_rotate %100 by %c1_i32_49 dim 1 : vector<3x256xf32>, i32 -> vector<3x256xf32>
    %111 = vector.broadcast %36 : vector<1x256xf32> to vector<3x256xf32>
    %112 = arith.mulf %110, %111 : vector<3x256xf32>
    %c255_i32_50 = arith.constant 255 : i32
    %113 = tpu.dynamic_rotate %100 by %c255_i32_50 dim 1 : vector<3x256xf32>, i32 -> vector<3x256xf32>
    %114 = vector.broadcast %41 : vector<1x256xf32> to vector<3x256xf32>
    %115 = arith.mulf %113, %114 : vector<3x256xf32>
    %c241_i32_51 = arith.constant 241 : i32
    %116 = tpu.dynamic_rotate %100 by %c241_i32_51 dim 1 : vector<3x256xf32>, i32 -> vector<3x256xf32>
    %117 = vector.broadcast %52 : vector<1x256xf32> to vector<3x256xf32>
    %118 = arith.mulf %116, %117 : vector<3x256xf32>
    %c240_i32_52 = arith.constant 240 : i32
    %119 = tpu.dynamic_rotate %100 by %c240_i32_52 dim 1 : vector<3x256xf32>, i32 -> vector<3x256xf32>
    %120 = vector.broadcast %57 : vector<1x256xf32> to vector<3x256xf32>
    %121 = arith.mulf %119, %120 : vector<3x256xf32>
    %c239_i32_53 = arith.constant 239 : i32
    %122 = tpu.dynamic_rotate %100 by %c239_i32_53 dim 1 : vector<3x256xf32>, i32 -> vector<3x256xf32>
    %123 = vector.broadcast %68 : vector<1x256xf32> to vector<3x256xf32>
    %124 = arith.mulf %122, %123 : vector<3x256xf32>
    %c0_54 = arith.constant 0 : index
    %c0_55 = arith.constant 0 : index
    %c0_56 = arith.constant 0 : index
    %c0_57 = arith.constant 0 : index
    %125 = vector.load %arg4[%c0_54, %c0_55, %c0_56, %c0_57] : memref<4x9x3x3xf32, #tpu.memory_space<vmem>>, vector<1x1x3x3xf32>
    %126 = vector.shape_cast %125 : vector<1x1x3x3xf32> to vector<3x3xf32>
    %cst_58 = arith.constant dense<0.000000e+00> : vector<3x256xf32>
    %127 = tpu.matmul %126, %78, %cst_58 {dimension_numbers = #tpu.dot_dimension_numbers<[1], [0], [0], [1], [0, 0, 1, 1], [], []>} : vector<3x3xf32>, vector<3x256xf32>, vector<3x256xf32> -> vector<3x256xf32>
    %c0_59 = arith.constant 0 : index
    %c0_60 = arith.constant 0 : index
    %c0_61 = arith.constant 0 : index
    %c0_62 = arith.constant 0 : index
    %128 = vector.load %arg5[%c0_59, %c0_60, %c0_61, %c0_62] : memref<4x9x3x3xf32, #tpu.memory_space<vmem>>, vector<1x1x3x3xf32>
    %129 = vector.shape_cast %128 : vector<1x1x3x3xf32> to vector<3x3xf32>
    %cst_63 = arith.constant dense<0.000000e+00> : vector<3x256xf32>
    %130 = tpu.matmul %129, %103, %cst_63 {dimension_numbers = #tpu.dot_dimension_numbers<[1], [0], [0], [1], [0, 0, 1, 1], [], []>} : vector<3x3xf32>, vector<3x256xf32>, vector<3x256xf32> -> vector<3x256xf32>
    %131 = arith.addf %127, %130 : vector<3x256xf32>
    %c0_64 = arith.constant 0 : index
    %c1 = arith.constant 1 : index
    %c0_65 = arith.constant 0 : index
    %c0_66 = arith.constant 0 : index
    %132 = vector.load %arg4[%c0_64, %c1, %c0_65, %c0_66] : memref<4x9x3x3xf32, #tpu.memory_space<vmem>>, vector<1x1x3x3xf32>
    %133 = vector.shape_cast %132 : vector<1x1x3x3xf32> to vector<3x3xf32>
    %cst_67 = arith.constant dense<0.000000e+00> : vector<3x256xf32>
    %134 = tpu.matmul %133, %81, %cst_67 {dimension_numbers = #tpu.dot_dimension_numbers<[1], [0], [0], [1], [0, 0, 1, 1], [], []>} : vector<3x3xf32>, vector<3x256xf32>, vector<3x256xf32> -> vector<3x256xf32>
    %c0_68 = arith.constant 0 : index
    %c1_69 = arith.constant 1 : index
    %c0_70 = arith.constant 0 : index
    %c0_71 = arith.constant 0 : index
    %135 = vector.load %arg5[%c0_68, %c1_69, %c0_70, %c0_71] : memref<4x9x3x3xf32, #tpu.memory_space<vmem>>, vector<1x1x3x3xf32>
    %136 = vector.shape_cast %135 : vector<1x1x3x3xf32> to vector<3x3xf32>
    %cst_72 = arith.constant dense<0.000000e+00> : vector<3x256xf32>
    %137 = tpu.matmul %136, %106, %cst_72 {dimension_numbers = #tpu.dot_dimension_numbers<[1], [0], [0], [1], [0, 0, 1, 1], [], []>} : vector<3x3xf32>, vector<3x256xf32>, vector<3x256xf32> -> vector<3x256xf32>
    %138 = arith.addf %131, %134 : vector<3x256xf32>
    %139 = arith.addf %138, %137 : vector<3x256xf32>
    %c0_73 = arith.constant 0 : index
    %c2 = arith.constant 2 : index
    %c0_74 = arith.constant 0 : index
    %c0_75 = arith.constant 0 : index
    %140 = vector.load %arg4[%c0_73, %c2, %c0_74, %c0_75] : memref<4x9x3x3xf32, #tpu.memory_space<vmem>>, vector<1x1x3x3xf32>
    %141 = vector.shape_cast %140 : vector<1x1x3x3xf32> to vector<3x3xf32>
    %cst_76 = arith.constant dense<0.000000e+00> : vector<3x256xf32>
    %142 = tpu.matmul %141, %84, %cst_76 {dimension_numbers = #tpu.dot_dimension_numbers<[1], [0], [0], [1], [0, 0, 1, 1], [], []>} : vector<3x3xf32>, vector<3x256xf32>, vector<3x256xf32> -> vector<3x256xf32>
    %c0_77 = arith.constant 0 : index
    %c2_78 = arith.constant 2 : index
    %c0_79 = arith.constant 0 : index
    %c0_80 = arith.constant 0 : index
    %143 = vector.load %arg5[%c0_77, %c2_78, %c0_79, %c0_80] : memref<4x9x3x3xf32, #tpu.memory_space<vmem>>, vector<1x1x3x3xf32>
    %144 = vector.shape_cast %143 : vector<1x1x3x3xf32> to vector<3x3xf32>
    %cst_81 = arith.constant dense<0.000000e+00> : vector<3x256xf32>
    %145 = tpu.matmul %144, %109, %cst_81 {dimension_numbers = #tpu.dot_dimension_numbers<[1], [0], [0], [1], [0, 0, 1, 1], [], []>} : vector<3x3xf32>, vector<3x256xf32>, vector<3x256xf32> -> vector<3x256xf32>
    %146 = arith.addf %139, %142 : vector<3x256xf32>
    %147 = arith.addf %146, %145 : vector<3x256xf32>
    %c0_82 = arith.constant 0 : index
    %c3 = arith.constant 3 : index
    %c0_83 = arith.constant 0 : index
    %c0_84 = arith.constant 0 : index
    %148 = vector.load %arg4[%c0_82, %c3, %c0_83, %c0_84] : memref<4x9x3x3xf32, #tpu.memory_space<vmem>>, vector<1x1x3x3xf32>
    %149 = vector.shape_cast %148 : vector<1x1x3x3xf32> to vector<3x3xf32>
    %cst_85 = arith.constant dense<0.000000e+00> : vector<3x256xf32>
    %150 = tpu.matmul %149, %87, %cst_85 {dimension_numbers = #tpu.dot_dimension_numbers<[1], [0], [0], [1], [0, 0, 1, 1], [], []>} : vector<3x3xf32>, vector<3x256xf32>, vector<3x256xf32> -> vector<3x256xf32>
    %c0_86 = arith.constant 0 : index
    %c3_87 = arith.constant 3 : index
    %c0_88 = arith.constant 0 : index
    %c0_89 = arith.constant 0 : index
    %151 = vector.load %arg5[%c0_86, %c3_87, %c0_88, %c0_89] : memref<4x9x3x3xf32, #tpu.memory_space<vmem>>, vector<1x1x3x3xf32>
    %152 = vector.shape_cast %151 : vector<1x1x3x3xf32> to vector<3x3xf32>
    %cst_90 = arith.constant dense<0.000000e+00> : vector<3x256xf32>
    %153 = tpu.matmul %152, %112, %cst_90 {dimension_numbers = #tpu.dot_dimension_numbers<[1], [0], [0], [1], [0, 0, 1, 1], [], []>} : vector<3x3xf32>, vector<3x256xf32>, vector<3x256xf32> -> vector<3x256xf32>
    %154 = arith.addf %147, %150 : vector<3x256xf32>
    %155 = arith.addf %154, %153 : vector<3x256xf32>
    %c0_91 = arith.constant 0 : index
    %c4 = arith.constant 4 : index
    %c0_92 = arith.constant 0 : index
    %c0_93 = arith.constant 0 : index
    %156 = vector.load %arg4[%c0_91, %c4, %c0_92, %c0_93] : memref<4x9x3x3xf32, #tpu.memory_space<vmem>>, vector<1x1x3x3xf32>
    %157 = vector.shape_cast %156 : vector<1x1x3x3xf32> to vector<3x3xf32>
    %cst_94 = arith.constant dense<0.000000e+00> : vector<3x256xf32>
    %158 = tpu.matmul %157, %71, %cst_94 {dimension_numbers = #tpu.dot_dimension_numbers<[1], [0], [0], [1], [0, 0, 1, 1], [], []>} : vector<3x3xf32>, vector<3x256xf32>, vector<3x256xf32> -> vector<3x256xf32>
    %c0_95 = arith.constant 0 : index
    %c4_96 = arith.constant 4 : index
    %c0_97 = arith.constant 0 : index
    %c0_98 = arith.constant 0 : index
    %159 = vector.load %arg5[%c0_95, %c4_96, %c0_97, %c0_98] : memref<4x9x3x3xf32, #tpu.memory_space<vmem>>, vector<1x1x3x3xf32>
    %160 = vector.shape_cast %159 : vector<1x1x3x3xf32> to vector<3x3xf32>
    %cst_99 = arith.constant dense<0.000000e+00> : vector<3x256xf32>
    %161 = tpu.matmul %160, %100, %cst_99 {dimension_numbers = #tpu.dot_dimension_numbers<[1], [0], [0], [1], [0, 0, 1, 1], [], []>} : vector<3x3xf32>, vector<3x256xf32>, vector<3x256xf32> -> vector<3x256xf32>
    %162 = arith.addf %155, %158 : vector<3x256xf32>
    %163 = arith.addf %162, %161 : vector<3x256xf32>
    %c0_100 = arith.constant 0 : index
    %c5 = arith.constant 5 : index
    %c0_101 = arith.constant 0 : index
    %c0_102 = arith.constant 0 : index
    %164 = vector.load %arg4[%c0_100, %c5, %c0_101, %c0_102] : memref<4x9x3x3xf32, #tpu.memory_space<vmem>>, vector<1x1x3x3xf32>
    %165 = vector.shape_cast %164 : vector<1x1x3x3xf32> to vector<3x3xf32>
    %cst_103 = arith.constant dense<0.000000e+00> : vector<3x256xf32>
    %166 = tpu.matmul %165, %90, %cst_103 {dimension_numbers = #tpu.dot_dimension_numbers<[1], [0], [0], [1], [0, 0, 1, 1], [], []>} : vector<3x3xf32>, vector<3x256xf32>, vector<3x256xf32> -> vector<3x256xf32>
    %c0_104 = arith.constant 0 : index
    %c5_105 = arith.constant 5 : index
    %c0_106 = arith.constant 0 : index
    %c0_107 = arith.constant 0 : index
    %167 = vector.load %arg5[%c0_104, %c5_105, %c0_106, %c0_107] : memref<4x9x3x3xf32, #tpu.memory_space<vmem>>, vector<1x1x3x3xf32>
    %168 = vector.shape_cast %167 : vector<1x1x3x3xf32> to vector<3x3xf32>
    %cst_108 = arith.constant dense<0.000000e+00> : vector<3x256xf32>
    %169 = tpu.matmul %168, %115, %cst_108 {dimension_numbers = #tpu.dot_dimension_numbers<[1], [0], [0], [1], [0, 0, 1, 1], [], []>} : vector<3x3xf32>, vector<3x256xf32>, vector<3x256xf32> -> vector<3x256xf32>
    %170 = arith.addf %163, %166 : vector<3x256xf32>
    %171 = arith.addf %170, %169 : vector<3x256xf32>
    %c0_109 = arith.constant 0 : index
    %c6 = arith.constant 6 : index
    %c0_110 = arith.constant 0 : index
    %c0_111 = arith.constant 0 : index
    %172 = vector.load %arg4[%c0_109, %c6, %c0_110, %c0_111] : memref<4x9x3x3xf32, #tpu.memory_space<vmem>>, vector<1x1x3x3xf32>
    %173 = vector.shape_cast %172 : vector<1x1x3x3xf32> to vector<3x3xf32>
    %cst_112 = arith.constant dense<0.000000e+00> : vector<3x256xf32>
    %174 = tpu.matmul %173, %93, %cst_112 {dimension_numbers = #tpu.dot_dimension_numbers<[1], [0], [0], [1], [0, 0, 1, 1], [], []>} : vector<3x3xf32>, vector<3x256xf32>, vector<3x256xf32> -> vector<3x256xf32>
    %c0_113 = arith.constant 0 : index
    %c6_114 = arith.constant 6 : index
    %c0_115 = arith.constant 0 : index
    %c0_116 = arith.constant 0 : index
    %175 = vector.load %arg5[%c0_113, %c6_114, %c0_115, %c0_116] : memref<4x9x3x3xf32, #tpu.memory_space<vmem>>, vector<1x1x3x3xf32>
    %176 = vector.shape_cast %175 : vector<1x1x3x3xf32> to vector<3x3xf32>
    %cst_117 = arith.constant dense<0.000000e+00> : vector<3x256xf32>
    %177 = tpu.matmul %176, %118, %cst_117 {dimension_numbers = #tpu.dot_dimension_numbers<[1], [0], [0], [1], [0, 0, 1, 1], [], []>} : vector<3x3xf32>, vector<3x256xf32>, vector<3x256xf32> -> vector<3x256xf32>
    %178 = arith.addf %171, %174 : vector<3x256xf32>
    %179 = arith.addf %178, %177 : vector<3x256xf32>
    %c0_118 = arith.constant 0 : index
    %c7 = arith.constant 7 : index
    %c0_119 = arith.constant 0 : index
    %c0_120 = arith.constant 0 : index
    %180 = vector.load %arg4[%c0_118, %c7, %c0_119, %c0_120] : memref<4x9x3x3xf32, #tpu.memory_space<vmem>>, vector<1x1x3x3xf32>
    %181 = vector.shape_cast %180 : vector<1x1x3x3xf32> to vector<3x3xf32>
    %cst_121 = arith.constant dense<0.000000e+00> : vector<3x256xf32>
    %182 = tpu.matmul %181, %96, %cst_121 {dimension_numbers = #tpu.dot_dimension_numbers<[1], [0], [0], [1], [0, 0, 1, 1], [], []>} : vector<3x3xf32>, vector<3x256xf32>, vector<3x256xf32> -> vector<3x256xf32>
    %c0_122 = arith.constant 0 : index
    %c7_123 = arith.constant 7 : index
    %c0_124 = arith.constant 0 : index
    %c0_125 = arith.constant 0 : index
    %183 = vector.load %arg5[%c0_122, %c7_123, %c0_124, %c0_125] : memref<4x9x3x3xf32, #tpu.memory_space<vmem>>, vector<1x1x3x3xf32>
    %184 = vector.shape_cast %183 : vector<1x1x3x3xf32> to vector<3x3xf32>
    %cst_126 = arith.constant dense<0.000000e+00> : vector<3x256xf32>
    %185 = tpu.matmul %184, %121, %cst_126 {dimension_numbers = #tpu.dot_dimension_numbers<[1], [0], [0], [1], [0, 0, 1, 1], [], []>} : vector<3x3xf32>, vector<3x256xf32>, vector<3x256xf32> -> vector<3x256xf32>
    %186 = arith.addf %179, %182 : vector<3x256xf32>
    %187 = arith.addf %186, %185 : vector<3x256xf32>
    %c0_127 = arith.constant 0 : index
    %c8 = arith.constant 8 : index
    %c0_128 = arith.constant 0 : index
    %c0_129 = arith.constant 0 : index
    %188 = vector.load %arg4[%c0_127, %c8, %c0_128, %c0_129] : memref<4x9x3x3xf32, #tpu.memory_space<vmem>>, vector<1x1x3x3xf32>
    %189 = vector.shape_cast %188 : vector<1x1x3x3xf32> to vector<3x3xf32>
    %cst_130 = arith.constant dense<0.000000e+00> : vector<3x256xf32>
    %190 = tpu.matmul %189, %99, %cst_130 {dimension_numbers = #tpu.dot_dimension_numbers<[1], [0], [0], [1], [0, 0, 1, 1], [], []>} : vector<3x3xf32>, vector<3x256xf32>, vector<3x256xf32> -> vector<3x256xf32>
    %c0_131 = arith.constant 0 : index
    %c8_132 = arith.constant 8 : index
    %c0_133 = arith.constant 0 : index
    %c0_134 = arith.constant 0 : index
    %191 = vector.load %arg5[%c0_131, %c8_132, %c0_133, %c0_134] : memref<4x9x3x3xf32, #tpu.memory_space<vmem>>, vector<1x1x3x3xf32>
    %192 = vector.shape_cast %191 : vector<1x1x3x3xf32> to vector<3x3xf32>
    %cst_135 = arith.constant dense<0.000000e+00> : vector<3x256xf32>
    %193 = tpu.matmul %192, %124, %cst_135 {dimension_numbers = #tpu.dot_dimension_numbers<[1], [0], [0], [1], [0, 0, 1, 1], [], []>} : vector<3x3xf32>, vector<3x256xf32>, vector<3x256xf32> -> vector<3x256xf32>
    %194 = arith.addf %187, %190 : vector<3x256xf32>
    %195 = arith.addf %194, %193 : vector<3x256xf32>
    %c0_136 = arith.constant 0 : index
    %c0_137 = arith.constant 0 : index
    %c0_138 = arith.constant 0 : index
    %196 = vector.load %arg6[%c0_136, %c0_137, %c0_138] : memref<4x3x1xf32, #tpu.memory_space<vmem>>, vector<1x3x1xf32>
    %197 = vector.shape_cast %196 : vector<1x3x1xf32> to vector<3x1xf32>
    %198 = vector.broadcast %197 : vector<3x1xf32> to vector<3x256xf32>
    %199 = arith.addf %195, %198 : vector<3x256xf32>
    %200 = arith.negf %199 : vector<3x256xf32>
    %201 = math.exp %200 : vector<3x256xf32>
    %cst_139 = arith.constant 1.000000e+00 : f32
    %202 = vector.broadcast %cst_139 : f32 to vector<3x256xf32>
    %203 = arith.addf %202, %201 : vector<3x256xf32>
    %204 = arith.divf %202, %203 : vector<3x256xf32>
    %c1_140 = arith.constant 1 : index
    %c0_141 = arith.constant 0 : index
    %c0_142 = arith.constant 0 : index
    %c0_143 = arith.constant 0 : index
    %205 = vector.load %arg4[%c1_140, %c0_141, %c0_142, %c0_143] : memref<4x9x3x3xf32, #tpu.memory_space<vmem>>, vector<1x1x3x3xf32>
    %206 = vector.shape_cast %205 : vector<1x1x3x3xf32> to vector<3x3xf32>
    %cst_144 = arith.constant dense<0.000000e+00> : vector<3x256xf32>
    %207 = tpu.matmul %206, %78, %cst_144 {dimension_numbers = #tpu.dot_dimension_numbers<[1], [0], [0], [1], [0, 0, 1, 1], [], []>} : vector<3x3xf32>, vector<3x256xf32>, vector<3x256xf32> -> vector<3x256xf32>
    %c1_145 = arith.constant 1 : index
    %c0_146 = arith.constant 0 : index
    %c0_147 = arith.constant 0 : index
    %c0_148 = arith.constant 0 : index
    %208 = vector.load %arg5[%c1_145, %c0_146, %c0_147, %c0_148] : memref<4x9x3x3xf32, #tpu.memory_space<vmem>>, vector<1x1x3x3xf32>
    %209 = vector.shape_cast %208 : vector<1x1x3x3xf32> to vector<3x3xf32>
    %cst_149 = arith.constant dense<0.000000e+00> : vector<3x256xf32>
    %210 = tpu.matmul %209, %103, %cst_149 {dimension_numbers = #tpu.dot_dimension_numbers<[1], [0], [0], [1], [0, 0, 1, 1], [], []>} : vector<3x3xf32>, vector<3x256xf32>, vector<3x256xf32> -> vector<3x256xf32>
    %211 = arith.addf %207, %210 : vector<3x256xf32>
    %c1_150 = arith.constant 1 : index
    %c1_151 = arith.constant 1 : index
    %c0_152 = arith.constant 0 : index
    %c0_153 = arith.constant 0 : index
    %212 = vector.load %arg4[%c1_150, %c1_151, %c0_152, %c0_153] : memref<4x9x3x3xf32, #tpu.memory_space<vmem>>, vector<1x1x3x3xf32>
    %213 = vector.shape_cast %212 : vector<1x1x3x3xf32> to vector<3x3xf32>
    %cst_154 = arith.constant dense<0.000000e+00> : vector<3x256xf32>
    %214 = tpu.matmul %213, %81, %cst_154 {dimension_numbers = #tpu.dot_dimension_numbers<[1], [0], [0], [1], [0, 0, 1, 1], [], []>} : vector<3x3xf32>, vector<3x256xf32>, vector<3x256xf32> -> vector<3x256xf32>
    %c1_155 = arith.constant 1 : index
    %c1_156 = arith.constant 1 : index
    %c0_157 = arith.constant 0 : index
    %c0_158 = arith.constant 0 : index
    %215 = vector.load %arg5[%c1_155, %c1_156, %c0_157, %c0_158] : memref<4x9x3x3xf32, #tpu.memory_space<vmem>>, vector<1x1x3x3xf32>
    %216 = vector.shape_cast %215 : vector<1x1x3x3xf32> to vector<3x3xf32>
    %cst_159 = arith.constant dense<0.000000e+00> : vector<3x256xf32>
    %217 = tpu.matmul %216, %106, %cst_159 {dimension_numbers = #tpu.dot_dimension_numbers<[1], [0], [0], [1], [0, 0, 1, 1], [], []>} : vector<3x3xf32>, vector<3x256xf32>, vector<3x256xf32> -> vector<3x256xf32>
    %218 = arith.addf %211, %214 : vector<3x256xf32>
    %219 = arith.addf %218, %217 : vector<3x256xf32>
    %c1_160 = arith.constant 1 : index
    %c2_161 = arith.constant 2 : index
    %c0_162 = arith.constant 0 : index
    %c0_163 = arith.constant 0 : index
    %220 = vector.load %arg4[%c1_160, %c2_161, %c0_162, %c0_163] : memref<4x9x3x3xf32, #tpu.memory_space<vmem>>, vector<1x1x3x3xf32>
    %221 = vector.shape_cast %220 : vector<1x1x3x3xf32> to vector<3x3xf32>
    %cst_164 = arith.constant dense<0.000000e+00> : vector<3x256xf32>
    %222 = tpu.matmul %221, %84, %cst_164 {dimension_numbers = #tpu.dot_dimension_numbers<[1], [0], [0], [1], [0, 0, 1, 1], [], []>} : vector<3x3xf32>, vector<3x256xf32>, vector<3x256xf32> -> vector<3x256xf32>
    %c1_165 = arith.constant 1 : index
    %c2_166 = arith.constant 2 : index
    %c0_167 = arith.constant 0 : index
    %c0_168 = arith.constant 0 : index
    %223 = vector.load %arg5[%c1_165, %c2_166, %c0_167, %c0_168] : memref<4x9x3x3xf32, #tpu.memory_space<vmem>>, vector<1x1x3x3xf32>
    %224 = vector.shape_cast %223 : vector<1x1x3x3xf32> to vector<3x3xf32>
    %cst_169 = arith.constant dense<0.000000e+00> : vector<3x256xf32>
    %225 = tpu.matmul %224, %109, %cst_169 {dimension_numbers = #tpu.dot_dimension_numbers<[1], [0], [0], [1], [0, 0, 1, 1], [], []>} : vector<3x3xf32>, vector<3x256xf32>, vector<3x256xf32> -> vector<3x256xf32>
    %226 = arith.addf %219, %222 : vector<3x256xf32>
    %227 = arith.addf %226, %225 : vector<3x256xf32>
    %c1_170 = arith.constant 1 : index
    %c3_171 = arith.constant 3 : index
    %c0_172 = arith.constant 0 : index
    %c0_173 = arith.constant 0 : index
    %228 = vector.load %arg4[%c1_170, %c3_171, %c0_172, %c0_173] : memref<4x9x3x3xf32, #tpu.memory_space<vmem>>, vector<1x1x3x3xf32>
    %229 = vector.shape_cast %228 : vector<1x1x3x3xf32> to vector<3x3xf32>
    %cst_174 = arith.constant dense<0.000000e+00> : vector<3x256xf32>
    %230 = tpu.matmul %229, %87, %cst_174 {dimension_numbers = #tpu.dot_dimension_numbers<[1], [0], [0], [1], [0, 0, 1, 1], [], []>} : vector<3x3xf32>, vector<3x256xf32>, vector<3x256xf32> -> vector<3x256xf32>
    %c1_175 = arith.constant 1 : index
    %c3_176 = arith.constant 3 : index
    %c0_177 = arith.constant 0 : index
    %c0_178 = arith.constant 0 : index
    %231 = vector.load %arg5[%c1_175, %c3_176, %c0_177, %c0_178] : memref<4x9x3x3xf32, #tpu.memory_space<vmem>>, vector<1x1x3x3xf32>
    %232 = vector.shape_cast %231 : vector<1x1x3x3xf32> to vector<3x3xf32>
    %cst_179 = arith.constant dense<0.000000e+00> : vector<3x256xf32>
    %233 = tpu.matmul %232, %112, %cst_179 {dimension_numbers = #tpu.dot_dimension_numbers<[1], [0], [0], [1], [0, 0, 1, 1], [], []>} : vector<3x3xf32>, vector<3x256xf32>, vector<3x256xf32> -> vector<3x256xf32>
    %234 = arith.addf %227, %230 : vector<3x256xf32>
    %235 = arith.addf %234, %233 : vector<3x256xf32>
    %c1_180 = arith.constant 1 : index
    %c4_181 = arith.constant 4 : index
    %c0_182 = arith.constant 0 : index
    %c0_183 = arith.constant 0 : index
    %236 = vector.load %arg4[%c1_180, %c4_181, %c0_182, %c0_183] : memref<4x9x3x3xf32, #tpu.memory_space<vmem>>, vector<1x1x3x3xf32>
    %237 = vector.shape_cast %236 : vector<1x1x3x3xf32> to vector<3x3xf32>
    %cst_184 = arith.constant dense<0.000000e+00> : vector<3x256xf32>
    %238 = tpu.matmul %237, %71, %cst_184 {dimension_numbers = #tpu.dot_dimension_numbers<[1], [0], [0], [1], [0, 0, 1, 1], [], []>} : vector<3x3xf32>, vector<3x256xf32>, vector<3x256xf32> -> vector<3x256xf32>
    %c1_185 = arith.constant 1 : index
    %c4_186 = arith.constant 4 : index
    %c0_187 = arith.constant 0 : index
    %c0_188 = arith.constant 0 : index
    %239 = vector.load %arg5[%c1_185, %c4_186, %c0_187, %c0_188] : memref<4x9x3x3xf32, #tpu.memory_space<vmem>>, vector<1x1x3x3xf32>
    %240 = vector.shape_cast %239 : vector<1x1x3x3xf32> to vector<3x3xf32>
    %cst_189 = arith.constant dense<0.000000e+00> : vector<3x256xf32>
    %241 = tpu.matmul %240, %100, %cst_189 {dimension_numbers = #tpu.dot_dimension_numbers<[1], [0], [0], [1], [0, 0, 1, 1], [], []>} : vector<3x3xf32>, vector<3x256xf32>, vector<3x256xf32> -> vector<3x256xf32>
    %242 = arith.addf %235, %238 : vector<3x256xf32>
    %243 = arith.addf %242, %241 : vector<3x256xf32>
    %c1_190 = arith.constant 1 : index
    %c5_191 = arith.constant 5 : index
    %c0_192 = arith.constant 0 : index
    %c0_193 = arith.constant 0 : index
    %244 = vector.load %arg4[%c1_190, %c5_191, %c0_192, %c0_193] : memref<4x9x3x3xf32, #tpu.memory_space<vmem>>, vector<1x1x3x3xf32>
    %245 = vector.shape_cast %244 : vector<1x1x3x3xf32> to vector<3x3xf32>
    %cst_194 = arith.constant dense<0.000000e+00> : vector<3x256xf32>
    %246 = tpu.matmul %245, %90, %cst_194 {dimension_numbers = #tpu.dot_dimension_numbers<[1], [0], [0], [1], [0, 0, 1, 1], [], []>} : vector<3x3xf32>, vector<3x256xf32>, vector<3x256xf32> -> vector<3x256xf32>
    %c1_195 = arith.constant 1 : index
    %c5_196 = arith.constant 5 : index
    %c0_197 = arith.constant 0 : index
    %c0_198 = arith.constant 0 : index
    %247 = vector.load %arg5[%c1_195, %c5_196, %c0_197, %c0_198] : memref<4x9x3x3xf32, #tpu.memory_space<vmem>>, vector<1x1x3x3xf32>
    %248 = vector.shape_cast %247 : vector<1x1x3x3xf32> to vector<3x3xf32>
    %cst_199 = arith.constant dense<0.000000e+00> : vector<3x256xf32>
    %249 = tpu.matmul %248, %115, %cst_199 {dimension_numbers = #tpu.dot_dimension_numbers<[1], [0], [0], [1], [0, 0, 1, 1], [], []>} : vector<3x3xf32>, vector<3x256xf32>, vector<3x256xf32> -> vector<3x256xf32>
    %250 = arith.addf %243, %246 : vector<3x256xf32>
    %251 = arith.addf %250, %249 : vector<3x256xf32>
    %c1_200 = arith.constant 1 : index
    %c6_201 = arith.constant 6 : index
    %c0_202 = arith.constant 0 : index
    %c0_203 = arith.constant 0 : index
    %252 = vector.load %arg4[%c1_200, %c6_201, %c0_202, %c0_203] : memref<4x9x3x3xf32, #tpu.memory_space<vmem>>, vector<1x1x3x3xf32>
    %253 = vector.shape_cast %252 : vector<1x1x3x3xf32> to vector<3x3xf32>
    %cst_204 = arith.constant dense<0.000000e+00> : vector<3x256xf32>
    %254 = tpu.matmul %253, %93, %cst_204 {dimension_numbers = #tpu.dot_dimension_numbers<[1], [0], [0], [1], [0, 0, 1, 1], [], []>} : vector<3x3xf32>, vector<3x256xf32>, vector<3x256xf32> -> vector<3x256xf32>
    %c1_205 = arith.constant 1 : index
    %c6_206 = arith.constant 6 : index
    %c0_207 = arith.constant 0 : index
    %c0_208 = arith.constant 0 : index
    %255 = vector.load %arg5[%c1_205, %c6_206, %c0_207, %c0_208] : memref<4x9x3x3xf32, #tpu.memory_space<vmem>>, vector<1x1x3x3xf32>
    %256 = vector.shape_cast %255 : vector<1x1x3x3xf32> to vector<3x3xf32>
    %cst_209 = arith.constant dense<0.000000e+00> : vector<3x256xf32>
    %257 = tpu.matmul %256, %118, %cst_209 {dimension_numbers = #tpu.dot_dimension_numbers<[1], [0], [0], [1], [0, 0, 1, 1], [], []>} : vector<3x3xf32>, vector<3x256xf32>, vector<3x256xf32> -> vector<3x256xf32>
    %258 = arith.addf %251, %254 : vector<3x256xf32>
    %259 = arith.addf %258, %257 : vector<3x256xf32>
    %c1_210 = arith.constant 1 : index
    %c7_211 = arith.constant 7 : index
    %c0_212 = arith.constant 0 : index
    %c0_213 = arith.constant 0 : index
    %260 = vector.load %arg4[%c1_210, %c7_211, %c0_212, %c0_213] : memref<4x9x3x3xf32, #tpu.memory_space<vmem>>, vector<1x1x3x3xf32>
    %261 = vector.shape_cast %260 : vector<1x1x3x3xf32> to vector<3x3xf32>
    %cst_214 = arith.constant dense<0.000000e+00> : vector<3x256xf32>
    %262 = tpu.matmul %261, %96, %cst_214 {dimension_numbers = #tpu.dot_dimension_numbers<[1], [0], [0], [1], [0, 0, 1, 1], [], []>} : vector<3x3xf32>, vector<3x256xf32>, vector<3x256xf32> -> vector<3x256xf32>
    %c1_215 = arith.constant 1 : index
    %c7_216 = arith.constant 7 : index
    %c0_217 = arith.constant 0 : index
    %c0_218 = arith.constant 0 : index
    %263 = vector.load %arg5[%c1_215, %c7_216, %c0_217, %c0_218] : memref<4x9x3x3xf32, #tpu.memory_space<vmem>>, vector<1x1x3x3xf32>
    %264 = vector.shape_cast %263 : vector<1x1x3x3xf32> to vector<3x3xf32>
    %cst_219 = arith.constant dense<0.000000e+00> : vector<3x256xf32>
    %265 = tpu.matmul %264, %121, %cst_219 {dimension_numbers = #tpu.dot_dimension_numbers<[1], [0], [0], [1], [0, 0, 1, 1], [], []>} : vector<3x3xf32>, vector<3x256xf32>, vector<3x256xf32> -> vector<3x256xf32>
    %266 = arith.addf %259, %262 : vector<3x256xf32>
    %267 = arith.addf %266, %265 : vector<3x256xf32>
    %c1_220 = arith.constant 1 : index
    %c8_221 = arith.constant 8 : index
    %c0_222 = arith.constant 0 : index
    %c0_223 = arith.constant 0 : index
    %268 = vector.load %arg4[%c1_220, %c8_221, %c0_222, %c0_223] : memref<4x9x3x3xf32, #tpu.memory_space<vmem>>, vector<1x1x3x3xf32>
    %269 = vector.shape_cast %268 : vector<1x1x3x3xf32> to vector<3x3xf32>
    %cst_224 = arith.constant dense<0.000000e+00> : vector<3x256xf32>
    %270 = tpu.matmul %269, %99, %cst_224 {dimension_numbers = #tpu.dot_dimension_numbers<[1], [0], [0], [1], [0, 0, 1, 1], [], []>} : vector<3x3xf32>, vector<3x256xf32>, vector<3x256xf32> -> vector<3x256xf32>
    %c1_225 = arith.constant 1 : index
    %c8_226 = arith.constant 8 : index
    %c0_227 = arith.constant 0 : index
    %c0_228 = arith.constant 0 : index
    %271 = vector.load %arg5[%c1_225, %c8_226, %c0_227, %c0_228] : memref<4x9x3x3xf32, #tpu.memory_space<vmem>>, vector<1x1x3x3xf32>
    %272 = vector.shape_cast %271 : vector<1x1x3x3xf32> to vector<3x3xf32>
    %cst_229 = arith.constant dense<0.000000e+00> : vector<3x256xf32>
    %273 = tpu.matmul %272, %124, %cst_229 {dimension_numbers = #tpu.dot_dimension_numbers<[1], [0], [0], [1], [0, 0, 1, 1], [], []>} : vector<3x3xf32>, vector<3x256xf32>, vector<3x256xf32> -> vector<3x256xf32>
    %274 = arith.addf %267, %270 : vector<3x256xf32>
    %275 = arith.addf %274, %273 : vector<3x256xf32>
    %c1_230 = arith.constant 1 : index
    %c0_231 = arith.constant 0 : index
    %c0_232 = arith.constant 0 : index
    %276 = vector.load %arg6[%c1_230, %c0_231, %c0_232] : memref<4x3x1xf32, #tpu.memory_space<vmem>>, vector<1x3x1xf32>
    %277 = vector.shape_cast %276 : vector<1x3x1xf32> to vector<3x1xf32>
    %278 = vector.broadcast %277 : vector<3x1xf32> to vector<3x256xf32>
    %279 = arith.addf %275, %278 : vector<3x256xf32>
    %280 = arith.negf %279 : vector<3x256xf32>
    %281 = math.exp %280 : vector<3x256xf32>
    %cst_233 = arith.constant 1.000000e+00 : f32
    %282 = vector.broadcast %cst_233 : f32 to vector<3x256xf32>
    %283 = arith.addf %282, %281 : vector<3x256xf32>
    %284 = arith.divf %282, %283 : vector<3x256xf32>
    %c2_234 = arith.constant 2 : index
    %c0_235 = arith.constant 0 : index
    %c0_236 = arith.constant 0 : index
    %c0_237 = arith.constant 0 : index
    %285 = vector.load %arg4[%c2_234, %c0_235, %c0_236, %c0_237] : memref<4x9x3x3xf32, #tpu.memory_space<vmem>>, vector<1x1x3x3xf32>
    %286 = vector.shape_cast %285 : vector<1x1x3x3xf32> to vector<3x3xf32>
    %cst_238 = arith.constant dense<0.000000e+00> : vector<3x256xf32>
    %287 = tpu.matmul %286, %78, %cst_238 {dimension_numbers = #tpu.dot_dimension_numbers<[1], [0], [0], [1], [0, 0, 1, 1], [], []>} : vector<3x3xf32>, vector<3x256xf32>, vector<3x256xf32> -> vector<3x256xf32>
    %c2_239 = arith.constant 2 : index
    %c0_240 = arith.constant 0 : index
    %c0_241 = arith.constant 0 : index
    %c0_242 = arith.constant 0 : index
    %288 = vector.load %arg5[%c2_239, %c0_240, %c0_241, %c0_242] : memref<4x9x3x3xf32, #tpu.memory_space<vmem>>, vector<1x1x3x3xf32>
    %289 = vector.shape_cast %288 : vector<1x1x3x3xf32> to vector<3x3xf32>
    %cst_243 = arith.constant dense<0.000000e+00> : vector<3x256xf32>
    %290 = tpu.matmul %289, %103, %cst_243 {dimension_numbers = #tpu.dot_dimension_numbers<[1], [0], [0], [1], [0, 0, 1, 1], [], []>} : vector<3x3xf32>, vector<3x256xf32>, vector<3x256xf32> -> vector<3x256xf32>
    %291 = arith.addf %287, %290 : vector<3x256xf32>
    %c2_244 = arith.constant 2 : index
    %c1_245 = arith.constant 1 : index
    %c0_246 = arith.constant 0 : index
    %c0_247 = arith.constant 0 : index
    %292 = vector.load %arg4[%c2_244, %c1_245, %c0_246, %c0_247] : memref<4x9x3x3xf32, #tpu.memory_space<vmem>>, vector<1x1x3x3xf32>
    %293 = vector.shape_cast %292 : vector<1x1x3x3xf32> to vector<3x3xf32>
    %cst_248 = arith.constant dense<0.000000e+00> : vector<3x256xf32>
    %294 = tpu.matmul %293, %81, %cst_248 {dimension_numbers = #tpu.dot_dimension_numbers<[1], [0], [0], [1], [0, 0, 1, 1], [], []>} : vector<3x3xf32>, vector<3x256xf32>, vector<3x256xf32> -> vector<3x256xf32>
    %c2_249 = arith.constant 2 : index
    %c1_250 = arith.constant 1 : index
    %c0_251 = arith.constant 0 : index
    %c0_252 = arith.constant 0 : index
    %295 = vector.load %arg5[%c2_249, %c1_250, %c0_251, %c0_252] : memref<4x9x3x3xf32, #tpu.memory_space<vmem>>, vector<1x1x3x3xf32>
    %296 = vector.shape_cast %295 : vector<1x1x3x3xf32> to vector<3x3xf32>
    %cst_253 = arith.constant dense<0.000000e+00> : vector<3x256xf32>
    %297 = tpu.matmul %296, %106, %cst_253 {dimension_numbers = #tpu.dot_dimension_numbers<[1], [0], [0], [1], [0, 0, 1, 1], [], []>} : vector<3x3xf32>, vector<3x256xf32>, vector<3x256xf32> -> vector<3x256xf32>
    %298 = arith.addf %291, %294 : vector<3x256xf32>
    %299 = arith.addf %298, %297 : vector<3x256xf32>
    %c2_254 = arith.constant 2 : index
    %c2_255 = arith.constant 2 : index
    %c0_256 = arith.constant 0 : index
    %c0_257 = arith.constant 0 : index
    %300 = vector.load %arg4[%c2_254, %c2_255, %c0_256, %c0_257] : memref<4x9x3x3xf32, #tpu.memory_space<vmem>>, vector<1x1x3x3xf32>
    %301 = vector.shape_cast %300 : vector<1x1x3x3xf32> to vector<3x3xf32>
    %cst_258 = arith.constant dense<0.000000e+00> : vector<3x256xf32>
    %302 = tpu.matmul %301, %84, %cst_258 {dimension_numbers = #tpu.dot_dimension_numbers<[1], [0], [0], [1], [0, 0, 1, 1], [], []>} : vector<3x3xf32>, vector<3x256xf32>, vector<3x256xf32> -> vector<3x256xf32>
    %c2_259 = arith.constant 2 : index
    %c2_260 = arith.constant 2 : index
    %c0_261 = arith.constant 0 : index
    %c0_262 = arith.constant 0 : index
    %303 = vector.load %arg5[%c2_259, %c2_260, %c0_261, %c0_262] : memref<4x9x3x3xf32, #tpu.memory_space<vmem>>, vector<1x1x3x3xf32>
    %304 = vector.shape_cast %303 : vector<1x1x3x3xf32> to vector<3x3xf32>
    %cst_263 = arith.constant dense<0.000000e+00> : vector<3x256xf32>
    %305 = tpu.matmul %304, %109, %cst_263 {dimension_numbers = #tpu.dot_dimension_numbers<[1], [0], [0], [1], [0, 0, 1, 1], [], []>} : vector<3x3xf32>, vector<3x256xf32>, vector<3x256xf32> -> vector<3x256xf32>
    %306 = arith.addf %299, %302 : vector<3x256xf32>
    %307 = arith.addf %306, %305 : vector<3x256xf32>
    %c2_264 = arith.constant 2 : index
    %c3_265 = arith.constant 3 : index
    %c0_266 = arith.constant 0 : index
    %c0_267 = arith.constant 0 : index
    %308 = vector.load %arg4[%c2_264, %c3_265, %c0_266, %c0_267] : memref<4x9x3x3xf32, #tpu.memory_space<vmem>>, vector<1x1x3x3xf32>
    %309 = vector.shape_cast %308 : vector<1x1x3x3xf32> to vector<3x3xf32>
    %cst_268 = arith.constant dense<0.000000e+00> : vector<3x256xf32>
    %310 = tpu.matmul %309, %87, %cst_268 {dimension_numbers = #tpu.dot_dimension_numbers<[1], [0], [0], [1], [0, 0, 1, 1], [], []>} : vector<3x3xf32>, vector<3x256xf32>, vector<3x256xf32> -> vector<3x256xf32>
    %c2_269 = arith.constant 2 : index
    %c3_270 = arith.constant 3 : index
    %c0_271 = arith.constant 0 : index
    %c0_272 = arith.constant 0 : index
    %311 = vector.load %arg5[%c2_269, %c3_270, %c0_271, %c0_272] : memref<4x9x3x3xf32, #tpu.memory_space<vmem>>, vector<1x1x3x3xf32>
    %312 = vector.shape_cast %311 : vector<1x1x3x3xf32> to vector<3x3xf32>
    %cst_273 = arith.constant dense<0.000000e+00> : vector<3x256xf32>
    %313 = tpu.matmul %312, %112, %cst_273 {dimension_numbers = #tpu.dot_dimension_numbers<[1], [0], [0], [1], [0, 0, 1, 1], [], []>} : vector<3x3xf32>, vector<3x256xf32>, vector<3x256xf32> -> vector<3x256xf32>
    %314 = arith.addf %307, %310 : vector<3x256xf32>
    %315 = arith.addf %314, %313 : vector<3x256xf32>
    %c2_274 = arith.constant 2 : index
    %c4_275 = arith.constant 4 : index
    %c0_276 = arith.constant 0 : index
    %c0_277 = arith.constant 0 : index
    %316 = vector.load %arg4[%c2_274, %c4_275, %c0_276, %c0_277] : memref<4x9x3x3xf32, #tpu.memory_space<vmem>>, vector<1x1x3x3xf32>
    %317 = vector.shape_cast %316 : vector<1x1x3x3xf32> to vector<3x3xf32>
    %cst_278 = arith.constant dense<0.000000e+00> : vector<3x256xf32>
    %318 = tpu.matmul %317, %71, %cst_278 {dimension_numbers = #tpu.dot_dimension_numbers<[1], [0], [0], [1], [0, 0, 1, 1], [], []>} : vector<3x3xf32>, vector<3x256xf32>, vector<3x256xf32> -> vector<3x256xf32>
    %c2_279 = arith.constant 2 : index
    %c4_280 = arith.constant 4 : index
    %c0_281 = arith.constant 0 : index
    %c0_282 = arith.constant 0 : index
    %319 = vector.load %arg5[%c2_279, %c4_280, %c0_281, %c0_282] : memref<4x9x3x3xf32, #tpu.memory_space<vmem>>, vector<1x1x3x3xf32>
    %320 = vector.shape_cast %319 : vector<1x1x3x3xf32> to vector<3x3xf32>
    %cst_283 = arith.constant dense<0.000000e+00> : vector<3x256xf32>
    %321 = tpu.matmul %320, %100, %cst_283 {dimension_numbers = #tpu.dot_dimension_numbers<[1], [0], [0], [1], [0, 0, 1, 1], [], []>} : vector<3x3xf32>, vector<3x256xf32>, vector<3x256xf32> -> vector<3x256xf32>
    %322 = arith.addf %315, %318 : vector<3x256xf32>
    %323 = arith.addf %322, %321 : vector<3x256xf32>
    %c2_284 = arith.constant 2 : index
    %c5_285 = arith.constant 5 : index
    %c0_286 = arith.constant 0 : index
    %c0_287 = arith.constant 0 : index
    %324 = vector.load %arg4[%c2_284, %c5_285, %c0_286, %c0_287] : memref<4x9x3x3xf32, #tpu.memory_space<vmem>>, vector<1x1x3x3xf32>
    %325 = vector.shape_cast %324 : vector<1x1x3x3xf32> to vector<3x3xf32>
    %cst_288 = arith.constant dense<0.000000e+00> : vector<3x256xf32>
    %326 = tpu.matmul %325, %90, %cst_288 {dimension_numbers = #tpu.dot_dimension_numbers<[1], [0], [0], [1], [0, 0, 1, 1], [], []>} : vector<3x3xf32>, vector<3x256xf32>, vector<3x256xf32> -> vector<3x256xf32>
    %c2_289 = arith.constant 2 : index
    %c5_290 = arith.constant 5 : index
    %c0_291 = arith.constant 0 : index
    %c0_292 = arith.constant 0 : index
    %327 = vector.load %arg5[%c2_289, %c5_290, %c0_291, %c0_292] : memref<4x9x3x3xf32, #tpu.memory_space<vmem>>, vector<1x1x3x3xf32>
    %328 = vector.shape_cast %327 : vector<1x1x3x3xf32> to vector<3x3xf32>
    %cst_293 = arith.constant dense<0.000000e+00> : vector<3x256xf32>
    %329 = tpu.matmul %328, %115, %cst_293 {dimension_numbers = #tpu.dot_dimension_numbers<[1], [0], [0], [1], [0, 0, 1, 1], [], []>} : vector<3x3xf32>, vector<3x256xf32>, vector<3x256xf32> -> vector<3x256xf32>
    %330 = arith.addf %323, %326 : vector<3x256xf32>
    %331 = arith.addf %330, %329 : vector<3x256xf32>
    %c2_294 = arith.constant 2 : index
    %c6_295 = arith.constant 6 : index
    %c0_296 = arith.constant 0 : index
    %c0_297 = arith.constant 0 : index
    %332 = vector.load %arg4[%c2_294, %c6_295, %c0_296, %c0_297] : memref<4x9x3x3xf32, #tpu.memory_space<vmem>>, vector<1x1x3x3xf32>
    %333 = vector.shape_cast %332 : vector<1x1x3x3xf32> to vector<3x3xf32>
    %cst_298 = arith.constant dense<0.000000e+00> : vector<3x256xf32>
    %334 = tpu.matmul %333, %93, %cst_298 {dimension_numbers = #tpu.dot_dimension_numbers<[1], [0], [0], [1], [0, 0, 1, 1], [], []>} : vector<3x3xf32>, vector<3x256xf32>, vector<3x256xf32> -> vector<3x256xf32>
    %c2_299 = arith.constant 2 : index
    %c6_300 = arith.constant 6 : index
    %c0_301 = arith.constant 0 : index
    %c0_302 = arith.constant 0 : index
    %335 = vector.load %arg5[%c2_299, %c6_300, %c0_301, %c0_302] : memref<4x9x3x3xf32, #tpu.memory_space<vmem>>, vector<1x1x3x3xf32>
    %336 = vector.shape_cast %335 : vector<1x1x3x3xf32> to vector<3x3xf32>
    %cst_303 = arith.constant dense<0.000000e+00> : vector<3x256xf32>
    %337 = tpu.matmul %336, %118, %cst_303 {dimension_numbers = #tpu.dot_dimension_numbers<[1], [0], [0], [1], [0, 0, 1, 1], [], []>} : vector<3x3xf32>, vector<3x256xf32>, vector<3x256xf32> -> vector<3x256xf32>
    %338 = arith.addf %331, %334 : vector<3x256xf32>
    %339 = arith.addf %338, %337 : vector<3x256xf32>
    %c2_304 = arith.constant 2 : index
    %c7_305 = arith.constant 7 : index
    %c0_306 = arith.constant 0 : index
    %c0_307 = arith.constant 0 : index
    %340 = vector.load %arg4[%c2_304, %c7_305, %c0_306, %c0_307] : memref<4x9x3x3xf32, #tpu.memory_space<vmem>>, vector<1x1x3x3xf32>
    %341 = vector.shape_cast %340 : vector<1x1x3x3xf32> to vector<3x3xf32>
    %cst_308 = arith.constant dense<0.000000e+00> : vector<3x256xf32>
    %342 = tpu.matmul %341, %96, %cst_308 {dimension_numbers = #tpu.dot_dimension_numbers<[1], [0], [0], [1], [0, 0, 1, 1], [], []>} : vector<3x3xf32>, vector<3x256xf32>, vector<3x256xf32> -> vector<3x256xf32>
    %c2_309 = arith.constant 2 : index
    %c7_310 = arith.constant 7 : index
    %c0_311 = arith.constant 0 : index
    %c0_312 = arith.constant 0 : index
    %343 = vector.load %arg5[%c2_309, %c7_310, %c0_311, %c0_312] : memref<4x9x3x3xf32, #tpu.memory_space<vmem>>, vector<1x1x3x3xf32>
    %344 = vector.shape_cast %343 : vector<1x1x3x3xf32> to vector<3x3xf32>
    %cst_313 = arith.constant dense<0.000000e+00> : vector<3x256xf32>
    %345 = tpu.matmul %344, %121, %cst_313 {dimension_numbers = #tpu.dot_dimension_numbers<[1], [0], [0], [1], [0, 0, 1, 1], [], []>} : vector<3x3xf32>, vector<3x256xf32>, vector<3x256xf32> -> vector<3x256xf32>
    %346 = arith.addf %339, %342 : vector<3x256xf32>
    %347 = arith.addf %346, %345 : vector<3x256xf32>
    %c2_314 = arith.constant 2 : index
    %c8_315 = arith.constant 8 : index
    %c0_316 = arith.constant 0 : index
    %c0_317 = arith.constant 0 : index
    %348 = vector.load %arg4[%c2_314, %c8_315, %c0_316, %c0_317] : memref<4x9x3x3xf32, #tpu.memory_space<vmem>>, vector<1x1x3x3xf32>
    %349 = vector.shape_cast %348 : vector<1x1x3x3xf32> to vector<3x3xf32>
    %cst_318 = arith.constant dense<0.000000e+00> : vector<3x256xf32>
    %350 = tpu.matmul %349, %99, %cst_318 {dimension_numbers = #tpu.dot_dimension_numbers<[1], [0], [0], [1], [0, 0, 1, 1], [], []>} : vector<3x3xf32>, vector<3x256xf32>, vector<3x256xf32> -> vector<3x256xf32>
    %c2_319 = arith.constant 2 : index
    %c8_320 = arith.constant 8 : index
    %c0_321 = arith.constant 0 : index
    %c0_322 = arith.constant 0 : index
    %351 = vector.load %arg5[%c2_319, %c8_320, %c0_321, %c0_322] : memref<4x9x3x3xf32, #tpu.memory_space<vmem>>, vector<1x1x3x3xf32>
    %352 = vector.shape_cast %351 : vector<1x1x3x3xf32> to vector<3x3xf32>
    %cst_323 = arith.constant dense<0.000000e+00> : vector<3x256xf32>
    %353 = tpu.matmul %352, %124, %cst_323 {dimension_numbers = #tpu.dot_dimension_numbers<[1], [0], [0], [1], [0, 0, 1, 1], [], []>} : vector<3x3xf32>, vector<3x256xf32>, vector<3x256xf32> -> vector<3x256xf32>
    %354 = arith.addf %347, %350 : vector<3x256xf32>
    %355 = arith.addf %354, %353 : vector<3x256xf32>
    %c2_324 = arith.constant 2 : index
    %c0_325 = arith.constant 0 : index
    %c0_326 = arith.constant 0 : index
    %356 = vector.load %arg6[%c2_324, %c0_325, %c0_326] : memref<4x3x1xf32, #tpu.memory_space<vmem>>, vector<1x3x1xf32>
    %357 = vector.shape_cast %356 : vector<1x3x1xf32> to vector<3x1xf32>
    %358 = vector.broadcast %357 : vector<3x1xf32> to vector<3x256xf32>
    %359 = arith.addf %355, %358 : vector<3x256xf32>
    %360 = arith.negf %359 : vector<3x256xf32>
    %361 = math.exp %360 : vector<3x256xf32>
    %cst_327 = arith.constant 1.000000e+00 : f32
    %362 = vector.broadcast %cst_327 : f32 to vector<3x256xf32>
    %363 = arith.addf %362, %361 : vector<3x256xf32>
    %364 = arith.divf %362, %363 : vector<3x256xf32>
    %c3_328 = arith.constant 3 : index
    %c0_329 = arith.constant 0 : index
    %c0_330 = arith.constant 0 : index
    %c0_331 = arith.constant 0 : index
    %365 = vector.load %arg4[%c3_328, %c0_329, %c0_330, %c0_331] : memref<4x9x3x3xf32, #tpu.memory_space<vmem>>, vector<1x1x3x3xf32>
    %366 = vector.shape_cast %365 : vector<1x1x3x3xf32> to vector<3x3xf32>
    %cst_332 = arith.constant dense<0.000000e+00> : vector<3x256xf32>
    %367 = tpu.matmul %366, %78, %cst_332 {dimension_numbers = #tpu.dot_dimension_numbers<[1], [0], [0], [1], [0, 0, 1, 1], [], []>} : vector<3x3xf32>, vector<3x256xf32>, vector<3x256xf32> -> vector<3x256xf32>
    %c3_333 = arith.constant 3 : index
    %c0_334 = arith.constant 0 : index
    %c0_335 = arith.constant 0 : index
    %c0_336 = arith.constant 0 : index
    %368 = vector.load %arg5[%c3_333, %c0_334, %c0_335, %c0_336] : memref<4x9x3x3xf32, #tpu.memory_space<vmem>>, vector<1x1x3x3xf32>
    %369 = vector.shape_cast %368 : vector<1x1x3x3xf32> to vector<3x3xf32>
    %cst_337 = arith.constant dense<0.000000e+00> : vector<3x256xf32>
    %370 = tpu.matmul %369, %103, %cst_337 {dimension_numbers = #tpu.dot_dimension_numbers<[1], [0], [0], [1], [0, 0, 1, 1], [], []>} : vector<3x3xf32>, vector<3x256xf32>, vector<3x256xf32> -> vector<3x256xf32>
    %371 = arith.addf %367, %370 : vector<3x256xf32>
    %c3_338 = arith.constant 3 : index
    %c1_339 = arith.constant 1 : index
    %c0_340 = arith.constant 0 : index
    %c0_341 = arith.constant 0 : index
    %372 = vector.load %arg4[%c3_338, %c1_339, %c0_340, %c0_341] : memref<4x9x3x3xf32, #tpu.memory_space<vmem>>, vector<1x1x3x3xf32>
    %373 = vector.shape_cast %372 : vector<1x1x3x3xf32> to vector<3x3xf32>
    %cst_342 = arith.constant dense<0.000000e+00> : vector<3x256xf32>
    %374 = tpu.matmul %373, %81, %cst_342 {dimension_numbers = #tpu.dot_dimension_numbers<[1], [0], [0], [1], [0, 0, 1, 1], [], []>} : vector<3x3xf32>, vector<3x256xf32>, vector<3x256xf32> -> vector<3x256xf32>
    %c3_343 = arith.constant 3 : index
    %c1_344 = arith.constant 1 : index
    %c0_345 = arith.constant 0 : index
    %c0_346 = arith.constant 0 : index
    %375 = vector.load %arg5[%c3_343, %c1_344, %c0_345, %c0_346] : memref<4x9x3x3xf32, #tpu.memory_space<vmem>>, vector<1x1x3x3xf32>
    %376 = vector.shape_cast %375 : vector<1x1x3x3xf32> to vector<3x3xf32>
    %cst_347 = arith.constant dense<0.000000e+00> : vector<3x256xf32>
    %377 = tpu.matmul %376, %106, %cst_347 {dimension_numbers = #tpu.dot_dimension_numbers<[1], [0], [0], [1], [0, 0, 1, 1], [], []>} : vector<3x3xf32>, vector<3x256xf32>, vector<3x256xf32> -> vector<3x256xf32>
    %378 = arith.addf %371, %374 : vector<3x256xf32>
    %379 = arith.addf %378, %377 : vector<3x256xf32>
    %c3_348 = arith.constant 3 : index
    %c2_349 = arith.constant 2 : index
    %c0_350 = arith.constant 0 : index
    %c0_351 = arith.constant 0 : index
    %380 = vector.load %arg4[%c3_348, %c2_349, %c0_350, %c0_351] : memref<4x9x3x3xf32, #tpu.memory_space<vmem>>, vector<1x1x3x3xf32>
    %381 = vector.shape_cast %380 : vector<1x1x3x3xf32> to vector<3x3xf32>
    %cst_352 = arith.constant dense<0.000000e+00> : vector<3x256xf32>
    %382 = tpu.matmul %381, %84, %cst_352 {dimension_numbers = #tpu.dot_dimension_numbers<[1], [0], [0], [1], [0, 0, 1, 1], [], []>} : vector<3x3xf32>, vector<3x256xf32>, vector<3x256xf32> -> vector<3x256xf32>
    %c3_353 = arith.constant 3 : index
    %c2_354 = arith.constant 2 : index
    %c0_355 = arith.constant 0 : index
    %c0_356 = arith.constant 0 : index
    %383 = vector.load %arg5[%c3_353, %c2_354, %c0_355, %c0_356] : memref<4x9x3x3xf32, #tpu.memory_space<vmem>>, vector<1x1x3x3xf32>
    %384 = vector.shape_cast %383 : vector<1x1x3x3xf32> to vector<3x3xf32>
    %cst_357 = arith.constant dense<0.000000e+00> : vector<3x256xf32>
    %385 = tpu.matmul %384, %109, %cst_357 {dimension_numbers = #tpu.dot_dimension_numbers<[1], [0], [0], [1], [0, 0, 1, 1], [], []>} : vector<3x3xf32>, vector<3x256xf32>, vector<3x256xf32> -> vector<3x256xf32>
    %386 = arith.addf %379, %382 : vector<3x256xf32>
    %387 = arith.addf %386, %385 : vector<3x256xf32>
    %c3_358 = arith.constant 3 : index
    %c3_359 = arith.constant 3 : index
    %c0_360 = arith.constant 0 : index
    %c0_361 = arith.constant 0 : index
    %388 = vector.load %arg4[%c3_358, %c3_359, %c0_360, %c0_361] : memref<4x9x3x3xf32, #tpu.memory_space<vmem>>, vector<1x1x3x3xf32>
    %389 = vector.shape_cast %388 : vector<1x1x3x3xf32> to vector<3x3xf32>
    %cst_362 = arith.constant dense<0.000000e+00> : vector<3x256xf32>
    %390 = tpu.matmul %389, %87, %cst_362 {dimension_numbers = #tpu.dot_dimension_numbers<[1], [0], [0], [1], [0, 0, 1, 1], [], []>} : vector<3x3xf32>, vector<3x256xf32>, vector<3x256xf32> -> vector<3x256xf32>
    %c3_363 = arith.constant 3 : index
    %c3_364 = arith.constant 3 : index
    %c0_365 = arith.constant 0 : index
    %c0_366 = arith.constant 0 : index
    %391 = vector.load %arg5[%c3_363, %c3_364, %c0_365, %c0_366] : memref<4x9x3x3xf32, #tpu.memory_space<vmem>>, vector<1x1x3x3xf32>
    %392 = vector.shape_cast %391 : vector<1x1x3x3xf32> to vector<3x3xf32>
    %cst_367 = arith.constant dense<0.000000e+00> : vector<3x256xf32>
    %393 = tpu.matmul %392, %112, %cst_367 {dimension_numbers = #tpu.dot_dimension_numbers<[1], [0], [0], [1], [0, 0, 1, 1], [], []>} : vector<3x3xf32>, vector<3x256xf32>, vector<3x256xf32> -> vector<3x256xf32>
    %394 = arith.addf %387, %390 : vector<3x256xf32>
    %395 = arith.addf %394, %393 : vector<3x256xf32>
    %c3_368 = arith.constant 3 : index
    %c4_369 = arith.constant 4 : index
    %c0_370 = arith.constant 0 : index
    %c0_371 = arith.constant 0 : index
    %396 = vector.load %arg4[%c3_368, %c4_369, %c0_370, %c0_371] : memref<4x9x3x3xf32, #tpu.memory_space<vmem>>, vector<1x1x3x3xf32>
    %397 = vector.shape_cast %396 : vector<1x1x3x3xf32> to vector<3x3xf32>
    %cst_372 = arith.constant dense<0.000000e+00> : vector<3x256xf32>
    %398 = tpu.matmul %397, %71, %cst_372 {dimension_numbers = #tpu.dot_dimension_numbers<[1], [0], [0], [1], [0, 0, 1, 1], [], []>} : vector<3x3xf32>, vector<3x256xf32>, vector<3x256xf32> -> vector<3x256xf32>
    %c3_373 = arith.constant 3 : index
    %c4_374 = arith.constant 4 : index
    %c0_375 = arith.constant 0 : index
    %c0_376 = arith.constant 0 : index
    %399 = vector.load %arg5[%c3_373, %c4_374, %c0_375, %c0_376] : memref<4x9x3x3xf32, #tpu.memory_space<vmem>>, vector<1x1x3x3xf32>
    %400 = vector.shape_cast %399 : vector<1x1x3x3xf32> to vector<3x3xf32>
    %cst_377 = arith.constant dense<0.000000e+00> : vector<3x256xf32>
    %401 = tpu.matmul %400, %100, %cst_377 {dimension_numbers = #tpu.dot_dimension_numbers<[1], [0], [0], [1], [0, 0, 1, 1], [], []>} : vector<3x3xf32>, vector<3x256xf32>, vector<3x256xf32> -> vector<3x256xf32>
    %402 = arith.addf %395, %398 : vector<3x256xf32>
    %403 = arith.addf %402, %401 : vector<3x256xf32>
    %c3_378 = arith.constant 3 : index
    %c5_379 = arith.constant 5 : index
    %c0_380 = arith.constant 0 : index
    %c0_381 = arith.constant 0 : index
    %404 = vector.load %arg4[%c3_378, %c5_379, %c0_380, %c0_381] : memref<4x9x3x3xf32, #tpu.memory_space<vmem>>, vector<1x1x3x3xf32>
    %405 = vector.shape_cast %404 : vector<1x1x3x3xf32> to vector<3x3xf32>
    %cst_382 = arith.constant dense<0.000000e+00> : vector<3x256xf32>
    %406 = tpu.matmul %405, %90, %cst_382 {dimension_numbers = #tpu.dot_dimension_numbers<[1], [0], [0], [1], [0, 0, 1, 1], [], []>} : vector<3x3xf32>, vector<3x256xf32>, vector<3x256xf32> -> vector<3x256xf32>
    %c3_383 = arith.constant 3 : index
    %c5_384 = arith.constant 5 : index
    %c0_385 = arith.constant 0 : index
    %c0_386 = arith.constant 0 : index
    %407 = vector.load %arg5[%c3_383, %c5_384, %c0_385, %c0_386] : memref<4x9x3x3xf32, #tpu.memory_space<vmem>>, vector<1x1x3x3xf32>
    %408 = vector.shape_cast %407 : vector<1x1x3x3xf32> to vector<3x3xf32>
    %cst_387 = arith.constant dense<0.000000e+00> : vector<3x256xf32>
    %409 = tpu.matmul %408, %115, %cst_387 {dimension_numbers = #tpu.dot_dimension_numbers<[1], [0], [0], [1], [0, 0, 1, 1], [], []>} : vector<3x3xf32>, vector<3x256xf32>, vector<3x256xf32> -> vector<3x256xf32>
    %410 = arith.addf %403, %406 : vector<3x256xf32>
    %411 = arith.addf %410, %409 : vector<3x256xf32>
    %c3_388 = arith.constant 3 : index
    %c6_389 = arith.constant 6 : index
    %c0_390 = arith.constant 0 : index
    %c0_391 = arith.constant 0 : index
    %412 = vector.load %arg4[%c3_388, %c6_389, %c0_390, %c0_391] : memref<4x9x3x3xf32, #tpu.memory_space<vmem>>, vector<1x1x3x3xf32>
    %413 = vector.shape_cast %412 : vector<1x1x3x3xf32> to vector<3x3xf32>
    %cst_392 = arith.constant dense<0.000000e+00> : vector<3x256xf32>
    %414 = tpu.matmul %413, %93, %cst_392 {dimension_numbers = #tpu.dot_dimension_numbers<[1], [0], [0], [1], [0, 0, 1, 1], [], []>} : vector<3x3xf32>, vector<3x256xf32>, vector<3x256xf32> -> vector<3x256xf32>
    %c3_393 = arith.constant 3 : index
    %c6_394 = arith.constant 6 : index
    %c0_395 = arith.constant 0 : index
    %c0_396 = arith.constant 0 : index
    %415 = vector.load %arg5[%c3_393, %c6_394, %c0_395, %c0_396] : memref<4x9x3x3xf32, #tpu.memory_space<vmem>>, vector<1x1x3x3xf32>
    %416 = vector.shape_cast %415 : vector<1x1x3x3xf32> to vector<3x3xf32>
    %cst_397 = arith.constant dense<0.000000e+00> : vector<3x256xf32>
    %417 = tpu.matmul %416, %118, %cst_397 {dimension_numbers = #tpu.dot_dimension_numbers<[1], [0], [0], [1], [0, 0, 1, 1], [], []>} : vector<3x3xf32>, vector<3x256xf32>, vector<3x256xf32> -> vector<3x256xf32>
    %418 = arith.addf %411, %414 : vector<3x256xf32>
    %419 = arith.addf %418, %417 : vector<3x256xf32>
    %c3_398 = arith.constant 3 : index
    %c7_399 = arith.constant 7 : index
    %c0_400 = arith.constant 0 : index
    %c0_401 = arith.constant 0 : index
    %420 = vector.load %arg4[%c3_398, %c7_399, %c0_400, %c0_401] : memref<4x9x3x3xf32, #tpu.memory_space<vmem>>, vector<1x1x3x3xf32>
    %421 = vector.shape_cast %420 : vector<1x1x3x3xf32> to vector<3x3xf32>
    %cst_402 = arith.constant dense<0.000000e+00> : vector<3x256xf32>
    %422 = tpu.matmul %421, %96, %cst_402 {dimension_numbers = #tpu.dot_dimension_numbers<[1], [0], [0], [1], [0, 0, 1, 1], [], []>} : vector<3x3xf32>, vector<3x256xf32>, vector<3x256xf32> -> vector<3x256xf32>
    %c3_403 = arith.constant 3 : index
    %c7_404 = arith.constant 7 : index
    %c0_405 = arith.constant 0 : index
    %c0_406 = arith.constant 0 : index
    %423 = vector.load %arg5[%c3_403, %c7_404, %c0_405, %c0_406] : memref<4x9x3x3xf32, #tpu.memory_space<vmem>>, vector<1x1x3x3xf32>
    %424 = vector.shape_cast %423 : vector<1x1x3x3xf32> to vector<3x3xf32>
    %cst_407 = arith.constant dense<0.000000e+00> : vector<3x256xf32>
    %425 = tpu.matmul %424, %121, %cst_407 {dimension_numbers = #tpu.dot_dimension_numbers<[1], [0], [0], [1], [0, 0, 1, 1], [], []>} : vector<3x3xf32>, vector<3x256xf32>, vector<3x256xf32> -> vector<3x256xf32>
    %426 = arith.addf %419, %422 : vector<3x256xf32>
    %427 = arith.addf %426, %425 : vector<3x256xf32>
    %c3_408 = arith.constant 3 : index
    %c8_409 = arith.constant 8 : index
    %c0_410 = arith.constant 0 : index
    %c0_411 = arith.constant 0 : index
    %428 = vector.load %arg4[%c3_408, %c8_409, %c0_410, %c0_411] : memref<4x9x3x3xf32, #tpu.memory_space<vmem>>, vector<1x1x3x3xf32>
    %429 = vector.shape_cast %428 : vector<1x1x3x3xf32> to vector<3x3xf32>
    %cst_412 = arith.constant dense<0.000000e+00> : vector<3x256xf32>
    %430 = tpu.matmul %429, %99, %cst_412 {dimension_numbers = #tpu.dot_dimension_numbers<[1], [0], [0], [1], [0, 0, 1, 1], [], []>} : vector<3x3xf32>, vector<3x256xf32>, vector<3x256xf32> -> vector<3x256xf32>
    %c3_413 = arith.constant 3 : index
    %c8_414 = arith.constant 8 : index
    %c0_415 = arith.constant 0 : index
    %c0_416 = arith.constant 0 : index
    %431 = vector.load %arg5[%c3_413, %c8_414, %c0_415, %c0_416] : memref<4x9x3x3xf32, #tpu.memory_space<vmem>>, vector<1x1x3x3xf32>
    %432 = vector.shape_cast %431 : vector<1x1x3x3xf32> to vector<3x3xf32>
    %cst_417 = arith.constant dense<0.000000e+00> : vector<3x256xf32>
    %433 = tpu.matmul %432, %124, %cst_417 {dimension_numbers = #tpu.dot_dimension_numbers<[1], [0], [0], [1], [0, 0, 1, 1], [], []>} : vector<3x3xf32>, vector<3x256xf32>, vector<3x256xf32> -> vector<3x256xf32>
    %434 = arith.addf %427, %430 : vector<3x256xf32>
    %435 = arith.addf %434, %433 : vector<3x256xf32>
    %c3_418 = arith.constant 3 : index
    %c0_419 = arith.constant 0 : index
    %c0_420 = arith.constant 0 : index
    %436 = vector.load %arg6[%c3_418, %c0_419, %c0_420] : memref<4x3x1xf32, #tpu.memory_space<vmem>>, vector<1x3x1xf32>
    %437 = vector.shape_cast %436 : vector<1x3x1xf32> to vector<3x1xf32>
    %438 = vector.broadcast %437 : vector<3x1xf32> to vector<3x256xf32>
    %439 = arith.addf %435, %438 : vector<3x256xf32>
    %440 = math.tanh %439 : vector<3x256xf32>
    %c0_421 = arith.constant 0 : index
    %c0_422 = arith.constant 0 : index
    %441 = vector.load %arg15[%c0_421, %c0_422] : memref<3x256xf32, #tpu.memory_space<vmem>>, vector<3x256xf32>
    %442 = arith.mulf %284, %441 : vector<3x256xf32>
    %443 = arith.mulf %204, %440 : vector<3x256xf32>
    %444 = arith.addf %442, %443 : vector<3x256xf32>
    %445 = math.tanh %444 : vector<3x256xf32>
    %446 = arith.mulf %364, %445 : vector<3x256xf32>
    %c0_423 = arith.constant 0 : index
    %c0_424 = arith.constant 0 : index
    %447 = vector.load %arg15[%c0_423, %c0_424] : memref<3x256xf32, #tpu.memory_space<vmem>>, vector<3x256xf32>
    tpu.vector_store %arg15[%c0_423, %c0_424], %444 {strides = array<i32>} : memref<3x256xf32, #tpu.memory_space<vmem>>, vector<3x256xf32>,
    %c0_425 = arith.constant 0 : index
    %c0_426 = arith.constant 0 : index
    %448 = vector.load %arg14[%c0_425, %c0_426] : memref<3x256xf32, #tpu.memory_space<vmem>>, vector<3x256xf32>
    tpu.vector_store %arg14[%c0_425, %c0_426], %446 {strides = array<i32>} : memref<3x256xf32, #tpu.memory_space<vmem>>, vector<3x256xf32>,
    %c17_i32_427 = arith.constant 17 : i32
    %449 = tpu.dynamic_rotate %75 by %c17_i32_427 dim 1 : vector<3x256xf32>, i32 -> vector<3x256xf32>
    %450 = vector.broadcast %15 : vector<1x256xf32> to vector<3x256xf32>
    %451 = arith.mulf %449, %450 : vector<3x256xf32>
    %c16_i32_428 = arith.constant 16 : i32
    %452 = tpu.dynamic_rotate %75 by %c16_i32_428 dim 1 : vector<3x256xf32>, i32 -> vector<3x256xf32>
    %453 = vector.broadcast %20 : vector<1x256xf32> to vector<3x256xf32>
    %454 = arith.mulf %452, %453 : vector<3x256xf32>
    %c15_i32_429 = arith.constant 15 : i32
    %455 = tpu.dynamic_rotate %75 by %c15_i32_429 dim 1 : vector<3x256xf32>, i32 -> vector<3x256xf32>
    %456 = vector.broadcast %31 : vector<1x256xf32> to vector<3x256xf32>
    %457 = arith.mulf %455, %456 : vector<3x256xf32>
    %c1_i32_430 = arith.constant 1 : i32
    %458 = tpu.dynamic_rotate %75 by %c1_i32_430 dim 1 : vector<3x256xf32>, i32 -> vector<3x256xf32>
    %459 = vector.broadcast %36 : vector<1x256xf32> to vector<3x256xf32>
    %460 = arith.mulf %458, %459 : vector<3x256xf32>
    %c255_i32_431 = arith.constant 255 : i32
    %461 = tpu.dynamic_rotate %75 by %c255_i32_431 dim 1 : vector<3x256xf32>, i32 -> vector<3x256xf32>
    %462 = vector.broadcast %41 : vector<1x256xf32> to vector<3x256xf32>
    %463 = arith.mulf %461, %462 : vector<3x256xf32>
    %c241_i32_432 = arith.constant 241 : i32
    %464 = tpu.dynamic_rotate %75 by %c241_i32_432 dim 1 : vector<3x256xf32>, i32 -> vector<3x256xf32>
    %465 = vector.broadcast %52 : vector<1x256xf32> to vector<3x256xf32>
    %466 = arith.mulf %464, %465 : vector<3x256xf32>
    %c240_i32_433 = arith.constant 240 : i32
    %467 = tpu.dynamic_rotate %75 by %c240_i32_433 dim 1 : vector<3x256xf32>, i32 -> vector<3x256xf32>
    %468 = vector.broadcast %57 : vector<1x256xf32> to vector<3x256xf32>
    %469 = arith.mulf %467, %468 : vector<3x256xf32>
    %c239_i32_434 = arith.constant 239 : i32
    %470 = tpu.dynamic_rotate %75 by %c239_i32_434 dim 1 : vector<3x256xf32>, i32 -> vector<3x256xf32>
    %471 = vector.broadcast %68 : vector<1x256xf32> to vector<3x256xf32>
    %472 = arith.mulf %470, %471 : vector<3x256xf32>
    %c0_435 = arith.constant 0 : index
    %c0_436 = arith.constant 0 : index
    %473 = vector.load %arg16[%c0_435, %c0_436] : memref<3x256xf32, #tpu.memory_space<vmem>>, vector<3x256xf32>
    %c17_i32_437 = arith.constant 17 : i32
    %474 = tpu.dynamic_rotate %473 by %c17_i32_437 dim 1 : vector<3x256xf32>, i32 -> vector<3x256xf32>
    %475 = vector.broadcast %15 : vector<1x256xf32> to vector<3x256xf32>
    %476 = arith.mulf %474, %475 : vector<3x256xf32>
    %c16_i32_438 = arith.constant 16 : i32
    %477 = tpu.dynamic_rotate %473 by %c16_i32_438 dim 1 : vector<3x256xf32>, i32 -> vector<3x256xf32>
    %478 = vector.broadcast %20 : vector<1x256xf32> to vector<3x256xf32>
    %479 = arith.mulf %477, %478 : vector<3x256xf32>
    %c15_i32_439 = arith.constant 15 : i32
    %480 = tpu.dynamic_rotate %473 by %c15_i32_439 dim 1 : vector<3x256xf32>, i32 -> vector<3x256xf32>
    %481 = vector.broadcast %31 : vector<1x256xf32> to vector<3x256xf32>
    %482 = arith.mulf %480, %481 : vector<3x256xf32>
    %c1_i32_440 = arith.constant 1 : i32
    %483 = tpu.dynamic_rotate %473 by %c1_i32_440 dim 1 : vector<3x256xf32>, i32 -> vector<3x256xf32>
    %484 = vector.broadcast %36 : vector<1x256xf32> to vector<3x256xf32>
    %485 = arith.mulf %483, %484 : vector<3x256xf32>
    %c255_i32_441 = arith.constant 255 : i32
    %486 = tpu.dynamic_rotate %473 by %c255_i32_441 dim 1 : vector<3x256xf32>, i32 -> vector<3x256xf32>
    %487 = vector.broadcast %41 : vector<1x256xf32> to vector<3x256xf32>
    %488 = arith.mulf %486, %487 : vector<3x256xf32>
    %c241_i32_442 = arith.constant 241 : i32
    %489 = tpu.dynamic_rotate %473 by %c241_i32_442 dim 1 : vector<3x256xf32>, i32 -> vector<3x256xf32>
    %490 = vector.broadcast %52 : vector<1x256xf32> to vector<3x256xf32>
    %491 = arith.mulf %489, %490 : vector<3x256xf32>
    %c240_i32_443 = arith.constant 240 : i32
    %492 = tpu.dynamic_rotate %473 by %c240_i32_443 dim 1 : vector<3x256xf32>, i32 -> vector<3x256xf32>
    %493 = vector.broadcast %57 : vector<1x256xf32> to vector<3x256xf32>
    %494 = arith.mulf %492, %493 : vector<3x256xf32>
    %c239_i32_444 = arith.constant 239 : i32
    %495 = tpu.dynamic_rotate %473 by %c239_i32_444 dim 1 : vector<3x256xf32>, i32 -> vector<3x256xf32>
    %496 = vector.broadcast %68 : vector<1x256xf32> to vector<3x256xf32>
    %497 = arith.mulf %495, %496 : vector<3x256xf32>
    %c0_445 = arith.constant 0 : index
    %c0_446 = arith.constant 0 : index
    %c0_447 = arith.constant 0 : index
    %c0_448 = arith.constant 0 : index
    %498 = vector.load %arg7[%c0_445, %c0_446, %c0_447, %c0_448] : memref<4x9x3x3xf32, #tpu.memory_space<vmem>>, vector<1x1x3x3xf32>
    %499 = vector.shape_cast %498 : vector<1x1x3x3xf32> to vector<3x3xf32>
    %cst_449 = arith.constant dense<0.000000e+00> : vector<3x256xf32>
    %500 = tpu.matmul %499, %451, %cst_449 {dimension_numbers = #tpu.dot_dimension_numbers<[1], [0], [0], [1], [0, 0, 1, 1], [], []>} : vector<3x3xf32>, vector<3x256xf32>, vector<3x256xf32> -> vector<3x256xf32>
    %c0_450 = arith.constant 0 : index
    %c0_451 = arith.constant 0 : index
    %c0_452 = arith.constant 0 : index
    %c0_453 = arith.constant 0 : index
    %501 = vector.load %arg8[%c0_450, %c0_451, %c0_452, %c0_453] : memref<4x9x3x3xf32, #tpu.memory_space<vmem>>, vector<1x1x3x3xf32>
    %502 = vector.shape_cast %501 : vector<1x1x3x3xf32> to vector<3x3xf32>
    %cst_454 = arith.constant dense<0.000000e+00> : vector<3x256xf32>
    %503 = tpu.matmul %502, %476, %cst_454 {dimension_numbers = #tpu.dot_dimension_numbers<[1], [0], [0], [1], [0, 0, 1, 1], [], []>} : vector<3x3xf32>, vector<3x256xf32>, vector<3x256xf32> -> vector<3x256xf32>
    %504 = arith.addf %500, %503 : vector<3x256xf32>
    %c0_455 = arith.constant 0 : index
    %c1_456 = arith.constant 1 : index
    %c0_457 = arith.constant 0 : index
    %c0_458 = arith.constant 0 : index
    %505 = vector.load %arg7[%c0_455, %c1_456, %c0_457, %c0_458] : memref<4x9x3x3xf32, #tpu.memory_space<vmem>>, vector<1x1x3x3xf32>
    %506 = vector.shape_cast %505 : vector<1x1x3x3xf32> to vector<3x3xf32>
    %cst_459 = arith.constant dense<0.000000e+00> : vector<3x256xf32>
    %507 = tpu.matmul %506, %454, %cst_459 {dimension_numbers = #tpu.dot_dimension_numbers<[1], [0], [0], [1], [0, 0, 1, 1], [], []>} : vector<3x3xf32>, vector<3x256xf32>, vector<3x256xf32> -> vector<3x256xf32>
    %c0_460 = arith.constant 0 : index
    %c1_461 = arith.constant 1 : index
    %c0_462 = arith.constant 0 : index
    %c0_463 = arith.constant 0 : index
    %508 = vector.load %arg8[%c0_460, %c1_461, %c0_462, %c0_463] : memref<4x9x3x3xf32, #tpu.memory_space<vmem>>, vector<1x1x3x3xf32>
    %509 = vector.shape_cast %508 : vector<1x1x3x3xf32> to vector<3x3xf32>
    %cst_464 = arith.constant dense<0.000000e+00> : vector<3x256xf32>
    %510 = tpu.matmul %509, %479, %cst_464 {dimension_numbers = #tpu.dot_dimension_numbers<[1], [0], [0], [1], [0, 0, 1, 1], [], []>} : vector<3x3xf32>, vector<3x256xf32>, vector<3x256xf32> -> vector<3x256xf32>
    %511 = arith.addf %504, %507 : vector<3x256xf32>
    %512 = arith.addf %511, %510 : vector<3x256xf32>
    %c0_465 = arith.constant 0 : index
    %c2_466 = arith.constant 2 : index
    %c0_467 = arith.constant 0 : index
    %c0_468 = arith.constant 0 : index
    %513 = vector.load %arg7[%c0_465, %c2_466, %c0_467, %c0_468] : memref<4x9x3x3xf32, #tpu.memory_space<vmem>>, vector<1x1x3x3xf32>
    %514 = vector.shape_cast %513 : vector<1x1x3x3xf32> to vector<3x3xf32>
    %cst_469 = arith.constant dense<0.000000e+00> : vector<3x256xf32>
    %515 = tpu.matmul %514, %457, %cst_469 {dimension_numbers = #tpu.dot_dimension_numbers<[1], [0], [0], [1], [0, 0, 1, 1], [], []>} : vector<3x3xf32>, vector<3x256xf32>, vector<3x256xf32> -> vector<3x256xf32>
    %c0_470 = arith.constant 0 : index
    %c2_471 = arith.constant 2 : index
    %c0_472 = arith.constant 0 : index
    %c0_473 = arith.constant 0 : index
    %516 = vector.load %arg8[%c0_470, %c2_471, %c0_472, %c0_473] : memref<4x9x3x3xf32, #tpu.memory_space<vmem>>, vector<1x1x3x3xf32>
    %517 = vector.shape_cast %516 : vector<1x1x3x3xf32> to vector<3x3xf32>
    %cst_474 = arith.constant dense<0.000000e+00> : vector<3x256xf32>
    %518 = tpu.matmul %517, %482, %cst_474 {dimension_numbers = #tpu.dot_dimension_numbers<[1], [0], [0], [1], [0, 0, 1, 1], [], []>} : vector<3x3xf32>, vector<3x256xf32>, vector<3x256xf32> -> vector<3x256xf32>
    %519 = arith.addf %512, %515 : vector<3x256xf32>
    %520 = arith.addf %519, %518 : vector<3x256xf32>
    %c0_475 = arith.constant 0 : index
    %c3_476 = arith.constant 3 : index
    %c0_477 = arith.constant 0 : index
    %c0_478 = arith.constant 0 : index
    %521 = vector.load %arg7[%c0_475, %c3_476, %c0_477, %c0_478] : memref<4x9x3x3xf32, #tpu.memory_space<vmem>>, vector<1x1x3x3xf32>
    %522 = vector.shape_cast %521 : vector<1x1x3x3xf32> to vector<3x3xf32>
    %cst_479 = arith.constant dense<0.000000e+00> : vector<3x256xf32>
    %523 = tpu.matmul %522, %460, %cst_479 {dimension_numbers = #tpu.dot_dimension_numbers<[1], [0], [0], [1], [0, 0, 1, 1], [], []>} : vector<3x3xf32>, vector<3x256xf32>, vector<3x256xf32> -> vector<3x256xf32>
    %c0_480 = arith.constant 0 : index
    %c3_481 = arith.constant 3 : index
    %c0_482 = arith.constant 0 : index
    %c0_483 = arith.constant 0 : index
    %524 = vector.load %arg8[%c0_480, %c3_481, %c0_482, %c0_483] : memref<4x9x3x3xf32, #tpu.memory_space<vmem>>, vector<1x1x3x3xf32>
    %525 = vector.shape_cast %524 : vector<1x1x3x3xf32> to vector<3x3xf32>
    %cst_484 = arith.constant dense<0.000000e+00> : vector<3x256xf32>
    %526 = tpu.matmul %525, %485, %cst_484 {dimension_numbers = #tpu.dot_dimension_numbers<[1], [0], [0], [1], [0, 0, 1, 1], [], []>} : vector<3x3xf32>, vector<3x256xf32>, vector<3x256xf32> -> vector<3x256xf32>
    %527 = arith.addf %520, %523 : vector<3x256xf32>
    %528 = arith.addf %527, %526 : vector<3x256xf32>
    %c0_485 = arith.constant 0 : index
    %c4_486 = arith.constant 4 : index
    %c0_487 = arith.constant 0 : index
    %c0_488 = arith.constant 0 : index
    %529 = vector.load %arg7[%c0_485, %c4_486, %c0_487, %c0_488] : memref<4x9x3x3xf32, #tpu.memory_space<vmem>>, vector<1x1x3x3xf32>
    %530 = vector.shape_cast %529 : vector<1x1x3x3xf32> to vector<3x3xf32>
    %cst_489 = arith.constant dense<0.000000e+00> : vector<3x256xf32>
    %531 = tpu.matmul %530, %75, %cst_489 {dimension_numbers = #tpu.dot_dimension_numbers<[1], [0], [0], [1], [0, 0, 1, 1], [], []>} : vector<3x3xf32>, vector<3x256xf32>, vector<3x256xf32> -> vector<3x256xf32>
    %c0_490 = arith.constant 0 : index
    %c4_491 = arith.constant 4 : index
    %c0_492 = arith.constant 0 : index
    %c0_493 = arith.constant 0 : index
    %532 = vector.load %arg8[%c0_490, %c4_491, %c0_492, %c0_493] : memref<4x9x3x3xf32, #tpu.memory_space<vmem>>, vector<1x1x3x3xf32>
    %533 = vector.shape_cast %532 : vector<1x1x3x3xf32> to vector<3x3xf32>
    %cst_494 = arith.constant dense<0.000000e+00> : vector<3x256xf32>
    %534 = tpu.matmul %533, %473, %cst_494 {dimension_numbers = #tpu.dot_dimension_numbers<[1], [0], [0], [1], [0, 0, 1, 1], [], []>} : vector<3x3xf32>, vector<3x256xf32>, vector<3x256xf32> -> vector<3x256xf32>
    %535 = arith.addf %528, %531 : vector<3x256xf32>
    %536 = arith.addf %535, %534 : vector<3x256xf32>
    %c0_495 = arith.constant 0 : index
    %c5_496 = arith.constant 5 : index
    %c0_497 = arith.constant 0 : index
    %c0_498 = arith.constant 0 : index
    %537 = vector.load %arg7[%c0_495, %c5_496, %c0_497, %c0_498] : memref<4x9x3x3xf32, #tpu.memory_space<vmem>>, vector<1x1x3x3xf32>
    %538 = vector.shape_cast %537 : vector<1x1x3x3xf32> to vector<3x3xf32>
    %cst_499 = arith.constant dense<0.000000e+00> : vector<3x256xf32>
    %539 = tpu.matmul %538, %463, %cst_499 {dimension_numbers = #tpu.dot_dimension_numbers<[1], [0], [0], [1], [0, 0, 1, 1], [], []>} : vector<3x3xf32>, vector<3x256xf32>, vector<3x256xf32> -> vector<3x256xf32>
    %c0_500 = arith.constant 0 : index
    %c5_501 = arith.constant 5 : index
    %c0_502 = arith.constant 0 : index
    %c0_503 = arith.constant 0 : index
    %540 = vector.load %arg8[%c0_500, %c5_501, %c0_502, %c0_503] : memref<4x9x3x3xf32, #tpu.memory_space<vmem>>, vector<1x1x3x3xf32>
    %541 = vector.shape_cast %540 : vector<1x1x3x3xf32> to vector<3x3xf32>
    %cst_504 = arith.constant dense<0.000000e+00> : vector<3x256xf32>
    %542 = tpu.matmul %541, %488, %cst_504 {dimension_numbers = #tpu.dot_dimension_numbers<[1], [0], [0], [1], [0, 0, 1, 1], [], []>} : vector<3x3xf32>, vector<3x256xf32>, vector<3x256xf32> -> vector<3x256xf32>
    %543 = arith.addf %536, %539 : vector<3x256xf32>
    %544 = arith.addf %543, %542 : vector<3x256xf32>
    %c0_505 = arith.constant 0 : index
    %c6_506 = arith.constant 6 : index
    %c0_507 = arith.constant 0 : index
    %c0_508 = arith.constant 0 : index
    %545 = vector.load %arg7[%c0_505, %c6_506, %c0_507, %c0_508] : memref<4x9x3x3xf32, #tpu.memory_space<vmem>>, vector<1x1x3x3xf32>
    %546 = vector.shape_cast %545 : vector<1x1x3x3xf32> to vector<3x3xf32>
    %cst_509 = arith.constant dense<0.000000e+00> : vector<3x256xf32>
    %547 = tpu.matmul %546, %466, %cst_509 {dimension_numbers = #tpu.dot_dimension_numbers<[1], [0], [0], [1], [0, 0, 1, 1], [], []>} : vector<3x3xf32>, vector<3x256xf32>, vector<3x256xf32> -> vector<3x256xf32>
    %c0_510 = arith.constant 0 : index
    %c6_511 = arith.constant 6 : index
    %c0_512 = arith.constant 0 : index
    %c0_513 = arith.constant 0 : index
    %548 = vector.load %arg8[%c0_510, %c6_511, %c0_512, %c0_513] : memref<4x9x3x3xf32, #tpu.memory_space<vmem>>, vector<1x1x3x3xf32>
    %549 = vector.shape_cast %548 : vector<1x1x3x3xf32> to vector<3x3xf32>
    %cst_514 = arith.constant dense<0.000000e+00> : vector<3x256xf32>
    %550 = tpu.matmul %549, %491, %cst_514 {dimension_numbers = #tpu.dot_dimension_numbers<[1], [0], [0], [1], [0, 0, 1, 1], [], []>} : vector<3x3xf32>, vector<3x256xf32>, vector<3x256xf32> -> vector<3x256xf32>
    %551 = arith.addf %544, %547 : vector<3x256xf32>
    %552 = arith.addf %551, %550 : vector<3x256xf32>
    %c0_515 = arith.constant 0 : index
    %c7_516 = arith.constant 7 : index
    %c0_517 = arith.constant 0 : index
    %c0_518 = arith.constant 0 : index
    %553 = vector.load %arg7[%c0_515, %c7_516, %c0_517, %c0_518] : memref<4x9x3x3xf32, #tpu.memory_space<vmem>>, vector<1x1x3x3xf32>
    %554 = vector.shape_cast %553 : vector<1x1x3x3xf32> to vector<3x3xf32>
    %cst_519 = arith.constant dense<0.000000e+00> : vector<3x256xf32>
    %555 = tpu.matmul %554, %469, %cst_519 {dimension_numbers = #tpu.dot_dimension_numbers<[1], [0], [0], [1], [0, 0, 1, 1], [], []>} : vector<3x3xf32>, vector<3x256xf32>, vector<3x256xf32> -> vector<3x256xf32>
    %c0_520 = arith.constant 0 : index
    %c7_521 = arith.constant 7 : index
    %c0_522 = arith.constant 0 : index
    %c0_523 = arith.constant 0 : index
    %556 = vector.load %arg8[%c0_520, %c7_521, %c0_522, %c0_523] : memref<4x9x3x3xf32, #tpu.memory_space<vmem>>, vector<1x1x3x3xf32>
    %557 = vector.shape_cast %556 : vector<1x1x3x3xf32> to vector<3x3xf32>
    %cst_524 = arith.constant dense<0.000000e+00> : vector<3x256xf32>
    %558 = tpu.matmul %557, %494, %cst_524 {dimension_numbers = #tpu.dot_dimension_numbers<[1], [0], [0], [1], [0, 0, 1, 1], [], []>} : vector<3x3xf32>, vector<3x256xf32>, vector<3x256xf32> -> vector<3x256xf32>
    %559 = arith.addf %552, %555 : vector<3x256xf32>
    %560 = arith.addf %559, %558 : vector<3x256xf32>
    %c0_525 = arith.constant 0 : index
    %c8_526 = arith.constant 8 : index
    %c0_527 = arith.constant 0 : index
    %c0_528 = arith.constant 0 : index
    %561 = vector.load %arg7[%c0_525, %c8_526, %c0_527, %c0_528] : memref<4x9x3x3xf32, #tpu.memory_space<vmem>>, vector<1x1x3x3xf32>
    %562 = vector.shape_cast %561 : vector<1x1x3x3xf32> to vector<3x3xf32>
    %cst_529 = arith.constant dense<0.000000e+00> : vector<3x256xf32>
    %563 = tpu.matmul %562, %472, %cst_529 {dimension_numbers = #tpu.dot_dimension_numbers<[1], [0], [0], [1], [0, 0, 1, 1], [], []>} : vector<3x3xf32>, vector<3x256xf32>, vector<3x256xf32> -> vector<3x256xf32>
    %c0_530 = arith.constant 0 : index
    %c8_531 = arith.constant 8 : index
    %c0_532 = arith.constant 0 : index
    %c0_533 = arith.constant 0 : index
    %564 = vector.load %arg8[%c0_530, %c8_531, %c0_532, %c0_533] : memref<4x9x3x3xf32, #tpu.memory_space<vmem>>, vector<1x1x3x3xf32>
    %565 = vector.shape_cast %564 : vector<1x1x3x3xf32> to vector<3x3xf32>
    %cst_534 = arith.constant dense<0.000000e+00> : vector<3x256xf32>
    %566 = tpu.matmul %565, %497, %cst_534 {dimension_numbers = #tpu.dot_dimension_numbers<[1], [0], [0], [1], [0, 0, 1, 1], [], []>} : vector<3x3xf32>, vector<3x256xf32>, vector<3x256xf32> -> vector<3x256xf32>
    %567 = arith.addf %560, %563 : vector<3x256xf32>
    %568 = arith.addf %567, %566 : vector<3x256xf32>
    %c0_535 = arith.constant 0 : index
    %c0_536 = arith.constant 0 : index
    %c0_537 = arith.constant 0 : index
    %569 = vector.load %arg9[%c0_535, %c0_536, %c0_537] : memref<4x3x1xf32, #tpu.memory_space<vmem>>, vector<1x3x1xf32>
    %570 = vector.shape_cast %569 : vector<1x3x1xf32> to vector<3x1xf32>
    %571 = vector.broadcast %570 : vector<3x1xf32> to vector<3x256xf32>
    %572 = arith.addf %568, %571 : vector<3x256xf32>
    %573 = arith.negf %572 : vector<3x256xf32>
    %574 = math.exp %573 : vector<3x256xf32>
    %cst_538 = arith.constant 1.000000e+00 : f32
    %575 = vector.broadcast %cst_538 : f32 to vector<3x256xf32>
    %576 = arith.addf %575, %574 : vector<3x256xf32>
    %577 = arith.divf %575, %576 : vector<3x256xf32>
    %c1_539 = arith.constant 1 : index
    %c0_540 = arith.constant 0 : index
    %c0_541 = arith.constant 0 : index
    %c0_542 = arith.constant 0 : index
    %578 = vector.load %arg7[%c1_539, %c0_540, %c0_541, %c0_542] : memref<4x9x3x3xf32, #tpu.memory_space<vmem>>, vector<1x1x3x3xf32>
    %579 = vector.shape_cast %578 : vector<1x1x3x3xf32> to vector<3x3xf32>
    %cst_543 = arith.constant dense<0.000000e+00> : vector<3x256xf32>
    %580 = tpu.matmul %579, %451, %cst_543 {dimension_numbers = #tpu.dot_dimension_numbers<[1], [0], [0], [1], [0, 0, 1, 1], [], []>} : vector<3x3xf32>, vector<3x256xf32>, vector<3x256xf32> -> vector<3x256xf32>
    %c1_544 = arith.constant 1 : index
    %c0_545 = arith.constant 0 : index
    %c0_546 = arith.constant 0 : index
    %c0_547 = arith.constant 0 : index
    %581 = vector.load %arg8[%c1_544, %c0_545, %c0_546, %c0_547] : memref<4x9x3x3xf32, #tpu.memory_space<vmem>>, vector<1x1x3x3xf32>
    %582 = vector.shape_cast %581 : vector<1x1x3x3xf32> to vector<3x3xf32>
    %cst_548 = arith.constant dense<0.000000e+00> : vector<3x256xf32>
    %583 = tpu.matmul %582, %476, %cst_548 {dimension_numbers = #tpu.dot_dimension_numbers<[1], [0], [0], [1], [0, 0, 1, 1], [], []>} : vector<3x3xf32>, vector<3x256xf32>, vector<3x256xf32> -> vector<3x256xf32>
    %584 = arith.addf %580, %583 : vector<3x256xf32>
    %c1_549 = arith.constant 1 : index
    %c1_550 = arith.constant 1 : index
    %c0_551 = arith.constant 0 : index
    %c0_552 = arith.constant 0 : index
    %585 = vector.load %arg7[%c1_549, %c1_550, %c0_551, %c0_552] : memref<4x9x3x3xf32, #tpu.memory_space<vmem>>, vector<1x1x3x3xf32>
    %586 = vector.shape_cast %585 : vector<1x1x3x3xf32> to vector<3x3xf32>
    %cst_553 = arith.constant dense<0.000000e+00> : vector<3x256xf32>
    %587 = tpu.matmul %586, %454, %cst_553 {dimension_numbers = #tpu.dot_dimension_numbers<[1], [0], [0], [1], [0, 0, 1, 1], [], []>} : vector<3x3xf32>, vector<3x256xf32>, vector<3x256xf32> -> vector<3x256xf32>
    %c1_554 = arith.constant 1 : index
    %c1_555 = arith.constant 1 : index
    %c0_556 = arith.constant 0 : index
    %c0_557 = arith.constant 0 : index
    %588 = vector.load %arg8[%c1_554, %c1_555, %c0_556, %c0_557] : memref<4x9x3x3xf32, #tpu.memory_space<vmem>>, vector<1x1x3x3xf32>
    %589 = vector.shape_cast %588 : vector<1x1x3x3xf32> to vector<3x3xf32>
    %cst_558 = arith.constant dense<0.000000e+00> : vector<3x256xf32>
    %590 = tpu.matmul %589, %479, %cst_558 {dimension_numbers = #tpu.dot_dimension_numbers<[1], [0], [0], [1], [0, 0, 1, 1], [], []>} : vector<3x3xf32>, vector<3x256xf32>, vector<3x256xf32> -> vector<3x256xf32>
    %591 = arith.addf %584, %587 : vector<3x256xf32>
    %592 = arith.addf %591, %590 : vector<3x256xf32>
    %c1_559 = arith.constant 1 : index
    %c2_560 = arith.constant 2 : index
    %c0_561 = arith.constant 0 : index
    %c0_562 = arith.constant 0 : index
    %593 = vector.load %arg7[%c1_559, %c2_560, %c0_561, %c0_562] : memref<4x9x3x3xf32, #tpu.memory_space<vmem>>, vector<1x1x3x3xf32>
    %594 = vector.shape_cast %593 : vector<1x1x3x3xf32> to vector<3x3xf32>
    %cst_563 = arith.constant dense<0.000000e+00> : vector<3x256xf32>
    %595 = tpu.matmul %594, %457, %cst_563 {dimension_numbers = #tpu.dot_dimension_numbers<[1], [0], [0], [1], [0, 0, 1, 1], [], []>} : vector<3x3xf32>, vector<3x256xf32>, vector<3x256xf32> -> vector<3x256xf32>
    %c1_564 = arith.constant 1 : index
    %c2_565 = arith.constant 2 : index
    %c0_566 = arith.constant 0 : index
    %c0_567 = arith.constant 0 : index
    %596 = vector.load %arg8[%c1_564, %c2_565, %c0_566, %c0_567] : memref<4x9x3x3xf32, #tpu.memory_space<vmem>>, vector<1x1x3x3xf32>
    %597 = vector.shape_cast %596 : vector<1x1x3x3xf32> to vector<3x3xf32>
    %cst_568 = arith.constant dense<0.000000e+00> : vector<3x256xf32>
    %598 = tpu.matmul %597, %482, %cst_568 {dimension_numbers = #tpu.dot_dimension_numbers<[1], [0], [0], [1], [0, 0, 1, 1], [], []>} : vector<3x3xf32>, vector<3x256xf32>, vector<3x256xf32> -> vector<3x256xf32>
    %599 = arith.addf %592, %595 : vector<3x256xf32>
    %600 = arith.addf %599, %598 : vector<3x256xf32>
    %c1_569 = arith.constant 1 : index
    %c3_570 = arith.constant 3 : index
    %c0_571 = arith.constant 0 : index
    %c0_572 = arith.constant 0 : index
    %601 = vector.load %arg7[%c1_569, %c3_570, %c0_571, %c0_572] : memref<4x9x3x3xf32, #tpu.memory_space<vmem>>, vector<1x1x3x3xf32>
    %602 = vector.shape_cast %601 : vector<1x1x3x3xf32> to vector<3x3xf32>
    %cst_573 = arith.constant dense<0.000000e+00> : vector<3x256xf32>
    %603 = tpu.matmul %602, %460, %cst_573 {dimension_numbers = #tpu.dot_dimension_numbers<[1], [0], [0], [1], [0, 0, 1, 1], [], []>} : vector<3x3xf32>, vector<3x256xf32>, vector<3x256xf32> -> vector<3x256xf32>
    %c1_574 = arith.constant 1 : index
    %c3_575 = arith.constant 3 : index
    %c0_576 = arith.constant 0 : index
    %c0_577 = arith.constant 0 : index
    %604 = vector.load %arg8[%c1_574, %c3_575, %c0_576, %c0_577] : memref<4x9x3x3xf32, #tpu.memory_space<vmem>>, vector<1x1x3x3xf32>
    %605 = vector.shape_cast %604 : vector<1x1x3x3xf32> to vector<3x3xf32>
    %cst_578 = arith.constant dense<0.000000e+00> : vector<3x256xf32>
    %606 = tpu.matmul %605, %485, %cst_578 {dimension_numbers = #tpu.dot_dimension_numbers<[1], [0], [0], [1], [0, 0, 1, 1], [], []>} : vector<3x3xf32>, vector<3x256xf32>, vector<3x256xf32> -> vector<3x256xf32>
    %607 = arith.addf %600, %603 : vector<3x256xf32>
    %608 = arith.addf %607, %606 : vector<3x256xf32>
    %c1_579 = arith.constant 1 : index
    %c4_580 = arith.constant 4 : index
    %c0_581 = arith.constant 0 : index
    %c0_582 = arith.constant 0 : index
    %609 = vector.load %arg7[%c1_579, %c4_580, %c0_581, %c0_582] : memref<4x9x3x3xf32, #tpu.memory_space<vmem>>, vector<1x1x3x3xf32>
    %610 = vector.shape_cast %609 : vector<1x1x3x3xf32> to vector<3x3xf32>
    %cst_583 = arith.constant dense<0.000000e+00> : vector<3x256xf32>
    %611 = tpu.matmul %610, %75, %cst_583 {dimension_numbers = #tpu.dot_dimension_numbers<[1], [0], [0], [1], [0, 0, 1, 1], [], []>} : vector<3x3xf32>, vector<3x256xf32>, vector<3x256xf32> -> vector<3x256xf32>
    %c1_584 = arith.constant 1 : index
    %c4_585 = arith.constant 4 : index
    %c0_586 = arith.constant 0 : index
    %c0_587 = arith.constant 0 : index
    %612 = vector.load %arg8[%c1_584, %c4_585, %c0_586, %c0_587] : memref<4x9x3x3xf32, #tpu.memory_space<vmem>>, vector<1x1x3x3xf32>
    %613 = vector.shape_cast %612 : vector<1x1x3x3xf32> to vector<3x3xf32>
    %cst_588 = arith.constant dense<0.000000e+00> : vector<3x256xf32>
    %614 = tpu.matmul %613, %473, %cst_588 {dimension_numbers = #tpu.dot_dimension_numbers<[1], [0], [0], [1], [0, 0, 1, 1], [], []>} : vector<3x3xf32>, vector<3x256xf32>, vector<3x256xf32> -> vector<3x256xf32>
    %615 = arith.addf %608, %611 : vector<3x256xf32>
    %616 = arith.addf %615, %614 : vector<3x256xf32>
    %c1_589 = arith.constant 1 : index
    %c5_590 = arith.constant 5 : index
    %c0_591 = arith.constant 0 : index
    %c0_592 = arith.constant 0 : index
    %617 = vector.load %arg7[%c1_589, %c5_590, %c0_591, %c0_592] : memref<4x9x3x3xf32, #tpu.memory_space<vmem>>, vector<1x1x3x3xf32>
    %618 = vector.shape_cast %617 : vector<1x1x3x3xf32> to vector<3x3xf32>
    %cst_593 = arith.constant dense<0.000000e+00> : vector<3x256xf32>
    %619 = tpu.matmul %618, %463, %cst_593 {dimension_numbers = #tpu.dot_dimension_numbers<[1], [0], [0], [1], [0, 0, 1, 1], [], []>} : vector<3x3xf32>, vector<3x256xf32>, vector<3x256xf32> -> vector<3x256xf32>
    %c1_594 = arith.constant 1 : index
    %c5_595 = arith.constant 5 : index
    %c0_596 = arith.constant 0 : index
    %c0_597 = arith.constant 0 : index
    %620 = vector.load %arg8[%c1_594, %c5_595, %c0_596, %c0_597] : memref<4x9x3x3xf32, #tpu.memory_space<vmem>>, vector<1x1x3x3xf32>
    %621 = vector.shape_cast %620 : vector<1x1x3x3xf32> to vector<3x3xf32>
    %cst_598 = arith.constant dense<0.000000e+00> : vector<3x256xf32>
    %622 = tpu.matmul %621, %488, %cst_598 {dimension_numbers = #tpu.dot_dimension_numbers<[1], [0], [0], [1], [0, 0, 1, 1], [], []>} : vector<3x3xf32>, vector<3x256xf32>, vector<3x256xf32> -> vector<3x256xf32>
    %623 = arith.addf %616, %619 : vector<3x256xf32>
    %624 = arith.addf %623, %622 : vector<3x256xf32>
    %c1_599 = arith.constant 1 : index
    %c6_600 = arith.constant 6 : index
    %c0_601 = arith.constant 0 : index
    %c0_602 = arith.constant 0 : index
    %625 = vector.load %arg7[%c1_599, %c6_600, %c0_601, %c0_602] : memref<4x9x3x3xf32, #tpu.memory_space<vmem>>, vector<1x1x3x3xf32>
    %626 = vector.shape_cast %625 : vector<1x1x3x3xf32> to vector<3x3xf32>
    %cst_603 = arith.constant dense<0.000000e+00> : vector<3x256xf32>
    %627 = tpu.matmul %626, %466, %cst_603 {dimension_numbers = #tpu.dot_dimension_numbers<[1], [0], [0], [1], [0, 0, 1, 1], [], []>} : vector<3x3xf32>, vector<3x256xf32>, vector<3x256xf32> -> vector<3x256xf32>
    %c1_604 = arith.constant 1 : index
    %c6_605 = arith.constant 6 : index
    %c0_606 = arith.constant 0 : index
    %c0_607 = arith.constant 0 : index
    %628 = vector.load %arg8[%c1_604, %c6_605, %c0_606, %c0_607] : memref<4x9x3x3xf32, #tpu.memory_space<vmem>>, vector<1x1x3x3xf32>
    %629 = vector.shape_cast %628 : vector<1x1x3x3xf32> to vector<3x3xf32>
    %cst_608 = arith.constant dense<0.000000e+00> : vector<3x256xf32>
    %630 = tpu.matmul %629, %491, %cst_608 {dimension_numbers = #tpu.dot_dimension_numbers<[1], [0], [0], [1], [0, 0, 1, 1], [], []>} : vector<3x3xf32>, vector<3x256xf32>, vector<3x256xf32> -> vector<3x256xf32>
    %631 = arith.addf %624, %627 : vector<3x256xf32>
    %632 = arith.addf %631, %630 : vector<3x256xf32>
    %c1_609 = arith.constant 1 : index
    %c7_610 = arith.constant 7 : index
    %c0_611 = arith.constant 0 : index
    %c0_612 = arith.constant 0 : index
    %633 = vector.load %arg7[%c1_609, %c7_610, %c0_611, %c0_612] : memref<4x9x3x3xf32, #tpu.memory_space<vmem>>, vector<1x1x3x3xf32>
    %634 = vector.shape_cast %633 : vector<1x1x3x3xf32> to vector<3x3xf32>
    %cst_613 = arith.constant dense<0.000000e+00> : vector<3x256xf32>
    %635 = tpu.matmul %634, %469, %cst_613 {dimension_numbers = #tpu.dot_dimension_numbers<[1], [0], [0], [1], [0, 0, 1, 1], [], []>} : vector<3x3xf32>, vector<3x256xf32>, vector<3x256xf32> -> vector<3x256xf32>
    %c1_614 = arith.constant 1 : index
    %c7_615 = arith.constant 7 : index
    %c0_616 = arith.constant 0 : index
    %c0_617 = arith.constant 0 : index
    %636 = vector.load %arg8[%c1_614, %c7_615, %c0_616, %c0_617] : memref<4x9x3x3xf32, #tpu.memory_space<vmem>>, vector<1x1x3x3xf32>
    %637 = vector.shape_cast %636 : vector<1x1x3x3xf32> to vector<3x3xf32>
    %cst_618 = arith.constant dense<0.000000e+00> : vector<3x256xf32>
    %638 = tpu.matmul %637, %494, %cst_618 {dimension_numbers = #tpu.dot_dimension_numbers<[1], [0], [0], [1], [0, 0, 1, 1], [], []>} : vector<3x3xf32>, vector<3x256xf32>, vector<3x256xf32> -> vector<3x256xf32>
    %639 = arith.addf %632, %635 : vector<3x256xf32>
    %640 = arith.addf %639, %638 : vector<3x256xf32>
    %c1_619 = arith.constant 1 : index
    %c8_620 = arith.constant 8 : index
    %c0_621 = arith.constant 0 : index
    %c0_622 = arith.constant 0 : index
    %641 = vector.load %arg7[%c1_619, %c8_620, %c0_621, %c0_622] : memref<4x9x3x3xf32, #tpu.memory_space<vmem>>, vector<1x1x3x3xf32>
    %642 = vector.shape_cast %641 : vector<1x1x3x3xf32> to vector<3x3xf32>
    %cst_623 = arith.constant dense<0.000000e+00> : vector<3x256xf32>
    %643 = tpu.matmul %642, %472, %cst_623 {dimension_numbers = #tpu.dot_dimension_numbers<[1], [0], [0], [1], [0, 0, 1, 1], [], []>} : vector<3x3xf32>, vector<3x256xf32>, vector<3x256xf32> -> vector<3x256xf32>
    %c1_624 = arith.constant 1 : index
    %c8_625 = arith.constant 8 : index
    %c0_626 = arith.constant 0 : index
    %c0_627 = arith.constant 0 : index
    %644 = vector.load %arg8[%c1_624, %c8_625, %c0_626, %c0_627] : memref<4x9x3x3xf32, #tpu.memory_space<vmem>>, vector<1x1x3x3xf32>
    %645 = vector.shape_cast %644 : vector<1x1x3x3xf32> to vector<3x3xf32>
    %cst_628 = arith.constant dense<0.000000e+00> : vector<3x256xf32>
    %646 = tpu.matmul %645, %497, %cst_628 {dimension_numbers = #tpu.dot_dimension_numbers<[1], [0], [0], [1], [0, 0, 1, 1], [], []>} : vector<3x3xf32>, vector<3x256xf32>, vector<3x256xf32> -> vector<3x256xf32>
    %647 = arith.addf %640, %643 : vector<3x256xf32>
    %648 = arith.addf %647, %646 : vector<3x256xf32>
    %c1_629 = arith.constant 1 : index
    %c0_630 = arith.constant 0 : index
    %c0_631 = arith.constant 0 : index
    %649 = vector.load %arg9[%c1_629, %c0_630, %c0_631] : memref<4x3x1xf32, #tpu.memory_space<vmem>>, vector<1x3x1xf32>
    %650 = vector.shape_cast %649 : vector<1x3x1xf32> to vector<3x1xf32>
    %651 = vector.broadcast %650 : vector<3x1xf32> to vector<3x256xf32>
    %652 = arith.addf %648, %651 : vector<3x256xf32>
    %653 = arith.negf %652 : vector<3x256xf32>
    %654 = math.exp %653 : vector<3x256xf32>
    %cst_632 = arith.constant 1.000000e+00 : f32
    %655 = vector.broadcast %cst_632 : f32 to vector<3x256xf32>
    %656 = arith.addf %655, %654 : vector<3x256xf32>
    %657 = arith.divf %655, %656 : vector<3x256xf32>
    %c2_633 = arith.constant 2 : index
    %c0_634 = arith.constant 0 : index
    %c0_635 = arith.constant 0 : index
    %c0_636 = arith.constant 0 : index
    %658 = vector.load %arg7[%c2_633, %c0_634, %c0_635, %c0_636] : memref<4x9x3x3xf32, #tpu.memory_space<vmem>>, vector<1x1x3x3xf32>
    %659 = vector.shape_cast %658 : vector<1x1x3x3xf32> to vector<3x3xf32>
    %cst_637 = arith.constant dense<0.000000e+00> : vector<3x256xf32>
    %660 = tpu.matmul %659, %451, %cst_637 {dimension_numbers = #tpu.dot_dimension_numbers<[1], [0], [0], [1], [0, 0, 1, 1], [], []>} : vector<3x3xf32>, vector<3x256xf32>, vector<3x256xf32> -> vector<3x256xf32>
    %c2_638 = arith.constant 2 : index
    %c0_639 = arith.constant 0 : index
    %c0_640 = arith.constant 0 : index
    %c0_641 = arith.constant 0 : index
    %661 = vector.load %arg8[%c2_638, %c0_639, %c0_640, %c0_641] : memref<4x9x3x3xf32, #tpu.memory_space<vmem>>, vector<1x1x3x3xf32>
    %662 = vector.shape_cast %661 : vector<1x1x3x3xf32> to vector<3x3xf32>
    %cst_642 = arith.constant dense<0.000000e+00> : vector<3x256xf32>
    %663 = tpu.matmul %662, %476, %cst_642 {dimension_numbers = #tpu.dot_dimension_numbers<[1], [0], [0], [1], [0, 0, 1, 1], [], []>} : vector<3x3xf32>, vector<3x256xf32>, vector<3x256xf32> -> vector<3x256xf32>
    %664 = arith.addf %660, %663 : vector<3x256xf32>
    %c2_643 = arith.constant 2 : index
    %c1_644 = arith.constant 1 : index
    %c0_645 = arith.constant 0 : index
    %c0_646 = arith.constant 0 : index
    %665 = vector.load %arg7[%c2_643, %c1_644, %c0_645, %c0_646] : memref<4x9x3x3xf32, #tpu.memory_space<vmem>>, vector<1x1x3x3xf32>
    %666 = vector.shape_cast %665 : vector<1x1x3x3xf32> to vector<3x3xf32>
    %cst_647 = arith.constant dense<0.000000e+00> : vector<3x256xf32>
    %667 = tpu.matmul %666, %454, %cst_647 {dimension_numbers = #tpu.dot_dimension_numbers<[1], [0], [0], [1], [0, 0, 1, 1], [], []>} : vector<3x3xf32>, vector<3x256xf32>, vector<3x256xf32> -> vector<3x256xf32>
    %c2_648 = arith.constant 2 : index
    %c1_649 = arith.constant 1 : index
    %c0_650 = arith.constant 0 : index
    %c0_651 = arith.constant 0 : index
    %668 = vector.load %arg8[%c2_648, %c1_649, %c0_650, %c0_651] : memref<4x9x3x3xf32, #tpu.memory_space<vmem>>, vector<1x1x3x3xf32>
    %669 = vector.shape_cast %668 : vector<1x1x3x3xf32> to vector<3x3xf32>
    %cst_652 = arith.constant dense<0.000000e+00> : vector<3x256xf32>
    %670 = tpu.matmul %669, %479, %cst_652 {dimension_numbers = #tpu.dot_dimension_numbers<[1], [0], [0], [1], [0, 0, 1, 1], [], []>} : vector<3x3xf32>, vector<3x256xf32>, vector<3x256xf32> -> vector<3x256xf32>
    %671 = arith.addf %664, %667 : vector<3x256xf32>
    %672 = arith.addf %671, %670 : vector<3x256xf32>
    %c2_653 = arith.constant 2 : index
    %c2_654 = arith.constant 2 : index
    %c0_655 = arith.constant 0 : index
    %c0_656 = arith.constant 0 : index
    %673 = vector.load %arg7[%c2_653, %c2_654, %c0_655, %c0_656] : memref<4x9x3x3xf32, #tpu.memory_space<vmem>>, vector<1x1x3x3xf32>
    %674 = vector.shape_cast %673 : vector<1x1x3x3xf32> to vector<3x3xf32>
    %cst_657 = arith.constant dense<0.000000e+00> : vector<3x256xf32>
    %675 = tpu.matmul %674, %457, %cst_657 {dimension_numbers = #tpu.dot_dimension_numbers<[1], [0], [0], [1], [0, 0, 1, 1], [], []>} : vector<3x3xf32>, vector<3x256xf32>, vector<3x256xf32> -> vector<3x256xf32>
    %c2_658 = arith.constant 2 : index
    %c2_659 = arith.constant 2 : index
    %c0_660 = arith.constant 0 : index
    %c0_661 = arith.constant 0 : index
    %676 = vector.load %arg8[%c2_658, %c2_659, %c0_660, %c0_661] : memref<4x9x3x3xf32, #tpu.memory_space<vmem>>, vector<1x1x3x3xf32>
    %677 = vector.shape_cast %676 : vector<1x1x3x3xf32> to vector<3x3xf32>
    %cst_662 = arith.constant dense<0.000000e+00> : vector<3x256xf32>
    %678 = tpu.matmul %677, %482, %cst_662 {dimension_numbers = #tpu.dot_dimension_numbers<[1], [0], [0], [1], [0, 0, 1, 1], [], []>} : vector<3x3xf32>, vector<3x256xf32>, vector<3x256xf32> -> vector<3x256xf32>
    %679 = arith.addf %672, %675 : vector<3x256xf32>
    %680 = arith.addf %679, %678 : vector<3x256xf32>
    %c2_663 = arith.constant 2 : index
    %c3_664 = arith.constant 3 : index
    %c0_665 = arith.constant 0 : index
    %c0_666 = arith.constant 0 : index
    %681 = vector.load %arg7[%c2_663, %c3_664, %c0_665, %c0_666] : memref<4x9x3x3xf32, #tpu.memory_space<vmem>>, vector<1x1x3x3xf32>
    %682 = vector.shape_cast %681 : vector<1x1x3x3xf32> to vector<3x3xf32>
    %cst_667 = arith.constant dense<0.000000e+00> : vector<3x256xf32>
    %683 = tpu.matmul %682, %460, %cst_667 {dimension_numbers = #tpu.dot_dimension_numbers<[1], [0], [0], [1], [0, 0, 1, 1], [], []>} : vector<3x3xf32>, vector<3x256xf32>, vector<3x256xf32> -> vector<3x256xf32>
    %c2_668 = arith.constant 2 : index
    %c3_669 = arith.constant 3 : index
    %c0_670 = arith.constant 0 : index
    %c0_671 = arith.constant 0 : index
    %684 = vector.load %arg8[%c2_668, %c3_669, %c0_670, %c0_671] : memref<4x9x3x3xf32, #tpu.memory_space<vmem>>, vector<1x1x3x3xf32>
    %685 = vector.shape_cast %684 : vector<1x1x3x3xf32> to vector<3x3xf32>
    %cst_672 = arith.constant dense<0.000000e+00> : vector<3x256xf32>
    %686 = tpu.matmul %685, %485, %cst_672 {dimension_numbers = #tpu.dot_dimension_numbers<[1], [0], [0], [1], [0, 0, 1, 1], [], []>} : vector<3x3xf32>, vector<3x256xf32>, vector<3x256xf32> -> vector<3x256xf32>
    %687 = arith.addf %680, %683 : vector<3x256xf32>
    %688 = arith.addf %687, %686 : vector<3x256xf32>
    %c2_673 = arith.constant 2 : index
    %c4_674 = arith.constant 4 : index
    %c0_675 = arith.constant 0 : index
    %c0_676 = arith.constant 0 : index
    %689 = vector.load %arg7[%c2_673, %c4_674, %c0_675, %c0_676] : memref<4x9x3x3xf32, #tpu.memory_space<vmem>>, vector<1x1x3x3xf32>
    %690 = vector.shape_cast %689 : vector<1x1x3x3xf32> to vector<3x3xf32>
    %cst_677 = arith.constant dense<0.000000e+00> : vector<3x256xf32>
    %691 = tpu.matmul %690, %75, %cst_677 {dimension_numbers = #tpu.dot_dimension_numbers<[1], [0], [0], [1], [0, 0, 1, 1], [], []>} : vector<3x3xf32>, vector<3x256xf32>, vector<3x256xf32> -> vector<3x256xf32>
    %c2_678 = arith.constant 2 : index
    %c4_679 = arith.constant 4 : index
    %c0_680 = arith.constant 0 : index
    %c0_681 = arith.constant 0 : index
    %692 = vector.load %arg8[%c2_678, %c4_679, %c0_680, %c0_681] : memref<4x9x3x3xf32, #tpu.memory_space<vmem>>, vector<1x1x3x3xf32>
    %693 = vector.shape_cast %692 : vector<1x1x3x3xf32> to vector<3x3xf32>
    %cst_682 = arith.constant dense<0.000000e+00> : vector<3x256xf32>
    %694 = tpu.matmul %693, %473, %cst_682 {dimension_numbers = #tpu.dot_dimension_numbers<[1], [0], [0], [1], [0, 0, 1, 1], [], []>} : vector<3x3xf32>, vector<3x256xf32>, vector<3x256xf32> -> vector<3x256xf32>
    %695 = arith.addf %688, %691 : vector<3x256xf32>
    %696 = arith.addf %695, %694 : vector<3x256xf32>
    %c2_683 = arith.constant 2 : index
    %c5_684 = arith.constant 5 : index
    %c0_685 = arith.constant 0 : index
    %c0_686 = arith.constant 0 : index
    %697 = vector.load %arg7[%c2_683, %c5_684, %c0_685, %c0_686] : memref<4x9x3x3xf32, #tpu.memory_space<vmem>>, vector<1x1x3x3xf32>
    %698 = vector.shape_cast %697 : vector<1x1x3x3xf32> to vector<3x3xf32>
    %cst_687 = arith.constant dense<0.000000e+00> : vector<3x256xf32>
    %699 = tpu.matmul %698, %463, %cst_687 {dimension_numbers = #tpu.dot_dimension_numbers<[1], [0], [0], [1], [0, 0, 1, 1], [], []>} : vector<3x3xf32>, vector<3x256xf32>, vector<3x256xf32> -> vector<3x256xf32>
    %c2_688 = arith.constant 2 : index
    %c5_689 = arith.constant 5 : index
    %c0_690 = arith.constant 0 : index
    %c0_691 = arith.constant 0 : index
    %700 = vector.load %arg8[%c2_688, %c5_689, %c0_690, %c0_691] : memref<4x9x3x3xf32, #tpu.memory_space<vmem>>, vector<1x1x3x3xf32>
    %701 = vector.shape_cast %700 : vector<1x1x3x3xf32> to vector<3x3xf32>
    %cst_692 = arith.constant dense<0.000000e+00> : vector<3x256xf32>
    %702 = tpu.matmul %701, %488, %cst_692 {dimension_numbers = #tpu.dot_dimension_numbers<[1], [0], [0], [1], [0, 0, 1, 1], [], []>} : vector<3x3xf32>, vector<3x256xf32>, vector<3x256xf32> -> vector<3x256xf32>
    %703 = arith.addf %696, %699 : vector<3x256xf32>
    %704 = arith.addf %703, %702 : vector<3x256xf32>
    %c2_693 = arith.constant 2 : index
    %c6_694 = arith.constant 6 : index
    %c0_695 = arith.constant 0 : index
    %c0_696 = arith.constant 0 : index
    %705 = vector.load %arg7[%c2_693, %c6_694, %c0_695, %c0_696] : memref<4x9x3x3xf32, #tpu.memory_space<vmem>>, vector<1x1x3x3xf32>
    %706 = vector.shape_cast %705 : vector<1x1x3x3xf32> to vector<3x3xf32>
    %cst_697 = arith.constant dense<0.000000e+00> : vector<3x256xf32>
    %707 = tpu.matmul %706, %466, %cst_697 {dimension_numbers = #tpu.dot_dimension_numbers<[1], [0], [0], [1], [0, 0, 1, 1], [], []>} : vector<3x3xf32>, vector<3x256xf32>, vector<3x256xf32> -> vector<3x256xf32>
    %c2_698 = arith.constant 2 : index
    %c6_699 = arith.constant 6 : index
    %c0_700 = arith.constant 0 : index
    %c0_701 = arith.constant 0 : index
    %708 = vector.load %arg8[%c2_698, %c6_699, %c0_700, %c0_701] : memref<4x9x3x3xf32, #tpu.memory_space<vmem>>, vector<1x1x3x3xf32>
    %709 = vector.shape_cast %708 : vector<1x1x3x3xf32> to vector<3x3xf32>
    %cst_702 = arith.constant dense<0.000000e+00> : vector<3x256xf32>
    %710 = tpu.matmul %709, %491, %cst_702 {dimension_numbers = #tpu.dot_dimension_numbers<[1], [0], [0], [1], [0, 0, 1, 1], [], []>} : vector<3x3xf32>, vector<3x256xf32>, vector<3x256xf32> -> vector<3x256xf32>
    %711 = arith.addf %704, %707 : vector<3x256xf32>
    %712 = arith.addf %711, %710 : vector<3x256xf32>
    %c2_703 = arith.constant 2 : index
    %c7_704 = arith.constant 7 : index
    %c0_705 = arith.constant 0 : index
    %c0_706 = arith.constant 0 : index
    %713 = vector.load %arg7[%c2_703, %c7_704, %c0_705, %c0_706] : memref<4x9x3x3xf32, #tpu.memory_space<vmem>>, vector<1x1x3x3xf32>
    %714 = vector.shape_cast %713 : vector<1x1x3x3xf32> to vector<3x3xf32>
    %cst_707 = arith.constant dense<0.000000e+00> : vector<3x256xf32>
    %715 = tpu.matmul %714, %469, %cst_707 {dimension_numbers = #tpu.dot_dimension_numbers<[1], [0], [0], [1], [0, 0, 1, 1], [], []>} : vector<3x3xf32>, vector<3x256xf32>, vector<3x256xf32> -> vector<3x256xf32>
    %c2_708 = arith.constant 2 : index
    %c7_709 = arith.constant 7 : index
    %c0_710 = arith.constant 0 : index
    %c0_711 = arith.constant 0 : index
    %716 = vector.load %arg8[%c2_708, %c7_709, %c0_710, %c0_711] : memref<4x9x3x3xf32, #tpu.memory_space<vmem>>, vector<1x1x3x3xf32>
    %717 = vector.shape_cast %716 : vector<1x1x3x3xf32> to vector<3x3xf32>
    %cst_712 = arith.constant dense<0.000000e+00> : vector<3x256xf32>
    %718 = tpu.matmul %717, %494, %cst_712 {dimension_numbers = #tpu.dot_dimension_numbers<[1], [0], [0], [1], [0, 0, 1, 1], [], []>} : vector<3x3xf32>, vector<3x256xf32>, vector<3x256xf32> -> vector<3x256xf32>
    %719 = arith.addf %712, %715 : vector<3x256xf32>
    %720 = arith.addf %719, %718 : vector<3x256xf32>
    %c2_713 = arith.constant 2 : index
    %c8_714 = arith.constant 8 : index
    %c0_715 = arith.constant 0 : index
    %c0_716 = arith.constant 0 : index
    %721 = vector.load %arg7[%c2_713, %c8_714, %c0_715, %c0_716] : memref<4x9x3x3xf32, #tpu.memory_space<vmem>>, vector<1x1x3x3xf32>
    %722 = vector.shape_cast %721 : vector<1x1x3x3xf32> to vector<3x3xf32>
    %cst_717 = arith.constant dense<0.000000e+00> : vector<3x256xf32>
    %723 = tpu.matmul %722, %472, %cst_717 {dimension_numbers = #tpu.dot_dimension_numbers<[1], [0], [0], [1], [0, 0, 1, 1], [], []>} : vector<3x3xf32>, vector<3x256xf32>, vector<3x256xf32> -> vector<3x256xf32>
    %c2_718 = arith.constant 2 : index
    %c8_719 = arith.constant 8 : index
    %c0_720 = arith.constant 0 : index
    %c0_721 = arith.constant 0 : index
    %724 = vector.load %arg8[%c2_718, %c8_719, %c0_720, %c0_721] : memref<4x9x3x3xf32, #tpu.memory_space<vmem>>, vector<1x1x3x3xf32>
    %725 = vector.shape_cast %724 : vector<1x1x3x3xf32> to vector<3x3xf32>
    %cst_722 = arith.constant dense<0.000000e+00> : vector<3x256xf32>
    %726 = tpu.matmul %725, %497, %cst_722 {dimension_numbers = #tpu.dot_dimension_numbers<[1], [0], [0], [1], [0, 0, 1, 1], [], []>} : vector<3x3xf32>, vector<3x256xf32>, vector<3x256xf32> -> vector<3x256xf32>
    %727 = arith.addf %720, %723 : vector<3x256xf32>
    %728 = arith.addf %727, %726 : vector<3x256xf32>
    %c2_723 = arith.constant 2 : index
    %c0_724 = arith.constant 0 : index
    %c0_725 = arith.constant 0 : index
    %729 = vector.load %arg9[%c2_723, %c0_724, %c0_725] : memref<4x3x1xf32, #tpu.memory_space<vmem>>, vector<1x3x1xf32>
    %730 = vector.shape_cast %729 : vector<1x3x1xf32> to vector<3x1xf32>
    %731 = vector.broadcast %730 : vector<3x1xf32> to vector<3x256xf32>
    %732 = arith.addf %728, %731 : vector<3x256xf32>
    %733 = arith.negf %732 : vector<3x256xf32>
    %734 = math.exp %733 : vector<3x256xf32>
    %cst_726 = arith.constant 1.000000e+00 : f32
    %735 = vector.broadcast %cst_726 : f32 to vector<3x256xf32>
    %736 = arith.addf %735, %734 : vector<3x256xf32>
    %737 = arith.divf %735, %736 : vector<3x256xf32>
    %c3_727 = arith.constant 3 : index
    %c0_728 = arith.constant 0 : index
    %c0_729 = arith.constant 0 : index
    %c0_730 = arith.constant 0 : index
    %738 = vector.load %arg7[%c3_727, %c0_728, %c0_729, %c0_730] : memref<4x9x3x3xf32, #tpu.memory_space<vmem>>, vector<1x1x3x3xf32>
    %739 = vector.shape_cast %738 : vector<1x1x3x3xf32> to vector<3x3xf32>
    %cst_731 = arith.constant dense<0.000000e+00> : vector<3x256xf32>
    %740 = tpu.matmul %739, %451, %cst_731 {dimension_numbers = #tpu.dot_dimension_numbers<[1], [0], [0], [1], [0, 0, 1, 1], [], []>} : vector<3x3xf32>, vector<3x256xf32>, vector<3x256xf32> -> vector<3x256xf32>
    %c3_732 = arith.constant 3 : index
    %c0_733 = arith.constant 0 : index
    %c0_734 = arith.constant 0 : index
    %c0_735 = arith.constant 0 : index
    %741 = vector.load %arg8[%c3_732, %c0_733, %c0_734, %c0_735] : memref<4x9x3x3xf32, #tpu.memory_space<vmem>>, vector<1x1x3x3xf32>
    %742 = vector.shape_cast %741 : vector<1x1x3x3xf32> to vector<3x3xf32>
    %cst_736 = arith.constant dense<0.000000e+00> : vector<3x256xf32>
    %743 = tpu.matmul %742, %476, %cst_736 {dimension_numbers = #tpu.dot_dimension_numbers<[1], [0], [0], [1], [0, 0, 1, 1], [], []>} : vector<3x3xf32>, vector<3x256xf32>, vector<3x256xf32> -> vector<3x256xf32>
    %744 = arith.addf %740, %743 : vector<3x256xf32>
    %c3_737 = arith.constant 3 : index
    %c1_738 = arith.constant 1 : index
    %c0_739 = arith.constant 0 : index
    %c0_740 = arith.constant 0 : index
    %745 = vector.load %arg7[%c3_737, %c1_738, %c0_739, %c0_740] : memref<4x9x3x3xf32, #tpu.memory_space<vmem>>, vector<1x1x3x3xf32>
    %746 = vector.shape_cast %745 : vector<1x1x3x3xf32> to vector<3x3xf32>
    %cst_741 = arith.constant dense<0.000000e+00> : vector<3x256xf32>
    %747 = tpu.matmul %746, %454, %cst_741 {dimension_numbers = #tpu.dot_dimension_numbers<[1], [0], [0], [1], [0, 0, 1, 1], [], []>} : vector<3x3xf32>, vector<3x256xf32>, vector<3x256xf32> -> vector<3x256xf32>
    %c3_742 = arith.constant 3 : index
    %c1_743 = arith.constant 1 : index
    %c0_744 = arith.constant 0 : index
    %c0_745 = arith.constant 0 : index
    %748 = vector.load %arg8[%c3_742, %c1_743, %c0_744, %c0_745] : memref<4x9x3x3xf32, #tpu.memory_space<vmem>>, vector<1x1x3x3xf32>
    %749 = vector.shape_cast %748 : vector<1x1x3x3xf32> to vector<3x3xf32>
    %cst_746 = arith.constant dense<0.000000e+00> : vector<3x256xf32>
    %750 = tpu.matmul %749, %479, %cst_746 {dimension_numbers = #tpu.dot_dimension_numbers<[1], [0], [0], [1], [0, 0, 1, 1], [], []>} : vector<3x3xf32>, vector<3x256xf32>, vector<3x256xf32> -> vector<3x256xf32>
    %751 = arith.addf %744, %747 : vector<3x256xf32>
    %752 = arith.addf %751, %750 : vector<3x256xf32>
    %c3_747 = arith.constant 3 : index
    %c2_748 = arith.constant 2 : index
    %c0_749 = arith.constant 0 : index
    %c0_750 = arith.constant 0 : index
    %753 = vector.load %arg7[%c3_747, %c2_748, %c0_749, %c0_750] : memref<4x9x3x3xf32, #tpu.memory_space<vmem>>, vector<1x1x3x3xf32>
    %754 = vector.shape_cast %753 : vector<1x1x3x3xf32> to vector<3x3xf32>
    %cst_751 = arith.constant dense<0.000000e+00> : vector<3x256xf32>
    %755 = tpu.matmul %754, %457, %cst_751 {dimension_numbers = #tpu.dot_dimension_numbers<[1], [0], [0], [1], [0, 0, 1, 1], [], []>} : vector<3x3xf32>, vector<3x256xf32>, vector<3x256xf32> -> vector<3x256xf32>
    %c3_752 = arith.constant 3 : index
    %c2_753 = arith.constant 2 : index
    %c0_754 = arith.constant 0 : index
    %c0_755 = arith.constant 0 : index
    %756 = vector.load %arg8[%c3_752, %c2_753, %c0_754, %c0_755] : memref<4x9x3x3xf32, #tpu.memory_space<vmem>>, vector<1x1x3x3xf32>
    %757 = vector.shape_cast %756 : vector<1x1x3x3xf32> to vector<3x3xf32>
    %cst_756 = arith.constant dense<0.000000e+00> : vector<3x256xf32>
    %758 = tpu.matmul %757, %482, %cst_756 {dimension_numbers = #tpu.dot_dimension_numbers<[1], [0], [0], [1], [0, 0, 1, 1], [], []>} : vector<3x3xf32>, vector<3x256xf32>, vector<3x256xf32> -> vector<3x256xf32>
    %759 = arith.addf %752, %755 : vector<3x256xf32>
    %760 = arith.addf %759, %758 : vector<3x256xf32>
    %c3_757 = arith.constant 3 : index
    %c3_758 = arith.constant 3 : index
    %c0_759 = arith.constant 0 : index
    %c0_760 = arith.constant 0 : index
    %761 = vector.load %arg7[%c3_757, %c3_758, %c0_759, %c0_760] : memref<4x9x3x3xf32, #tpu.memory_space<vmem>>, vector<1x1x3x3xf32>
    %762 = vector.shape_cast %761 : vector<1x1x3x3xf32> to vector<3x3xf32>
    %cst_761 = arith.constant dense<0.000000e+00> : vector<3x256xf32>
    %763 = tpu.matmul %762, %460, %cst_761 {dimension_numbers = #tpu.dot_dimension_numbers<[1], [0], [0], [1], [0, 0, 1, 1], [], []>} : vector<3x3xf32>, vector<3x256xf32>, vector<3x256xf32> -> vector<3x256xf32>
    %c3_762 = arith.constant 3 : index
    %c3_763 = arith.constant 3 : index
    %c0_764 = arith.constant 0 : index
    %c0_765 = arith.constant 0 : index
    %764 = vector.load %arg8[%c3_762, %c3_763, %c0_764, %c0_765] : memref<4x9x3x3xf32, #tpu.memory_space<vmem>>, vector<1x1x3x3xf32>
    %765 = vector.shape_cast %764 : vector<1x1x3x3xf32> to vector<3x3xf32>
    %cst_766 = arith.constant dense<0.000000e+00> : vector<3x256xf32>
    %766 = tpu.matmul %765, %485, %cst_766 {dimension_numbers = #tpu.dot_dimension_numbers<[1], [0], [0], [1], [0, 0, 1, 1], [], []>} : vector<3x3xf32>, vector<3x256xf32>, vector<3x256xf32> -> vector<3x256xf32>
    %767 = arith.addf %760, %763 : vector<3x256xf32>
    %768 = arith.addf %767, %766 : vector<3x256xf32>
    %c3_767 = arith.constant 3 : index
    %c4_768 = arith.constant 4 : index
    %c0_769 = arith.constant 0 : index
    %c0_770 = arith.constant 0 : index
    %769 = vector.load %arg7[%c3_767, %c4_768, %c0_769, %c0_770] : memref<4x9x3x3xf32, #tpu.memory_space<vmem>>, vector<1x1x3x3xf32>
    %770 = vector.shape_cast %769 : vector<1x1x3x3xf32> to vector<3x3xf32>
    %cst_771 = arith.constant dense<0.000000e+00> : vector<3x256xf32>
    %771 = tpu.matmul %770, %75, %cst_771 {dimension_numbers = #tpu.dot_dimension_numbers<[1], [0], [0], [1], [0, 0, 1, 1], [], []>} : vector<3x3xf32>, vector<3x256xf32>, vector<3x256xf32> -> vector<3x256xf32>
    %c3_772 = arith.constant 3 : index
    %c4_773 = arith.constant 4 : index
    %c0_774 = arith.constant 0 : index
    %c0_775 = arith.constant 0 : index
    %772 = vector.load %arg8[%c3_772, %c4_773, %c0_774, %c0_775] : memref<4x9x3x3xf32, #tpu.memory_space<vmem>>, vector<1x1x3x3xf32>
    %773 = vector.shape_cast %772 : vector<1x1x3x3xf32> to vector<3x3xf32>
    %cst_776 = arith.constant dense<0.000000e+00> : vector<3x256xf32>
    %774 = tpu.matmul %773, %473, %cst_776 {dimension_numbers = #tpu.dot_dimension_numbers<[1], [0], [0], [1], [0, 0, 1, 1], [], []>} : vector<3x3xf32>, vector<3x256xf32>, vector<3x256xf32> -> vector<3x256xf32>
    %775 = arith.addf %768, %771 : vector<3x256xf32>
    %776 = arith.addf %775, %774 : vector<3x256xf32>
    %c3_777 = arith.constant 3 : index
    %c5_778 = arith.constant 5 : index
    %c0_779 = arith.constant 0 : index
    %c0_780 = arith.constant 0 : index
    %777 = vector.load %arg7[%c3_777, %c5_778, %c0_779, %c0_780] : memref<4x9x3x3xf32, #tpu.memory_space<vmem>>, vector<1x1x3x3xf32>
    %778 = vector.shape_cast %777 : vector<1x1x3x3xf32> to vector<3x3xf32>
    %cst_781 = arith.constant dense<0.000000e+00> : vector<3x256xf32>
    %779 = tpu.matmul %778, %463, %cst_781 {dimension_numbers = #tpu.dot_dimension_numbers<[1], [0], [0], [1], [0, 0, 1, 1], [], []>} : vector<3x3xf32>, vector<3x256xf32>, vector<3x256xf32> -> vector<3x256xf32>
    %c3_782 = arith.constant 3 : index
    %c5_783 = arith.constant 5 : index
    %c0_784 = arith.constant 0 : index
    %c0_785 = arith.constant 0 : index
    %780 = vector.load %arg8[%c3_782, %c5_783, %c0_784, %c0_785] : memref<4x9x3x3xf32, #tpu.memory_space<vmem>>, vector<1x1x3x3xf32>
    %781 = vector.shape_cast %780 : vector<1x1x3x3xf32> to vector<3x3xf32>
    %cst_786 = arith.constant dense<0.000000e+00> : vector<3x256xf32>
    %782 = tpu.matmul %781, %488, %cst_786 {dimension_numbers = #tpu.dot_dimension_numbers<[1], [0], [0], [1], [0, 0, 1, 1], [], []>} : vector<3x3xf32>, vector<3x256xf32>, vector<3x256xf32> -> vector<3x256xf32>
    %783 = arith.addf %776, %779 : vector<3x256xf32>
    %784 = arith.addf %783, %782 : vector<3x256xf32>
    %c3_787 = arith.constant 3 : index
    %c6_788 = arith.constant 6 : index
    %c0_789 = arith.constant 0 : index
    %c0_790 = arith.constant 0 : index
    %785 = vector.load %arg7[%c3_787, %c6_788, %c0_789, %c0_790] : memref<4x9x3x3xf32, #tpu.memory_space<vmem>>, vector<1x1x3x3xf32>
    %786 = vector.shape_cast %785 : vector<1x1x3x3xf32> to vector<3x3xf32>
    %cst_791 = arith.constant dense<0.000000e+00> : vector<3x256xf32>
    %787 = tpu.matmul %786, %466, %cst_791 {dimension_numbers = #tpu.dot_dimension_numbers<[1], [0], [0], [1], [0, 0, 1, 1], [], []>} : vector<3x3xf32>, vector<3x256xf32>, vector<3x256xf32> -> vector<3x256xf32>
    %c3_792 = arith.constant 3 : index
    %c6_793 = arith.constant 6 : index
    %c0_794 = arith.constant 0 : index
    %c0_795 = arith.constant 0 : index
    %788 = vector.load %arg8[%c3_792, %c6_793, %c0_794, %c0_795] : memref<4x9x3x3xf32, #tpu.memory_space<vmem>>, vector<1x1x3x3xf32>
    %789 = vector.shape_cast %788 : vector<1x1x3x3xf32> to vector<3x3xf32>
    %cst_796 = arith.constant dense<0.000000e+00> : vector<3x256xf32>
    %790 = tpu.matmul %789, %491, %cst_796 {dimension_numbers = #tpu.dot_dimension_numbers<[1], [0], [0], [1], [0, 0, 1, 1], [], []>} : vector<3x3xf32>, vector<3x256xf32>, vector<3x256xf32> -> vector<3x256xf32>
    %791 = arith.addf %784, %787 : vector<3x256xf32>
    %792 = arith.addf %791, %790 : vector<3x256xf32>
    %c3_797 = arith.constant 3 : index
    %c7_798 = arith.constant 7 : index
    %c0_799 = arith.constant 0 : index
    %c0_800 = arith.constant 0 : index
    %793 = vector.load %arg7[%c3_797, %c7_798, %c0_799, %c0_800] : memref<4x9x3x3xf32, #tpu.memory_space<vmem>>, vector<1x1x3x3xf32>
    %794 = vector.shape_cast %793 : vector<1x1x3x3xf32> to vector<3x3xf32>
    %cst_801 = arith.constant dense<0.000000e+00> : vector<3x256xf32>
    %795 = tpu.matmul %794, %469, %cst_801 {dimension_numbers = #tpu.dot_dimension_numbers<[1], [0], [0], [1], [0, 0, 1, 1], [], []>} : vector<3x3xf32>, vector<3x256xf32>, vector<3x256xf32> -> vector<3x256xf32>
    %c3_802 = arith.constant 3 : index
    %c7_803 = arith.constant 7 : index
    %c0_804 = arith.constant 0 : index
    %c0_805 = arith.constant 0 : index
    %796 = vector.load %arg8[%c3_802, %c7_803, %c0_804, %c0_805] : memref<4x9x3x3xf32, #tpu.memory_space<vmem>>, vector<1x1x3x3xf32>
    %797 = vector.shape_cast %796 : vector<1x1x3x3xf32> to vector<3x3xf32>
    %cst_806 = arith.constant dense<0.000000e+00> : vector<3x256xf32>
    %798 = tpu.matmul %797, %494, %cst_806 {dimension_numbers = #tpu.dot_dimension_numbers<[1], [0], [0], [1], [0, 0, 1, 1], [], []>} : vector<3x3xf32>, vector<3x256xf32>, vector<3x256xf32> -> vector<3x256xf32>
    %799 = arith.addf %792, %795 : vector<3x256xf32>
    %800 = arith.addf %799, %798 : vector<3x256xf32>
    %c3_807 = arith.constant 3 : index
    %c8_808 = arith.constant 8 : index
    %c0_809 = arith.constant 0 : index
    %c0_810 = arith.constant 0 : index
    %801 = vector.load %arg7[%c3_807, %c8_808, %c0_809, %c0_810] : memref<4x9x3x3xf32, #tpu.memory_space<vmem>>, vector<1x1x3x3xf32>
    %802 = vector.shape_cast %801 : vector<1x1x3x3xf32> to vector<3x3xf32>
    %cst_811 = arith.constant dense<0.000000e+00> : vector<3x256xf32>
    %803 = tpu.matmul %802, %472, %cst_811 {dimension_numbers = #tpu.dot_dimension_numbers<[1], [0], [0], [1], [0, 0, 1, 1], [], []>} : vector<3x3xf32>, vector<3x256xf32>, vector<3x256xf32> -> vector<3x256xf32>
    %c3_812 = arith.constant 3 : index
    %c8_813 = arith.constant 8 : index
    %c0_814 = arith.constant 0 : index
    %c0_815 = arith.constant 0 : index
    %804 = vector.load %arg8[%c3_812, %c8_813, %c0_814, %c0_815] : memref<4x9x3x3xf32, #tpu.memory_space<vmem>>, vector<1x1x3x3xf32>
    %805 = vector.shape_cast %804 : vector<1x1x3x3xf32> to vector<3x3xf32>
    %cst_816 = arith.constant dense<0.000000e+00> : vector<3x256xf32>
    %806 = tpu.matmul %805, %497, %cst_816 {dimension_numbers = #tpu.dot_dimension_numbers<[1], [0], [0], [1], [0, 0, 1, 1], [], []>} : vector<3x3xf32>, vector<3x256xf32>, vector<3x256xf32> -> vector<3x256xf32>
    %807 = arith.addf %800, %803 : vector<3x256xf32>
    %808 = arith.addf %807, %806 : vector<3x256xf32>
    %c3_817 = arith.constant 3 : index
    %c0_818 = arith.constant 0 : index
    %c0_819 = arith.constant 0 : index
    %809 = vector.load %arg9[%c3_817, %c0_818, %c0_819] : memref<4x3x1xf32, #tpu.memory_space<vmem>>, vector<1x3x1xf32>
    %810 = vector.shape_cast %809 : vector<1x3x1xf32> to vector<3x1xf32>
    %811 = vector.broadcast %810 : vector<3x1xf32> to vector<3x256xf32>
    %812 = arith.addf %808, %811 : vector<3x256xf32>
    %813 = math.tanh %812 : vector<3x256xf32>
    %c0_820 = arith.constant 0 : index
    %c0_821 = arith.constant 0 : index
    %814 = vector.load %arg17[%c0_820, %c0_821] : memref<3x256xf32, #tpu.memory_space<vmem>>, vector<3x256xf32>
    %815 = arith.mulf %657, %814 : vector<3x256xf32>
    %816 = arith.mulf %577, %813 : vector<3x256xf32>
    %817 = arith.addf %815, %816 : vector<3x256xf32>
    %818 = math.tanh %817 : vector<3x256xf32>
    %819 = arith.mulf %737, %818 : vector<3x256xf32>
    %c0_822 = arith.constant 0 : index
    %c0_823 = arith.constant 0 : index
    %820 = vector.load %arg17[%c0_822, %c0_823] : memref<3x256xf32, #tpu.memory_space<vmem>>, vector<3x256xf32>
    tpu.vector_store %arg17[%c0_822, %c0_823], %817 {strides = array<i32>} : memref<3x256xf32, #tpu.memory_space<vmem>>, vector<3x256xf32>,
    %c0_824 = arith.constant 0 : index
    %c0_825 = arith.constant 0 : index
    %821 = vector.load %arg16[%c0_824, %c0_825] : memref<3x256xf32, #tpu.memory_space<vmem>>, vector<3x256xf32>
    tpu.vector_store %arg16[%c0_824, %c0_825], %819 {strides = array<i32>} : memref<3x256xf32, #tpu.memory_space<vmem>>, vector<3x256xf32>,
    %c17_i32_826 = arith.constant 17 : i32
    %822 = tpu.dynamic_rotate %446 by %c17_i32_826 dim 1 : vector<3x256xf32>, i32 -> vector<3x256xf32>
    %823 = vector.broadcast %15 : vector<1x256xf32> to vector<3x256xf32>
    %824 = arith.mulf %822, %823 : vector<3x256xf32>
    %c16_i32_827 = arith.constant 16 : i32
    %825 = tpu.dynamic_rotate %446 by %c16_i32_827 dim 1 : vector<3x256xf32>, i32 -> vector<3x256xf32>
    %826 = vector.broadcast %20 : vector<1x256xf32> to vector<3x256xf32>
    %827 = arith.mulf %825, %826 : vector<3x256xf32>
    %c15_i32_828 = arith.constant 15 : i32
    %828 = tpu.dynamic_rotate %446 by %c15_i32_828 dim 1 : vector<3x256xf32>, i32 -> vector<3x256xf32>
    %829 = vector.broadcast %31 : vector<1x256xf32> to vector<3x256xf32>
    %830 = arith.mulf %828, %829 : vector<3x256xf32>
    %c1_i32_829 = arith.constant 1 : i32
    %831 = tpu.dynamic_rotate %446 by %c1_i32_829 dim 1 : vector<3x256xf32>, i32 -> vector<3x256xf32>
    %832 = vector.broadcast %36 : vector<1x256xf32> to vector<3x256xf32>
    %833 = arith.mulf %831, %832 : vector<3x256xf32>
    %c255_i32_830 = arith.constant 255 : i32
    %834 = tpu.dynamic_rotate %446 by %c255_i32_830 dim 1 : vector<3x256xf32>, i32 -> vector<3x256xf32>
    %835 = vector.broadcast %41 : vector<1x256xf32> to vector<3x256xf32>
    %836 = arith.mulf %834, %835 : vector<3x256xf32>
    %c241_i32_831 = arith.constant 241 : i32
    %837 = tpu.dynamic_rotate %446 by %c241_i32_831 dim 1 : vector<3x256xf32>, i32 -> vector<3x256xf32>
    %838 = vector.broadcast %52 : vector<1x256xf32> to vector<3x256xf32>
    %839 = arith.mulf %837, %838 : vector<3x256xf32>
    %c240_i32_832 = arith.constant 240 : i32
    %840 = tpu.dynamic_rotate %446 by %c240_i32_832 dim 1 : vector<3x256xf32>, i32 -> vector<3x256xf32>
    %841 = vector.broadcast %57 : vector<1x256xf32> to vector<3x256xf32>
    %842 = arith.mulf %840, %841 : vector<3x256xf32>
    %c239_i32_833 = arith.constant 239 : i32
    %843 = tpu.dynamic_rotate %446 by %c239_i32_833 dim 1 : vector<3x256xf32>, i32 -> vector<3x256xf32>
    %844 = vector.broadcast %68 : vector<1x256xf32> to vector<3x256xf32>
    %845 = arith.mulf %843, %844 : vector<3x256xf32>
    %c17_i32_834 = arith.constant 17 : i32
    %846 = tpu.dynamic_rotate %819 by %c17_i32_834 dim 1 : vector<3x256xf32>, i32 -> vector<3x256xf32>
    %847 = vector.broadcast %15 : vector<1x256xf32> to vector<3x256xf32>
    %848 = arith.mulf %846, %847 : vector<3x256xf32>
    %c16_i32_835 = arith.constant 16 : i32
    %849 = tpu.dynamic_rotate %819 by %c16_i32_835 dim 1 : vector<3x256xf32>, i32 -> vector<3x256xf32>
    %850 = vector.broadcast %20 : vector<1x256xf32> to vector<3x256xf32>
    %851 = arith.mulf %849, %850 : vector<3x256xf32>
    %c15_i32_836 = arith.constant 15 : i32
    %852 = tpu.dynamic_rotate %819 by %c15_i32_836 dim 1 : vector<3x256xf32>, i32 -> vector<3x256xf32>
    %853 = vector.broadcast %31 : vector<1x256xf32> to vector<3x256xf32>
    %854 = arith.mulf %852, %853 : vector<3x256xf32>
    %c1_i32_837 = arith.constant 1 : i32
    %855 = tpu.dynamic_rotate %819 by %c1_i32_837 dim 1 : vector<3x256xf32>, i32 -> vector<3x256xf32>
    %856 = vector.broadcast %36 : vector<1x256xf32> to vector<3x256xf32>
    %857 = arith.mulf %855, %856 : vector<3x256xf32>
    %c255_i32_838 = arith.constant 255 : i32
    %858 = tpu.dynamic_rotate %819 by %c255_i32_838 dim 1 : vector<3x256xf32>, i32 -> vector<3x256xf32>
    %859 = vector.broadcast %41 : vector<1x256xf32> to vector<3x256xf32>
    %860 = arith.mulf %858, %859 : vector<3x256xf32>
    %c241_i32_839 = arith.constant 241 : i32
    %861 = tpu.dynamic_rotate %819 by %c241_i32_839 dim 1 : vector<3x256xf32>, i32 -> vector<3x256xf32>
    %862 = vector.broadcast %52 : vector<1x256xf32> to vector<3x256xf32>
    %863 = arith.mulf %861, %862 : vector<3x256xf32>
    %c240_i32_840 = arith.constant 240 : i32
    %864 = tpu.dynamic_rotate %819 by %c240_i32_840 dim 1 : vector<3x256xf32>, i32 -> vector<3x256xf32>
    %865 = vector.broadcast %57 : vector<1x256xf32> to vector<3x256xf32>
    %866 = arith.mulf %864, %865 : vector<3x256xf32>
    %c239_i32_841 = arith.constant 239 : i32
    %867 = tpu.dynamic_rotate %819 by %c239_i32_841 dim 1 : vector<3x256xf32>, i32 -> vector<3x256xf32>
    %868 = vector.broadcast %68 : vector<1x256xf32> to vector<3x256xf32>
    %869 = arith.mulf %867, %868 : vector<3x256xf32>
    %c0_842 = arith.constant 0 : index
    %c0_843 = arith.constant 0 : index
    %c0_844 = arith.constant 0 : index
    %870 = vector.load %arg10[%c0_842, %c0_843, %c0_844] : memref<9x3x3xf32, #tpu.memory_space<vmem>>, vector<1x3x3xf32>
    %871 = vector.shape_cast %870 : vector<1x3x3xf32> to vector<3x3xf32>
    %cst_845 = arith.constant dense<0.000000e+00> : vector<3x256xf32>
    %872 = tpu.matmul %871, %824, %cst_845 {dimension_numbers = #tpu.dot_dimension_numbers<[1], [0], [0], [1], [0, 0, 1, 1], [], []>} : vector<3x3xf32>, vector<3x256xf32>, vector<3x256xf32> -> vector<3x256xf32>
    %c0_846 = arith.constant 0 : index
    %c0_847 = arith.constant 0 : index
    %c0_848 = arith.constant 0 : index
    %873 = vector.load %arg11[%c0_846, %c0_847, %c0_848] : memref<9x3x3xf32, #tpu.memory_space<vmem>>, vector<1x3x3xf32>
    %874 = vector.shape_cast %873 : vector<1x3x3xf32> to vector<3x3xf32>
    %cst_849 = arith.constant dense<0.000000e+00> : vector<3x256xf32>
    %875 = tpu.matmul %874, %848, %cst_849 {dimension_numbers = #tpu.dot_dimension_numbers<[1], [0], [0], [1], [0, 0, 1, 1], [], []>} : vector<3x3xf32>, vector<3x256xf32>, vector<3x256xf32> -> vector<3x256xf32>
    %876 = arith.addf %872, %875 : vector<3x256xf32>
    %c1_850 = arith.constant 1 : index
    %c0_851 = arith.constant 0 : index
    %c0_852 = arith.constant 0 : index
    %877 = vector.load %arg10[%c1_850, %c0_851, %c0_852] : memref<9x3x3xf32, #tpu.memory_space<vmem>>, vector<1x3x3xf32>
    %878 = vector.shape_cast %877 : vector<1x3x3xf32> to vector<3x3xf32>
    %cst_853 = arith.constant dense<0.000000e+00> : vector<3x256xf32>
    %879 = tpu.matmul %878, %827, %cst_853 {dimension_numbers = #tpu.dot_dimension_numbers<[1], [0], [0], [1], [0, 0, 1, 1], [], []>} : vector<3x3xf32>, vector<3x256xf32>, vector<3x256xf32> -> vector<3x256xf32>
    %c1_854 = arith.constant 1 : index
    %c0_855 = arith.constant 0 : index
    %c0_856 = arith.constant 0 : index
    %880 = vector.load %arg11[%c1_854, %c0_855, %c0_856] : memref<9x3x3xf32, #tpu.memory_space<vmem>>, vector<1x3x3xf32>
    %881 = vector.shape_cast %880 : vector<1x3x3xf32> to vector<3x3xf32>
    %cst_857 = arith.constant dense<0.000000e+00> : vector<3x256xf32>
    %882 = tpu.matmul %881, %851, %cst_857 {dimension_numbers = #tpu.dot_dimension_numbers<[1], [0], [0], [1], [0, 0, 1, 1], [], []>} : vector<3x3xf32>, vector<3x256xf32>, vector<3x256xf32> -> vector<3x256xf32>
    %883 = arith.addf %879, %882 : vector<3x256xf32>
    %884 = arith.addf %876, %883 : vector<3x256xf32>
    %c2_858 = arith.constant 2 : index
    %c0_859 = arith.constant 0 : index
    %c0_860 = arith.constant 0 : index
    %885 = vector.load %arg10[%c2_858, %c0_859, %c0_860] : memref<9x3x3xf32, #tpu.memory_space<vmem>>, vector<1x3x3xf32>
    %886 = vector.shape_cast %885 : vector<1x3x3xf32> to vector<3x3xf32>
    %cst_861 = arith.constant dense<0.000000e+00> : vector<3x256xf32>
    %887 = tpu.matmul %886, %830, %cst_861 {dimension_numbers = #tpu.dot_dimension_numbers<[1], [0], [0], [1], [0, 0, 1, 1], [], []>} : vector<3x3xf32>, vector<3x256xf32>, vector<3x256xf32> -> vector<3x256xf32>
    %c2_862 = arith.constant 2 : index
    %c0_863 = arith.constant 0 : index
    %c0_864 = arith.constant 0 : index
    %888 = vector.load %arg11[%c2_862, %c0_863, %c0_864] : memref<9x3x3xf32, #tpu.memory_space<vmem>>, vector<1x3x3xf32>
    %889 = vector.shape_cast %888 : vector<1x3x3xf32> to vector<3x3xf32>
    %cst_865 = arith.constant dense<0.000000e+00> : vector<3x256xf32>
    %890 = tpu.matmul %889, %854, %cst_865 {dimension_numbers = #tpu.dot_dimension_numbers<[1], [0], [0], [1], [0, 0, 1, 1], [], []>} : vector<3x3xf32>, vector<3x256xf32>, vector<3x256xf32> -> vector<3x256xf32>
    %891 = arith.addf %887, %890 : vector<3x256xf32>
    %892 = arith.addf %884, %891 : vector<3x256xf32>
    %c3_866 = arith.constant 3 : index
    %c0_867 = arith.constant 0 : index
    %c0_868 = arith.constant 0 : index
    %893 = vector.load %arg10[%c3_866, %c0_867, %c0_868] : memref<9x3x3xf32, #tpu.memory_space<vmem>>, vector<1x3x3xf32>
    %894 = vector.shape_cast %893 : vector<1x3x3xf32> to vector<3x3xf32>
    %cst_869 = arith.constant dense<0.000000e+00> : vector<3x256xf32>
    %895 = tpu.matmul %894, %833, %cst_869 {dimension_numbers = #tpu.dot_dimension_numbers<[1], [0], [0], [1], [0, 0, 1, 1], [], []>} : vector<3x3xf32>, vector<3x256xf32>, vector<3x256xf32> -> vector<3x256xf32>
    %c3_870 = arith.constant 3 : index
    %c0_871 = arith.constant 0 : index
    %c0_872 = arith.constant 0 : index
    %896 = vector.load %arg11[%c3_870, %c0_871, %c0_872] : memref<9x3x3xf32, #tpu.memory_space<vmem>>, vector<1x3x3xf32>
    %897 = vector.shape_cast %896 : vector<1x3x3xf32> to vector<3x3xf32>
    %cst_873 = arith.constant dense<0.000000e+00> : vector<3x256xf32>
    %898 = tpu.matmul %897, %857, %cst_873 {dimension_numbers = #tpu.dot_dimension_numbers<[1], [0], [0], [1], [0, 0, 1, 1], [], []>} : vector<3x3xf32>, vector<3x256xf32>, vector<3x256xf32> -> vector<3x256xf32>
    %899 = arith.addf %895, %898 : vector<3x256xf32>
    %900 = arith.addf %892, %899 : vector<3x256xf32>
    %c4_874 = arith.constant 4 : index
    %c0_875 = arith.constant 0 : index
    %c0_876 = arith.constant 0 : index
    %901 = vector.load %arg10[%c4_874, %c0_875, %c0_876] : memref<9x3x3xf32, #tpu.memory_space<vmem>>, vector<1x3x3xf32>
    %902 = vector.shape_cast %901 : vector<1x3x3xf32> to vector<3x3xf32>
    %cst_877 = arith.constant dense<0.000000e+00> : vector<3x256xf32>
    %903 = tpu.matmul %902, %446, %cst_877 {dimension_numbers = #tpu.dot_dimension_numbers<[1], [0], [0], [1], [0, 0, 1, 1], [], []>} : vector<3x3xf32>, vector<3x256xf32>, vector<3x256xf32> -> vector<3x256xf32>
    %c4_878 = arith.constant 4 : index
    %c0_879 = arith.constant 0 : index
    %c0_880 = arith.constant 0 : index
    %904 = vector.load %arg11[%c4_878, %c0_879, %c0_880] : memref<9x3x3xf32, #tpu.memory_space<vmem>>, vector<1x3x3xf32>
    %905 = vector.shape_cast %904 : vector<1x3x3xf32> to vector<3x3xf32>
    %cst_881 = arith.constant dense<0.000000e+00> : vector<3x256xf32>
    %906 = tpu.matmul %905, %819, %cst_881 {dimension_numbers = #tpu.dot_dimension_numbers<[1], [0], [0], [1], [0, 0, 1, 1], [], []>} : vector<3x3xf32>, vector<3x256xf32>, vector<3x256xf32> -> vector<3x256xf32>
    %907 = arith.addf %903, %906 : vector<3x256xf32>
    %908 = arith.addf %900, %907 : vector<3x256xf32>
    %c5_882 = arith.constant 5 : index
    %c0_883 = arith.constant 0 : index
    %c0_884 = arith.constant 0 : index
    %909 = vector.load %arg10[%c5_882, %c0_883, %c0_884] : memref<9x3x3xf32, #tpu.memory_space<vmem>>, vector<1x3x3xf32>
    %910 = vector.shape_cast %909 : vector<1x3x3xf32> to vector<3x3xf32>
    %cst_885 = arith.constant dense<0.000000e+00> : vector<3x256xf32>
    %911 = tpu.matmul %910, %836, %cst_885 {dimension_numbers = #tpu.dot_dimension_numbers<[1], [0], [0], [1], [0, 0, 1, 1], [], []>} : vector<3x3xf32>, vector<3x256xf32>, vector<3x256xf32> -> vector<3x256xf32>
    %c5_886 = arith.constant 5 : index
    %c0_887 = arith.constant 0 : index
    %c0_888 = arith.constant 0 : index
    %912 = vector.load %arg11[%c5_886, %c0_887, %c0_888] : memref<9x3x3xf32, #tpu.memory_space<vmem>>, vector<1x3x3xf32>
    %913 = vector.shape_cast %912 : vector<1x3x3xf32> to vector<3x3xf32>
    %cst_889 = arith.constant dense<0.000000e+00> : vector<3x256xf32>
    %914 = tpu.matmul %913, %860, %cst_889 {dimension_numbers = #tpu.dot_dimension_numbers<[1], [0], [0], [1], [0, 0, 1, 1], [], []>} : vector<3x3xf32>, vector<3x256xf32>, vector<3x256xf32> -> vector<3x256xf32>
    %915 = arith.addf %911, %914 : vector<3x256xf32>
    %916 = arith.addf %908, %915 : vector<3x256xf32>
    %c6_890 = arith.constant 6 : index
    %c0_891 = arith.constant 0 : index
    %c0_892 = arith.constant 0 : index
    %917 = vector.load %arg10[%c6_890, %c0_891, %c0_892] : memref<9x3x3xf32, #tpu.memory_space<vmem>>, vector<1x3x3xf32>
    %918 = vector.shape_cast %917 : vector<1x3x3xf32> to vector<3x3xf32>
    %cst_893 = arith.constant dense<0.000000e+00> : vector<3x256xf32>
    %919 = tpu.matmul %918, %839, %cst_893 {dimension_numbers = #tpu.dot_dimension_numbers<[1], [0], [0], [1], [0, 0, 1, 1], [], []>} : vector<3x3xf32>, vector<3x256xf32>, vector<3x256xf32> -> vector<3x256xf32>
    %c6_894 = arith.constant 6 : index
    %c0_895 = arith.constant 0 : index
    %c0_896 = arith.constant 0 : index
    %920 = vector.load %arg11[%c6_894, %c0_895, %c0_896] : memref<9x3x3xf32, #tpu.memory_space<vmem>>, vector<1x3x3xf32>
    %921 = vector.shape_cast %920 : vector<1x3x3xf32> to vector<3x3xf32>
    %cst_897 = arith.constant dense<0.000000e+00> : vector<3x256xf32>
    %922 = tpu.matmul %921, %863, %cst_897 {dimension_numbers = #tpu.dot_dimension_numbers<[1], [0], [0], [1], [0, 0, 1, 1], [], []>} : vector<3x3xf32>, vector<3x256xf32>, vector<3x256xf32> -> vector<3x256xf32>
    %923 = arith.addf %919, %922 : vector<3x256xf32>
    %924 = arith.addf %916, %923 : vector<3x256xf32>
    %c7_898 = arith.constant 7 : index
    %c0_899 = arith.constant 0 : index
    %c0_900 = arith.constant 0 : index
    %925 = vector.load %arg10[%c7_898, %c0_899, %c0_900] : memref<9x3x3xf32, #tpu.memory_space<vmem>>, vector<1x3x3xf32>
    %926 = vector.shape_cast %925 : vector<1x3x3xf32> to vector<3x3xf32>
    %cst_901 = arith.constant dense<0.000000e+00> : vector<3x256xf32>
    %927 = tpu.matmul %926, %842, %cst_901 {dimension_numbers = #tpu.dot_dimension_numbers<[1], [0], [0], [1], [0, 0, 1, 1], [], []>} : vector<3x3xf32>, vector<3x256xf32>, vector<3x256xf32> -> vector<3x256xf32>
    %c7_902 = arith.constant 7 : index
    %c0_903 = arith.constant 0 : index
    %c0_904 = arith.constant 0 : index
    %928 = vector.load %arg11[%c7_902, %c0_903, %c0_904] : memref<9x3x3xf32, #tpu.memory_space<vmem>>, vector<1x3x3xf32>
    %929 = vector.shape_cast %928 : vector<1x3x3xf32> to vector<3x3xf32>
    %cst_905 = arith.constant dense<0.000000e+00> : vector<3x256xf32>
    %930 = tpu.matmul %929, %866, %cst_905 {dimension_numbers = #tpu.dot_dimension_numbers<[1], [0], [0], [1], [0, 0, 1, 1], [], []>} : vector<3x3xf32>, vector<3x256xf32>, vector<3x256xf32> -> vector<3x256xf32>
    %931 = arith.addf %927, %930 : vector<3x256xf32>
    %932 = arith.addf %924, %931 : vector<3x256xf32>
    %c8_906 = arith.constant 8 : index
    %c0_907 = arith.constant 0 : index
    %c0_908 = arith.constant 0 : index
    %933 = vector.load %arg10[%c8_906, %c0_907, %c0_908] : memref<9x3x3xf32, #tpu.memory_space<vmem>>, vector<1x3x3xf32>
    %934 = vector.shape_cast %933 : vector<1x3x3xf32> to vector<3x3xf32>
    %cst_909 = arith.constant dense<0.000000e+00> : vector<3x256xf32>
    %935 = tpu.matmul %934, %845, %cst_909 {dimension_numbers = #tpu.dot_dimension_numbers<[1], [0], [0], [1], [0, 0, 1, 1], [], []>} : vector<3x3xf32>, vector<3x256xf32>, vector<3x256xf32> -> vector<3x256xf32>
    %c8_910 = arith.constant 8 : index
    %c0_911 = arith.constant 0 : index
    %c0_912 = arith.constant 0 : index
    %936 = vector.load %arg11[%c8_910, %c0_911, %c0_912] : memref<9x3x3xf32, #tpu.memory_space<vmem>>, vector<1x3x3xf32>
    %937 = vector.shape_cast %936 : vector<1x3x3xf32> to vector<3x3xf32>
    %cst_913 = arith.constant dense<0.000000e+00> : vector<3x256xf32>
    %938 = tpu.matmul %937, %869, %cst_913 {dimension_numbers = #tpu.dot_dimension_numbers<[1], [0], [0], [1], [0, 0, 1, 1], [], []>} : vector<3x3xf32>, vector<3x256xf32>, vector<3x256xf32> -> vector<3x256xf32>
    %939 = arith.addf %935, %938 : vector<3x256xf32>
    %940 = arith.addf %932, %939 : vector<3x256xf32>
    %c0_914 = arith.constant 0 : index
    %c0_915 = arith.constant 0 : index
    %941 = vector.load %arg12[%c0_914, %c0_915] : memref<3x1xf32, #tpu.memory_space<vmem>>, vector<3x1xf32>
    %942 = vector.broadcast %941 : vector<3x1xf32> to vector<3x256xf32>
    %943 = arith.addf %940, %942 : vector<3x256xf32>
    %c0_916 = arith.constant 0 : index
    %c0_917 = arith.constant 0 : index
    %c0_918 = arith.constant 0 : index
    %944 = vector.load %arg13[%c0_916, %c0_917, %c0_918] : memref<1x3x256xf32, #tpu.memory_space<vmem>>, vector<1x3x256xf32>
    %945 = vector.shape_cast %944 : vector<1x3x256xf32> to vector<3x256xf32>
    %946 = vector.shape_cast %943 : vector<3x256xf32> to vector<1x3x256xf32>
    tpu.vector_store %arg13[%c0_916, %c0_917, %c0_918], %946 {strides = array<i32>} : memref<1x3x256xf32, #tpu.memory_space<vmem>>, vector<1x3x256xf32>,
    return
  }
  func.func @transform_0(%arg0: i32) -> (i32, i32, i32) {
    %c0_i32 = arith.constant 0 : i32
    %c0_i32_0 = arith.constant 0 : i32
    %c0_i32_1 = arith.constant 0 : i32
    %c0_i32_2 = arith.constant 0 : i32
    return %c0_i32, %c0_i32_0, %c0_i32_1 : i32, i32, i32
  }
  func.func @transform_1(%arg0: i32) -> (i32, i32) {
    %c0_i32 = arith.constant 0 : i32
    %c0_i32_0 = arith.constant 0 : i32
    %c0_i32_1 = arith.constant 0 : i32
    return %c0_i32, %c0_i32_0 : i32, i32
  }
  func.func @transform_2(%arg0: i32) -> (i32, i32) {
    %c0_i32 = arith.constant 0 : i32
    %c0_i32_0 = arith.constant 0 : i32
    %c0_i32_1 = arith.constant 0 : i32
    return %c0_i32, %c0_i32_0 : i32, i32
  }
  func.func @transform_3(%arg0: i32) -> (i32, i32, i32, i32) {
    %c0_i32 = arith.constant 0 : i32
    %c0_i32_0 = arith.constant 0 : i32
    %c0_i32_1 = arith.constant 0 : i32
    %c0_i32_2 = arith.constant 0 : i32
    %c0_i32_3 = arith.constant 0 : i32
    return %c0_i32, %c0_i32_0, %c0_i32_1, %c0_i32_2 : i32, i32, i32, i32
  }
  func.func @transform_4(%arg0: i32) -> (i32, i32, i32, i32) {
    %c0_i32 = arith.constant 0 : i32
    %c0_i32_0 = arith.constant 0 : i32
    %c0_i32_1 = arith.constant 0 : i32
    %c0_i32_2 = arith.constant 0 : i32
    %c0_i32_3 = arith.constant 0 : i32
    return %c0_i32, %c0_i32_0, %c0_i32_1, %c0_i32_2 : i32, i32, i32, i32
  }
  func.func @transform_5(%arg0: i32) -> (i32, i32, i32) {
    %c0_i32 = arith.constant 0 : i32
    %c0_i32_0 = arith.constant 0 : i32
    %c0_i32_1 = arith.constant 0 : i32
    %c0_i32_2 = arith.constant 0 : i32
    return %c0_i32, %c0_i32_0, %c0_i32_1 : i32, i32, i32
  }
  func.func @transform_6(%arg0: i32) -> (i32, i32, i32, i32) {
    %c0_i32 = arith.constant 0 : i32
    %c0_i32_0 = arith.constant 0 : i32
    %c0_i32_1 = arith.constant 0 : i32
    %c0_i32_2 = arith.constant 0 : i32
    %c0_i32_3 = arith.constant 0 : i32
    return %c0_i32, %c0_i32_0, %c0_i32_1, %c0_i32_2 : i32, i32, i32, i32
  }
  func.func @transform_7(%arg0: i32) -> (i32, i32, i32, i32) {
    %c0_i32 = arith.constant 0 : i32
    %c0_i32_0 = arith.constant 0 : i32
    %c0_i32_1 = arith.constant 0 : i32
    %c0_i32_2 = arith.constant 0 : i32
    %c0_i32_3 = arith.constant 0 : i32
    return %c0_i32, %c0_i32_0, %c0_i32_1, %c0_i32_2 : i32, i32, i32, i32
  }
  func.func @transform_8(%arg0: i32) -> (i32, i32, i32) {
    %c0_i32 = arith.constant 0 : i32
    %c0_i32_0 = arith.constant 0 : i32
    %c0_i32_1 = arith.constant 0 : i32
    %c0_i32_2 = arith.constant 0 : i32
    return %c0_i32, %c0_i32_0, %c0_i32_1 : i32, i32, i32
  }
  func.func @transform_9(%arg0: i32) -> (i32, i32, i32) {
    %c0_i32 = arith.constant 0 : i32
    %c0_i32_0 = arith.constant 0 : i32
    %c0_i32_1 = arith.constant 0 : i32
    %c0_i32_2 = arith.constant 0 : i32
    return %c0_i32, %c0_i32_0, %c0_i32_1 : i32, i32, i32
  }
  func.func @transform_10(%arg0: i32) -> (i32, i32, i32) {
    %c0_i32 = arith.constant 0 : i32
    %c0_i32_0 = arith.constant 0 : i32
    %c0_i32_1 = arith.constant 0 : i32
    %c0_i32_2 = arith.constant 0 : i32
    return %c0_i32, %c0_i32_0, %c0_i32_1 : i32, i32, i32
  }
  func.func @transform_11(%arg0: i32) -> (i32, i32) {
    %c0_i32 = arith.constant 0 : i32
    %c0_i32_0 = arith.constant 0 : i32
    %c0_i32_1 = arith.constant 0 : i32
    return %c0_i32, %c0_i32_0 : i32, i32
  }
  func.func @transform_12(%arg0: i32) -> (i32, i32, i32) {
    %c0_i32 = arith.constant 0 : i32
    %c0_i32_0 = arith.constant 0 : i32
    %c0_i32_1 = arith.constant 0 : i32
    return %arg0, %c0_i32, %c0_i32_0 : i32, i32, i32
  }
}

</mosaic_0001>

<bundles_post_ra>
// kernel: rnn_unet_config1_forward.2
= control target key start
LH: loop header
LB: loop body
LE: loop exit
PB: predicated region body
PF: predicated region fallthrough
CT: control target
= control target key end

     0   :  { %s9296_s0 = inlined_call_operand.vmem [shape: f32[2,1,256], index: 0, kind: input, shape index: {}]   ;;  %s9297_s1 = inlined_call_operand.vmem [shape: s32[1,256], index: 1, kind: input, shape index: {}]   ;;  %s9298_s2 = inlined_call_operand.vmem [shape: s32[1,256], index: 2, kind: input, shape index: {}]   ;;  %s9299_s3 = inlined_call_operand.vmem [shape: f32[1,256], index: 3, kind: input, shape index: {}]   ;;  %s9300_s4 = inlined_call_operand.vmem [shape: f32[1,256], index: 4, kind: input, shape index: {}]   ;;  %s9301_s5 = inlined_call_operand.vmem [shape: f32[9,8,1], index: 5, kind: input, shape index: {}]   ;;  %s9302_s6 = inlined_call_operand.vmem [shape: f32[8,1], index: 6, kind: input, shape index: {}]   ;;  %s9303_s7 = inlined_call_operand.vmem [shape: f32[9,8,8], index: 7, kind: input, shape index: {}]   ;;  %s9304_s8 = inlined_call_operand.vmem [shape: f32[8,1], index: 8, kind: input, shape index: {}]   ;;  %s9305_s9 = inlined_call_operand.vmem [shape: f32[9,16,8], index: 9, kind: input, shape index: {}]   ;;  %s9306_s10 = inlined_call_operand.vmem [shape: f32[16,1], index: 10, kind: input, shape index: {}]   ;;  %s9307_s11 = inlined_call_operand.vmem [shape: f32[9,16,16], index: 11, kind: input, shape index: {}]   ;;  %s9308_s12 = inlined_call_operand.vmem [shape: f32[16,1], index: 12, kind: input, shape index: {}]   ;;  %s9309_s13 = inlined_call_operand.vmem [shape: f32[9,8,16], index: 13, kind: input, shape index: {}]   ;;  %s9310_s14 = inlined_call_operand.vmem [shape: f32[8,1], index: 14, kind: input, shape index: {}]   ;;  %s9311_s15 = inlined_call_operand.vmem [shape: f32[9,8,8], index: 15, kind: input, shape index: {}]   ;;  %s9312_s16 = inlined_call_operand.vmem [shape: f32[9,8,8], index: 16, kind: input, shape index: {}]   ;;  %s9313_s17 = inlined_call_operand.vmem [shape: f32[8,1], index: 17, kind: input, shape index: {}]   ;;  %s9314_s18 = inlined_call_operand.vmem [shape: f32[9,8,8], index: 18, kind: input, shape index: {}]   ;;  %s9315_s19 = inlined_call_operand.vmem [shape: f32[8,1], index: 19, kind: input, shape index: {}]   ;;  %s9316_s20 = inlined_call_operand.vmem [shape: f32[3,8], index: 20, kind: input, shape index: {}]   ;;  %s9317_s21 = inlined_call_operand.vmem [shape: f32[3,1], index: 21, kind: input, shape index: {}]   ;;  %s9318_s22 = inlined_call_operand.vmem [shape: f32[2,3,256], index: 22, kind: output, shape index: {}]  }
   0x1   :  { %9351 = sst [smem:[#allocation2_spill]] %s9296_s0 }
   0x2   :  { %9352 = sst [smem:[#allocation3_spill]] %s9297_s1 }
   0x3   :  { %9353 = sst [smem:[#allocation4_spill]] %s9298_s2 }
   0x4   :  { %9354 = sst [smem:[#allocation5_spill]] %s9299_s3  ;;  %s7673_s3 = smov 0  }
   0x5   :  { %9355 = sst [smem:[#allocation6_spill]] %s9300_s4 }
   0x6   :  { %9356 = sst [smem:[#allocation7_spill]] %s9301_s5 }
   0x7   :  { %9357 = sst [smem:[#allocation8_spill]] %s9302_s6 }
   0x8 LB: > { %s7113_s28 = sadd.s32 4294967295, %s7538_s3   ;;  %p7117_p0 = scmp.ge.s32.totalorder %s7538_s3, 1  ;;  %s7538_s3 = sphi %s7673_s3, %s32_s3  }
   0x9   : > { %p611_p1 = scmp.lt.s32.totalorder %s7538_s3, 3 }
   0xb   : > { %p612_p2 = pnand %p7117_p0, %p611_p1 }
   0xc   : > { %s9358_s4 = sld [smem:[#allocation7_spill]] (!%p612_p2)  ;;  %p672_p3 = scmp.lt.s32.totalorder (!%p612_p2), %s7113_s28, 1  ;;  %v712_v1 = vlaneseq (!%p612_p2)  ;;  %v7540_v2 = vmov (!%p612_p2), 0   ;;  %v7541_v4 = vmov (!%p612_p2), 0.0   ;;  %vm1121_vm12 = vcmask (!%p612_p2), 64512  }
   0xd   : > { %615 = sbr.rel (%p612_p2) target bundleno = 3178 (0xc6a), region = 108  ;;  %7530 = vset.pattern.permute.xlu0 (!%p612_p2), %v7540_v2  ;;  %7531 = vset.pattern.permute.xlu1 (!%p612_p2), %v7540_v2  ;;  %s9359_s6 = sld [smem:[#allocation2_spill]] (!%p612_p2) }
   0xe   : > { %v713_v3 = vshrl.u32 (!%p612_p2), %v712_v1, 7  ;;  %1189 = vmatprep.mubr.f32.mxu0 (!%p612_p2), %v7541_v4  ;;  %2148 = vmatprep.mubr.f32.mxu1 (!%p612_p2), %v7541_v4  ;;  %s9332_s26 = smov (!%p612_p2), 17   ;;  %s9334_s2 = smov (!%p612_p2), 16   ;;  %v7787_v33 = vand.u32 (!%p612_p2), 127, %v712_v1 }
   0xf   : > { %s9330_s30 = smov (!%p612_p2), 15   ;;  %s9326_s0 = smov (!%p612_p2), 1  }
  0x10   : > { %v7693_v6 = vsub.s32 (!%p612_p2), 0, %v713_v3  ;;  %v7698_v7 = vsub.s32 (!%p612_p2), 1, %v713_v3  ;;  %s9324_s5 = smov (!%p612_p2), 112   ;;  %s9328_s23 = smov (!%p612_p2), 111   ;;  %vm728_vm3 = vcmp.lt.s32.totalorder (!%p612_p2), %v7787_v33, 17  ;;  %vm748_vm4 = vcmp.lt.s32.totalorder (!%p612_p2), %v7787_v33, 16 }
  0x11   : > { %s9360_s24 = sld [smem:[#allocation8_spill]] (!%p612_p2)  ;;  %s9361_s29 = sld [smem:[#allocation3_spill]] (!%p612_p2)  ;;  %vm768_vm5 = vcmp.lt.s32.totalorder (!%p612_p2), %v7787_v33, 15  ;;  %vm788_vm7 = vcmp.lt.s32.totalorder (!%p612_p2), %v7787_v33, 1  ;;  %vm808_vm8 = vcmp.lt.s32.totalorder (!%p612_p2), %v7787_v33, 127  ;;  %vm828_vm9 = vcmp.lt.s32.totalorder (!%p612_p2), %v7787_v33, 113 }
  0x12   : > { %v884_v0 = vld [vmem:[%s9358_s4] sm:$0xff] (!%p612_p2)  ;;  %v7121_v5 = vld [vmem:[%s9358_s4 + $0x8] sm:$0xff] (!%p612_p2)  ;;  %v7122_v11 = vld [vmem:[%s9358_s4 + $0x10] sm:$0xff] (!%p612_p2)  ;;  %vm848_vm10 = vcmp.lt.s32.totalorder (!%p612_p2), %v7787_v33, 112  ;;  %vm9346_vm11 = vcmp.lt.s32.totalorder (!%p612_p2), %v7787_v33, 111  ;;  %s9368_s27 = sld [smem:[#allocation5_spill]] (!%p612_p2) }
  0x13   : > { %887 = vperm.xlu0 (!%p612_p2), %7530, %v884_v0   ;;  %v7123_v12 = vld [vmem:[%s9358_s4 + $0x18] sm:$0xff] (!%p612_p2)  ;;  %v7124_v13 = vld [vmem:[%s9358_s4 + $0x20] sm:$0xff] (!%p612_p2)  ;;  %v7125_v14 = vld [vmem:[%s9358_s4 + $0x28] sm:$0xff] (!%p612_p2) }
  0x14   : > { %s9393_s28 = smov (!%p672_p3, %s7113_s28), 1  ;;  %v7126_v15 = vld [vmem:[%s9358_s4 + $0x30] sm:$0xff]  ;;  %v7127_v16 = vld [vmem:[%s9358_s4 + $0x38] sm:$0xff]  ;;  %v7128_v17 = vld [vmem:[%s9358_s4 + $0x40] sm:$0xff] }
  0x15   : > { %s7118_s1 = sshll.u32 %s9393_s28, 1 }
  0x16   : > { %s675_s25 = scalar_lea.vmem %s9359_s6, %s7118_s1  ;;  %s9322_s6 = smov 127  }
  0x17   : > { %904 = vperm.xlu0 %7530, %v7121_v5   ;;  %v709_v8 = vld [vmem:[%s675_s25] sm:$0x3]  ;;  %s9320_s1 = smov 113   ;;  %s9369_s25 = sld [smem:[#allocation6_spill]] }
  0x18   : > { %v7701_v9 = vrot.slane %v709_v8, %v7693_v6  ;;  %v7706_v10 = vrot.slane %v709_v8, %v7698_v7  ;;  %v710_v18 = vld [vmem:[%s9360_s24] sm:$0xff]  ;;  %s7552_s24 = smov 30  }
  0x19   : > { %v7769_v24 = vld [vmem:[%s9361_s29] sm:$0x3]  ;;  %s9336_s29 = smov 34  }
  0x1a   : > { %722 = vrot.lane.b32.xlu1 %v7701_v9, %s9332_s26  ;;  %vm687_vm1 = vcmp.ge.s32.totalorder %v7769_v24, 1  ;;  %vm690_vm2 = vcmp.lt.s32.totalorder %v7769_v24, 15  ;;  %vm699_vm13 = vcmp.ge.s32.totalorder %v7769_v24, 2  ;;  %vm702_vm15 = vcmp.lt.s32.totalorder %v7769_v24, 14 }
  0x1b   : > { %744 = vrot.lane.b32.xlu0 %v7701_v9, %s9334_s2  ;;  %v688_v30 = vsel %vm687_vm1, 1.0, %v7541_v4  ;;  %v7784_v32 = vsel %vm690_vm2, 1.0, %v7541_v4  ;;  %vm1917_vm1 = vcmp.lt.s32.totalorder %v7787_v33, 34  ;;  %vm1957_vm2 = vcmp.lt.s32.totalorder %v7787_v33, 30 }
  0x1c   : > { %v7830_v53 = vrot.slane %v688_v30, %v7693_v6  ;;  %v7833_v54 = vrot.slane %v688_v30, %v7698_v7 }
  0x1e   : > { %724 = vrot.lane.b32.xlu1 %v7706_v10, %s9332_s26 }
  0x1f   : > { %923 = vperm.xlu0 %7530, %v7122_v11  }
  0x22   : > { %746 = vrot.lane.b32.xlu1 %v7706_v10, %s9334_s2 }
  0x23   : > { %766 = vrot.lane.b32.xlu0 %v7706_v10, %s9330_s30 }
  0x26   : > { %764 = vrot.lane.b32.xlu1 %v7701_v9, %s9330_s30 }
  0x27   : > { %784 = vrot.lane.b32.xlu0 %v7701_v9, %s9326_s0 }
  0x2a   : > { %942 = vperm.xlu1 %7531, %v7123_v12  }
  0x2b   : > { %961 = vperm.xlu0 %7530, %v7124_v13  }
  0x2e   : > { %786 = vrot.lane.b32.xlu1 %v7706_v10, %s9326_s0  ;;  %s9363_s0 = smov 1  }
  0x2f   : > { %804 = vrot.lane.b32.xlu0 %v7701_v9, %s9322_s6 }
  0x32   : > { %972 = vperm.xlu1 %7531, %v7125_v14  }
  0x33   : > { %991 = vperm.xlu0 %7530, %v7126_v15  }
  0x36   : > { %806 = vrot.lane.b32.xlu1 %v7706_v10, %s9322_s6  ;;  %s9364_s6 = smov 127  }
  0x37   : > { %826 = vrot.lane.b32.xlu0 %v7706_v10, %s9320_s1 }
  0x3a   : > { %824 = vrot.lane.b32.xlu1 %v7701_v9, %s9320_s1  ;;  %s9365_s1 = smov 113  }
  0x3b   : > { %844 = vrot.lane.b32.xlu0 %v7701_v9, %s9324_s5 }
  0x3e   : > { %1010 = vperm.xlu1 %7531, %v7127_v16  }
  0x3f   : > { %1029 = vperm.xlu0 %7530, %v7128_v17   ;;  %v7859_v17 = vrot.slane %v7784_v32, %v7693_v6 }
  0x42   : > { %846 = vrot.lane.b32.xlu1 %v7706_v10, %s9324_s5  ;;  %s9366_s5 = smov 112  }
  0x43   : > { %866 = vrot.lane.b32.xlu0 %v7706_v10, %s9328_s23 }
  0x46   : > { %864 = vrot.lane.b32.xlu1 %v7701_v9, %s9328_s23  ;;  %s9362_s23 = sld [smem:[#allocation4_spill]] }
  0x4a   : > { %1046 = vperm.xlu1 %7531, %v710_v18   ;;  %v7863_v18 = vrot.slane %v7784_v32, %v7698_v7 }
  0x4c   : > { %v7774_v25 = vld [vmem:[%s9362_s23] sm:$0x3]  ;;  %s9367_s23 = smov 111  }
  0x4d   : > { %vm685_vm0 = vcmp.ge.s32.totalorder %v7774_v25, 1  ;;  %vm693_vm6 = vcmp.lt.s32.totalorder %v7774_v25, 15  ;;  %vm697_vm14 = vcmp.ge.s32.totalorder %v7774_v25, 2 }
  0x4e   : > { %v686_v29 = vsel %vm685_vm0, 1.0, %v7541_v4  ;;  %v694_v55 = vsel %vm693_vm6, 1.0, %v7541_v4  ;;  %vm1937_vm0 = vcmp.lt.s32.totalorder %v7787_v33, 32  ;;  %vm1977_vm6 = vcmp.lt.s32.totalorder %v7787_v33, 2 }
  0x4f   : > { %v689_v35 = vmul.f32 %v688_v30, %v686_v29  ;;  %v692_v36 = vmul.f32 %v7784_v32, %v686_v29  ;;  %v7800_v40 = vrot.slane %v686_v29, %v7693_v6  ;;  %v7803_v41 = vrot.slane %v686_v29, %v7698_v7 }
  0x50   : > { %v695_v2 = vmul.f32 %v694_v55, %v688_v30 }
  0x51   : > { %v7797_v39 = vrot.slane %v689_v35, %v7693_v6  ;;  %v7807_v42 = vrot.slane %v689_v35, %v7698_v7  ;;  %v7810_v43 = vrot.slane %v692_v36, %v7693_v6  ;;  %v7813_v44 = vrot.slane %v692_v36, %v7698_v7 }
  0x8c   : > { %v723_v20 = vpop.permute.xlu1 %722 }
  0x90   : > { %v725_v22 = vpop.permute.xlu1 %724 }
  0x91   : > { %v729_v45 = vsel %vm728_vm3, %v723_v20, %v725_v22  ;;  %v730_v46 = vsel %vm728_vm3, %v725_v22, %v723_v20 }
  0x92   : > { %v7762_v19 = vpop.permute.xlu0 %887  ;;  %v742_v56 = vmul.f32 %v7797_v39, %v730_v46  ;;  %v743_v57 = vmul.f32 %v7807_v42, %v729_v45 }
  0x94   : > { %v747_v27 = vpop.permute.xlu1 %746  ;;  %v893_v12 = vrot.slane %v742_v56, %v7693_v6  ;;  %v897_v13 = vrot.slane %v743_v57, %v7693_v6 }
  0x96   : > { %v7764_v21 = vpop.permute.xlu0 %904  ;;  %v898_v35 = vmul.f32 %v893_v12, %v7762_v19  ;;  %v899_v36 = vmul.f32 %v897_v13, %v7762_v19 }
  0x98   : > { %v765_v31 = vpop.permute.xlu1 %764 }
  0x9a   : > { %v745_v23 = vpop.permute.xlu0 %744 }
  0x9b   : > { %v749_v47 = vsel %vm748_vm4, %v745_v23, %v747_v27  ;;  %v750_v48 = vsel %vm748_vm4, %v747_v27, %v745_v23  ;;  %v7871_v27 = vrot.slane %v695_v2, %v7693_v6 }
  0x9c   : > { %v762_v58 = vmul.f32 %v7800_v40, %v750_v48  ;;  %v763_v59 = vmul.f32 %v7803_v41, %v749_v47 }
  0x9e   : > { %v7776_v26 = vpop.permute.xlu0 %923  ;;  %v910_v3 = vrot.slane %v762_v58, %v7693_v6  ;;  %v914_v5 = vrot.slane %v763_v59, %v7693_v6 }
  0xa0   : > { %v915_v29 = vmul.f32 %v910_v3, %v7764_v21  ;;  %v916_v30 = vmul.f32 %v914_v5, %v7764_v21  ;;  %v7898_v3 = vrot.slane %v694_v55, %v7693_v6  ;;  %v7901_v5 = vrot.slane %v694_v55, %v7698_v7 }
  0xa2   : > { %v767_v28 = vpop.permute.xlu0 %766  ;;  %v918_v56 = vadd.f32 %v916_v30, %v899_v36 }
  0xa3   : > { %v769_v50 = vsel %vm768_vm5, %v765_v31, %v767_v28  ;;  %v770_v51 = vsel %vm768_vm5, %v767_v28, %v765_v31  ;;  %v7874_v28 = vrot.slane %v695_v2, %v7698_v7 }
  0xa4   : > { %v782_v60 = vmul.f32 %v7810_v43, %v770_v51  ;;  %v783_v61 = vmul.f32 %v7813_v44, %v769_v50 }
  0xa6   : > { %v785_v34 = vpop.permute.xlu0 %784  ;;  %v929_v14 = vrot.slane %v782_v60, %v7693_v6  ;;  %v933_v15 = vrot.slane %v783_v61, %v7693_v6 }
  0xa8   : > { %v934_v45 = vmul.f32 %v929_v14, %v7776_v26  ;;  %v935_v46 = vmul.f32 %v933_v15, %v7776_v26 }
  0xa9   : > { %v7790_v37 = vpop.permute.xlu1 %942 }
  0xaa   : > { %v7794_v38 = vpop.permute.xlu0 %961  ;;  %v937_v61 = vadd.f32 %v935_v46, %v918_v56 }
  0xab   : > { %v964_v12 = vmul.f32 %v7794_v38, %v7701_v9  ;;  %v965_v13 = vmul.f32 %v7794_v38, %v7706_v10 }
  0xad   : > { %v787_v49 = vpop.permute.xlu1 %786 }
  0xae   : > { %v805_v52 = vpop.permute.xlu0 %804  ;;  %v789_v62 = vsel %vm788_vm7, %v785_v34, %v787_v49  ;;  %v790_v63 = vsel %vm788_vm7, %v787_v49, %v785_v34 }
  0xaf   : > { %v802_v8 = vmul.f32 %v7830_v53, %v790_v63  ;;  %v803_v11 = vmul.f32 %v7833_v54, %v789_v62 }
  0xb1   : > { %v973_v0 = vpop.permute.xlu1 %972  ;;  %v948_v31 = vrot.slane %v802_v8, %v7693_v6  ;;  %v952_v34 = vrot.slane %v803_v11, %v7693_v6 }
  0xb2   : > { %v7846_v1 = vpop.permute.xlu0 %991 }
  0xb3   : > { %v953_v19 = vmul.f32 %v948_v31, %v7790_v37  ;;  %v954_v57 = vmul.f32 %v952_v34, %v7790_v37  ;;  %v696_v37 = vmul.f32 %v694_v55, %v7784_v32 }
  0xb5   : > { %v807_v16 = vpop.permute.xlu1 %806  ;;  %v956_v11 = vadd.f32 %v954_v57, %v937_v61  ;;  %v7918_v10 = vrot.slane %v696_v37, %v7693_v6  ;;  %v7921_v38 = vrot.slane %v696_v37, %v7698_v7 }
  0xb6   : > { %v827_v20 = vpop.permute.xlu0 %826  ;;  %v809_v22 = vsel %vm808_vm8, %v805_v52, %v807_v16  ;;  %v810_v23 = vsel %vm808_vm8, %v807_v16, %v805_v52  ;;  %v917_v52 = vadd.f32 %v915_v29, %v898_v35 }
  0xb7   : > { %v822_v48 = vmul.f32 %v7859_v17, %v809_v22  ;;  %v823_v49 = vmul.f32 %v7863_v18, %v810_v23  ;;  %v967_v31 = vadd.f32 %v965_v13, %v956_v11 }
  0xb8   : > { %v936_v60 = vadd.f32 %v934_v45, %v917_v52 }
  0xb9   : > { %v825_v47 = vpop.permute.xlu1 %824  ;;  %v978_v62 = vrot.slane %v822_v48, %v7693_v6  ;;  %v982_v63 = vrot.slane %v823_v49, %v7693_v6 }
  0xba   : > { %v829_v21 = vsel %vm828_vm9, %v825_v47, %v827_v20  ;;  %v830_v50 = vsel %vm828_vm9, %v827_v20, %v825_v47  ;;  %v845_v51 = vpop.permute.xlu0 %844  ;;  %v955_v8 = vadd.f32 %v953_v19, %v936_v60 }
  0xbb   : > { %v842_v26 = vmul.f32 %v7871_v27, %v829_v21  ;;  %v843_v58 = vmul.f32 %v7874_v28, %v830_v50  ;;  %v983_v20 = vmul.f32 %v978_v62, %v973_v0  ;;  %v984_v22 = vmul.f32 %v982_v63, %v973_v0 }
  0xbc   : > { %v966_v30 = vadd.f32 %v964_v12, %v955_v8 }
  0xbd   : > { %v1011_v59 = vpop.permute.xlu1 %1010  ;;  %v997_v14 = vrot.slane %v842_v26, %v7693_v6  ;;  %v1001_v15 = vrot.slane %v843_v58, %v7693_v6  ;;  %v986_v47 = vadd.f32 %v984_v22, %v967_v31 }
  0xbe   : > { %v1030_v2 = vpop.permute.xlu0 %1029  ;;  %v985_v46 = vadd.f32 %v983_v20, %v966_v30 }
  0xbf   : > { %v1002_v0 = vmul.f32 %v997_v14, %v7846_v1  ;;  %v1003_v34 = vmul.f32 %v1001_v15, %v7846_v1 }
  0xc1   : > { %v847_v16 = vpop.permute.xlu1 %846  ;;  %v1004_v19 = vadd.f32 %v1002_v0, %v985_v46  ;;  %v1005_v57 = vadd.f32 %v1003_v34, %v986_v47  ;;  %v1118_v46 = vld [vmem:[%s9303_s7] sm:$0xff] }
  0xc2   : > { %v849_v32 = vsel %vm848_vm10, %v845_v51, %v847_v16  ;;  %v850_v55 = vsel %vm848_vm10, %v847_v16, %v845_v51  ;;  %v867_v29 = vpop.permute.xlu0 %866 }
  0xc3   : > { %v862_v23 = vmul.f32 %v7898_v3, %v849_v32  ;;  %v863_v9 = vmul.f32 %v7901_v5, %v850_v55  ;;  %v7129_v32 = vld [vmem:[%s9303_s7 + $0x8] sm:$0xff] }
  0xc5   : > { %v1016_v35 = vrot.slane %v862_v23, %v7693_v6  ;;  %v1020_v36 = vrot.slane %v863_v9, %v7693_v6  ;;  %v865_v45 = vpop.permute.xlu1 %864 }
  0xc6   : > { %v869_v48 = vsel %vm9346_vm11, %v865_v45, %v867_v29  ;;  %v870_v49 = vsel %vm9346_vm11, %v867_v29, %v865_v45 }
  0xc7   : > { %v1021_v21 = vmul.f32 %v1016_v35, %v1011_v59  ;;  %v1022_v50 = vmul.f32 %v1020_v36, %v1011_v59  ;;  %v882_v51 = vmul.f32 %v7918_v10, %v869_v48  ;;  %v883_v52 = vmul.f32 %v7921_v38, %v870_v49 }
  0xc9   : > { %v1035_v1 = vrot.slane %v882_v51, %v7693_v6  ;;  %v1039_v56 = vrot.slane %v883_v52, %v7693_v6  ;;  %v1023_v26 = vadd.f32 %v1021_v21, %v1004_v19  ;;  %v1024_v58 = vadd.f32 %v1022_v50, %v1005_v57  ;;  %v1047_v37 = vpop.permute.xlu1 %1046  ;;  %v7132_v52 = vld [vmem:[%s9303_s7 + $0x10] sm:$0xff] }
  0xcb   : > { %v1040_v60 = vmul.f32 %v1035_v1, %v1030_v2  ;;  %v1041_v61 = vmul.f32 %v1039_v56, %v1030_v2  ;;  %v1053_v2 = vld [vmem:[%s9304_s8] sm:$0xff] }
  0xcd   : > { %v1042_v62 = vadd.f32 %v1040_v60, %v1023_v26  ;;  %v1043_v63 = vadd.f32 %v1041_v61, %v1024_v58  ;;  %v7134_v26 = vld [vmem:[%s9303_s7 + $0x18] sm:$0xff] }
  0xcf   : > { %v1049_v8 = vadd.f32 %v1047_v37, %v1042_v62  ;;  %v1050_v11 = vadd.f32 %v1047_v37, %v1043_v63  ;;  %v7136_v37 = vld [vmem:[%s9303_s7 + $0x20] sm:$0xff] }
  0xd1   : > { %v7935_v59 = vmax.f32 %v1049_v8, 0.0  ;;  %v1052_v12 = vmax.f32 %v1050_v11, 0.0 }
  0xd3   : > { %1064 = vrot.lane.b32.xlu1 %v1052_v12, %s9334_s2  ;;  %1062 = vrot.lane.b32.xlu0 %v7935_v59, %s9334_s2 }
  0xd7   : > { %1056 = vrot.lane.b32.xlu1 %v1052_v12, %s9332_s26  ;;  %1054 = vrot.lane.b32.xlu0 %v7935_v59, %s9332_s26  ;;  %s9344_s26 = smov 98  }
  0xdb   : > { %1072 = vrot.lane.b32.xlu1 %v1052_v12, %s9330_s30  ;;  %1070 = vrot.lane.b32.xlu0 %v7935_v59, %s9330_s30  ;;  %s9340_s30 = smov 126  }
  0xdf   : > { %1080 = vrot.lane.b32.xlu1 %v1052_v12, %s9363_s0  ;;  %1078 = vrot.lane.b32.xlu0 %v7935_v59, %s9363_s0 }
  0xe3   : > { %1088 = vrot.lane.b32.xlu1 %v1052_v12, %s9364_s6  ;;  %1086 = vrot.lane.b32.xlu0 %v7935_v59, %s9364_s6 }
  0xe7   : > { %1096 = vrot.lane.b32.xlu1 %v1052_v12, %s9365_s1  ;;  %1094 = vrot.lane.b32.xlu0 %v7935_v59, %s9365_s1 }
  0xeb   : > { %1104 = vrot.lane.b32.xlu1 %v1052_v12, %s9366_s5  ;;  %1102 = vrot.lane.b32.xlu0 %v7935_v59, %s9366_s5 }
  0xef   : > { %1112 = vrot.lane.b32.xlu1 %v1052_v12, %s9367_s23  ;;  %1110 = vrot.lane.b32.xlu0 %v7935_v59, %s9367_s23 }
  0xf3   : > { %1818 = vperm.xlu0 %7530, %v1053_v2  }
 0x145   : > { %v1065_v13 = vpop.permute.xlu1 %1064  ;;  %v1063_v14 = vpop.permute.xlu0 %1062 }
 0x146   : > { %v1066_v15 = vsel %vm748_vm4, %v1063_v14, %v1065_v13  ;;  %v1067_v16 = vsel %vm748_vm4, %v1065_v13, %v1063_v14  ;;  %v7138_v14 = vld [vmem:[%s9303_s7 + $0x28] sm:$0xff] }
 0x147   : > { %v1069_v20 = vmul.f32 %v1066_v15, %v7803_v41  ;;  %v1068_v22 = vmul.f32 %v1067_v16, %v7800_v40 }
 0x149   : > { %v1057_v55 = vpop.permute.xlu1 %1056  ;;  %1125 = vmatprep.subr.mxu0 %v1069_v20  ;;  %v1055_v23 = vpop.permute.xlu0 %1054 }
 0x14a   : > { %v1058_v9 = vsel %vm728_vm3, %v1055_v23, %v1057_v55  ;;  %v1059_v29 = vsel %vm728_vm3, %v1057_v55, %v1055_v23  ;;  %1126 = vmatpush1.msra.mxu0 %v1068_v22  ;;  %v7140_v23 = vld [vmem:[%s9303_s7 + $0x30] sm:$0xff] }
 0x14b   : > { %v1060_v30 = vmul.f32 %v1059_v29, %v7797_v39  ;;  %7130 = vmatmul.mubr.msk.f32.vlgmr.msra.gmra.mrb[0].mxu0 %vm1121_vm12, %v7129_v32  ;;  %v1061_v31 = vmul.f32 %v1058_v9, %v7807_v42 }
 0x14c   : > { %1263 = vmatprep.mubr.f32.mxu0 %v7541_v4 }
 0x14d   : > { %v1073_v0 = vpop.permute.xlu1 %1072  ;;  %1199 = vmatprep.subr.mxu0 %v1061_v31  ;;  %v1071_v34 = vpop.permute.xlu0 %1070  ;;  %v7142_v31 = vld [vmem:[%s9303_s7 + $0x38] sm:$0xff] }
 0x14e   : > { %v1074_v35 = vsel %vm768_vm5, %v1071_v34, %v1073_v0  ;;  %1200 = vmatpush1.msra.mxu0 %v1060_v30  ;;  %v1075_v36 = vsel %vm768_vm5, %v1073_v0, %v1071_v34  ;;  %v7144_v34 = vld [vmem:[%s9303_s7 + $0x40] sm:$0xff] }
 0x14f   : > { %v1077_v45 = vmul.f32 %v1074_v35, %v7813_v44  ;;  %v1076_v49 = vmul.f32 %v1075_v36, %v7810_v43 }
 0x151   : > { %v1081_v47 = vpop.permute.xlu1 %1080  ;;  %1275 = vmatprep.subr.mxu0 %v1077_v45  ;;  %v1079_v48 = vpop.permute.xlu0 %1078 }
 0x152   : > { %v1082_v21 = vsel %vm788_vm7, %v1079_v48, %v1081_v47  ;;  %v1083_v51 = vsel %vm788_vm7, %v1081_v47, %v1079_v48 }
 0x153   : > { %7131 = vmatmul.mubr.msk.f32.vlgmr.msra.gmra.mrb[0].mxu0 %vm1121_vm12, %v1118_v46  ;;  %v1085_v50 = vmul.f32 %v1082_v21, %v7833_v54  ;;  %v1084_v1 = vmul.f32 %v1083_v51, %v7830_v53  ;;  %v683_v21 = vld [vmem:[%s9368_s27] sm:$0x3]  ;;  %s9338_s27 = smov 32  }
 0x154   : > { %1276 = vmatpush1.msra.mxu0 %v1076_v49  ;;  %1339 = vmatprep.mubr.f32.mxu0 %v7541_v4 }
 0x155   : > { %1353 = vmatprep.subr.mxu0 %v1085_v50  ;;  %v1089_v56 = vpop.permute.xlu1 %1088  ;;  %v1087_v19 = vpop.permute.xlu0 %1086  ;;  %v1850_v50 = vsub.f32 1.0, %v683_v21 }
 0x156   : > { %v1091_v57 = vsel %vm808_vm8, %v1089_v56, %v1087_v19  ;;  %v1090_v62 = vsel %vm808_vm8, %v1087_v19, %v1089_v56  ;;  %v1845_v56 = vrot.slane %v683_v21, %v7698_v7 }
 0x157   : > { %v1093_v58 = vmul.f32 %v1091_v57, %v7863_v18  ;;  %v1092_v8 = vmul.f32 %v1090_v62, %v7859_v17  ;;  %v1855_v19 = vrot.slane %v1850_v50, %v7693_v6  ;;  %v1859_v57 = vrot.slane %v1850_v50, %v7698_v7 }
 0x159   : > { %v1097_v60 = vpop.permute.xlu1 %1096  ;;  %v1095_v61 = vpop.permute.xlu0 %1094 }
 0x15a   : > { %v1099_v63 = vsel %vm828_vm9, %v1097_v60, %v1095_v61  ;;  %v1098_v2 = vsel %vm828_vm9, %v1095_v61, %v1097_v60 }
 0x15b   : > { %7133 = vmatmul.mubr.msk.f32.vlgmr.msra.gmra.mrb[0].mxu0 %vm1121_vm12, %v7132_v52  ;;  %v1101_v11 = vmul.f32 %v1099_v63, %v7874_v28  ;;  %v1100_v15 = vmul.f32 %v1098_v2, %v7871_v27 }
 0x15c   : > { %1354 = vmatpush1.msra.mxu0 %v1084_v1  ;;  %1417 = vmatprep.mubr.f32.mxu0 %v7541_v4  ;;  %v1841_v1 = vrot.slane %v683_v21, %v7693_v6 }
 0x15d   : > { %1431 = vmatprep.subr.mxu0 %v1052_v12  ;;  %v1103_v12 = vpop.permute.xlu0 %1102 }
 0x161   : > { %v1111_v22 = vpop.permute.xlu0 %1110 }
 0x163   : > { %7135 = vmatmul.mubr.msk.f32.vlgmr.msra.gmra.mrb[0].mxu0 %vm1121_vm12, %v7134_v26 }
 0x164   : > { %1432 = vmatpush1.msra.mxu0 %v7935_v59  ;;  %1495 = vmatprep.mubr.f32.mxu0 %v7541_v4  ;;  %v1105_v59 = vpop.permute.xlu1 %1104 }
 0x165   : > { %1509 = vmatprep.subr.mxu0 %v1093_v58  ;;  %v1107_v13 = vsel %vm848_vm10, %v1105_v59, %v1103_v12  ;;  %v1106_v32 = vsel %vm848_vm10, %v1103_v12, %v1105_v59 }
 0x166   : > { %v1109_v16 = vmul.f32 %v1107_v13, %v7901_v5  ;;  %v1108_v9 = vmul.f32 %v1106_v32, %v7898_v3 }
 0x168   : > { %v1113_v20 = vpop.permute.xlu1 %1112 }
 0x169   : > { %v1115_v55 = vsel %vm9346_vm11, %v1113_v20, %v1111_v22  ;;  %v1114_v30 = vsel %vm9346_vm11, %v1111_v22, %v1113_v20  ;;  %vm2057_vm11 = vcmp.lt.s32.totalorder %v7787_v33, 94 }
 0x16a   : > { %v1117_v29 = vmul.f32 %v1115_v55, %v7921_v38  ;;  %v1116_v0 = vmul.f32 %v1114_v30, %v7918_v10 }
 0x16b   : > { %7137 = vmatmul.mubr.msk.f32.vlgmr.msra.gmra.mrb[0].mxu0 %vm1121_vm12, %v7136_v37 }
 0x16c   : > { %1510 = vmatpush1.msra.mxu0 %v1092_v8  ;;  %1573 = vmatprep.mubr.f32.mxu0 %v7541_v4 }
 0x16d   : > { %1587 = vmatprep.subr.mxu0 %v1101_v11 }
 0x172   : > { %v1819_v35 = vpop.permute.xlu0 %1818 }
 0x173   : > { %7139 = vmatmul.mubr.msk.f32.vlgmr.msra.gmra.mrb[0].mxu0 %vm1121_vm12, %v7138_v14 }
 0x174   : > { %1588 = vmatpush1.msra.mxu0 %v1100_v15  ;;  %1651 = vmatprep.mubr.f32.mxu0 %v7541_v4  ;;  %v684_v15 = vld [vmem:[%s9369_s25] sm:$0x3]  ;;  %s9342_s25 = smov 2  }
 0x175   : > { %1665 = vmatprep.subr.mxu0 %v1109_v16  ;;  %v1893_v16 = vsub.f32 1.0, %v684_v15  ;;  %v1884_v32 = vrot.slane %v684_v15, %v7693_v6  ;;  %v1888_v55 = vrot.slane %v684_v15, %v7698_v7 }
 0x17b   : > { %7141 = vmatmul.mubr.msk.f32.vlgmr.msra.gmra.mrb[0].mxu0 %vm1121_vm12, %v7140_v23  ;;  %v1898_v23 = vrot.slane %v1893_v16, %v7693_v6 }
 0x17c   : > { %1666 = vmatpush1.msra.mxu0 %v1108_v9  ;;  %1729 = vmatprep.mubr.f32.mxu0 %v7541_v4  ;;  %v1902_v9 = vrot.slane %v1893_v16, %v7698_v7 }
 0x17d   : > { %1743 = vmatprep.subr.mxu0 %v1117_v29 }
 0x183   : > { %7143 = vmatmul.mubr.msk.f32.vlgmr.msra.gmra.mrb[0].mxu0 %vm1121_vm12, %v7142_v31 }
 0x184   : > { %1744 = vmatpush1.msra.mxu0 %v1116_v0  ;;  %1807 = vmatprep.mubr.f32.mxu0 %v7541_v4 }
 0x18b   : > { %7145 = vmatmul.mubr.msk.f32.vlgmr.msra.gmra.mrb[0].mxu0 %vm1121_vm12, %v7144_v34 }
 0x18c   : > { %3267 = vmatprep.mubr.f32.mxu0 %v7541_v4 }
 0x25e   : > { %v1809_v36 = vpop.f32.mrb[0].mxu0 }
 0x25f   : > { %v1821_v45 = vadd.f32 %v1819_v35, %v1809_v36  ;;  %v1811_v46 = vpop.f32.mrb[1].mxu0 }
 0x260   : > { %v1822_v47 = vadd.f32 %v1819_v35, %v1811_v46 }
 0x261   : > { %v8058_v48 = vmax.f32 %v1821_v45, 0.0 }
 0x262   : > { %v8060_v49 = vmax.f32 %v1822_v47, 0.0 }
 0x263   : > { %1825 = vrot.lane.b32.xlu1 %v8058_v48, %s9364_s6 }
 0x264   : > { %1827 = vrot.lane.b32.xlu0 %v8060_v49, %s9364_s6 }
 0x267   : > { %1831 = vrot.lane.b32.xlu1 %v8058_v48, %s9363_s0 }
 0x268   : > { %1833 = vrot.lane.b32.xlu0 %v8060_v49, %s9363_s0 }
 0x2d5   : > { %v1826_v51 = vpop.permute.xlu1 %1825 }
 0x2d6   : > { %v1828_v52 = vpop.permute.xlu0 %1827 }
 0x2d7   : > { %v8079_v26 = vsel %vm808_vm8, %v1826_v51, %v1828_v52  ;;  %v8083_v58 = vsel %vm808_vm8, %v1828_v52, %v1826_v51 }
 0x2d8   : > { %v1848_v37 = vmul.f32 %v1841_v1, %v8079_v26  ;;  %v1849_v8 = vmul.f32 %v1845_v56, %v8083_v58  ;;  %v1911_v1 = vld [vmem:[%s9306_s10] sm:$0xff]  ;;  %v1912_v56 = vld [vmem:[%s9306_s10 + $0x8] sm:$0xff] }
 0x2d9   : > { %v1832_v60 = vpop.permute.xlu1 %1831 }
 0x2da   : > { %v1834_v61 = vpop.permute.xlu0 %1833 }
 0x2db   : > { %v8087_v62 = vsel %vm788_vm7, %v1832_v60, %v1834_v61  ;;  %v8091_v63 = vsel %vm788_vm7, %v1834_v61, %v1832_v60 }
 0x2dc   : > { %v1862_v11 = vmul.f32 %v1855_v19, %v8091_v63  ;;  %v1863_v59 = vmul.f32 %v1859_v57, %v8087_v62  ;;  %v8163_v19 = vsel %vm699_vm13, 1.0, %v7541_v4  ;;  %v698_v57 = vsel %vm697_vm14, 1.0, %v7541_v4 }
 0x2dd   : > { %v701_v60 = vmul.f32 %v8163_v19, %v698_v57  ;;  %v8170_v61 = vrot.slane %v698_v57, %v7698_v7  ;;  %vm1997_vm13 = vcmp.lt.s32.totalorder %v7787_v33, 126  ;;  %vm705_vm14 = vcmp.lt.s32.totalorder %v7774_v25, 14 }
 0x2de   : > { %v1864_v12 = vadd.f32 %v1862_v11, %v1848_v37  ;;  %v1865_v2 = vadd.f32 %v1863_v59, %v1849_v8  ;;  %v8173_v37 = vrot.slane %v698_v57, %v7693_v6  ;;  %v8176_v8 = vsel %vm702_vm15, 1.0, %v7541_v4 }
 0x2df   : > { %v8182_v24 = vrot.slane %v701_v60, %v7693_v6  ;;  %v8189_v15 = vrot.slane %v701_v60, %v7698_v7  ;;  %v704_v16 = vmul.f32 %v8176_v8, %v698_v57  ;;  %vm2017_vm15 = vcmp.lt.s32.totalorder %v7787_v33, 98 }
 0x2e0   : > { %v1866_v13 = vmax.f32 %v8058_v48, %v1864_v12  ;;  %v1867_v14 = vmax.f32 %v8060_v49, %v1865_v2 }
 0x2e2   : > { %1868 = vrot.lane.b32.xlu1 %v1866_v13, %s9366_s5  ;;  %1870 = vrot.lane.b32.xlu0 %v1867_v14, %s9366_s5 }
 0x2e6   : > { %1874 = vrot.lane.b32.xlu1 %v1866_v13, %s9334_s2  ;;  %1876 = vrot.lane.b32.xlu0 %v1867_v14, %s9334_s2  ;;  %s9349_s2 = smov 96  }
 0x354   : > { %v1869_v20 = vpop.permute.xlu1 %1868  ;;  %v1871_v22 = vpop.permute.xlu0 %1870 }
 0x355   : > { %v1872_v29 = vsel %vm848_vm10, %v1869_v20, %v1871_v22  ;;  %v1873_v30 = vsel %vm848_vm10, %v1871_v22, %v1869_v20  ;;  %v7146_v20 = vld [vmem:[%s9305_s9 + $0x10] sm:$0xff] }
 0x356   : > { %v1891_v36 = vmul.f32 %v1884_v32, %v1872_v29  ;;  %v1892_v45 = vmul.f32 %v1888_v55, %v1873_v30  ;;  %v8204_v30 = vrot.slane %v704_v16, %v7698_v7 }
 0x358   : > { %v1875_v31 = vpop.permute.xlu1 %1874  ;;  %v1877_v0 = vpop.permute.xlu0 %1876 }
 0x359   : > { %v1878_v34 = vsel %vm748_vm4, %v1875_v31, %v1877_v0  ;;  %v1879_v35 = vsel %vm748_vm4, %v1877_v0, %v1875_v31  ;;  %v7147_v31 = vld [vmem:[%s9305_s9 + $0x18] sm:$0xff] }
 0x35a   : > { %v1905_v46 = vmul.f32 %v1898_v23, %v1879_v35  ;;  %v1906_v47 = vmul.f32 %v1902_v9, %v1878_v34  ;;  %v8211_v35 = vrot.slane %v704_v16, %v7693_v6 }
 0x35c   : > { %v1907_v21 = vadd.f32 %v1905_v46, %v1891_v36  ;;  %v1908_v50 = vadd.f32 %v1906_v47, %v1892_v45  ;;  %v8222_v47 = vrot.slane %v8163_v19, %v7698_v7 }
 0x35e   : > { %v8118_v51 = vmax.f32 %v1866_v13, %v1907_v21  ;;  %v8120_v52 = vmax.f32 %v1867_v14, %v1908_v50  ;;  %v2073_v21 = vld [vmem:[%s9305_s9] sm:$0xff] }
 0x360   : > { %1933 = vrot.lane.b32.xlu1 %v8118_v51, %s9338_s27  ;;  %1935 = vrot.lane.b32.xlu0 %v8120_v52, %s9338_s27  ;;  %s9372_s27 = smov 98  }
 0x364   : > { %1913 = vrot.lane.b32.xlu1 %v8118_v51, %s9336_s29  ;;  %1915 = vrot.lane.b32.xlu0 %v8120_v52, %s9336_s29  ;;  %s9347_s29 = smov 94  }
 0x368   : > { %1953 = vrot.lane.b32.xlu1 %v8118_v51, %s7552_s24  ;;  %1955 = vrot.lane.b32.xlu0 %v8120_v52, %s7552_s24 }
 0x36c   : > { %1973 = vrot.lane.b32.xlu1 %v8118_v51, %s9342_s25  ;;  %1975 = vrot.lane.b32.xlu0 %v8120_v52, %s9342_s25  ;;  %s9373_s25 = smov 32  }
 0x370   : > { %1993 = vrot.lane.b32.xlu1 %v8118_v51, %s9340_s30  ;;  %1995 = vrot.lane.b32.xlu0 %v8120_v52, %s9340_s30  ;;  %s9376_s30 = smov 94  }
 0x374   : > { %2013 = vrot.lane.b32.xlu1 %v8118_v51, %s9344_s26  ;;  %2015 = vrot.lane.b32.xlu0 %v8120_v52, %s9344_s26  ;;  %s9375_s26 = smov 34  }
 0x378   : > { %2033 = vrot.lane.b32.xlu1 %v8118_v51, %s9349_s2  ;;  %2035 = vrot.lane.b32.xlu0 %v8120_v52, %s9349_s2  ;;  %s9370_s2 = smov 2  }
 0x37c   : > { %2053 = vrot.lane.b32.xlu1 %v8118_v51, %s9347_s29  ;;  %2055 = vrot.lane.b32.xlu0 %v8120_v52, %s9347_s29  ;;  %s9371_s29 = smov 126  }
 0x380   : > { %2876 = vperm.xlu1 %7531, %v1911_v1   ;;  %2881 = vperm.xlu0 %7530, %v1912_v56  }
 0x3d2   : > { %v1934_v11 = vpop.permute.xlu1 %1933  ;;  %v1936_v59 = vpop.permute.xlu0 %1935 }
 0x3d3   : > { %v1938_v12 = vsel %vm1937_vm0, %v1934_v11, %v1936_v59  ;;  %v1939_v2 = vsel %vm1937_vm0, %v1936_v59, %v1934_v11  ;;  %v2074_v11 = vld [vmem:[%s9305_s9 + $0x8] sm:$0xff]  ;;  %v8239_v59 = vrot.slane %v8163_v19, %v7693_v6 }
 0x3d4   : > { %v1952_v13 = vmul.f32 %v8170_v61, %v1938_v12  ;;  %v1951_v14 = vmul.f32 %v8173_v37, %v1939_v2  ;;  %v7152_v2 = vld [vmem:[%s9305_s9 + $0x20] sm:$0xff] }
 0x3d6   : > { %v1914_v22 = vpop.permute.xlu1 %1913  ;;  %2084 = vmatprep.subr.mxu1 %v1952_v13  ;;  %v1916_v32 = vpop.permute.xlu0 %1915 }
 0x3d7   : > { %v1918_v55 = vsel %vm1917_vm1, %v1914_v22, %v1916_v32  ;;  %v1919_v23 = vsel %vm1917_vm1, %v1916_v32, %v1914_v22  ;;  %2085 = vmatpush1.msra.mxu1 %v1951_v14  ;;  %v7153_v14 = vld [vmem:[%s9305_s9 + $0x28] sm:$0xff]  ;;  %v8260_v22 = vrot.slane %v8176_v8, %v7698_v7 }
 0x3d8   : > { %v1931_v9 = vmul.f32 %v8182_v24, %v1919_v23  ;;  %7148 = vmatmul.mubr.msk.f32.vlgmr.msra.gmra.mrb[0].mxu1 %vm1121_vm12, %v7146_v20  ;;  %v1932_v29 = vmul.f32 %v8189_v15, %v1918_v55  ;;  %v706_v55 = vsel %vm705_vm14, 1.0, %v7541_v4  ;;  %v7156_v23 = vld [vmem:[%s9305_s9 + $0x30] sm:$0xff]  ;;  %vm2037_vm14 = vcmp.lt.s32.totalorder %v7787_v33, 96 }
 0x3d9   : > { %2154 = vmatprep.mubr.f32.mxu1 %v7541_v4  ;;  %v707_v25 = vmul.f32 %v706_v55, %v8163_v19  ;;  %v8280_v19 = vrot.slane %v8176_v8, %v7693_v6 }
 0x3da   : > { %v1954_v0 = vpop.permute.xlu1 %1953  ;;  %2167 = vmatprep.subr.mxu1 %v1932_v29  ;;  %v1956_v34 = vpop.permute.xlu0 %1955 }
 0x3db   : > { %v1958_v36 = vsel %vm1957_vm2, %v1954_v0, %v1956_v34  ;;  %2168 = vmatpush1.msra.mxu1 %v1931_v9  ;;  %v1959_v45 = vsel %vm1957_vm2, %v1956_v34, %v1954_v0  ;;  %v7157_v9 = vld [vmem:[%s9305_s9 + $0x38] sm:$0xff] }
 0x3dc   : > { %7149 = vmatmul.mubr.msk.f32.gmra.mrb[2].mxu1 %vm1121_vm12, %v7147_v31  ;;  %v1972_v46 = vmul.f32 %v8204_v30, %v1958_v36  ;;  %v1971_v56 = vmul.f32 %v8211_v35, %v1959_v45  ;;  %v7160_v36 = vld [vmem:[%s9305_s9 + $0x40] sm:$0xff] }
 0x3dd   : > { %2231 = vmatprep.mubr.f32.mxu1 %v7541_v4 }
 0x3de   : > { %v1974_v50 = vpop.permute.xlu1 %1973  ;;  %2253 = vmatprep.subr.mxu1 %v1972_v46  ;;  %v1976_v1 = vpop.permute.xlu0 %1975 }
 0x3df   : > { %v1978_v57 = vsel %vm1977_vm6, %v1974_v50, %v1976_v1  ;;  %v1979_v12 = vsel %vm1977_vm6, %v1976_v1, %v1974_v50 }
 0x3e0   : > { %7150 = vmatmul.mubr.msk.f32.vlgmr.msra.gmra.mrb[0].mxu1 %vm1121_vm12, %v2073_v21  ;;  %v1992_v60 = vmul.f32 %v8222_v47, %v1978_v57  ;;  %v1991_v13 = vmul.f32 %v8239_v59, %v1979_v12  ;;  %v7161_v21 = vld [vmem:[%s9305_s9 + $0x48] sm:$0xff]  ;;  %v7164_v12 = vld [vmem:[%s9305_s9 + $0x50] sm:$0xff] }
 0x3e1   : > { %2254 = vmatpush1.msra.mxu1 %v1971_v56  ;;  %2237 = vmatprep.mubr.f32.mxu1 %v7541_v4  ;;  %v8303_v56 = vrot.slane %v707_v25, %v7693_v6 }
 0x3e2   : > { %2343 = vmatprep.subr.mxu1 %v1992_v60  ;;  %v1994_v16 = vpop.permute.xlu1 %1993  ;;  %v1996_v20 = vpop.permute.xlu0 %1995  ;;  %v8309_v60 = vrot.slane %v706_v55, %v7698_v7 }
 0x3e3   : > { %v1999_v32 = vsel %vm1997_vm13, %v1996_v20, %v1994_v16  ;;  %v1998_v0 = vsel %vm1997_vm13, %v1994_v16, %v1996_v20  ;;  %v7165_v16 = vld [vmem:[%s9305_s9 + $0x58] sm:$0xff] }
 0x3e4   : > { %7151 = vmatmul.mubr.msk.f32.gmra.mrb[2].mxu1 %vm1121_vm12, %v2074_v11  ;;  %v2011_v45 = vmul.f32 %v8280_v19, %v1998_v0 }
 0x3e5   : > { %2317 = vmatprep.mubr.f32.mxu1 %v7541_v4 }
 0x3e6   : > { %v2014_v29 = vpop.permute.xlu1 %2013  ;;  %v2016_v31 = vpop.permute.xlu0 %2015 }
 0x3e7   : > { %v2019_v34 = vsel %vm2017_vm15, %v2016_v31, %v2014_v29  ;;  %v2018_v57 = vsel %vm2017_vm15, %v2014_v29, %v2016_v31 }
 0x3e8   : > { %7154 = vmatmul.mubr.msk.f32.vlgmr.msra.gmra.mrb[0].mxu1 %vm1121_vm12, %v7152_v2  ;;  %v2031_v2 = vmul.f32 %v8303_v56, %v2018_v57 }
 0x3e9   : > { %2344 = vmatpush1.msra.mxu1 %v1991_v13  ;;  %2323 = vmatprep.mubr.f32.mxu1 %v7541_v4  ;;  %v708_v13 = vmul.f32 %v706_v55, %v8176_v8 }
 0x3ea   : > { %2433 = vmatprep.subr.mxu1 %v8120_v52  ;;  %v2012_v52 = vmul.f32 %v8260_v22, %v1999_v32  ;;  %v2034_v50 = vpop.permute.xlu1 %2033  ;;  %v2036_v1 = vpop.permute.xlu0 %2035 }
 0x3eb   : > { %v2039_v11 = vsel %vm2037_vm14, %v2036_v1, %v2034_v50  ;;  %v2038_v8 = vsel %vm2037_vm14, %v2034_v50, %v2036_v1  ;;  %v8349_v31 = vrot.slane %v708_v13, %v7693_v6 }
 0x3ec   : > { %7155 = vmatmul.mubr.msk.f32.gmra.mrb[2].mxu1 %vm1121_vm12, %v7153_v14  ;;  %v2052_v14 = vmul.f32 %v8309_v60, %v2039_v11 }
 0x3ed   : > { %2407 = vmatprep.mubr.f32.mxu1 %v7541_v4 }
 0x3ee   : > { %v2054_v20 = vpop.permute.xlu1 %2053  ;;  %v2056_v32 = vpop.permute.xlu0 %2055 }
 0x3ef   : > { %v2058_v0 = vsel %vm2057_vm11, %v2054_v20, %v2056_v32 }
 0x3f0   : > { %7158 = vmatmul.mubr.msk.f32.vlgmr.msra.gmra.mrb[0].mxu1 %vm1121_vm12, %v7156_v23  ;;  %v8327_v23 = vrot.slane %v706_v55, %v7693_v6  ;;  %v7173_v6 = vld [vmem:[%s9305_s9 + $0x78] sm:$0xff] }
 0x3f1   : > { %2434 = vmatpush1.msra.mxu1 %v8118_v51  ;;  %2413 = vmatprep.mubr.f32.mxu1 %v7541_v4  ;;  %v8286_v51 = vrot.slane %v707_v25, %v7698_v7  ;;  %v8333_v25 = vrot.slane %v708_v13, %v7698_v7  ;;  %v7169_v7 = vld [vmem:[%s9305_s9 + $0x68] sm:$0xff] }
 0x3f2   : > { %2523 = vmatprep.subr.mxu1 %v2012_v52  ;;  %v2059_v52 = vsel %vm2057_vm11, %v2056_v32, %v2054_v20  ;;  %v2051_v55 = vmul.f32 %v8327_v23, %v2038_v8 }
 0x3f3   : > { %v2032_v46 = vmul.f32 %v8286_v51, %v2019_v34  ;;  %v2072_v29 = vmul.f32 %v8333_v25, %v2059_v52  ;;  %v7172_v34 = vld [vmem:[%s9305_s9 + $0x70] sm:$0xff] }
 0x3f4   : > { %7159 = vmatmul.mubr.msk.f32.gmra.mrb[2].mxu1 %vm1121_vm12, %v7157_v9  ;;  %v7168_v9 = vld [vmem:[%s9305_s9 + $0x60] sm:$0xff] }
 0x3f5   : > { %2497 = vmatprep.mubr.f32.mxu1 %v7541_v4 }
 0x3f8   : > { %7162 = vmatmul.mubr.msk.f32.vlgmr.msra.gmra.mrb[0].mxu1 %vm1121_vm12, %v7160_v36  ;;  %v2071_v36 = vmul.f32 %v8349_v31, %v2058_v0 }
 0x3f9   : > { %2524 = vmatpush1.msra.mxu1 %v2011_v45  ;;  %2503 = vmatprep.mubr.f32.mxu1 %v7541_v4  ;;  %v7176_v45 = vld [vmem:[%s9305_s9 + $0x80] sm:$0xff] }
 0x3fa   : > { %2613 = vmatprep.subr.mxu1 %v2032_v46  ;;  %v7177_v46 = vld [vmem:[%s9305_s9 + $0x88] sm:$0xff] }
 0x3fc   : > { %7163 = vmatmul.mubr.msk.f32.gmra.mrb[2].mxu1 %vm1121_vm12, %v7161_v21 }
 0x3fd   : > { %2587 = vmatprep.mubr.f32.mxu1 %v7541_v4 }
 0x3ff   : > { %v2877_v21 = vpop.permute.xlu1 %2876 }
 0x400   : > { %7166 = vmatmul.mubr.msk.f32.vlgmr.msra.gmra.mrb[0].mxu1 %vm1121_vm12, %v7164_v12  ;;  %v2882_v12 = vpop.permute.xlu0 %2881 }
 0x401   : > { %2614 = vmatpush1.msra.mxu1 %v2031_v2  ;;  %2593 = vmatprep.mubr.f32.mxu1 %v7541_v4 }
 0x402   : > { %2703 = vmatprep.subr.mxu1 %v2052_v14 }
 0x404   : > { %7167 = vmatmul.mubr.msk.f32.gmra.mrb[2].mxu1 %vm1121_vm12, %v7165_v16 }
 0x405   : > { %2677 = vmatprep.mubr.f32.mxu1 %v7541_v4 }
 0x408   : > { %7170 = vmatmul.mubr.msk.f32.vlgmr.msra.gmra.mrb[0].mxu1 %vm1121_vm12, %v7168_v9 }
 0x409   : > { %2704 = vmatpush1.msra.mxu1 %v2051_v55  ;;  %2683 = vmatprep.mubr.f32.mxu1 %v7541_v4 }
 0x40a   : > { %2793 = vmatprep.subr.mxu1 %v2072_v29  ;;  %v2892_v29 = vld [vmem:[%s9308_s12] sm:$0xff] }
 0x40c   : > { %7171 = vmatmul.mubr.msk.f32.gmra.mrb[2].mxu1 %vm1121_vm12, %v7169_v7  ;;  %v2893_v7 = vld [vmem:[%s9308_s12 + $0x8] sm:$0xff] }
 0x40d   : > { %2767 = vmatprep.mubr.f32.mxu1 %v7541_v4 }
 0x410   : > { %7174 = vmatmul.mubr.msk.f32.vlgmr.msra.gmra.mrb[0].mxu1 %vm1121_vm12, %v7172_v34 }
 0x411   : > { %2794 = vmatpush1.msra.mxu1 %v2071_v36  ;;  %2773 = vmatprep.mubr.f32.mxu1 %v7541_v4 }
 0x414   : > { %7175 = vmatmul.mubr.msk.f32.gmra.mrb[2].mxu1 %vm1121_vm12, %v7173_v6 }
 0x415   : > { %2857 = vmatprep.mubr.f32.mxu1 %v7541_v4 }
 0x418   : > { %7178 = vmatmul.mubr.msk.f32.vlgmr.msra.gmra.mrb[0].mxu1 %vm1121_vm12, %v7176_v45 }
 0x419   : > { %2863 = vmatprep.mubr.f32.mxu1 %v7541_v4 }
 0x41c   : > { %7179 = vmatmul.mubr.msk.f32.gmra.mrb[2].mxu1 %vm1121_vm12, %v7177_v46 }
 0x41d   : > { %3098 = vmatprep.mubr.f32.mxu1 %v7541_v4 }
 0x4eb   : > { %v2859_v50 = vpop.f32.mrb[0].mxu1 }
 0x4ec   : > { %v2884_v1 = vadd.f32 %v2877_v21, %v2859_v50  ;;  %v2861_v57 = vpop.f32.mrb[1].mxu1 }
 0x4ed   : > { %v2885_v2 = vadd.f32 %v2877_v21, %v2861_v57 }
 0x4ee   : > { %v8376_v11 = vmax.f32 %v2884_v1, 0.0 }
 0x4ef   : > { %v2865_v13 = vpop.f32.mrb[2].mxu1  ;;  %v8382_v8 = vmax.f32 %v2885_v2, 0.0 }
 0x4f0   : > { %v2886_v14 = vadd.f32 %v2882_v12, %v2865_v13  ;;  %2926 = vrot.lane.b32.xlu1 %v8376_v11, %s7552_s24  ;;  %v2867_v16 = vpop.f32.mrb[3].mxu1 }
 0x4f1   : > { %v2887_v20 = vadd.f32 %v2882_v12, %v2867_v16 }
 0x4f2   : > { %v8380_v32 = vmax.f32 %v2886_v14, 0.0 }
 0x4f3   : > { %v8384_v52 = vmax.f32 %v2887_v20, 0.0 }
 0x4f4   : > { %2942 = vrot.lane.b32.xlu1 %v8376_v11, %s9370_s2  ;;  %2928 = vrot.lane.b32.xlu0 %v8380_v32, %s7552_s24 }
 0x4f8   : > { %2958 = vrot.lane.b32.xlu1 %v8376_v11, %s9371_s29  ;;  %2944 = vrot.lane.b32.xlu0 %v8380_v32, %s9370_s2 }
 0x4fc   : > { %2930 = vrot.lane.b32.xlu1 %v8382_v8, %s7552_s24  ;;  %2960 = vrot.lane.b32.xlu0 %v8380_v32, %s9371_s29 }
 0x500   : > { %2974 = vrot.lane.b32.xlu1 %v8376_v11, %s9372_s27  ;;  %2932 = vrot.lane.b32.xlu0 %v8384_v52, %s7552_s24  ;;  %s9374_s24 = smov 96  }
 0x504   : > { %2946 = vrot.lane.b32.xlu1 %v8382_v8, %s9370_s2  ;;  %2976 = vrot.lane.b32.xlu0 %v8380_v32, %s9372_s27 }
 0x508   : > { %2962 = vrot.lane.b32.xlu1 %v8382_v8, %s9371_s29  ;;  %2948 = vrot.lane.b32.xlu0 %v8384_v52, %s9370_s2  ;;  %s9381_s2 = smov 15  }
 0x50c   : > { %2978 = vrot.lane.b32.xlu1 %v8382_v8, %s9372_s27  ;;  %2912 = vrot.lane.b32.xlu0 %v8380_v32, %s9373_s25 }
 0x510   : > { %2910 = vrot.lane.b32.xlu1 %v8376_v11, %s9373_s25  ;;  %2992 = vrot.lane.b32.xlu0 %v8380_v32, %s9374_s24 }
 0x514   : > { %2914 = vrot.lane.b32.xlu1 %v8382_v8, %s9373_s25  ;;  %2896 = vrot.lane.b32.xlu0 %v8380_v32, %s9375_s26 }
 0x518   : > { %2990 = vrot.lane.b32.xlu1 %v8376_v11, %s9374_s24  ;;  %2964 = vrot.lane.b32.xlu0 %v8384_v52, %s9371_s29 }
 0x51c   : > { %2994 = vrot.lane.b32.xlu1 %v8382_v8, %s9374_s24  ;;  %3008 = vrot.lane.b32.xlu0 %v8380_v32, %s9376_s30 }
 0x520   : > { %2894 = vrot.lane.b32.xlu1 %v8376_v11, %s9375_s26  ;;  %2980 = vrot.lane.b32.xlu0 %v8384_v52, %s9372_s27 }
 0x524   : > { %2898 = vrot.lane.b32.xlu1 %v8382_v8, %s9375_s26  ;;  %2916 = vrot.lane.b32.xlu0 %v8384_v52, %s9373_s25 }
 0x528   : > { %3006 = vrot.lane.b32.xlu1 %v8376_v11, %s9376_s30  ;;  %2996 = vrot.lane.b32.xlu0 %v8384_v52, %s9374_s24 }
 0x52c   : > { %3010 = vrot.lane.b32.xlu1 %v8382_v8, %s9376_s30  ;;  %2900 = vrot.lane.b32.xlu0 %v8384_v52, %s9375_s26  ;;  %s9379_s26 = smov 16  }
 0x530   : > { %3826 = vperm.xlu1 %7531, %v2892_v29   ;;  %3012 = vrot.lane.b32.xlu0 %v8384_v52, %s9376_s30  ;;  %s9380_s30 = smov 17  }
 0x534   : > { %3831 = vperm.xlu0 %7530, %v2893_v7  }
 0x562   : > { %v2927_v0 = vpop.permute.xlu1 %2926 }
 0x566   : > { %v2943_v34 = vpop.permute.xlu1 %2942  ;;  %v2929_v36 = vpop.permute.xlu0 %2928 }
 0x56a   : > { %v2959_v6 = vpop.permute.xlu1 %2958  ;;  %v2945_v45 = vpop.permute.xlu0 %2944 }
 0x56e   : > { %v2931_v46 = vpop.permute.xlu1 %2930  ;;  %v2961_v21 = vpop.permute.xlu0 %2960 }
 0x56f   : > { %v2934_v50 = vsel %vm1957_vm2, %v2927_v0, %v2931_v46  ;;  %v2936_v1 = vsel %vm1957_vm2, %v2931_v46, %v2927_v0 }
 0x570   : > { %v2938_v14 = vmul.f32 %v2936_v1, %v8211_v35  ;;  %v2939_v16 = vmul.f32 %v2934_v50, %v8204_v30 }
 0x572   : > { %v8462_v57 = vpop.permute.xlu1 %2974  ;;  %v2933_v12 = vpop.permute.xlu0 %2932 }
 0x573   : > { %v2935_v2 = vsel %vm1957_vm2, %v2929_v36, %v2933_v12  ;;  %v2937_v13 = vsel %vm1957_vm2, %v2933_v12, %v2929_v36  ;;  %vm3027_vm2 = vcmask 130048  }
 0x574   : > { %v2940_v20 = vmul.f32 %v2937_v13, %v8211_v35  ;;  %v2941_v29 = vmul.f32 %v2935_v2, %v8204_v30  ;;  %v7186_v35 = vld [vmem:[%s9307_s11 + $0x20] sm:$0xff] }
 0x576   : > { %v7296_v7 = vpack.c.bf16 %v2940_v20, %v2938_v14  ;;  %v2947_v9 = vpop.permute.xlu1 %2946  ;;  %v8472_v0 = vpop.permute.xlu0 %2976  ;;  %v7294_v46 = vpack.c.bf16 %v2941_v29, %v2939_v16  ;;  %v7187_v14 = vld [vmem:[%s9307_s11 + $0x28] sm:$0xff] }
 0x577   : > { %v2950_v55 = vsel %vm1977_vm6, %v2943_v34, %v2947_v9  ;;  %v2952_v36 = vsel %vm1977_vm6, %v2947_v9, %v2943_v34 }
 0x578   : > { %7295 = vmatprep.subr.bf16.mxu0 %v7294_v46  ;;  %v2954_v2 = vmul.f32 %v2952_v36, %v8239_v59  ;;  %v2955_v13 = vmul.f32 %v2950_v55, %v8222_v47  ;;  %v9377_v55 = vpack.c.bf16 %v8384_v52, %v8382_v8  ;;  %v9378_v46 = vpack.c.bf16 %v8380_v32, %v8376_v11  ;;  %v7191_v36 = vld [vmem:[%s9307_s11 + $0x38] sm:$0xff]  ;;  %v7194_v11 = vld [vmem:[%s9307_s11 + $0x40] sm:$0xff] }
 0x579   : > { %7297 = vmatpush1.bf16.msra.mxu0 %v7296_v7 }
 0x57a   : > { %v2963_v50 = vpop.permute.xlu1 %2962  ;;  %v2949_v30 = vpop.permute.xlu0 %2948 }
 0x57b   : > { %v2951_v1 = vsel %vm1977_vm6, %v2945_v45, %v2949_v30  ;;  %v2953_v12 = vsel %vm1977_vm6, %v2949_v30, %v2945_v45  ;;  %v2966_v8 = vsel %vm1997_vm13, %v2959_v6, %v2963_v50  ;;  %v2968_v52 = vsel %vm1997_vm13, %v2963_v50, %v2959_v6 }
 0x57c   : > { %v2956_v9 = vmul.f32 %v2953_v12, %v8239_v59  ;;  %v2957_v34 = vmul.f32 %v2951_v1, %v8222_v47  ;;  %7188 = vmatmul.mubr.msk.f32.vlgmr.msra.gmra.mrb[2].mxu0 %vm3027_vm2, %v7186_v35  ;;  %v7190_v47 = vld [vmem:[%s9307_s11 + $0x30] sm:$0xff] }
 0x57d   : > { %3273 = vmatprep.mubr.f32.mxu0 %v7541_v4 }
 0x57e   : > { %v7300_v16 = vpack.c.bf16 %v2956_v9, %v2954_v2  ;;  %v2979_v20 = vpop.permute.xlu1 %2978  ;;  %v8494_v29 = vpop.permute.xlu0 %2912  ;;  %v7298_v45 = vpack.c.bf16 %v2957_v34, %v2955_v13  ;;  %v2970_v13 = vmul.f32 %v2966_v8, %v8280_v19  ;;  %v2971_v9 = vmul.f32 %v2968_v52, %v8260_v22  ;;  %v7195_v34 = vld [vmem:[%s9307_s11 + $0x48] sm:$0xff] }
 0x580   : > { %7189 = vmatmul.mubr.msk.f32.gmra.mrb[4].mxu0 %vm3027_vm2, %v7187_v14  ;;  %7299 = vmatprep.subr.bf16.mxu0 %v7298_v45 }
 0x581   : > { %7301 = vmatpush1.bf16.msra.mxu0 %v7300_v16  ;;  %3357 = vmatprep.mubr.f32.mxu0 %v7541_v4 }
 0x582   : > { %v2911_v59 = vpop.permute.xlu1 %2910  ;;  %7303 = vmatprep.subr.bf16.mxu0 %v9377_v55  ;;  %v8504_v7 = vpop.permute.xlu0 %2992 }
 0x584   : > { %7192 = vmatmul.mubr.msk.f32.vlgmr.msra.gmra.mrb[2].mxu0 %vm3027_vm2, %v7190_v47  ;;  %v2982_v47 = vsel %vm2017_vm15, %v8462_v57, %v2979_v20 }
 0x585   : > { %7305 = vmatpush1.bf16.msra.mxu0 %v9378_v46  ;;  %3363 = vmatprep.mubr.f32.mxu0 %v7541_v4 }
 0x586   : > { %v2915_v35 = vpop.permute.xlu1 %2914  ;;  %v8514_v30 = vpop.permute.xlu0 %2896 }
 0x588   : > { %7193 = vmatmul.mubr.msk.f32.gmra.mrb[4].mxu0 %vm3027_vm2, %v7191_v36  ;;  %v2986_v36 = vmul.f32 %v2982_v47, %v8303_v56 }
 0x589   : > { %3447 = vmatprep.mubr.f32.mxu0 %v7541_v4 }
 0x58a   : > { %v2991_v32 = vpop.permute.xlu1 %2990  ;;  %v2965_v1 = vpop.permute.xlu0 %2964 }
 0x58b   : > { %v2967_v12 = vsel %vm1997_vm13, %v2961_v21, %v2965_v1  ;;  %v2969_v2 = vsel %vm1997_vm13, %v2965_v1, %v2961_v21 }
 0x58c   : > { %v2972_v6 = vmul.f32 %v2967_v12, %v8280_v19  ;;  %v2973_v50 = vmul.f32 %v2969_v2, %v8260_v22  ;;  %7196 = vmatmul.mubr.msk.f32.vlgmr.msra.gmra.mrb[2].mxu0 %vm3027_vm2, %v7194_v11  ;;  %v2984_v22 = vsel %vm2017_vm15, %v2979_v20, %v8462_v57  ;;  %v7198_v19 = vld [vmem:[%s9307_s11 + $0x50] sm:$0xff]  ;;  %v2920_v20 = vsel %vm1937_vm0, %v2915_v35, %v2911_v59 }
 0x58d   : > { %3453 = vmatprep.mubr.f32.mxu0 %v7541_v4  ;;  %v2987_v57 = vmul.f32 %v2984_v22, %v8286_v51  ;;  %v2918_v12 = vsel %vm1937_vm0, %v2911_v59, %v2915_v35 }
 0x58e   : > { %v7308_v14 = vpack.c.bf16 %v2972_v6, %v2970_v13  ;;  %v2995_v16 = vpop.permute.xlu1 %2994  ;;  %v8538_v45 = vpop.permute.xlu0 %3008  ;;  %v7306_v21 = vpack.c.bf16 %v2973_v50, %v2971_v9  ;;  %v2922_v50 = vmul.f32 %v2920_v20, %v8173_v37  ;;  %v2923_v59 = vmul.f32 %v2918_v12, %v8170_v61 }
 0x58f   : > { %v2998_v35 = vsel %vm2037_vm14, %v2991_v32, %v2995_v16 }
 0x590   : > { %7197 = vmatmul.mubr.msk.f32.gmra.mrb[4].mxu0 %vm3027_vm2, %v7195_v34  ;;  %7307 = vmatprep.subr.bf16.mxu0 %v7306_v21  ;;  %v3000_v21 = vsel %vm2037_vm14, %v2995_v16, %v2991_v32 }
 0x591   : > { %7309 = vmatpush1.bf16.msra.mxu0 %v7308_v14  ;;  %3537 = vmatprep.mubr.f32.mxu0 %v7541_v4  ;;  %v3003_v16 = vmul.f32 %v3000_v21, %v8309_v60 }
 0x592   : > { %v2895_v55 = vpop.permute.xlu1 %2894  ;;  %v2981_v46 = vpop.permute.xlu0 %2980 }
 0x593   : > { %v2983_v8 = vsel %vm2017_vm15, %v8472_v0, %v2981_v46  ;;  %v2985_v52 = vsel %vm2017_vm15, %v2981_v46, %v8472_v0  ;;  %v7199_v0 = vld [vmem:[%s9307_s11 + $0x58] sm:$0xff]  ;;  %v7202_v46 = vld [vmem:[%s9307_s11 + $0x60] sm:$0xff] }
 0x594   : > { %v2988_v11 = vmul.f32 %v2983_v8, %v8303_v56  ;;  %v2989_v1 = vmul.f32 %v2985_v52, %v8286_v51  ;;  %7200 = vmatmul.mubr.msk.f32.vlgmr.msra.gmra.mrb[2].mxu0 %vm3027_vm2, %v7198_v19 }
 0x595   : > { %3543 = vmatprep.mubr.f32.mxu0 %v7541_v4 }
 0x596   : > { %v7312_v2 = vpack.c.bf16 %v2988_v11, %v2986_v36  ;;  %v2899_v13 = vpop.permute.xlu1 %2898  ;;  %v2917_v9 = vpop.permute.xlu0 %2916  ;;  %v7310_v6 = vpack.c.bf16 %v2989_v1, %v2987_v57 }
 0x597   : > { %v2919_v51 = vsel %vm1937_vm0, %v8494_v29, %v2917_v9  ;;  %v2921_v56 = vsel %vm1937_vm0, %v2917_v9, %v8494_v29  ;;  %v2904_v36 = vsel %vm1917_vm1, %v2899_v13, %v2895_v55  ;;  %v2902_v57 = vsel %vm1917_vm1, %v2895_v55, %v2899_v13 }
 0x598   : > { %v2924_v34 = vmul.f32 %v2921_v56, %v8173_v37  ;;  %v2925_v14 = vmul.f32 %v2919_v51, %v8170_v61  ;;  %7201 = vmatmul.mubr.msk.f32.gmra.mrb[4].mxu0 %vm3027_vm2, %v7199_v0  ;;  %7311 = vmatprep.subr.bf16.mxu0 %v7310_v6  ;;  %v3002_v37 = vmul.f32 %v2998_v35, %v8327_v23 }
 0x599   : > { %3627 = vmatprep.mubr.f32.mxu0 %v7541_v4  ;;  %7313 = vmatpush1.bf16.msra.mxu0 %v7312_v2  ;;  %v2906_v12 = vmul.f32 %v2904_v36, %v8182_v24  ;;  %v2907_v2 = vmul.f32 %v2902_v57, %v8189_v15 }
 0x59a   : > { %v7288_v47 = vpack.c.bf16 %v2924_v34, %v2922_v50  ;;  %v3007_v29 = vpop.permute.xlu1 %3006  ;;  %v2997_v22 = vpop.permute.xlu0 %2996  ;;  %v7286_v19 = vpack.c.bf16 %v2925_v14, %v2923_v59 }
 0x59b   : > { %v2999_v61 = vsel %vm2037_vm14, %v8504_v7, %v2997_v22  ;;  %v3001_v32 = vsel %vm2037_vm14, %v2997_v22, %v8504_v7  ;;  %v7180_v7 = vld [vmem:[%s9307_s11 + $0x10] sm:$0xff] }
 0x59c   : > { %v3004_v8 = vmul.f32 %v2999_v61, %v8327_v23  ;;  %v3005_v52 = vmul.f32 %v3001_v32, %v8309_v60  ;;  %7287 = vmatprep.subr.bf16.mxu1 %v7286_v19  ;;  %7204 = vmatmul.mubr.msk.f32.vlgmr.msra.gmra.mrb[2].mxu0 %vm3027_vm2, %v7202_v46  ;;  %v7203_v60 = vld [vmem:[%s9307_s11 + $0x68] sm:$0xff]  ;;  %v7210_v19 = vld [vmem:[%s9307_s11 + $0x80] sm:$0xff] }
 0x59d   : > { %7289 = vmatpush1.bf16.msra.mxu1 %v7288_v47  ;;  %3633 = vmatprep.mubr.f32.mxu0 %v7541_v4  ;;  %v7211_v46 = vld [vmem:[%s9307_s11 + $0x88] sm:$0xff] }
 0x59e   : > { %v7316_v20 = vpack.c.bf16 %v3004_v8, %v3002_v37  ;;  %v3011_v11 = vpop.permute.xlu1 %3010  ;;  %v2901_v1 = vpop.permute.xlu0 %2900  ;;  %v7314_v23 = vpack.c.bf16 %v3005_v52, %v3003_v16 }
 0x59f   : > { %v2903_v55 = vsel %vm1917_vm1, %v8514_v30, %v2901_v1  ;;  %v2905_v0 = vsel %vm1917_vm1, %v2901_v1, %v8514_v30  ;;  %v3014_v13 = vsel %vm2057_vm11, %v3007_v29, %v3011_v11  ;;  %v3016_v50 = vsel %vm2057_vm11, %v3011_v11, %v3007_v29  ;;  %v7181_v30 = vld [vmem:[%s9307_s11 + $0x18] sm:$0xff]  ;;  %v3022_v29 = vld [vmem:[%s9307_s11] sm:$0xff] }
 0x5a0   : > { %v2908_v9 = vmul.f32 %v2905_v0, %v8182_v24  ;;  %v2909_v6 = vmul.f32 %v2903_v55, %v8189_v15  ;;  %7182 = vmatmul.mubr.msk.f32.vlgmr.msra.gmra.mrb[4].mxu1 %vm3027_vm2, %v7180_v7  ;;  %7205 = vmatmul.mubr.msk.f32.gmra.mrb[4].mxu0 %vm3027_vm2, %v7203_v60  ;;  %v7206_v15 = vld [vmem:[%s9307_s11 + $0x70] sm:$0xff]  ;;  %v3018_v59 = vmul.f32 %v3014_v13, %v8349_v31 }
 0x5a1   : > { %7315 = vmatprep.subr.bf16.mxu0 %v7314_v23  ;;  %3104 = vmatprep.mubr.f32.mxu1 %v7541_v4  ;;  %v3019_v14 = vmul.f32 %v3016_v50, %v8333_v25 }
 0x5a2   : > { %v7292_v51 = vpack.c.bf16 %v2908_v9, %v2906_v12  ;;  %7317 = vmatpush1.bf16.msra.mxu0 %v7316_v20  ;;  %v3013_v56 = vpop.permute.xlu0 %3012  ;;  %v7290_v24 = vpack.c.bf16 %v2909_v6, %v2907_v2  ;;  %3717 = vmatprep.mubr.f32.mxu0 %v7541_v4 }
 0x5a3   : > { %v3015_v35 = vsel %vm2057_vm11, %v8538_v45, %v3013_v56  ;;  %v3017_v34 = vsel %vm2057_vm11, %v3013_v56, %v8538_v45  ;;  %v3023_v45 = vld [vmem:[%s9307_s11 + $0x8] sm:$0xff]  ;;  %v3842_v56 = vld [vmem:[%s9310_s14] sm:$0xff]  ;;  %vm9382_vm11 = vcmp.lt.s32.totalorder %v7787_v33, 111 }
 0x5a4   : > { %v3020_v21 = vmul.f32 %v3015_v35, %v8349_v31  ;;  %v3021_v47 = vmul.f32 %v3017_v34, %v8333_v25  ;;  %7183 = vmatmul.mubr.msk.f32.gmra.mrb[6].mxu1 %vm3027_vm2, %v7181_v30  ;;  %7291 = vmatprep.subr.bf16.mxu1 %v7290_v24  ;;  %v7207_v31 = vld [vmem:[%s9307_s11 + $0x78] sm:$0xff]  ;;  %vm9383_vm0 = vmmov %vm9382_vm11 }
 0x5a5   : > { %7208 = vmatmul.mubr.msk.f32.vlgmr.msra.gmra.mrb[2].mxu0 %vm3027_vm2, %v7206_v15  ;;  %7293 = vmatpush1.bf16.msra.mxu1 %v7292_v51  ;;  %vm9384_vm1 = vmmov %vm9383_vm0 }
 0x5a6   : > { %v7320_v22 = vpack.c.bf16 %v3020_v21, %v3018_v59  ;;  %3181 = vmatprep.mubr.f32.mxu1 %v7541_v4  ;;  %3723 = vmatprep.mubr.f32.mxu0 %v7541_v4  ;;  %v7318_v25 = vpack.c.bf16 %v3021_v47, %v3019_v14  ;;  %vm9385_vm6 = vmmov %vm9383_vm0 }
 0x5a7   : > { %vm9386_vm13 = vmmov %vm9383_vm0 }
 0x5a8   : > { %7184 = vmatmul.mubr.msk.f32.vlgmr.msra.gmra.mrb[4].mxu1 %vm3027_vm2, %v3022_v29  ;;  %7319 = vmatprep.subr.bf16.mxu0 %v7318_v25  ;;  %vm9387_vm15 = vmmov %vm9383_vm0 }
 0x5a9   : > { %7209 = vmatmul.mubr.msk.f32.gmra.mrb[4].mxu0 %vm3027_vm2, %v7207_v31  ;;  %3187 = vmatprep.mubr.f32.mxu1 %v7541_v4  ;;  %vm9388_vm14 = vmmov %vm9383_vm0 }
 0x5aa   : > { %7321 = vmatpush1.bf16.msra.mxu0 %v7320_v22  ;;  %3807 = vmatprep.mubr.f32.mxu0 %v7541_v4 }
 0x5ac   : > { %7185 = vmatmul.mubr.msk.f32.gmra.mrb[6].mxu1 %vm3027_vm2, %v3023_v45 }
 0x5ad   : > { %7212 = vmatmul.mubr.msk.f32.vlgmr.msra.gmra.mrb[2].mxu0 %vm3027_vm2, %v7210_v19  ;;  %4041 = vmatprep.mubr.f32.mxu1 %v7541_v4 }
 0x5ae   : > { %3813 = vmatprep.mubr.f32.mxu0 %v7541_v4 }
 0x5af   : > { %v3827_v57 = vpop.permute.xlu1 %3826 }
 0x5b1   : > { %7213 = vmatmul.mubr.msk.f32.gmra.mrb[4].mxu0 %vm3027_vm2, %v7211_v46 }
 0x5b2   : > { %4812 = vmatprep.mubr.f32.mxu0 %v7541_v4 }
 0x5b3   : > { %v3832_v55 = vpop.permute.xlu0 %3831 }
 0x67b   : > { %v3183_v37 = vpop.f32.mrb[4].mxu1 }
 0x67c   : > { %v3185_v61 = vpop.f32.mrb[5].mxu1 }
 0x67f   : > { %v3189_v32 = vpop.f32.mrb[6].mxu1 }
 0x680   : > { %v3809_v16 = vpop.f32.mrb[2].mxu0  ;;  %v3191_v36 = vpop.f32.mrb[7].mxu1 }
 0x681   : > { %v7358_v8 = vadd.f32 %v3809_v16, %v3183_v37  ;;  %v3811_v52 = vpop.f32.mrb[3].mxu0 }
 0x682   : > { %v7359_v7 = vadd.f32 %v3811_v52, %v3185_v61 }
 0x683   : > { %v3834_v20 = vadd.f32 %v7358_v8, %v3827_v57 }
 0x684   : > { %v3815_v11 = vpop.f32.mrb[4].mxu0  ;;  %v3835_v60 = vadd.f32 %v7359_v7, %v3827_v57 }
 0x685   : > { %v8674_v1 = vmax.f32 %v3834_v20, 0.0  ;;  %v7360_v23 = vadd.f32 %v3815_v11, %v3189_v32  ;;  %v3817_v12 = vpop.f32.mrb[5].mxu0 }
 0x686   : > { %v7361_v0 = vadd.f32 %v3817_v12, %v3191_v36  ;;  %v8678_v9 = vmax.f32 %v3835_v60, 0.0  ;;  %v7214_v36 = vld [vmem:[%s9309_s13 + $0x8] sm:$0xff] }
 0x687   : > { %v3836_v2 = vadd.f32 %v7360_v23, %v3832_v55  ;;  %3859 = vrot.lane.b32.xlu1 %v8674_v1, %s9379_s26 }
 0x688   : > { %v3837_v13 = vadd.f32 %v7361_v0, %v3832_v55 }
 0x689   : > { %v8680_v6 = vmax.f32 %v3836_v2, 0.0 }
 0x68a   : > { %v8682_v50 = vmax.f32 %v3837_v13, 0.0 }
 0x68b   : > { %3863 = vrot.lane.b32.xlu1 %v8678_v9, %s9379_s26  ;;  %3861 = vrot.lane.b32.xlu0 %v8680_v6, %s9379_s26  ;;  %v7340_v30 = vpack.c.bf16 %v8680_v6, %v8674_v1 }
 0x68c   : > { %v7338_v51 = vpack.c.bf16 %v8682_v50, %v8678_v9 }
 0x68f   : > { %3843 = vrot.lane.b32.xlu1 %v8674_v1, %s9380_s30  ;;  %3865 = vrot.lane.b32.xlu0 %v8682_v50, %s9379_s26 }
 0x693   : > { %3847 = vrot.lane.b32.xlu1 %v8678_v9, %s9380_s30  ;;  %3845 = vrot.lane.b32.xlu0 %v8680_v6, %s9380_s30 }
 0x697   : > { %3875 = vrot.lane.b32.xlu1 %v8674_v1, %s9381_s2  ;;  %3849 = vrot.lane.b32.xlu0 %v8682_v50, %s9380_s30 }
 0x69b   : > { %3879 = vrot.lane.b32.xlu1 %v8678_v9, %s9381_s2  ;;  %3877 = vrot.lane.b32.xlu0 %v8680_v6, %s9381_s2 }
 0x69f   : > { %3891 = vrot.lane.b32.xlu1 %v8674_v1, %s9363_s0  ;;  %3881 = vrot.lane.b32.xlu0 %v8682_v50, %s9381_s2 }
 0x6a3   : > { %3895 = vrot.lane.b32.xlu1 %v8678_v9, %s9363_s0  ;;  %3893 = vrot.lane.b32.xlu0 %v8680_v6, %s9363_s0 }
 0x6a7   : > { %3907 = vrot.lane.b32.xlu1 %v8674_v1, %s9364_s6  ;;  %3897 = vrot.lane.b32.xlu0 %v8682_v50, %s9363_s0 }
 0x6ab   : > { %3911 = vrot.lane.b32.xlu1 %v8678_v9, %s9364_s6  ;;  %3909 = vrot.lane.b32.xlu0 %v8680_v6, %s9364_s6 }
 0x6af   : > { %3923 = vrot.lane.b32.xlu1 %v8674_v1, %s9365_s1  ;;  %3913 = vrot.lane.b32.xlu0 %v8682_v50, %s9364_s6 }
 0x6b3   : > { %3927 = vrot.lane.b32.xlu1 %v8678_v9, %s9365_s1  ;;  %3925 = vrot.lane.b32.xlu0 %v8680_v6, %s9365_s1 }
 0x6b7   : > { %3939 = vrot.lane.b32.xlu1 %v8674_v1, %s9366_s5  ;;  %3929 = vrot.lane.b32.xlu0 %v8682_v50, %s9365_s1 }
 0x6bb   : > { %3943 = vrot.lane.b32.xlu1 %v8678_v9, %s9366_s5  ;;  %3941 = vrot.lane.b32.xlu0 %v8680_v6, %s9366_s5 }
 0x6bf   : > { %3955 = vrot.lane.b32.xlu1 %v8674_v1, %s9367_s23  ;;  %3945 = vrot.lane.b32.xlu0 %v8682_v50, %s9366_s5  ;;  %v7221_v1 = vld [vmem:[%s9309_s13 + $0x20] sm:$0xff] }
 0x6c3   : > { %3959 = vrot.lane.b32.xlu1 %v8678_v9, %s9367_s23  ;;  %3957 = vrot.lane.b32.xlu0 %v8680_v6, %s9367_s23 }
 0x6c7   : > { %4670 = vperm.xlu1 %7531, %v3842_v56   ;;  %3961 = vrot.lane.b32.xlu0 %v8682_v50, %s9367_s23 }
 0x6f9   : > { %v3860_v24 = vpop.permute.xlu1 %3859 }
 0x6fd   : > { %v3864_v15 = vpop.permute.xlu1 %3863  ;;  %v3862_v59 = vpop.permute.xlu0 %3861 }
 0x6fe   : > { %v3867_v35 = vsel %vm748_vm4, %v3860_v24, %v3864_v15  ;;  %v3869_v34 = vsel %vm748_vm4, %v3864_v15, %v3860_v24  ;;  %v3971_v24 = vld [vmem:[%s9309_s13] sm:$0xff] }
 0x6ff   : > { %v3871_v22 = vmul.f32 %v3869_v34, %v7800_v40  ;;  %v3872_v31 = vmul.f32 %v3867_v35, %v7803_v41 }
 0x701   : > { %v3844_v14 = vpop.permute.xlu1 %3843  ;;  %v3866_v21 = vpop.permute.xlu0 %3865 }
 0x702   : > { %v3868_v47 = vsel %vm748_vm4, %v3862_v59, %v3866_v21  ;;  %v3870_v29 = vsel %vm748_vm4, %v3866_v21, %v3862_v59 }
 0x703   : > { %v3873_v25 = vmul.f32 %v3870_v29, %v7800_v40  ;;  %v3874_v45 = vmul.f32 %v3868_v47, %v7803_v41 }
 0x705   : > { %v7324_v19 = vpack.c.bf16 %v3873_v25, %v3871_v22  ;;  %v3848_v46 = vpop.permute.xlu1 %3847  ;;  %v3846_v37 = vpop.permute.xlu0 %3845  ;;  %v7322_v61 = vpack.c.bf16 %v3874_v45, %v3872_v31 }
 0x706   : > { %v3851_v32 = vsel %vm728_vm3, %v3844_v14, %v3848_v46  ;;  %v3853_v16 = vsel %vm728_vm3, %v3848_v46, %v3844_v14 }
 0x707   : > { %7323 = vmatprep.subr.bf16.mxu1 %v7322_v61  ;;  %v3855_v20 = vmul.f32 %v3853_v16, %v7797_v39  ;;  %v3856_v11 = vmul.f32 %v3851_v32, %v7807_v42 }
 0x708   : > { %7325 = vmatpush1.bf16.msra.mxu1 %v7324_v19 }
 0x709   : > { %v3876_v8 = vpop.permute.xlu1 %3875  ;;  %v3850_v52 = vpop.permute.xlu0 %3849 }
 0x70a   : > { %v3852_v57 = vsel %vm728_vm3, %v3846_v37, %v3850_v52  ;;  %v3854_v7 = vsel %vm728_vm3, %v3850_v52, %v3846_v37  ;;  %v7217_v37 = vld [vmem:[%s9309_s13 + $0x10] sm:$0xff] }
 0x70b   : > { %v3857_v60 = vmul.f32 %v3854_v7, %v7797_v39  ;;  %v3858_v23 = vmul.f32 %v3852_v57, %v7807_v42  ;;  %7215 = vmatmul.mubr.msk.f32.vlgmr.msra.gmra.mrb[8].mxu1 %vm3027_vm2, %v7214_v36 }
 0x70c   : > { %4115 = vmatprep.mubr.f32.mxu1 %v7541_v4 }
 0x70d   : > { %v7328_v12 = vpack.c.bf16 %v3857_v60, %v3855_v20  ;;  %v3880_v55 = vpop.permute.xlu1 %3879  ;;  %v3878_v0 = vpop.permute.xlu0 %3877  ;;  %v7326_v2 = vpack.c.bf16 %v3858_v23, %v3856_v11 }
 0x70e   : > { %v3883_v13 = vsel %vm768_vm5, %v3876_v8, %v3880_v55  ;;  %v3885_v56 = vsel %vm768_vm5, %v3880_v55, %v3876_v8  ;;  %v7219_v55 = vld [vmem:[%s9309_s13 + $0x18] sm:$0xff] }
 0x70f   : > { %7327 = vmatprep.subr.bf16.mxu1 %v7326_v2  ;;  %v3887_v14 = vmul.f32 %v3885_v56, %v7810_v43  ;;  %v3888_v21 = vmul.f32 %v3883_v13, %v7813_v44 }
 0x710   : > { %7329 = vmatpush1.bf16.msra.mxu1 %v7328_v12 }
 0x711   : > { %v3892_v15 = vpop.permute.xlu1 %3891  ;;  %v3882_v59 = vpop.permute.xlu0 %3881 }
 0x712   : > { %v3884_v35 = vsel %vm768_vm5, %v3878_v0, %v3882_v59  ;;  %v3886_v34 = vsel %vm768_vm5, %v3882_v59, %v3878_v0 }
 0x713   : > { %v3889_v47 = vmul.f32 %v3886_v34, %v7810_v43  ;;  %v3890_v29 = vmul.f32 %v3884_v35, %v7813_v44  ;;  %7216 = vmatmul.mubr.msk.f32.vlgmr.msra.gmra.mrb[8].mxu1 %vm3027_vm2, %v3971_v24 }
 0x714   : > { %4191 = vmatprep.mubr.f32.mxu1 %v7541_v4 }
 0x715   : > { %v7332_v22 = vpack.c.bf16 %v3889_v47, %v3887_v14  ;;  %v3896_v31 = vpop.permute.xlu1 %3895  ;;  %v3894_v25 = vpop.permute.xlu0 %3893  ;;  %v7330_v45 = vpack.c.bf16 %v3890_v29, %v3888_v21 }
 0x716   : > { %v3899_v19 = vsel %vm788_vm7, %v3892_v15, %v3896_v31  ;;  %v3901_v46 = vsel %vm788_vm7, %v3896_v31, %v3892_v15 }
 0x717   : > { %7331 = vmatprep.subr.bf16.mxu1 %v7330_v45  ;;  %v3903_v8 = vmul.f32 %v3901_v46, %v7830_v53  ;;  %v3904_v52 = vmul.f32 %v3899_v19, %v7833_v54 }
 0x718   : > { %7333 = vmatpush1.bf16.msra.mxu1 %v7332_v22 }
 0x719   : > { %v3908_v61 = vpop.permute.xlu1 %3907  ;;  %v3898_v32 = vpop.permute.xlu0 %3897 }
 0x71a   : > { %v3900_v16 = vsel %vm788_vm7, %v3894_v25, %v3898_v32  ;;  %v3902_v36 = vsel %vm788_vm7, %v3898_v32, %v3894_v25 }
 0x71b   : > { %v3905_v57 = vmul.f32 %v3902_v36, %v7830_v53  ;;  %v3906_v7 = vmul.f32 %v3900_v16, %v7833_v54  ;;  %7218 = vmatmul.mubr.msk.f32.vlgmr.msra.gmra.mrb[8].mxu1 %vm3027_vm2, %v7217_v37  ;;  %v7223_v16 = vld [vmem:[%s9309_s13 + $0x28] sm:$0xff] }
 0x71c   : > { %4269 = vmatprep.mubr.f32.mxu1 %v7541_v4 }
 0x71d   : > { %v7336_v20 = vpack.c.bf16 %v3905_v57, %v3903_v8  ;;  %v3912_v11 = vpop.permute.xlu1 %3911  ;;  %v3910_v60 = vpop.permute.xlu0 %3909  ;;  %v7334_v23 = vpack.c.bf16 %v3906_v7, %v3904_v52 }
 0x71e   : > { %v3917_v12 = vsel %vm808_vm8, %v3912_v11, %v3908_v61  ;;  %v3915_v9 = vsel %vm808_vm8, %v3908_v61, %v3912_v11 }
 0x71f   : > { %7335 = vmatprep.subr.bf16.mxu1 %v7334_v23  ;;  %v3920_v56 = vmul.f32 %v3917_v12, %v7863_v18  ;;  %v3919_v34 = vmul.f32 %v3915_v9, %v7859_v17 }
 0x720   : > { %7337 = vmatpush1.bf16.msra.mxu1 %v7336_v20 }
 0x721   : > { %v3924_v0 = vpop.permute.xlu1 %3923  ;;  %v3914_v2 = vpop.permute.xlu0 %3913  ;;  %7339 = vmatprep.subr.bf16.mxu1 %v7338_v51 }
 0x722   : > { %v3918_v13 = vsel %vm808_vm8, %v3914_v2, %v3910_v60  ;;  %v3916_v24 = vsel %vm808_vm8, %v3910_v60, %v3914_v2 }
 0x723   : > { %v3922_v15 = vmul.f32 %v3918_v13, %v7863_v18  ;;  %7220 = vmatmul.mubr.msk.f32.vlgmr.msra.gmra.mrb[8].mxu1 %vm3027_vm2, %v7219_v55  ;;  %v3921_v35 = vmul.f32 %v3916_v24, %v7859_v17 }
 0x724   : > { %7341 = vmatpush1.bf16.msra.mxu1 %v7340_v30  ;;  %4347 = vmatprep.mubr.f32.mxu1 %v7541_v4 }
 0x725   : > { %v3928_v50 = vpop.permute.xlu1 %3927  ;;  %v3926_v51 = vpop.permute.xlu0 %3925  ;;  %v7342_v59 = vpack.c.bf16 %v3922_v15, %v3920_v56  ;;  %v7344_v21 = vpack.c.bf16 %v3921_v35, %v3919_v34  ;;  %v7225_v56 = vld [vmem:[%s9309_s13 + $0x30] sm:$0xff] }
 0x726   : > { %v3933_v14 = vsel %vm828_vm9, %v3928_v50, %v3924_v0  ;;  %v3931_v25 = vsel %vm828_vm9, %v3924_v0, %v3928_v50 }
 0x727   : > { %7343 = vmatprep.subr.bf16.mxu1 %v7342_v59  ;;  %v3936_v29 = vmul.f32 %v3933_v14, %v7874_v28  ;;  %v3935_v61 = vmul.f32 %v3931_v25, %v7871_v27 }
 0x729   : > { %v3940_v6 = vpop.permute.xlu1 %3939  ;;  %v3930_v30 = vpop.permute.xlu0 %3929 }
 0x72a   : > { %v3934_v47 = vsel %vm828_vm9, %v3930_v30, %v3926_v51  ;;  %v3932_v22 = vsel %vm828_vm9, %v3926_v51, %v3930_v30 }
 0x72b   : > { %v3938_v31 = vmul.f32 %v3934_v47, %v7874_v28  ;;  %7222 = vmatmul.mubr.msk.f32.vlgmr.msra.gmra.mrb[8].mxu1 %vm3027_vm2, %v7221_v1  ;;  %v3937_v37 = vmul.f32 %v3932_v22, %v7871_v27 }
 0x72c   : > { %7345 = vmatpush1.bf16.msra.mxu1 %v7344_v21  ;;  %4425 = vmatprep.mubr.f32.mxu1 %v7541_v4  ;;  %v7229_v21 = vld [vmem:[%s9309_s13 + $0x40] sm:$0xff] }
 0x72d   : > { %v3944_v45 = vpop.permute.xlu1 %3943  ;;  %v3942_v19 = vpop.permute.xlu0 %3941  ;;  %v7346_v46 = vpack.c.bf16 %v3938_v31, %v3936_v29  ;;  %v7348_v52 = vpack.c.bf16 %v3937_v37, %v3935_v61 }
 0x72e   : > { %v3949_v32 = vsel %vm848_vm10, %v3944_v45, %v3940_v6  ;;  %v3947_v60 = vsel %vm848_vm10, %v3940_v6, %v3944_v45  ;;  %v7227_v6 = vld [vmem:[%s9309_s13 + $0x38] sm:$0xff] }
 0x72f   : > { %7347 = vmatprep.subr.bf16.mxu1 %v7346_v46  ;;  %v3952_v7 = vmul.f32 %v3949_v32, %v7901_v5  ;;  %v3951_v2 = vmul.f32 %v3947_v60, %v7898_v3  ;;  %v4677_v46 = vld [vmem:[%s9313_s17] sm:$0xff] }
 0x731   : > { %v3956_v36 = vpop.permute.xlu1 %3955  ;;  %v3946_v8 = vpop.permute.xlu0 %3945 }
 0x732   : > { %v3950_v57 = vsel %vm848_vm10, %v3946_v8, %v3942_v19  ;;  %v3948_v20 = vsel %vm848_vm10, %v3942_v19, %v3946_v8 }
 0x733   : > { %v3954_v11 = vmul.f32 %v3950_v57, %v7901_v5  ;;  %7224 = vmatmul.mubr.msk.f32.vlgmr.msra.gmra.mrb[8].mxu1 %vm3027_vm2, %v7223_v16  ;;  %v3953_v0 = vmul.f32 %v3948_v20, %v7898_v3  ;;  %v7231_v57 = vld [vmem:[%s9311_s15 + $0x8] sm:$0xff] }
 0x734   : > { %7349 = vmatpush1.bf16.msra.mxu1 %v7348_v52  ;;  %4503 = vmatprep.mubr.f32.mxu1 %v7541_v4 }
 0x735   : > { %v3960_v23 = vpop.permute.xlu1 %3959  ;;  %v3958_v12 = vpop.permute.xlu0 %3957  ;;  %v7350_v55 = vpack.c.bf16 %v3954_v11, %v3952_v7  ;;  %v7352_v15 = vpack.c.bf16 %v3953_v0, %v3951_v2 }
 0x736   : > { %v3965_v13 = vsel %vm9382_vm11, %v3960_v23, %v3956_v36  ;;  %v3963_v35 = vsel %vm9385_vm6, %v3956_v36, %v3960_v23 }
 0x737   : > { %7351 = vmatprep.subr.bf16.mxu1 %v7350_v55  ;;  %v3968_v50 = vmul.f32 %v3965_v13, %v7921_v38  ;;  %v3967_v1 = vmul.f32 %v3963_v35, %v7918_v10  ;;  %v7234_v35 = vld [vmem:[%s9311_s15 + $0x10] sm:$0xff] }
 0x739   : > { %v3962_v24 = vpop.permute.xlu0 %3961 }
 0x73a   : > { %v3966_v9 = vsel %vm9383_vm0, %v3962_v24, %v3958_v12  ;;  %v3964_v51 = vsel %vm9384_vm1, %v3958_v12, %v3962_v24  ;;  %v4742_v24 = vld [vmem:[%s9311_s15] sm:$0xff] }
 0x73b   : > { %v3970_v59 = vmul.f32 %v3966_v9, %v7921_v38  ;;  %7226 = vmatmul.mubr.msk.f32.vlgmr.msra.gmra.mrb[8].mxu1 %vm3027_vm2, %v7225_v56  ;;  %v3969_v14 = vmul.f32 %v3964_v51, %v7918_v10 }
 0x73c   : > { %7353 = vmatpush1.bf16.msra.mxu1 %v7352_v15  ;;  %4581 = vmatprep.mubr.f32.mxu1 %v7541_v4 }
 0x73d   : > { %v7354_v34 = vpack.c.bf16 %v3970_v59, %v3968_v50  ;;  %v7356_v30 = vpack.c.bf16 %v3969_v14, %v3967_v1 }
 0x73f   : > { %7355 = vmatprep.subr.bf16.mxu1 %v7354_v34 }
 0x743   : > { %7228 = vmatmul.mubr.msk.f32.vlgmr.msra.gmra.mrb[8].mxu1 %vm3027_vm2, %v7227_v6 }
 0x744   : > { %7357 = vmatpush1.bf16.msra.mxu1 %v7356_v30  ;;  %4659 = vmatprep.mubr.f32.mxu1 %v7541_v4  ;;  %v7236_v30 = vld [vmem:[%s9311_s15 + $0x18] sm:$0xff] }
 0x746   : > { %v4671_v47 = vpop.permute.xlu1 %4670 }
 0x74b   : > { %7230 = vmatmul.mubr.msk.f32.vlgmr.msra.gmra.mrb[8].mxu1 %vm3027_vm2, %v7229_v21  ;;  %vm9389_vm2 = vmmov %vm9383_vm0 }
 0x74c   : > { %6336 = vmatprep.mubr.f32.mxu1 %v7541_v4 }
 0x81e   : > { %v4661_v29 = vpop.f32.mrb[8].mxu1 }
 0x81f   : > { %v4673_v22 = vadd.f32 %v4671_v47, %v4661_v29  ;;  %v4663_v31 = vpop.f32.mrb[9].mxu1 }
 0x820   : > { %v4674_v25 = vadd.f32 %v4671_v47, %v4663_v31 }
 0x821   : > { %v8900_v45 = vmax.f32 %v4673_v22, 0.0 }
 0x822   : > { %v8902_v19 = vmax.f32 %v4674_v25, 0.0  ;;  %v7238_v25 = vld [vmem:[%s9311_s15 + $0x20] sm:$0xff] }
 0x823   : > { %4686 = vrot.lane.b32.xlu0 %v8900_v45, %s9379_s26 }
 0x824   : > { %4688 = vrot.lane.b32.xlu1 %v8902_v19, %s9379_s26 }
 0x827   : > { %4678 = vrot.lane.b32.xlu0 %v8900_v45, %s9380_s30 }
 0x828   : > { %4680 = vrot.lane.b32.xlu1 %v8902_v19, %s9380_s30 }
 0x82b   : > { %4694 = vrot.lane.b32.xlu0 %v8900_v45, %s9381_s2 }
 0x82c   : > { %4696 = vrot.lane.b32.xlu1 %v8902_v19, %s9381_s2 }
 0x82f   : > { %4702 = vrot.lane.b32.xlu0 %v8900_v45, %s9363_s0 }
 0x830   : > { %4704 = vrot.lane.b32.xlu1 %v8902_v19, %s9363_s0 }
 0x833   : > { %4710 = vrot.lane.b32.xlu0 %v8900_v45, %s9364_s6 }
 0x834   : > { %4712 = vrot.lane.b32.xlu1 %v8902_v19, %s9364_s6 }
 0x837   : > { %4718 = vrot.lane.b32.xlu0 %v8900_v45, %s9365_s1 }
 0x838   : > { %4720 = vrot.lane.b32.xlu1 %v8902_v19, %s9365_s1 }
 0x83b   : > { %4726 = vrot.lane.b32.xlu0 %v8900_v45, %s9366_s5 }
 0x83c   : > { %4728 = vrot.lane.b32.xlu1 %v8902_v19, %s9366_s5 }
 0x83f   : > { %4734 = vrot.lane.b32.xlu0 %v8900_v45, %s9367_s23 }
 0x840   : > { %4736 = vrot.lane.b32.xlu1 %v8902_v19, %s9367_s23 }
 0x843   : > { %5439 = vrot.lane.b32.xlu0 %v8058_v48, %s9380_s30 }
 0x844   : > { %5441 = vrot.lane.b32.xlu1 %v8060_v49, %s9380_s30 }
 0x847   : > { %5447 = vrot.lane.b32.xlu0 %v8058_v48, %s9379_s26 }
 0x848   : > { %5449 = vrot.lane.b32.xlu1 %v8060_v49, %s9379_s26 }
 0x84b   : > { %5455 = vrot.lane.b32.xlu0 %v8058_v48, %s9381_s2 }
 0x84c   : > { %5457 = vrot.lane.b32.xlu1 %v8060_v49, %s9381_s2 }
 0x84f   : > { %5467 = vrot.lane.b32.xlu0 %v8058_v48, %s9365_s1 }
 0x850   : > { %5469 = vrot.lane.b32.xlu1 %v8060_v49, %s9365_s1 }
 0x853   : > { %5475 = vrot.lane.b32.xlu0 %v8058_v48, %s9366_s5 }
 0x854   : > { %5477 = vrot.lane.b32.xlu1 %v8060_v49, %s9366_s5 }
 0x857   : > { %5483 = vrot.lane.b32.xlu0 %v8058_v48, %s9367_s23 }
 0x858   : > { %5485 = vrot.lane.b32.xlu1 %v8060_v49, %s9367_s23 }
 0x85b   : > { %6194 = vperm.xlu0 %7530, %v4677_v46  }
 0x895   : > { %v4687_v37 = vpop.permute.xlu0 %4686 }
 0x896   : > { %v4689_v61 = vpop.permute.xlu1 %4688 }
 0x897   : > { %v4690_v32 = vsel %vm748_vm4, %v4687_v37, %v4689_v61  ;;  %v4691_v16 = vsel %vm748_vm4, %v4689_v61, %v4687_v37 }
 0x898   : > { %v4692_v36 = vmul.f32 %v4691_v16, %v7800_v40  ;;  %v4693_v8 = vmul.f32 %v4690_v32, %v7803_v41  ;;  %v7240_v16 = vld [vmem:[%s9311_s15 + $0x28] sm:$0xff] }
 0x899   : > { %v4679_v52 = vpop.permute.xlu0 %4678 }
 0x89a   : > { %4748 = vmatprep.subr.mxu0 %v4693_v8  ;;  %v4681_v7 = vpop.permute.xlu1 %4680 }
 0x89b   : > { %v4682_v20 = vsel %vm728_vm3, %v4679_v52, %v4681_v7  ;;  %v4683_v11 = vsel %vm728_vm3, %v4681_v7, %v4679_v52  ;;  %4749 = vmatpush1.msra.mxu0 %v4692_v36 }
 0x89c   : > { %v4684_v60 = vmul.f32 %v4683_v11, %v7797_v39  ;;  %v4685_v23 = vmul.f32 %v4682_v20, %v7807_v42  ;;  %7232 = vmatmul.mubr.msk.f32.vlgmr.msra.gmra.mrb[6].mxu0 %vm1121_vm12, %v7231_v57  ;;  %v7242_v11 = vld [vmem:[%s9311_s15 + $0x30] sm:$0xff] }
 0x89d   : > { %v4695_v12 = vpop.permute.xlu0 %4694  ;;  %4886 = vmatprep.mubr.f32.mxu0 %v7541_v4 }
 0x89e   : > { %4822 = vmatprep.subr.mxu0 %v4685_v23  ;;  %v4697_v55 = vpop.permute.xlu1 %4696 }
 0x89f   : > { %v4698_v0 = vsel %vm768_vm5, %v4695_v12, %v4697_v55  ;;  %4823 = vmatpush1.msra.mxu0 %v4684_v60  ;;  %v4699_v2 = vsel %vm768_vm5, %v4697_v55, %v4695_v12 }
 0x8a0   : > { %v4701_v13 = vmul.f32 %v4698_v0, %v7813_v44  ;;  %v4700_v9 = vmul.f32 %v4699_v2, %v7810_v43 }
 0x8a1   : > { %v4703_v56 = vpop.permute.xlu0 %4702 }
 0x8a2   : > { %4898 = vmatprep.subr.mxu0 %v4701_v13  ;;  %v4705_v15 = vpop.permute.xlu1 %4704  ;;  %v7244_v13 = vld [vmem:[%s9311_s15 + $0x38] sm:$0xff] }
 0x8a3   : > { %v4706_v50 = vsel %vm788_vm7, %v4703_v56, %v4705_v15  ;;  %v4707_v59 = vsel %vm788_vm7, %v4705_v15, %v4703_v56 }
 0x8a4   : > { %v4709_v51 = vmul.f32 %v4706_v50, %v7833_v54  ;;  %7233 = vmatmul.mubr.msk.f32.vlgmr.msra.gmra.mrb[6].mxu0 %vm1121_vm12, %v4742_v24  ;;  %v4708_v34 = vmul.f32 %v4707_v59, %v7830_v53  ;;  %v7246_v59 = vld [vmem:[%s9311_s15 + $0x40] sm:$0xff] }
 0x8a5   : > { %4899 = vmatpush1.msra.mxu0 %v4700_v9  ;;  %4962 = vmatprep.mubr.f32.mxu0 %v7541_v4  ;;  %v4711_v14 = vpop.permute.xlu0 %4710 }
 0x8a6   : > { %4976 = vmatprep.subr.mxu0 %v4709_v51  ;;  %v4713_v1 = vpop.permute.xlu1 %4712 }
 0x8a7   : > { %v4715_v6 = vsel %vm808_vm8, %v4713_v1, %v4711_v14  ;;  %v4714_v22 = vsel %vm808_vm8, %v4711_v14, %v4713_v1 }
 0x8a8   : > { %v4717_v21 = vmul.f32 %v4715_v6, %v7863_v18 }
 0x8a9   : > { %v4719_v47 = vpop.permute.xlu0 %4718 }
 0x8aa   : > { %v4721_v29 = vpop.permute.xlu1 %4720 }
 0x8ab   : > { %v4723_v31 = vsel %vm828_vm9, %v4721_v29, %v4719_v47  ;;  %v4722_v61 = vsel %vm828_vm9, %v4719_v47, %v4721_v29 }
 0x8ac   : > { %7235 = vmatmul.mubr.msk.f32.vlgmr.msra.gmra.mrb[6].mxu0 %vm1121_vm12, %v7234_v35  ;;  %v4725_v46 = vmul.f32 %v4723_v31, %v7874_v28  ;;  %v4724_v36 = vmul.f32 %v4722_v61, %v7871_v27  ;;  %v7249_v31 = vld [vmem:[%s9312_s16 + $0x8] sm:$0xff] }
 0x8ad   : > { %4977 = vmatpush1.msra.mxu0 %v4708_v34  ;;  %5040 = vmatprep.mubr.f32.mxu0 %v7541_v4 }
 0x8ae   : > { %5054 = vmatprep.subr.mxu0 %v8902_v19  ;;  %v4716_v19 = vmul.f32 %v4714_v22, %v7859_v17  ;;  %v4729_v37 = vpop.permute.xlu1 %4728 }
 0x8b2   : > { %v4737_v57 = vpop.permute.xlu1 %4736 }
 0x8b4   : > { %7237 = vmatmul.mubr.msk.f32.vlgmr.msra.gmra.mrb[6].mxu0 %vm1121_vm12, %v7236_v30 }
 0x8b5   : > { %5055 = vmatpush1.msra.mxu0 %v8900_v45  ;;  %5118 = vmatprep.mubr.f32.mxu0 %v7541_v4  ;;  %v4727_v45 = vpop.permute.xlu0 %4726 }
 0x8b6   : > { %5132 = vmatprep.subr.mxu0 %v4717_v21  ;;  %v4731_v32 = vsel %vm848_vm10, %v4729_v37, %v4727_v45  ;;  %v4730_v7 = vsel %vm848_vm10, %v4727_v45, %v4729_v37  ;;  %v5442_v55 = vpop.permute.xlu1 %5441  ;;  %v5491_v21 = vld [vmem:[%s9312_s16] sm:$0xff]  ;;  %v5463_v45 = vmul.f32 %v8091_v63, %v7830_v53  ;;  %v5466_v37 = vmul.f32 %v8083_v58, %v7863_v18 }
 0x8b7   : > { %v4733_v8 = vmul.f32 %v4731_v32, %v7901_v5  ;;  %v4732_v60 = vmul.f32 %v4730_v7, %v7898_v3 }
 0x8b9   : > { %v4735_v52 = vpop.permute.xlu0 %4734 }
 0x8ba   : > { %v4739_v20 = vsel %vm9386_vm13, %v4737_v57, %v4735_v52  ;;  %v4738_v0 = vsel %vm9387_vm15, %v4735_v52, %v4737_v57  ;;  %v5450_v9 = vpop.permute.xlu1 %5449 }
 0x8bb   : > { %v4741_v23 = vmul.f32 %v4739_v20, %v7921_v38  ;;  %v4740_v56 = vmul.f32 %v4738_v0, %v7918_v10 }
 0x8bc   : > { %7239 = vmatmul.mubr.msk.f32.vlgmr.msra.gmra.mrb[6].mxu0 %vm1121_vm12, %v7238_v25 }
 0x8bd   : > { %5133 = vmatpush1.msra.mxu0 %v4716_v19  ;;  %5196 = vmatprep.mubr.f32.mxu0 %v7541_v4  ;;  %v5440_v12 = vpop.permute.xlu0 %5439  ;;  %v5464_v19 = vmul.f32 %v8087_v62, %v7833_v54  ;;  %v7253_v62 = vld [vmem:[%s9312_s16 + $0x18] sm:$0xff] }
 0x8be   : > { %5210 = vmatprep.subr.mxu0 %v4725_v46  ;;  %v5443_v2 = vsel %vm728_vm3, %v5440_v12, %v5442_v55  ;;  %v5444_v50 = vsel %vm728_vm3, %v5442_v55, %v5440_v12  ;;  %v5458_v1 = vpop.permute.xlu1 %5457  ;;  %v7251_v46 = vld [vmem:[%s9312_s16 + $0x10] sm:$0xff] }
 0x8bf   : > { %v5446_v24 = vmul.f32 %v5443_v2, %v7807_v42  ;;  %v5445_v35 = vmul.f32 %v5444_v50, %v7797_v39  ;;  %v7259_v12 = vld [vmem:[%s9312_s16 + $0x30] sm:$0xff] }
 0x8c1   : > { %v5448_v15 = vpop.permute.xlu0 %5447 }
 0x8c2   : > { %v5451_v51 = vsel %vm748_vm4, %v5448_v15, %v5450_v9  ;;  %v5452_v6 = vsel %vm748_vm4, %v5450_v9, %v5448_v15  ;;  %v5470_v61 = vpop.permute.xlu1 %5469 }
 0x8c3   : > { %v5454_v34 = vmul.f32 %v5451_v51, %v7803_v41  ;;  %v5453_v47 = vmul.f32 %v5452_v6, %v7800_v40 }
 0x8c4   : > { %7241 = vmatmul.mubr.msk.f32.vlgmr.msra.gmra.mrb[6].mxu0 %vm1121_vm12, %v7240_v16  ;;  %v5465_v16 = vmul.f32 %v8079_v26, %v7859_v17  ;;  %v7257_v26 = vld [vmem:[%s9312_s16 + $0x28] sm:$0xff] }
 0x8c5   : > { %5211 = vmatpush1.msra.mxu0 %v4724_v36  ;;  %5274 = vmatprep.mubr.f32.mxu0 %v7541_v4  ;;  %v5456_v14 = vpop.permute.xlu0 %5455 }
 0x8c6   : > { %5288 = vmatprep.subr.mxu0 %v4733_v8  ;;  %v5459_v30 = vsel %vm768_vm5, %v5456_v14, %v5458_v1  ;;  %v5460_v22 = vsel %vm768_vm5, %v5458_v1, %v5456_v14  ;;  %v5478_v58 = vpop.permute.xlu1 %5477  ;;  %v6201_v14 = vld [vmem:[%s9315_s19] sm:$0xff] }
 0x8c7   : > { %v5462_v29 = vmul.f32 %v5459_v30, %v7813_v44  ;;  %v5461_v25 = vmul.f32 %v5460_v22, %v7810_v43  ;;  %v6973_v1 = vld [vmem:[%s9317_s21] sm:$0x7] }
 0x8c9   : > { %v5468_v63 = vpop.permute.xlu0 %5467 }
 0x8ca   : > { %v5472_v32 = vsel %vm828_vm9, %v5470_v61, %v5468_v63  ;;  %v5471_v8 = vsel %vm828_vm9, %v5468_v63, %v5470_v61 }
 0x8cb   : > { %v5474_v36 = vmul.f32 %v5472_v32, %v7874_v28  ;;  %v5473_v57 = vmul.f32 %v5471_v8, %v7871_v27 }
 0x8cc   : > { %7243 = vmatmul.mubr.msk.f32.vlgmr.msra.gmra.mrb[6].mxu0 %vm1121_vm12, %v7242_v11  ;;  %v5486_v11 = vpop.permute.xlu1 %5485 }
 0x8cd   : > { %5289 = vmatpush1.msra.mxu0 %v4732_v60  ;;  %5352 = vmatprep.mubr.f32.mxu0 %v7541_v4 }
 0x8ce   : > { %5366 = vmatprep.subr.mxu0 %v4741_v23 }
 0x8d4   : > { %7245 = vmatmul.mubr.msk.f32.vlgmr.msra.gmra.mrb[6].mxu0 %vm1121_vm12, %v7244_v13  ;;  %v7261_v13 = vld [vmem:[%s9312_s16 + $0x38] sm:$0xff] }
 0x8d5   : > { %5367 = vmatpush1.msra.mxu0 %v4740_v56  ;;  %5430 = vmatprep.mubr.f32.mxu0 %v7541_v4 }
 0x8d6   : > { %5495 = vmatprep.subr.mxu0 %v5446_v24  ;;  %v7263_v24 = vld [vmem:[%s9312_s16 + $0x40] sm:$0xff] }
 0x8dc   : > { %7247 = vmatmul.mubr.msk.f32.vlgmr.msra.gmra.mrb[6].mxu0 %vm1121_vm12, %v7246_v59 }
 0x8dd   : > { %5496 = vmatpush1.msra.mxu0 %v5445_v35  ;;  %5559 = vmatprep.mubr.f32.mxu0 %v7541_v4 }
 0x8de   : > { %5573 = vmatprep.subr.mxu0 %v5454_v34 }
 0x8e4   : > { %7248 = vmatmul.mubr.msk.f32.vlgmr.msra.gmra.mrb[6].mxu0 %vm1121_vm12, %v5491_v21 }
 0x8e5   : > { %5574 = vmatpush1.msra.mxu0 %v5453_v47  ;;  %5637 = vmatprep.mubr.f32.mxu0 %v7541_v4 }
 0x8e6   : > { %5651 = vmatprep.subr.mxu0 %v5462_v29 }
 0x8ec   : > { %7250 = vmatmul.mubr.msk.f32.vlgmr.msra.gmra.mrb[6].mxu0 %vm1121_vm12, %v7249_v31 }
 0x8ed   : > { %5652 = vmatpush1.msra.mxu0 %v5461_v25  ;;  %5715 = vmatprep.mubr.f32.mxu0 %v7541_v4  ;;  %v7265_v25 = vld [vmem:[%s9314_s18 + $0x8] sm:$0xff] }
 0x8ee   : > { %5729 = vmatprep.subr.mxu0 %v5464_v19 }
 0x8f4   : > { %7252 = vmatmul.mubr.msk.f32.vlgmr.msra.gmra.mrb[6].mxu0 %vm1121_vm12, %v7251_v46 }
 0x8f5   : > { %5730 = vmatpush1.msra.mxu0 %v5463_v45  ;;  %5793 = vmatprep.mubr.f32.mxu0 %v7541_v4 }
 0x8f6   : > { %5807 = vmatprep.subr.mxu0 %v8060_v49  ;;  %v7255_v49 = vld [vmem:[%s9312_s16 + $0x20] sm:$0xff] }
 0x8fc   : > { %7254 = vmatmul.mubr.msk.f32.vlgmr.msra.gmra.mrb[6].mxu0 %vm1121_vm12, %v7253_v62 }
 0x8fd   : > { %5808 = vmatpush1.msra.mxu0 %v8058_v48  ;;  %5871 = vmatprep.mubr.f32.mxu0 %v7541_v4  ;;  %v5476_v48 = vpop.permute.xlu0 %5475 }
 0x8fe   : > { %5885 = vmatprep.subr.mxu0 %v5466_v37  ;;  %v5480_v52 = vsel %vm848_vm10, %v5478_v58, %v5476_v48  ;;  %v5479_v60 = vsel %vm848_vm10, %v5476_v48, %v5478_v58  ;;  %v7268_v58 = vld [vmem:[%s9314_s18 + $0x10] sm:$0xff] }
 0x8ff   : > { %v5482_v7 = vmul.f32 %v5480_v52, %v7901_v5  ;;  %v5481_v55 = vmul.f32 %v5479_v60, %v7898_v3  ;;  %v7272_v60 = vld [vmem:[%s9314_s18 + $0x20] sm:$0xff] }
 0x901   : > { %v5484_v20 = vpop.permute.xlu0 %5483 }
 0x902   : > { %v5488_v23 = vsel %vm9388_vm14, %v5486_v11, %v5484_v20  ;;  %v5487_v2 = vsel %vm9389_vm2, %v5484_v20, %v5486_v11 }
 0x903   : > { %v5490_v0 = vmul.f32 %v5488_v23, %v7921_v38  ;;  %v5489_v56 = vmul.f32 %v5487_v2, %v7918_v10 }
 0x904   : > { %7256 = vmatmul.mubr.msk.f32.vlgmr.msra.gmra.mrb[6].mxu0 %vm1121_vm12, %v7255_v49 }
 0x905   : > { %5886 = vmatpush1.msra.mxu0 %v5465_v16  ;;  %5949 = vmatprep.mubr.f32.mxu0 %v7541_v4  ;;  %v6195_v15 = vpop.permute.xlu0 %6194 }
 0x906   : > { %5963 = vmatprep.subr.mxu0 %v5474_v36 }
 0x90c   : > { %7258 = vmatmul.mubr.msk.f32.vlgmr.msra.gmra.mrb[6].mxu0 %vm1121_vm12, %v7257_v26  ;;  %v7270_v26 = vld [vmem:[%s9314_s18 + $0x18] sm:$0xff] }
 0x90d   : > { %5964 = vmatpush1.msra.mxu0 %v5473_v57  ;;  %6027 = vmatprep.mubr.f32.mxu0 %v7541_v4 }
 0x90e   : > { %6041 = vmatprep.subr.mxu0 %v5482_v7 }
 0x914   : > { %7260 = vmatmul.mubr.msk.f32.vlgmr.msra.gmra.mrb[6].mxu0 %vm1121_vm12, %v7259_v12 }
 0x915   : > { %6042 = vmatpush1.msra.mxu0 %v5481_v55  ;;  %6105 = vmatprep.mubr.f32.mxu0 %v7541_v4 }
 0x916   : > { %6119 = vmatprep.subr.mxu0 %v5490_v0 }
 0x91c   : > { %7262 = vmatmul.mubr.msk.f32.vlgmr.msra.gmra.mrb[6].mxu0 %vm1121_vm12, %v7261_v13 }
 0x91d   : > { %6120 = vmatpush1.msra.mxu0 %v5489_v56  ;;  %6183 = vmatprep.mubr.f32.mxu0 %v7541_v4 }
 0x924   : > { %7264 = vmatmul.mubr.msk.f32.vlgmr.msra.gmra.mrb[6].mxu0 %vm1121_vm12, %v7263_v24 }
 0x9f7   : > { %v6185_v9 = vpop.f32.mrb[6].mxu0 }
 0x9f8   : > { %v6197_v50 = vadd.f32 %v6195_v15, %v6185_v9  ;;  %v6187_v51 = vpop.f32.mrb[7].mxu0 }
 0x9f9   : > { %v6198_v59 = vadd.f32 %v6195_v15, %v6187_v51 }
 0x9fa   : > { %v9148_v35 = vmax.f32 %v6197_v50, 0.0 }
 0x9fb   : > { %v9150_v34 = vmax.f32 %v6198_v59, 0.0  ;;  %v7278_v59 = vld [vmem:[%s9314_s18 + $0x38] sm:$0xff] }
 0x9fc   : > { %6210 = vrot.lane.b32.xlu1 %v9148_v35, %s9379_s26 }
 0x9fd   : > { %6212 = vrot.lane.b32.xlu0 %v9150_v34, %s9379_s26 }
 0xa00   : > { %6202 = vrot.lane.b32.xlu1 %v9148_v35, %s9380_s30 }
 0xa01   : > { %6204 = vrot.lane.b32.xlu0 %v9150_v34, %s9380_s30 }
 0xa04   : > { %6218 = vrot.lane.b32.xlu1 %v9148_v35, %s9381_s2 }
 0xa05   : > { %6220 = vrot.lane.b32.xlu0 %v9150_v34, %s9381_s2 }
 0xa08   : > { %6226 = vrot.lane.b32.xlu1 %v9148_v35, %s9363_s0 }
 0xa09   : > { %6228 = vrot.lane.b32.xlu0 %v9150_v34, %s9363_s0  ;;  %s7285_s0 = sshll.u32 %s9393_s28, 3 }
 0xa0a   : > { %s680_s30 = scalar_lea.vmem %s9318_s22, %s7285_s0 }
 0xa0c   : > { %6234 = vrot.lane.b32.xlu1 %v9148_v35, %s9364_s6 }
 0xa0d   : > { %6236 = vrot.lane.b32.xlu0 %v9150_v34, %s9364_s6 }
 0xa10   : > { %6242 = vrot.lane.b32.xlu1 %v9148_v35, %s9365_s1 }
 0xa11   : > { %6244 = vrot.lane.b32.xlu0 %v9150_v34, %s9365_s1 }
 0xa14   : > { %6250 = vrot.lane.b32.xlu1 %v9148_v35, %s9366_s5 }
 0xa15   : > { %6252 = vrot.lane.b32.xlu0 %v9150_v34, %s9366_s5 }
 0xa18   : > { %6258 = vrot.lane.b32.xlu1 %v9148_v35, %s9367_s23 }
 0xa19   : > { %6260 = vrot.lane.b32.xlu0 %v9150_v34, %s9367_s23 }
 0xa1c   : > { %6965 = vperm.xlu1 %7531, %v6201_v14  }
 0xa1d   : > { %6976 = vperm.xlu0 %7530, %v6973_v1  }
 0xa6e   : > { %v6211_v6 = vpop.permute.xlu1 %6210 }
 0xa6f   : > { %v6213_v30 = vpop.permute.xlu0 %6212 }
 0xa70   : > { %v6214_v21 = vsel %vm748_vm4, %v6211_v6, %v6213_v30  ;;  %v6215_v47 = vsel %vm748_vm4, %v6213_v30, %v6211_v6  ;;  %vm9391_vm4 = vmmov %vm9383_vm0  ;;  %v6972_v30 = vld [vmem:[%s9316_s20] sm:$0x7] }
 0xa71   : > { %v6216_v29 = vmul.f32 %v6215_v47, %v7800_v40  ;;  %v6217_v22 = vmul.f32 %v6214_v21, %v7803_v41 }
 0xa72   : > { %v6203_v31 = vpop.permute.xlu1 %6202 }
 0xa73   : > { %6272 = vmatprep.subr.mxu1 %v6217_v22  ;;  %v6205_v19 = vpop.permute.xlu0 %6204 }
 0xa74   : > { %v6206_v46 = vsel %vm728_vm3, %v6203_v31, %v6205_v19  ;;  %v6207_v45 = vsel %vm728_vm3, %v6205_v19, %v6203_v31  ;;  %6273 = vmatpush1.msra.mxu1 %v6216_v29  ;;  %vm9390_vm3 = vmmov %vm9383_vm0 }
 0xa75   : > { %v6208_v62 = vmul.f32 %v6207_v45, %v7797_v39  ;;  %v6209_v40 = vmul.f32 %v6206_v46, %v7807_v42  ;;  %7266 = vmatmul.mubr.msk.f32.vlgmr.msra.gmra.mrb[10].mxu1 %vm1121_vm12, %v7265_v25  ;;  %v6266_v39 = vld [vmem:[%s9314_s18] sm:$0xff] }
 0xa76   : > { %v6219_v41 = vpop.permute.xlu1 %6218  ;;  %6410 = vmatprep.mubr.f32.mxu1 %v7541_v4 }
 0xa77   : > { %6346 = vmatprep.subr.mxu1 %v6209_v40  ;;  %v6221_v37 = vpop.permute.xlu0 %6220 }
 0xa78   : > { %v6222_v63 = vsel %vm768_vm5, %v6219_v41, %v6221_v37  ;;  %6347 = vmatpush1.msra.mxu1 %v6208_v62  ;;  %v6223_v61 = vsel %vm768_vm5, %v6221_v37, %v6219_v41 }
 0xa79   : > { %v6225_v32 = vmul.f32 %v6222_v63, %v7813_v44  ;;  %v6224_v16 = vmul.f32 %v6223_v61, %v7810_v43 }
 0xa7a   : > { %v6227_v49 = vpop.permute.xlu1 %6226 }
 0xa7b   : > { %6422 = vmatprep.subr.mxu1 %v6225_v32  ;;  %v6229_v42 = vpop.permute.xlu0 %6228 }
 0xa7c   : > { %v6230_v36 = vsel %vm788_vm7, %v6227_v49, %v6229_v42  ;;  %v6231_v44 = vsel %vm788_vm7, %v6229_v42, %v6227_v49 }
 0xa7d   : > { %v6233_v48 = vmul.f32 %v6230_v36, %v7833_v54  ;;  %7267 = vmatmul.mubr.msk.f32.vlgmr.msra.gmra.mrb[10].mxu1 %vm1121_vm12, %v6266_v39  ;;  %v6232_v43 = vmul.f32 %v6231_v44, %v7830_v53 }
 0xa7e   : > { %6423 = vmatpush1.msra.mxu1 %v6224_v16  ;;  %6486 = vmatprep.mubr.f32.mxu1 %v7541_v4  ;;  %v6235_v54 = vpop.permute.xlu1 %6234 }
 0xa7f   : > { %6500 = vmatprep.subr.mxu1 %v6233_v48  ;;  %v6237_v8 = vpop.permute.xlu0 %6236 }
 0xa80   : > { %v6239_v52 = vsel %vm808_vm8, %v6237_v8, %v6235_v54  ;;  %v6238_v20 = vsel %vm808_vm8, %v6235_v54, %v6237_v8 }
 0xa81   : > { %v6241_v57 = vmul.f32 %v6239_v52, %v7863_v18  ;;  %v6240_v18 = vmul.f32 %v6238_v20, %v7859_v17  ;;  %v7274_v17 = vld [vmem:[%s9314_s18 + $0x28] sm:$0xff] }
 0xa82   : > { %v6243_v53 = vpop.permute.xlu1 %6242 }
 0xa83   : > { %v6245_v7 = vpop.permute.xlu0 %6244 }
 0xa84   : > { %v6247_v11 = vsel %vm828_vm9, %v6245_v7, %v6243_v53  ;;  %v6246_v0 = vsel %vm828_vm9, %v6243_v53, %v6245_v7 }
 0xa85   : > { %7269 = vmatmul.mubr.msk.f32.vlgmr.msra.gmra.mrb[10].mxu1 %vm1121_vm12, %v7268_v58  ;;  %v6249_v23 = vmul.f32 %v6247_v11, %v7874_v28  ;;  %v6248_v28 = vmul.f32 %v6246_v0, %v7871_v27  ;;  %v7276_v27 = vld [vmem:[%s9314_s18 + $0x30] sm:$0xff] }
 0xa86   : > { %6501 = vmatpush1.msra.mxu1 %v6232_v43  ;;  %6564 = vmatprep.mubr.f32.mxu1 %v7541_v4  ;;  %v6251_v12 = vpop.permute.xlu1 %6250 }
 0xa87   : > { %6578 = vmatprep.subr.mxu1 %v9150_v34  ;;  %v6253_v55 = vpop.permute.xlu0 %6252 }
 0xa88   : > { %v6255_v2 = vsel %vm848_vm10, %v6253_v55, %v6251_v12  ;;  %v6254_v15 = vsel %vm848_vm10, %v6251_v12, %v6253_v55 }
 0xa89   : > { %v6257_v13 = vmul.f32 %v6255_v2, %v7901_v5  ;;  %v6256_v5 = vmul.f32 %v6254_v15, %v7898_v3  ;;  %v7280_v3 = vld [vmem:[%s9314_s18 + $0x40] sm:$0xff] }
 0xa8a   : > { %v6259_v56 = vpop.permute.xlu1 %6258 }
 0xa8b   : > { %v6261_v24 = vpop.permute.xlu0 %6260 }
 0xa8c   : > { %v6263_v9 = vsel %vm9390_vm3, %v6261_v24, %v6259_v56  ;;  %v6262_v51 = vsel %vm9391_vm4, %v6259_v56, %v6261_v24 }
 0xa8d   : > { %7271 = vmatmul.mubr.msk.f32.vlgmr.msra.gmra.mrb[10].mxu1 %vm1121_vm12, %v7270_v26  ;;  %v6265_v50 = vmul.f32 %v6263_v9, %v7921_v38 }
 0xa8e   : > { %6579 = vmatpush1.msra.mxu1 %v9148_v35  ;;  %6642 = vmatprep.mubr.f32.mxu1 %v7541_v4  ;;  %v6264_v35 = vmul.f32 %v6262_v51, %v7918_v10 }
 0xa8f   : > { %6656 = vmatprep.subr.mxu1 %v6241_v57 }
 0xa95   : > { %7273 = vmatmul.mubr.msk.f32.vlgmr.msra.gmra.mrb[10].mxu1 %vm1121_vm12, %v7272_v60 }
 0xa96   : > { %6657 = vmatpush1.msra.mxu1 %v6240_v18  ;;  %6720 = vmatprep.mubr.f32.mxu1 %v7541_v4 }
 0xa97   : > { %6734 = vmatprep.subr.mxu1 %v6249_v23 }
 0xa9b   : > { %v6966_v33 = vpop.permute.xlu1 %6965 }
 0xa9c   : > { %v6977_v21 = vpop.permute.xlu0 %6976 }
 0xa9d   : > { %7275 = vmatmul.mubr.msk.f32.vlgmr.msra.gmra.mrb[10].mxu1 %vm1121_vm12, %v7274_v17 }
 0xa9e   : > { %6735 = vmatpush1.msra.mxu1 %v6248_v28  ;;  %6798 = vmatprep.mubr.f32.mxu1 %v7541_v4 }
 0xa9f   : > { %6812 = vmatprep.subr.mxu1 %v6257_v13 }
 0xaa5   : > { %7277 = vmatmul.mubr.msk.f32.vlgmr.msra.gmra.mrb[10].mxu1 %vm1121_vm12, %v7276_v27 }
 0xaa6   : > { %6813 = vmatpush1.msra.mxu1 %v6256_v5  ;;  %6876 = vmatprep.mubr.f32.mxu1 %v7541_v4 }
 0xaa7   : > { %6890 = vmatprep.subr.mxu1 %v6265_v50 }
 0xaad   : > { %7279 = vmatmul.mubr.msk.f32.vlgmr.msra.gmra.mrb[10].mxu1 %vm1121_vm12, %v7278_v59 }
 0xaae   : > { %6891 = vmatpush1.msra.mxu1 %v6264_v35  ;;  %6954 = vmatprep.mubr.f32.mxu1 %v7541_v4 }
 0xab5   : > { %7281 = vmatmul.mubr.msk.f32.vlgmr.msra.gmra.mrb[10].mxu1 %vm1121_vm12, %v7280_v3 }
 0xab6   : > { %7046 = vmatprep.mubr.f32.mxu1 %v7541_v4 }
 0xb88   : > { %v6956_v38 = vpop.f32.mrb[10].mxu1 }
 0xb89   : > { %v6968_v34 = vadd.f32 %v6966_v33, %v6956_v38  ;;  %v6958_v14 = vpop.f32.mrb[11].mxu1 }
 0xb8a   : > { %v6969_v1 = vadd.f32 %v6966_v33, %v6958_v14 }
 0xb8b   : > { %v6970_v6 = vmax.f32 %v6968_v34, 0.0 }
 0xb8c   : > { %v6971_v10 = vmax.f32 %v6969_v1, 0.0 }
 0xb8e   : > { %6982 = vmatprep.subr.mxu1 %v6971_v10 }
 0xb8f   : > { %6983 = vmatpush1.msra.mxu1 %v6970_v6 }
 0xb90   : > { %7282 = vmatmul.mubr.msk.f32.vlgmr.msra.gmra.mrb[12].mxu1 %vm1121_vm12, %v6972_v30 }
 0xc63   : > { %v7048_v47 = vpop.f32.mrb[12].mxu1 }
 0xc64   : > { %v7049_v29 = vadd.f32 %v7048_v47, %v6977_v21  ;;  %v7050_v4 = vpop.f32.mrb[13].mxu1 }
 0xc65   : > { %v7051_v22 = vadd.f32 %v7050_v4, %v6977_v21 }
 0xc67   : > { %v7055_v31 = vcombine.low %v7049_v29, %v7051_v22 }
 0xc69   : > { %7057 = vst [vmem:[%s680_s30] sm:$0x77] %v7055_v31 }
 0xc6a PF: > { %s32_s3 = sadd.s32 1, %s7538_s3  }
 0xc6b   : > { %p29_p4 = scmp.ge.s32.totalorder %s32_s3, 4  }
 0xc6d   :  { %31 = sbr.rel (!%p29_p4) target bundleno = 8 (0x8), region = 202 }

// kernel: rnn_unet_config1_forward.3
= control target key start
LH: loop header
LB: loop body
LE: loop exit
PB: predicated region body
PF: predicated region fallthrough
CT: control target
= control target key end

     0   :  { %s15228_s21 = smov 0   ;;  %s17509_s0 = inlined_call_operand.vmem [shape: f32[2,3,256], index: 0, kind: input, shape index: {}]   ;;  %s17510_s1 = inlined_call_operand.vmem [shape: s32[1,256], index: 1, kind: input, shape index: {}]   ;;  %s17511_s2 = inlined_call_operand.vmem [shape: s32[1,256], index: 2, kind: input, shape index: {}]   ;;  %s17512_s3 = inlined_call_operand.vmem [shape: f32[4,9,3,3], index: 3, kind: input, shape index: {}]   ;;  %s17513_s4 = inlined_call_operand.vmem [shape: f32[4,9,3,3], index: 4, kind: input, shape index: {}]   ;;  %s17514_s5 = inlined_call_operand.vmem [shape: f32[4,3,1], index: 5, kind: input, shape index: {}]   ;;  %s17515_s6 = inlined_call_operand.vmem [shape: f32[4,9,3,3], index: 6, kind: input, shape index: {}]   ;;  %s17516_s7 = inlined_call_operand.vmem [shape: f32[4,9,3,3], index: 7, kind: input, shape index: {}]   ;;  %s17517_s8 = inlined_call_operand.vmem [shape: f32[4,3,1], index: 8, kind: input, shape index: {}]   ;;  %s17518_s9 = inlined_call_operand.vmem [shape: f32[9,3,3], index: 9, kind: input, shape index: {}]   ;;  %s17519_s10 = inlined_call_operand.vmem [shape: f32[9,3,3], index: 10, kind: input, shape index: {}]   ;;  %s17520_s11 = inlined_call_operand.vmem [shape: f32[3,1], index: 11, kind: input, shape index: {}]   ;;  %s17521_s12 = inlined_call_operand.vmem [shape: f32[2,3,256], index: 12, kind: output, shape index: {}]  }
   0x1 LB: > { %s15234_s22 = sadd.s32 4294967295, %s15150_s21   ;;  %p14070_p0 = scmp.ge.s32.totalorder %s15150_s21, 1  ;;  %s15150_s21 = sphi %s15228_s21, %s22_s21  }
   0x2   : > { %p352_p1 = scmp.lt.s32.totalorder %s15150_s21, 3 }
   0x4   : > { %p353_p2 = pnand %p14070_p0, %p352_p1 }
   0x5   : > { %p389_p3 = scmp.lt.s32.totalorder (!%p353_p2), %s15234_s22, 1  ;;  %p14073_p4 = scmp.ne.s32.totalorder (!%p353_p2), %s15234_s22, 0 }
   0x6   : > { %356 = sbr.rel (%p353_p2) target bundleno = 1488 (0x5d0), region = 68 }
   0xd   : > { %s390_s23 = scalar_select %p389_p3, %s15234_s22, 1 }
   0xe   : > { %397 = sbr.rel (%p14073_p4) target bundleno = 21 (0x15), region = 72  ;;  %v15152_v0 = vmov (!%p14073_p4), 0.0  }
   0xf   : > { %s14740_s24 = sshll.u32 %s390_s23, 3  ;;  %398 = vst [vmem:[#allocation2] sm:$0x77] (!%p14073_p4), %v15152_v0  ;;  %399 = vst [vmem:[#allocation3] sm:$0x77] (!%p14073_p4), %v15152_v0 }
  0x10   : > { %s15243_s27 = scalar_lea.vmem %s17521_s12, %s14740_s24  ;;  %400 = vst [vmem:[#allocation4] sm:$0x77] (!%p14073_p4), %v15152_v0  ;;  %401 = vst [vmem:[#allocation5] sm:$0x77] (!%p14073_p4), %v15152_v0 }
  0x15 PF: > { %s14741_s28 = sshll.u32 %s15234_s22, 3  ;;  %s15153_s29 = smov 17   ;;  %vm664_vm0 = vcmask 1042432   ;;  %v15154_v4 = vmov 0.0   ;;  %vm660_vm1 = vcmask 23552   ;;  %v432_v13 = vlaneseq }
  0x16   : > { %v15246_v1 = vld [vmem:[#allocation2] sm:$0x77]  ;;  %s15254_s14 = scalar_lea.vmem %s17509_s0, %s14741_s28  ;;  %735 = vmatprep.mubr.f32.mxu1 %v15154_v4  ;;  %1479 = vmatprep.mubr.f32.mxu0 %v15154_v4  ;;  %s15155_s15 = smov 16   ;;  %v14112_v6 = vld [vmem:[%s17513_s4 + $0x10] sm:$0x7] }
  0x17   : > { %594 = vrot.lane.b32.xlu0 %v15246_v1, %s15153_s29  ;;  %v15258_v2 = vcombine.high %v15246_v1, %v15246_v1  ;;  %v15261_v3 = vld [vmem:[%s15254_s14] sm:$0x77]  ;;  %s15156_s16 = smov 15   ;;  %s15157_s19 = smov 1   ;;  %v15340_v7 = vld [vmem:[#allocation4] sm:$0x77] }
  0x18   : > { %428 = vrot.lane.b32.xlu1 %v15261_v3, %s15153_s29  ;;  %v15269_v5 = vcombine.high %v15261_v3, %v15261_v3  ;;  %s15158_s20 = smov 127   ;;  %s15159_s23 = smov 113   ;;  %v15344_v8 = vcombine.high %v15340_v7, %v15340_v7  ;;  %v402_v10 = vld [vmem:[%s17510_s1] sm:$0x3]  ;;  %v439_v14 = vshrl.u32 %v432_v13, 7  ;;  %v15386_v17 = vand.u32 127, %v432_v13 }
  0x19   : > { %14113 = vmatprep.subr.msk.mxu0 %vm664_vm0, %v15258_v2  ;;  %s17524_s24 = smov 112   ;;  %s17522_s25 = smov 111   ;;  %v15365_v11 = vld [vmem:[%s17511_s2] sm:$0x3]  ;;  %vm406_vm3 = vcmp.ge.s32.totalorder %v402_v10, 1  ;;  %vm409_vm6 = vcmp.lt.s32.totalorder %v402_v10, 15 }
  0x1a   : > { %14114 = vmatpush1.msk.msra.mxu0 %vm664_vm0, %v15246_v1  ;;  %s420_s26 = ssub.s32 1, %s15234_s22  ;;  %vm404_vm2 = vcmp.ge.s32.totalorder %v15365_v11, 1  ;;  %v15380_v16 = vsel %vm406_vm3, 1.0, %v15154_v4  ;;  %v15388_v18 = vsub.s32 0, %v439_v14  ;;  %v15390_v19 = vsub.s32 1, %v439_v14  ;;  %s17527_s13 = smov 111  }
  0x1b   : > { %596 = vrot.lane.b32.xlu0 %v15258_v2, %s15153_s29  ;;  %14115 = vmatmul.mubr.msk.f32.vlgmr.msra.gmra.mrb[0].mxu0 %vm660_vm1, %v14112_v6  ;;  %s14742_s28 = sshll.u32 %s420_s26, 3  ;;  %v405_v15 = vsel %vm404_vm2, 1.0, %v15154_v4  ;;  %vm434_vm4 = vcmp.lt.s32.totalorder %v15386_v17, 17  ;;  %v659_v33 = vld [vmem:[%s17513_s4] sm:$0x7]  ;;  %vm454_vm5 = vcmp.lt.s32.totalorder %v15386_v17, 16 }
  0x1c   : > { %430 = vrot.lane.b32.xlu1 %v15269_v5, %s15153_s29  ;;  %1565 = vmatprep.mubr.f32.mxu0 %v15154_v4  ;;  %s15354_s17 = scalar_lea.vmem %s17509_s0, %s14742_s28  ;;  %v408_v20 = vmul.f32 %v15380_v16, %v405_v15  ;;  %v15437_v37 = vrot.slane %v405_v15, %v15390_v19  ;;  %v15449_v40 = vrot.slane %v405_v15, %v15388_v18  ;;  %v15462_v44 = vsel %vm409_vm6, 1.0, %v15154_v4  ;;  %v658_v48 = vld [vmem:[%s17512_s3] sm:$0x7]  ;;  %v14084_v59 = vld [vmem:[%s17512_s3 + $0x4] sm:$0x7] }
  0x1d   : > { %v15357_v9 = vld [vmem:[%s15354_s17] sm:$0x77]  ;;  %v411_v51 = vmul.f32 %v15462_v44, %v405_v15  ;;  %vm474_vm7 = vcmp.lt.s32.totalorder %v15386_v17, 15  ;;  %vm412_vm8 = vcmp.lt.s32.totalorder %v15365_v11, 15  ;;  %vm514_vm9 = vcmp.lt.s32.totalorder %v15386_v17, 127 }
  0x1e   : > { %v15369_v12 = vcombine.high %v15357_v9, %v15357_v9  ;;  %v15399_v23 = vrot.slane %v408_v20, %v15388_v18  ;;  %v15402_v24 = vrot.slane %v408_v20, %v15390_v19  ;;  %v14088_v15 = vld [vmem:[%s17513_s4 + $0x4] sm:$0x7]  ;;  %v15553_v11 = vrot.slane %v15462_v44, %v15388_v18 }
  0x1f   : > { %450 = vrot.lane.b32.xlu0 %v15261_v3, %s15155_s15  ;;  %v15492_v54 = vrot.slane %v411_v51, %v15390_v19  ;;  %v15521_v63 = vrot.slane %v411_v51, %v15388_v18  ;;  %vm494_vm10 = vcmp.lt.s32.totalorder %v15386_v17, 1  ;;  %v14092_v51 = vld [vmem:[%s17512_s3 + $0x8] sm:$0x7]  ;;  %vm534_vm11 = vcmp.lt.s32.totalorder %v15386_v17, 113 }
  0x20   : > { %452 = vrot.lane.b32.xlu1 %v15269_v5, %s15155_s15  ;;  %vm554_vm12 = vcmp.lt.s32.totalorder %v15386_v17, 112  ;;  %vm574_vm13 = vcmp.lt.s32.totalorder %v15386_v17, 111 }
  0x23   : > { %602 = vrot.lane.b32.xlu0 %v15246_v1, %s15155_s15 }
  0x24   : > { %604 = vrot.lane.b32.xlu1 %v15258_v2, %s15155_s15 }
  0x27   : > { %470 = vrot.lane.b32.xlu0 %v15261_v3, %s15156_s16 }
  0x28   : > { %472 = vrot.lane.b32.xlu1 %v15269_v5, %s15156_s16 }
  0x2b   : > { %610 = vrot.lane.b32.xlu0 %v15246_v1, %s15156_s16 }
  0x2c   : > { %612 = vrot.lane.b32.xlu1 %v15258_v2, %s15156_s16 }
  0x2f   : > { %490 = vrot.lane.b32.xlu0 %v15261_v3, %s15157_s19 }
  0x30   : > { %492 = vrot.lane.b32.xlu1 %v15269_v5, %s15157_s19 }
  0x33   : > { %618 = vrot.lane.b32.xlu0 %v15246_v1, %s15157_s19 }
  0x34   : > { %620 = vrot.lane.b32.xlu1 %v15258_v2, %s15157_s19 }
  0x37   : > { %510 = vrot.lane.b32.xlu0 %v15261_v3, %s15158_s20 }
  0x38   : > { %512 = vrot.lane.b32.xlu1 %v15269_v5, %s15158_s20 }
  0x3b   : > { %626 = vrot.lane.b32.xlu0 %v15246_v1, %s15158_s20 }
  0x3c   : > { %628 = vrot.lane.b32.xlu1 %v15258_v2, %s15158_s20 }
  0x3f   : > { %530 = vrot.lane.b32.xlu0 %v15261_v3, %s15159_s23 }
  0x40   : > { %532 = vrot.lane.b32.xlu1 %v15269_v5, %s15159_s23 }
  0x43   : > { %634 = vrot.lane.b32.xlu0 %v15246_v1, %s15159_s23 }
  0x44   : > { %636 = vrot.lane.b32.xlu1 %v15258_v2, %s15159_s23 }
  0x47   : > { %550 = vrot.lane.b32.xlu0 %v15261_v3, %s17524_s24 }
  0x48   : > { %552 = vrot.lane.b32.xlu1 %v15269_v5, %s17524_s24 }
  0x4b   : > { %642 = vrot.lane.b32.xlu0 %v15246_v1, %s17524_s24 }
  0x4c   : > { %644 = vrot.lane.b32.xlu1 %v15258_v2, %s17524_s24  ;;  %s17526_s24 = smov 112  }
  0x4f   : > { %570 = vrot.lane.b32.xlu0 %v15261_v3, %s17522_s25 }
  0x50   : > { %572 = vrot.lane.b32.xlu1 %v15269_v5, %s17522_s25 }
  0x53   : > { %650 = vrot.lane.b32.xlu0 %v15246_v1, %s17522_s25 }
  0x54   : > { %652 = vrot.lane.b32.xlu1 %v15258_v2, %s17522_s25 }
  0x57   : > { %6530 = vrot.lane.b32.xlu0 %v15340_v7, %s15153_s29 }
  0x58   : > { %6532 = vrot.lane.b32.xlu1 %v15344_v8, %s15153_s29 }
  0x5b   : > { %6462 = vrot.lane.b32.xlu0 %v15357_v9, %s15153_s29 }
  0x5c   : > { %6464 = vrot.lane.b32.xlu1 %v15369_v12, %s15153_s29 }
  0x5f   : > { %6470 = vrot.lane.b32.xlu0 %v15357_v9, %s15155_s15 }
  0x60   : > { %6472 = vrot.lane.b32.xlu1 %v15369_v12, %s15155_s15 }
  0x63   : > { %6538 = vrot.lane.b32.xlu0 %v15340_v7, %s15155_s15 }
  0x64   : > { %6540 = vrot.lane.b32.xlu1 %v15344_v8, %s15155_s15 }
  0x67   : > { %6478 = vrot.lane.b32.xlu0 %v15357_v9, %s15156_s16 }
  0x68   : > { %6480 = vrot.lane.b32.xlu1 %v15369_v12, %s15156_s16 }
  0x6b   : > { %6546 = vrot.lane.b32.xlu0 %v15340_v7, %s15156_s16 }
  0x6c   : > { %6548 = vrot.lane.b32.xlu1 %v15344_v8, %s15156_s16 }
  0x6f   : > { %6486 = vrot.lane.b32.xlu0 %v15357_v9, %s15157_s19 }
  0x70   : > { %6488 = vrot.lane.b32.xlu1 %v15369_v12, %s15157_s19 }
  0x73   : > { %6554 = vrot.lane.b32.xlu0 %v15340_v7, %s15157_s19 }
  0x74   : > { %6556 = vrot.lane.b32.xlu1 %v15344_v8, %s15157_s19 }
  0x77   : > { %6494 = vrot.lane.b32.xlu0 %v15357_v9, %s15158_s20 }
  0x78   : > { %6496 = vrot.lane.b32.xlu1 %v15369_v12, %s15158_s20 }
  0x7b   : > { %6562 = vrot.lane.b32.xlu0 %v15340_v7, %s15158_s20 }
  0x7c   : > { %6564 = vrot.lane.b32.xlu1 %v15344_v8, %s15158_s20 }
  0x7f   : > { %6502 = vrot.lane.b32.xlu0 %v15357_v9, %s15159_s23 }
  0x80   : > { %6504 = vrot.lane.b32.xlu1 %v15369_v12, %s15159_s23 }
  0x83   : > { %6570 = vrot.lane.b32.xlu0 %v15340_v7, %s15159_s23 }
  0x84   : > { %6572 = vrot.lane.b32.xlu1 %v15344_v8, %s15159_s23 }
  0x87   : > { %6510 = vrot.lane.b32.xlu0 %v15357_v9, %s17526_s24 }
  0x88   : > { %6512 = vrot.lane.b32.xlu1 %v15369_v12, %s17526_s24 }
  0x89   : > { %v595_v21 = vpop.permute.xlu0 %594 }
  0x8a   : > { %v429_v22 = vpop.permute.xlu1 %428 }
  0x8b   : > { %6578 = vrot.lane.b32.xlu0 %v15340_v7, %s17526_s24 }
  0x8c   : > { %6580 = vrot.lane.b32.xlu1 %v15344_v8, %s17526_s24 }
  0x8d   : > { %v597_v25 = vpop.permute.xlu0 %596 }
  0x8e   : > { %v598_v26 = vsel %vm434_vm4, %v595_v21, %v597_v25  ;;  %v599_v27 = vsel %vm434_vm4, %v597_v25, %v595_v21  ;;  %v431_v30 = vpop.permute.xlu1 %430  ;;  %v15560_v25 = vsel %vm412_vm8, 1.0, %v15154_v4 }
  0x8f   : > { %v15413_v28 = vmul.f32 %v599_v27, %v15399_v23  ;;  %v15416_v29 = vmul.f32 %v598_v26, %v15402_v24  ;;  %v435_v31 = vsel %vm434_vm4, %v429_v22, %v431_v30  ;;  %v436_v32 = vsel %vm434_vm4, %v431_v30, %v429_v22  ;;  %6518 = vrot.lane.b32.xlu0 %v15357_v9, %s17527_s13 }
  0x90   : > { %v15428_v34 = vmul.f32 %v15399_v23, %v436_v32  ;;  %v15431_v35 = vmul.f32 %v15402_v24, %v435_v31  ;;  %v15557_v22 = vrot.slane %v15462_v44, %v15390_v19  ;;  %v15569_v26 = vrot.slane %v15380_v16, %v15390_v19  ;;  %6520 = vrot.lane.b32.xlu1 %v15369_v12, %s17527_s13 }
  0x91   : > { %14078 = vmatprep.subr.msk.mxu1 %vm664_vm0, %v15416_v29  ;;  %v451_v36 = vpop.permute.xlu0 %450  ;;  %v414_v32 = vmul.f32 %v15560_v25, %v15380_v16 }
  0x92   : > { %14079 = vmatpush1.msk.msra.mxu1 %vm664_vm0, %v15413_v28  ;;  %v453_v38 = vpop.permute.xlu1 %452 }
  0x93   : > { %14080 = vmatmul.mubr.msk.f32.vlgmr.msra.gmra.mrb[0].mxu1 %vm660_vm1, %v659_v33  ;;  %14081 = vmatprep.subr.msk.mxu1 %vm664_vm0, %v15431_v35  ;;  %v455_v39 = vsel %vm454_vm5, %v451_v36, %v453_v38  ;;  %v456_v41 = vsel %vm454_vm5, %v453_v38, %v451_v36 }
  0x94   : > { %14082 = vmatpush1.msk.msra.mxu1 %vm664_vm0, %v15428_v34  ;;  %815 = vmatprep.mubr.f32.mxu1 %v15154_v4  ;;  %v15457_v42 = vmul.f32 %v15437_v37, %v455_v39  ;;  %v15469_v46 = vmul.f32 %v15449_v40, %v456_v41 }
  0x95   : > { %v603_v43 = vpop.permute.xlu0 %602  ;;  %6586 = vrot.lane.b32.xlu0 %v15340_v7, %s17527_s13  ;;  %6588 = vrot.lane.b32.xlu1 %v15344_v8, %s17527_s13 }
  0x96   : > { %v605_v45 = vpop.permute.xlu1 %604  ;;  %14085 = vmatprep.subr.msk.mxu1 %vm664_vm0, %v15457_v42 }
  0x97   : > { %v606_v47 = vsel %vm454_vm5, %v603_v43, %v605_v45  ;;  %v607_v53 = vsel %vm454_vm5, %v605_v45, %v603_v43  ;;  %v14116_v43 = vld [vmem:[%s17512_s3 + $0x14] sm:$0x7] }
  0x98   : > { %v15477_v49 = vmul.f32 %v606_v47, %v15437_v37  ;;  %v15503_v58 = vmul.f32 %v607_v53, %v15449_v40 }
  0x99   : > { %v471_v50 = vpop.permute.xlu0 %470 }
  0x9a   : > { %v473_v52 = vpop.permute.xlu1 %472 }
  0x9b   : > { %14083 = vmatmul.mubr.msk.f32.vlgmr.msra.gmra.mrb[0].mxu1 %vm660_vm1, %v658_v48  ;;  %v475_v56 = vsel %vm474_vm7, %v471_v50, %v473_v52  ;;  %v476_v0 = vsel %vm474_vm7, %v473_v52, %v471_v50  ;;  %v15617_v52 = vrot.slane %v414_v32, %v15390_v19 }
  0x9c   : > { %14086 = vmatpush1.msk.msra.mxu1 %vm664_vm0, %v15469_v46  ;;  %897 = vmatprep.mubr.f32.mxu1 %v15154_v4  ;;  %v15509_v60 = vmul.f32 %v15492_v54, %v475_v56  ;;  %v15542_v14 = vmul.f32 %v15521_v63, %v476_v0 }
  0x9d   : > { %v611_v55 = vpop.permute.xlu0 %610  ;;  %14089 = vmatprep.subr.msk.mxu1 %vm664_vm0, %v15477_v49 }
  0x9e   : > { %v613_v57 = vpop.permute.xlu1 %612 }
  0x9f   : > { %v614_v10 = vsel %vm474_vm7, %v611_v55, %v613_v57  ;;  %v615_v33 = vsel %vm474_vm7, %v613_v57, %v611_v55 }
  0xa0   : > { %v15549_v20 = vmul.f32 %v614_v10, %v15492_v54  ;;  %v15605_v47 = vmul.f32 %v615_v33, %v15521_v63  ;;  %v15643_v10 = vrot.slane %v15380_v16, %v15388_v18  ;;  %v14096_v33 = vld [vmem:[%s17513_s4 + $0x8] sm:$0x7] }
  0xa1   : > { %v15511_v61 = vpop.permute.xlu0 %490 }
  0xa2   : > { %v15517_v62 = vpop.permute.xlu1 %492 }
  0xa3   : > { %14087 = vmatmul.mubr.msk.f32.vlgmr.msra.gmra.mrb[0].mxu1 %vm660_vm1, %v14084_v59  ;;  %v495_v41 = vsel %vm494_vm10, %v15511_v61, %v15517_v62  ;;  %v15634_v59 = vrot.slane %v414_v32, %v15388_v18 }
  0xa4   : > { %14090 = vmatpush1.msk.msra.mxu1 %vm664_vm0, %v15503_v58  ;;  %979 = vmatprep.mubr.f32.mxu1 %v15154_v4  ;;  %v15620_v53 = vmul.f32 %v15569_v26, %v495_v41 }
  0xa5   : > { %v15528_v6 = vpop.permute.xlu0 %618  ;;  %14093 = vmatprep.subr.msk.mxu1 %vm664_vm0, %v15509_v60 }
  0xa6   : > { %v15539_v13 = vpop.permute.xlu1 %620 }
  0xa9   : > { %v511_v21 = vpop.permute.xlu0 %510 }
  0xaa   : > { %v513_v27 = vpop.permute.xlu1 %512 }
  0xab   : > { %14091 = vmatmul.mubr.msk.f32.vlgmr.msra.gmra.mrb[0].mxu1 %vm660_vm1, %v14088_v15  ;;  %v515_v30 = vsel %vm514_vm9, %v511_v21, %v513_v27  ;;  %v516_v31 = vsel %vm514_vm9, %v513_v27, %v511_v21  ;;  %v496_v21 = vsel %vm494_vm10, %v15517_v62, %v15511_v61 }
  0xac   : > { %14094 = vmatpush1.msk.msra.mxu1 %vm664_vm0, %v15542_v14  ;;  %1065 = vmatprep.mubr.f32.mxu1 %v15154_v4  ;;  %v15584_v36 = vmul.f32 %v15553_v11, %v515_v30  ;;  %v15587_v38 = vmul.f32 %v15557_v22, %v516_v31  ;;  %v622_v30 = vsel %vm494_vm10, %v15528_v6, %v15539_v13  ;;  %v14120_v31 = vld [vmem:[%s17513_s4 + $0x14] sm:$0x7] }
  0xad   : > { %v627_v39 = vpop.permute.xlu0 %626  ;;  %14097 = vmatprep.subr.msk.mxu1 %vm664_vm0, %v15549_v20  ;;  %v15680_v32 = vmul.f32 %v15643_v10, %v496_v21  ;;  %v15688_v41 = vmul.f32 %v622_v30, %v15569_v26  ;;  %v14517_v21 = vld [vmem:[%s17517_s8 + $0x4] sm:$0x7] }
  0xae   : > { %14117 = vmatprep.subr.msk.mxu0 %vm664_vm0, %v15587_v38  ;;  %v629_v45 = vpop.permute.xlu1 %628 }
  0xaf   : > { %14118 = vmatpush1.msk.msra.mxu0 %vm664_vm0, %v15584_v36  ;;  %v630_v48 = vsel %vm514_vm9, %v627_v39, %v629_v45  ;;  %v631_v50 = vsel %vm514_vm9, %v629_v45, %v627_v39  ;;  %v15162_v45 = vmov 0  }
  0xb0   : > { %14119 = vmatmul.mubr.msk.f32.vlgmr.msra.gmra.mrb[0].mxu0 %vm660_vm1, %v14116_v43  ;;  %v15624_v55 = vmul.f32 %v630_v48, %v15553_v11  ;;  %v15627_v56 = vmul.f32 %v631_v50, %v15557_v22  ;;  %15069 = vset.pattern.permute.xlu1 %v15162_v45 }
  0xb1   : > { %v531_v57 = vpop.permute.xlu0 %530  ;;  %1647 = vmatprep.mubr.f32.mxu0 %v15154_v4  ;;  %15068 = vset.pattern.permute.xlu0 %v15162_v45 }
  0xb2   : > { %14121 = vmatprep.subr.msk.mxu0 %vm664_vm0, %v15627_v56  ;;  %v533_v0 = vpop.permute.xlu1 %532  ;;  %9520 = vperm.xlu1 %15069, %v14517_v21  }
  0xb3   : > { %14095 = vmatmul.mubr.msk.f32.vlgmr.msra.gmra.mrb[0].mxu1 %vm660_vm1, %v14092_v51  ;;  %14122 = vmatpush1.msk.msra.mxu0 %vm664_vm0, %v15624_v55  ;;  %v535_v15 = vsel %vm534_vm11, %v531_v57, %v533_v0  ;;  %v536_v9 = vsel %vm534_vm11, %v533_v0, %v531_v57  ;;  %v15705_v51 = vrot.slane %v15560_v25, %v15390_v19 }
  0xb4   : > { %14098 = vmatpush1.msk.msra.mxu1 %vm664_vm0, %v15605_v47  ;;  %1147 = vmatprep.mubr.f32.mxu1 %v15154_v4  ;;  %v15659_v16 = vmul.f32 %v15617_v52, %v536_v9  ;;  %v15671_v61 = vmul.f32 %v15634_v59, %v535_v15  ;;  %v623_v0 = vsel %vm494_vm10, %v15539_v13, %v15528_v6  ;;  %v14124_v15 = vld [vmem:[%s17512_s3 + $0x18] sm:$0x7] }
  0xb5   : > { %14101 = vmatprep.subr.msk.mxu1 %vm664_vm0, %v15620_v53  ;;  %v635_v27 = vpop.permute.xlu0 %634  ;;  %v15733_v13 = vmul.f32 %v623_v0, %v15643_v10  ;;  %v14104_v0 = vld [vmem:[%s17513_s4 + $0xc] sm:$0x7] }
  0xb6   : > { %14125 = vmatprep.subr.msk.mxu0 %vm664_vm0, %v15659_v16  ;;  %v637_v62 = vpop.permute.xlu1 %636 }
  0xb7   : > { %v639_v39 = vsel %vm534_vm11, %v637_v62, %v635_v27  ;;  %v638_v48 = vsel %vm534_vm11, %v635_v27, %v637_v62  ;;  %v14100_v27 = vld [vmem:[%s17512_s3 + $0xc] sm:$0x7]  ;;  %v15744_v62 = vrot.slane %v15560_v25, %v15388_v18 }
  0xb8   : > { %14123 = vmatmul.mubr.msk.f32.vlgmr.msra.gmra.mrb[0].mxu0 %vm660_vm1, %v14120_v31  ;;  %v15692_v7 = vmul.f32 %v639_v39, %v15617_v52  ;;  %v15724_v9 = vmul.f32 %v638_v48, %v15634_v59  ;;  %v14128_v48 = vld [vmem:[%s17513_s4 + $0x18] sm:$0x7] }
  0xb9   : > { %v551_v43 = vpop.permute.xlu0 %550  ;;  %14126 = vmatpush1.msk.msra.mxu0 %vm664_vm0, %v15671_v61  ;;  %1733 = vmatprep.mubr.f32.mxu0 %v15154_v4 }
  0xba   : > { %14129 = vmatprep.subr.msk.mxu0 %vm664_vm0, %v15692_v7  ;;  %v553_v50 = vpop.permute.xlu1 %552 }
  0xbb   : > { %14099 = vmatmul.mubr.msk.f32.vlgmr.msra.gmra.mrb[0].mxu1 %vm660_vm1, %v14096_v33  ;;  %v556_v57 = vsel %vm554_vm12, %v553_v50, %v551_v43  ;;  %v2162_v33 = vld [vmem:[%s17514_s5] sm:$0x7]  ;;  %v555_v39 = vsel %vm554_vm12, %v551_v43, %v553_v50 }
  0xbc   : > { %14102 = vmatpush1.msk.msra.mxu1 %vm664_vm0, %v15680_v32  ;;  %1233 = vmatprep.mubr.f32.mxu1 %v15154_v4  ;;  %v15730_v6 = vmul.f32 %v15705_v51, %v556_v57  ;;  %v15765_v43 = vmul.f32 %v15744_v62, %v555_v39  ;;  %v415_v57 = vmul.f32 %v15560_v25, %v15462_v44 }
  0xbd   : > { %14105 = vmatprep.subr.msk.mxu1 %vm664_vm0, %v15688_v41  ;;  %v643_v30 = vpop.permute.xlu0 %642  ;;  %2165 = vperm.xlu1 %15069, %v2162_v33   ;;  %v14108_v33 = vld [vmem:[%s17512_s3 + $0x10] sm:$0x7] }
  0xbe   : > { %v645_v31 = vpop.permute.xlu1 %644  ;;  %v15786_v21 = vrot.slane %v415_v57, %v15390_v19 }
  0xbf   : > { %v647_v45 = vsel %vm554_vm12, %v645_v31, %v643_v30 }
  0xc0   : > { %14127 = vmatmul.mubr.msk.f32.vlgmr.msra.gmra.mrb[0].mxu0 %vm660_vm1, %v14124_v15  ;;  %v15768_v50 = vmul.f32 %v647_v45, %v15705_v51  ;;  %v646_v15 = vsel %vm554_vm12, %v643_v30, %v645_v31  ;;  %v14132_v30 = vld [vmem:[%s17512_s3 + $0x1c] sm:$0x7] }
  0xc1   : > { %14130 = vmatpush1.msk.msra.mxu0 %vm664_vm0, %v15724_v9  ;;  %1815 = vmatprep.mubr.f32.mxu0 %v15154_v4  ;;  %v571_v44 = vpop.permute.xlu0 %570  ;;  %v15799_v31 = vmul.f32 %v646_v15, %v15744_v62 }
  0xc2   : > { %14133 = vmatprep.subr.msk.mxu0 %vm664_vm0, %v15730_v6  ;;  %v573_v25 = vpop.permute.xlu1 %572 }
  0xc3   : > { %14103 = vmatmul.mubr.msk.f32.vlgmr.msra.gmra.mrb[0].mxu1 %vm660_vm1, %v14100_v27  ;;  %v576_v27 = vsel %vm574_vm13, %v573_v25, %v571_v44 }
  0xc4   : > { %14106 = vmatpush1.msk.msra.mxu1 %vm664_vm0, %v15733_v13  ;;  %1315 = vmatprep.mubr.f32.mxu1 %v15154_v4  ;;  %v15802_v19 = vmul.f32 %v15786_v21, %v576_v27 }
  0xc5   : > { %14109 = vmatprep.subr.msk.mxu1 %vm664_vm0, %v15269_v5  ;;  %v651_v39 = vpop.permute.xlu0 %650 }
  0xc6   : > { %v653_v45 = vpop.permute.xlu1 %652 }
  0xc7   : > { %v654_v27 = vsel %vm574_vm13, %v651_v39, %v653_v45 }
  0xc8   : > { %14131 = vmatmul.mubr.msk.f32.vlgmr.msra.gmra.mrb[0].mxu0 %vm660_vm1, %v14128_v48  ;;  %v15809_v48 = vrot.slane %v415_v57, %v15388_v18  ;;  %v14151_v18 = vld [vmem:[%s17513_s4 + $0x24] sm:$0x7]  ;;  %v655_v57 = vsel %vm574_vm13, %v653_v45, %v651_v39  ;;  %v14158_v39 = vld [vmem:[%s17512_s3 + $0x28] sm:$0x7]  ;;  %v14144_v45 = vld [vmem:[%s17513_s4 + $0x20] sm:$0x7] }
  0xc9   : > { %14134 = vmatpush1.msk.msra.mxu0 %vm664_vm0, %v15765_v43  ;;  %1901 = vmatprep.mubr.f32.mxu0 %v15154_v4 }
  0xca   : > { %14137 = vmatprep.subr.msk.mxu0 %vm664_vm0, %v15768_v50 }
  0xcb   : > { %14107 = vmatmul.mubr.msk.f32.vlgmr.msra.gmra.mrb[0].mxu1 %vm660_vm1, %v14104_v0  ;;  %v575_v0 = vsel %vm574_vm13, %v571_v44, %v573_v25  ;;  %v14136_v44 = vld [vmem:[%s17513_s4 + $0x1c] sm:$0x7]  ;;  %v15837_v25 = vmul.f32 %v655_v57, %v15786_v21  ;;  %v14162_v57 = vld [vmem:[%s17513_s4 + $0x28] sm:$0x7] }
  0xcc   : > { %14110 = vmatpush1.msk.msra.mxu1 %vm664_vm0, %v15261_v3  ;;  %1399 = vmatprep.mubr.f32.mxu1 %v15154_v4  ;;  %v15830_v15 = vmul.f32 %v15809_v48, %v575_v0  ;;  %v14140_v0 = vld [vmem:[%s17512_s3 + $0x20] sm:$0x7] }
  0xcd   : > { %14152 = vmatprep.subr.msk.mxu1 %vm664_vm0, %v15416_v29 }
  0xd0   : > { %14135 = vmatmul.mubr.msk.f32.vlgmr.msra.gmra.mrb[0].mxu0 %vm660_vm1, %v14132_v30  ;;  %v14150_v30 = vld [vmem:[%s17512_s3 + $0x24] sm:$0x7] }
  0xd1   : > { %14138 = vmatpush1.msk.msra.mxu0 %vm664_vm0, %v15799_v31  ;;  %1983 = vmatprep.mubr.f32.mxu0 %v15154_v4 }
  0xd2   : > { %14141 = vmatprep.subr.msk.mxu0 %vm664_vm0, %v15802_v19 }
  0xd3   : > { %14111 = vmatmul.mubr.msk.f32.vlgmr.msra.gmra.mrb[0].mxu1 %vm660_vm1, %v14108_v33  ;;  %v15856_v33 = vmul.f32 %v654_v27, %v15809_v48  ;;  %v14166_v27 = vld [vmem:[%s17512_s3 + $0x2c] sm:$0x7] }
  0xd4   : > { %14153 = vmatpush1.msk.msra.mxu1 %vm664_vm0, %v15413_v28  ;;  %2253 = vmatprep.mubr.f32.mxu1 %v15154_v4 }
  0xd5   : > { %14155 = vmatprep.subr.msk.mxu1 %vm664_vm0, %v15431_v35 }
  0xd7   : > { %14154 = vmatmul.mubr.msk.f32.vlgmr.msra.gmra.mrb[2].mxu1 %vm660_vm1, %v14151_v18  ;;  %v14226_v18 = vld [vmem:[%s17513_s4 + $0x48] sm:$0x7] }
  0xd8   : > { %14156 = vmatpush1.msk.msra.mxu1 %vm664_vm0, %v15428_v34  ;;  %2327 = vmatprep.mubr.f32.mxu1 %v15154_v4 }
  0xd9   : > { %14159 = vmatprep.subr.msk.mxu1 %vm664_vm0, %v15457_v42  ;;  %14139 = vmatmul.mubr.msk.f32.vlgmr.msra.gmra.mrb[0].mxu0 %vm660_vm1, %v14136_v44  ;;  %v14225_v44 = vld [vmem:[%s17512_s3 + $0x48] sm:$0x7] }
  0xda   : > { %14142 = vmatpush1.msk.msra.mxu0 %vm664_vm0, %v15830_v15  ;;  %2069 = vmatprep.mubr.f32.mxu0 %v15154_v4 }
  0xdb   : > { %14145 = vmatprep.subr.msk.mxu0 %vm664_vm0, %v15837_v25 }
  0xdf   : > { %14157 = vmatmul.mubr.msk.f32.vlgmr.msra.gmra.mrb[2].mxu1 %vm660_vm1, %v14150_v30  ;;  %v14233_v30 = vld [vmem:[%s17512_s3 + $0x4c] sm:$0x7] }
  0xe0   : > { %14160 = vmatpush1.msk.msra.mxu1 %vm664_vm0, %v15469_v46  ;;  %2403 = vmatprep.mubr.f32.mxu1 %v15154_v4 }
  0xe1   : > { %14163 = vmatprep.subr.msk.mxu1 %vm664_vm0, %v15477_v49  ;;  %14143 = vmatmul.mubr.msk.f32.vlgmr.msra.gmra.mrb[0].mxu0 %vm660_vm1, %v14140_v0  ;;  %v14170_v0 = vld [vmem:[%s17513_s4 + $0x2c] sm:$0x7] }
  0xe2   : > { %14146 = vmatpush1.msk.msra.mxu0 %vm664_vm0, %v15856_v33  ;;  %2151 = vmatprep.mubr.f32.mxu0 %v15154_v4 }
  0xe3   : > { %14227 = vmatprep.subr.msk.mxu0 %vm664_vm0, %v15416_v29 }
  0xe7   : > { %14161 = vmatmul.mubr.msk.f32.vlgmr.msra.gmra.mrb[2].mxu1 %vm660_vm1, %v14158_v39  ;;  %v14237_v39 = vld [vmem:[%s17513_s4 + $0x4c] sm:$0x7] }
  0xe8   : > { %14164 = vmatpush1.msk.msra.mxu1 %vm664_vm0, %v15503_v58  ;;  %2479 = vmatprep.mubr.f32.mxu1 %v15154_v4 }
  0xe9   : > { %14167 = vmatprep.subr.msk.mxu1 %vm664_vm0, %v15509_v60  ;;  %14147 = vmatmul.mubr.msk.f32.vlgmr.msra.gmra.mrb[0].mxu0 %vm660_vm1, %v14144_v45  ;;  %v14174_v45 = vld [vmem:[%s17512_s3 + $0x30] sm:$0x7] }
  0xea   : > { %14228 = vmatpush1.msk.msra.mxu0 %vm664_vm0, %v15413_v28  ;;  %3674 = vmatprep.mubr.f32.mxu0 %v15154_v4 }
  0xeb   : > { %14230 = vmatprep.subr.msk.mxu0 %vm664_vm0, %v15431_v35 }
  0xed   : > { %14229 = vmatmul.mubr.msk.f32.vlgmr.msra.gmra.mrb[2].mxu0 %vm660_vm1, %v14226_v18  ;;  %v14241_v18 = vld [vmem:[%s17512_s3 + $0x50] sm:$0x7] }
  0xee   : > { %14231 = vmatpush1.msk.msra.mxu0 %vm664_vm0, %v15428_v34  ;;  %3748 = vmatprep.mubr.f32.mxu0 %v15154_v4 }
  0xef   : > { %14234 = vmatprep.subr.msk.mxu0 %vm664_vm0, %v15457_v42  ;;  %14165 = vmatmul.mubr.msk.f32.vlgmr.msra.gmra.mrb[2].mxu1 %vm660_vm1, %v14162_v57  ;;  %v14178_v57 = vld [vmem:[%s17513_s4 + $0x30] sm:$0x7] }
  0xf0   : > { %14168 = vmatpush1.msk.msra.mxu1 %vm664_vm0, %v15542_v14  ;;  %2559 = vmatprep.mubr.f32.mxu1 %v15154_v4 }
  0xf1   : > { %14171 = vmatprep.subr.msk.mxu1 %vm664_vm0, %v15549_v20 }
  0xf5   : > { %14232 = vmatmul.mubr.msk.f32.vlgmr.msra.gmra.mrb[2].mxu0 %vm660_vm1, %v14225_v44  ;;  %v14245_v44 = vld [vmem:[%s17513_s4 + $0x50] sm:$0x7] }
  0xf6   : > { %14235 = vmatpush1.msk.msra.mxu0 %vm664_vm0, %v15469_v46  ;;  %3824 = vmatprep.mubr.f32.mxu0 %v15154_v4 }
  0xf7   : > { %14238 = vmatprep.subr.msk.mxu0 %vm664_vm0, %v15477_v49  ;;  %14169 = vmatmul.mubr.msk.f32.vlgmr.msra.gmra.mrb[2].mxu1 %vm660_vm1, %v14166_v27  ;;  %v14182_v27 = vld [vmem:[%s17512_s3 + $0x34] sm:$0x7] }
  0xf8   : > { %14172 = vmatpush1.msk.msra.mxu1 %vm664_vm0, %v15605_v47  ;;  %2635 = vmatprep.mubr.f32.mxu1 %v15154_v4 }
  0xf9   : > { %14175 = vmatprep.subr.msk.mxu1 %vm664_vm0, %v15620_v53 }
  0xfd   : > { %14236 = vmatmul.mubr.msk.f32.vlgmr.msra.gmra.mrb[2].mxu0 %vm660_vm1, %v14233_v30  ;;  %v14249_v30 = vld [vmem:[%s17512_s3 + $0x54] sm:$0x7] }
  0xfe   : > { %14239 = vmatpush1.msk.msra.mxu0 %vm664_vm0, %v15503_v58  ;;  %3900 = vmatprep.mubr.f32.mxu0 %v15154_v4 }
  0xff   : > { %14242 = vmatprep.subr.msk.mxu0 %vm664_vm0, %v15509_v60  ;;  %14173 = vmatmul.mubr.msk.f32.vlgmr.msra.gmra.mrb[2].mxu1 %vm660_vm1, %v14170_v0  ;;  %v14186_v0 = vld [vmem:[%s17513_s4 + $0x34] sm:$0x7] }
 0x100   : > { %14176 = vmatpush1.msk.msra.mxu1 %vm664_vm0, %v15680_v32  ;;  %2715 = vmatprep.mubr.f32.mxu1 %v15154_v4 }
 0x101   : > { %14179 = vmatprep.subr.msk.mxu1 %vm664_vm0, %v15688_v41 }
 0x105   : > { %14240 = vmatmul.mubr.msk.f32.vlgmr.msra.gmra.mrb[2].mxu0 %vm660_vm1, %v14237_v39  ;;  %v14253_v39 = vld [vmem:[%s17513_s4 + $0x54] sm:$0x7] }
 0x106   : > { %14243 = vmatpush1.msk.msra.mxu0 %vm664_vm0, %v15542_v14  ;;  %3980 = vmatprep.mubr.f32.mxu0 %v15154_v4 }
 0x107   : > { %14246 = vmatprep.subr.msk.mxu0 %vm664_vm0, %v15549_v20  ;;  %14177 = vmatmul.mubr.msk.f32.vlgmr.msra.gmra.mrb[2].mxu1 %vm660_vm1, %v14174_v45  ;;  %v14190_v45 = vld [vmem:[%s17512_s3 + $0x38] sm:$0x7] }
 0x108   : > { %14180 = vmatpush1.msk.msra.mxu1 %vm664_vm0, %v15733_v13  ;;  %2791 = vmatprep.mubr.f32.mxu1 %v15154_v4 }
 0x109   : > { %14183 = vmatprep.subr.msk.mxu1 %vm664_vm0, %v15269_v5 }
 0x10d   : > { %14244 = vmatmul.mubr.msk.f32.vlgmr.msra.gmra.mrb[2].mxu0 %vm660_vm1, %v14241_v18  ;;  %v14257_v18 = vld [vmem:[%s17512_s3 + $0x58] sm:$0x7] }
 0x10e   : > { %14247 = vmatpush1.msk.msra.mxu0 %vm664_vm0, %v15605_v47  ;;  %4056 = vmatprep.mubr.f32.mxu0 %v15154_v4 }
 0x10f   : > { %14250 = vmatprep.subr.msk.mxu0 %vm664_vm0, %v15620_v53  ;;  %14181 = vmatmul.mubr.msk.f32.vlgmr.msra.gmra.mrb[2].mxu1 %vm660_vm1, %v14178_v57  ;;  %v8096_v57 = vld [vmem:[%s17517_s8] sm:$0x7] }
 0x110   : > { %14184 = vmatpush1.msk.msra.mxu1 %vm664_vm0, %v15261_v3  ;;  %2871 = vmatprep.mubr.f32.mxu1 %v15154_v4 }
 0x111   : > { %14187 = vmatprep.subr.msk.mxu1 %vm664_vm0, %v15258_v2  ;;  %8099 = vperm.xlu0 %15068, %v8096_v57   ;;  %v14297_v57 = vld [vmem:[%s17514_s5 + $0x8] sm:$0x7] }
 0x115   : > { %14248 = vmatmul.mubr.msk.f32.vlgmr.msra.gmra.mrb[2].mxu0 %vm660_vm1, %v14245_v44  ;;  %v14222_v44 = vld [vmem:[%s17514_s5 + $0x4] sm:$0x7] }
 0x116   : > { %14251 = vmatpush1.msk.msra.mxu0 %vm664_vm0, %v15680_v32  ;;  %4136 = vmatprep.mubr.f32.mxu0 %v15154_v4 }
 0x117   : > { %14254 = vmatprep.subr.msk.mxu0 %vm664_vm0, %v15688_v41  ;;  %14185 = vmatmul.mubr.msk.f32.vlgmr.msra.gmra.mrb[2].mxu1 %vm660_vm1, %v14182_v27  ;;  %v14198_v27 = vld [vmem:[%s17512_s3 + $0x3c] sm:$0x7] }
 0x118   : > { %14188 = vmatpush1.msk.msra.mxu1 %vm664_vm0, %v15246_v1  ;;  %2947 = vmatprep.mubr.f32.mxu1 %v15154_v4 }
 0x119   : > { %14191 = vmatprep.subr.msk.mxu1 %vm664_vm0, %v15587_v38  ;;  %3586 = vperm.xlu0 %15068, %v14222_v44   ;;  %v14277_v44 = vld [vmem:[%s17513_s4 + $0x60] sm:$0x7] }
 0x11d   : > { %14252 = vmatmul.mubr.msk.f32.vlgmr.msra.gmra.mrb[2].mxu0 %vm660_vm1, %v14249_v30  ;;  %v14265_v30 = vld [vmem:[%s17512_s3 + $0x5c] sm:$0x7] }
 0x11e   : > { %14255 = vmatpush1.msk.msra.mxu0 %vm664_vm0, %v15733_v13  ;;  %4212 = vmatprep.mubr.f32.mxu0 %v15154_v4 }
 0x11f   : > { %14189 = vmatmul.mubr.msk.f32.vlgmr.msra.gmra.mrb[2].mxu1 %vm660_vm1, %v14186_v0  ;;  %14258 = vmatprep.subr.msk.mxu0 %vm664_vm0, %v15269_v5  ;;  %v14202_v0 = vld [vmem:[%s17513_s4 + $0x3c] sm:$0x7] }
 0x120   : > { %14192 = vmatpush1.msk.msra.mxu1 %vm664_vm0, %v15584_v36  ;;  %3027 = vmatprep.mubr.f32.mxu1 %v15154_v4 }
 0x121   : > { %14195 = vmatprep.subr.msk.mxu1 %vm664_vm0, %v15627_v56 }
 0x125   : > { %14256 = vmatmul.mubr.msk.f32.vlgmr.msra.gmra.mrb[2].mxu0 %vm660_vm1, %v14253_v39  ;;  %v14269_v39 = vld [vmem:[%s17513_s4 + $0x5c] sm:$0x7] }
 0x126   : > { %14259 = vmatpush1.msk.msra.mxu0 %vm664_vm0, %v15261_v3  ;;  %4292 = vmatprep.mubr.f32.mxu0 %v15154_v4  ;;  %v14194_v3 = vld [vmem:[%s17513_s4 + $0x38] sm:$0x7] }
 0x127   : > { %14193 = vmatmul.mubr.msk.f32.vlgmr.msra.gmra.mrb[2].mxu1 %vm660_vm1, %v14190_v45  ;;  %14262 = vmatprep.subr.msk.mxu0 %vm664_vm0, %v15258_v2  ;;  %v14206_v45 = vld [vmem:[%s17512_s3 + $0x40] sm:$0x7] }
 0x128   : > { %14196 = vmatpush1.msk.msra.mxu1 %vm664_vm0, %v15624_v55  ;;  %3103 = vmatprep.mubr.f32.mxu1 %v15154_v4 }
 0x129   : > { %14199 = vmatprep.subr.msk.mxu1 %vm664_vm0, %v15659_v16 }
 0x12d   : > { %14260 = vmatmul.mubr.msk.f32.vlgmr.msra.gmra.mrb[2].mxu0 %vm660_vm1, %v14257_v18  ;;  %v14592_v18 = vld [vmem:[%s17517_s8 + $0x8] sm:$0x7] }
 0x12e   : > { %14263 = vmatpush1.msk.msra.mxu0 %vm664_vm0, %v15246_v1  ;;  %4368 = vmatprep.mubr.f32.mxu0 %v15154_v4  ;;  %v14261_v1 = vld [vmem:[%s17513_s4 + $0x58] sm:$0x7] }
 0x12f   : > { %14266 = vmatprep.subr.msk.mxu0 %vm664_vm0, %v15587_v38  ;;  %14197 = vmatmul.mubr.msk.f32.vlgmr.msra.gmra.mrb[2].mxu1 %vm660_vm1, %v14194_v3  ;;  %v14273_v3 = vld [vmem:[%s17512_s3 + $0x60] sm:$0x7] }
 0x130   : > { %14200 = vmatpush1.msk.msra.mxu1 %vm664_vm0, %v15671_v61  ;;  %3183 = vmatprep.mubr.f32.mxu1 %v15154_v4 }
 0x131   : > { %14203 = vmatprep.subr.msk.mxu1 %vm664_vm0, %v15692_v7  ;;  %10941 = vperm.xlu1 %15069, %v14592_v18  }
 0x135   : > { %14264 = vmatmul.mubr.msk.f32.vlgmr.msra.gmra.mrb[2].mxu0 %vm660_vm1, %v14261_v1  ;;  %v14210_v1 = vld [vmem:[%s17513_s4 + $0x40] sm:$0x7]  ;;  %5007 = vperm.xlu1 %15069, %v14297_v57  }
 0x136   : > { %14267 = vmatpush1.msk.msra.mxu0 %vm664_vm0, %v15584_v36  ;;  %4448 = vmatprep.mubr.f32.mxu0 %v15154_v4 }
 0x137   : > { %14270 = vmatprep.subr.msk.mxu0 %vm664_vm0, %v15627_v56  ;;  %14201 = vmatmul.mubr.msk.f32.vlgmr.msra.gmra.mrb[2].mxu1 %vm660_vm1, %v14198_v27  ;;  %v14214_v27 = vld [vmem:[%s17512_s3 + $0x44] sm:$0x7] }
 0x138   : > { %14204 = vmatpush1.msk.msra.mxu1 %vm664_vm0, %v15724_v9  ;;  %3259 = vmatprep.mubr.f32.mxu1 %v15154_v4 }
 0x139   : > { %14207 = vmatprep.subr.msk.mxu1 %vm664_vm0, %v15730_v6 }
 0x13d   : > { %14268 = vmatmul.mubr.msk.f32.vlgmr.msra.gmra.mrb[2].mxu0 %vm660_vm1, %v14265_v30  ;;  %v14281_v30 = vld [vmem:[%s17512_s3 + $0x64] sm:$0x7] }
 0x13e   : > { %14271 = vmatpush1.msk.msra.mxu0 %vm664_vm0, %v15624_v55  ;;  %4524 = vmatprep.mubr.f32.mxu0 %v15154_v4 }
 0x13f   : > { %14274 = vmatprep.subr.msk.mxu0 %vm664_vm0, %v15659_v16  ;;  %14205 = vmatmul.mubr.msk.f32.vlgmr.msra.gmra.mrb[2].mxu1 %vm660_vm1, %v14202_v0  ;;  %v14218_v0 = vld [vmem:[%s17513_s4 + $0x44] sm:$0x7] }
 0x140   : > { %14208 = vmatpush1.msk.msra.mxu1 %vm664_vm0, %v15765_v43  ;;  %3339 = vmatprep.mubr.f32.mxu1 %v15154_v4 }
 0x141   : > { %14211 = vmatprep.subr.msk.mxu1 %vm664_vm0, %v15768_v50 }
 0x145   : > { %14272 = vmatmul.mubr.msk.f32.vlgmr.msra.gmra.mrb[2].mxu0 %vm660_vm1, %v14269_v39  ;;  %v14285_v39 = vld [vmem:[%s17513_s4 + $0x64] sm:$0x7] }
 0x146   : > { %14275 = vmatpush1.msk.msra.mxu0 %vm664_vm0, %v15671_v61  ;;  %4604 = vmatprep.mubr.f32.mxu0 %v15154_v4 }
 0x147   : > { %14278 = vmatprep.subr.msk.mxu0 %vm664_vm0, %v15692_v7  ;;  %14209 = vmatmul.mubr.msk.f32.vlgmr.msra.gmra.mrb[2].mxu1 %vm660_vm1, %v14206_v45  ;;  %v6533_v45 = vpop.permute.xlu1 %6532 }
 0x148   : > { %14212 = vmatpush1.msk.msra.mxu1 %vm664_vm0, %v15799_v31  ;;  %3415 = vmatprep.mubr.f32.mxu1 %v15154_v4 }
 0x149   : > { %14215 = vmatprep.subr.msk.mxu1 %vm664_vm0, %v15802_v19 }
 0x14b   : > { %v6465_v57 = vpop.permute.xlu1 %6464 }
 0x14d   : > { %14276 = vmatmul.mubr.msk.f32.vlgmr.msra.gmra.mrb[2].mxu0 %vm660_vm1, %v14273_v3 }
 0x14e   : > { %14279 = vmatpush1.msk.msra.mxu0 %vm664_vm0, %v15724_v9  ;;  %4680 = vmatprep.mubr.f32.mxu0 %v15154_v4 }
 0x14f   : > { %14282 = vmatprep.subr.msk.mxu0 %vm664_vm0, %v15730_v6  ;;  %14213 = vmatmul.mubr.msk.f32.vlgmr.msra.gmra.mrb[2].mxu1 %vm660_vm1, %v14210_v1 }
 0x150   : > { %14216 = vmatpush1.msk.msra.mxu1 %vm664_vm0, %v15830_v15  ;;  %3495 = vmatprep.mubr.f32.mxu1 %v15154_v4 }
 0x151   : > { %14219 = vmatprep.subr.msk.mxu1 %vm664_vm0, %v15837_v25 }
 0x155   : > { %14280 = vmatmul.mubr.msk.f32.vlgmr.msra.gmra.mrb[2].mxu0 %vm660_vm1, %v14277_v44  ;;  %v6473_v44 = vpop.permute.xlu1 %6472 }
 0x156   : > { %14283 = vmatpush1.msk.msra.mxu0 %vm664_vm0, %v15765_v43  ;;  %4760 = vmatprep.mubr.f32.mxu0 %v15154_v4 }
 0x157   : > { %14286 = vmatprep.subr.msk.mxu0 %vm664_vm0, %v15768_v50  ;;  %14217 = vmatmul.mubr.msk.f32.vlgmr.msra.gmra.mrb[2].mxu1 %vm660_vm1, %v14214_v27 }
 0x158   : > { %14220 = vmatpush1.msk.msra.mxu1 %vm664_vm0, %v15856_v33  ;;  %3571 = vmatprep.mubr.f32.mxu1 %v15154_v4 }
 0x159   : > { %14302 = vmatprep.subr.msk.mxu1 %vm664_vm0, %v15416_v29  ;;  %v14301_v29 = vld [vmem:[%s17513_s4 + $0x6c] sm:$0x7] }
 0x15d   : > { %14284 = vmatmul.mubr.msk.f32.vlgmr.msra.gmra.mrb[2].mxu0 %vm660_vm1, %v14281_v30 }
 0x15e   : > { %14287 = vmatpush1.msk.msra.mxu0 %vm664_vm0, %v15799_v31  ;;  %4836 = vmatprep.mubr.f32.mxu0 %v15154_v4 }
 0x15f   : > { %14290 = vmatprep.subr.msk.mxu0 %vm664_vm0, %v15802_v19  ;;  %14221 = vmatmul.mubr.msk.f32.vlgmr.msra.gmra.mrb[2].mxu1 %vm660_vm1, %v14218_v0  ;;  %v14293_v0 = vld [vmem:[%s17513_s4 + $0x68] sm:$0x7] }
 0x160   : > { %14303 = vmatpush1.msk.msra.mxu1 %vm664_vm0, %v15413_v28  ;;  %5095 = vmatprep.mubr.f32.mxu1 %v15154_v4  ;;  %v6531_v28 = vpop.permute.xlu0 %6530 }
 0x161   : > { %14305 = vmatprep.subr.msk.mxu1 %vm664_vm0, %v15431_v35  ;;  %v6534_v35 = vsel %vm434_vm4, %v6531_v28, %v6533_v45  ;;  %v6535_v1 = vsel %vm434_vm4, %v6533_v45, %v6531_v28  ;;  %v6595_v45 = vld [vmem:[%s17516_s7] sm:$0x7] }
 0x162   : > { %v16201_v18 = vmul.f32 %v6534_v35, %v15402_v24  ;;  %v16222_v30 = vmul.f32 %v6535_v1, %v15399_v23  ;;  %v6594_v1 = vld [vmem:[%s17515_s6] sm:$0x7] }
 0x163   : > { %14304 = vmatmul.mubr.msk.f32.vlgmr.msra.gmra.mrb[4].mxu1 %vm660_vm1, %v14301_v29 }
 0x164   : > { %14306 = vmatpush1.msk.msra.mxu1 %vm664_vm0, %v15428_v34  ;;  %5169 = vmatprep.mubr.f32.mxu1 %v15154_v4  ;;  %v14300_v34 = vld [vmem:[%s17512_s3 + $0x6c] sm:$0x7]  ;;  %v6463_v3 = vpop.permute.xlu0 %6462 }
 0x165   : > { %14309 = vmatprep.subr.msk.mxu1 %vm664_vm0, %v15457_v42  ;;  %14288 = vmatmul.mubr.msk.f32.vlgmr.msra.gmra.mrb[2].mxu0 %vm660_vm1, %v14285_v39  ;;  %v14289_v42 = vld [vmem:[%s17512_s3 + $0x68] sm:$0x7]  ;;  %v6467_v29 = vsel %vm434_vm4, %v6465_v57, %v6463_v3 }
 0x166   : > { %14291 = vmatpush1.msk.msra.mxu0 %vm664_vm0, %v15830_v15  ;;  %4916 = vmatprep.mubr.f32.mxu0 %v15154_v4 }
 0x167   : > { %14294 = vmatprep.subr.msk.mxu0 %vm664_vm0, %v15837_v25 }
 0x168   : > { %v6471_v27 = vpop.permute.xlu0 %6470 }
 0x169   : > { %v6474_v28 = vsel %vm454_vm5, %v6471_v27, %v6473_v44 }
 0x16b   : > { %14307 = vmatmul.mubr.msk.f32.vlgmr.msra.gmra.mrb[4].mxu1 %vm660_vm1, %v14300_v34  ;;  %v16253_v34 = vmul.f32 %v6474_v28, %v15437_v37 }
 0x16c   : > { %14310 = vmatpush1.msk.msra.mxu1 %vm664_vm0, %v15469_v46  ;;  %5245 = vmatprep.mubr.f32.mxu1 %v15154_v4  ;;  %v14308_v46 = vld [vmem:[%s17512_s3 + $0x70] sm:$0x7]  ;;  %v6539_v35 = vpop.permute.xlu0 %6538 }
 0x16d   : > { %14313 = vmatprep.subr.msk.mxu1 %vm664_vm0, %v15477_v49  ;;  %14292 = vmatmul.mubr.msk.f32.vlgmr.msra.gmra.mrb[2].mxu0 %vm660_vm1, %v14289_v42  ;;  %v6466_v49 = vsel %vm434_vm4, %v6463_v3, %v6465_v57  ;;  %v6475_v42 = vsel %vm454_vm5, %v6473_v44, %v6471_v27  ;;  %v6541_v3 = vpop.permute.xlu1 %6540 }
 0x16e   : > { %14295 = vmatpush1.msk.msra.mxu0 %vm664_vm0, %v15856_v33  ;;  %4992 = vmatprep.mubr.f32.mxu0 %v15154_v4  ;;  %v16231_v39 = vmul.f32 %v6466_v49, %v15402_v24  ;;  %v6542_v57 = vsel %vm454_vm5, %v6539_v35, %v6541_v3  ;;  %v6543_v27 = vsel %vm454_vm5, %v6541_v3, %v6539_v35  ;;  %v14383_v3 = vld [vmem:[%s17516_s7 + $0x4] sm:$0x7] }
 0x16f   : > { %14373 = vmatprep.subr.msk.mxu0 %vm664_vm0, %v16201_v18  ;;  %v16281_v49 = vmul.f32 %v6542_v57, %v15437_v37  ;;  %v16306_v28 = vmul.f32 %v6543_v27, %v15449_v40  ;;  %v14387_v27 = vld [vmem:[%s17515_s6 + $0x8] sm:$0x7] }
 0x170   : > { %v6479_v44 = vpop.permute.xlu0 %6478 }
 0x173   : > { %14311 = vmatmul.mubr.msk.f32.vlgmr.msra.gmra.mrb[4].mxu1 %vm660_vm1, %v14308_v46  ;;  %v16278_v46 = vmul.f32 %v6475_v42, %v15449_v40 }
 0x174   : > { %14314 = vmatpush1.msk.msra.mxu1 %vm664_vm0, %v15503_v58  ;;  %5321 = vmatprep.mubr.f32.mxu1 %v15154_v4  ;;  %v16248_v58 = vmul.f32 %v6467_v29, %v15399_v23  ;;  %v14379_v29 = vld [vmem:[%s17515_s6 + $0x4] sm:$0x7] }
 0x175   : > { %14317 = vmatprep.subr.msk.mxu1 %vm664_vm0, %v15509_v60  ;;  %14296 = vmatmul.mubr.msk.f32.vlgmr.msra.gmra.mrb[2].mxu0 %vm660_vm1, %v14293_v0  ;;  %v14312_v60 = vld [vmem:[%s17513_s4 + $0x70] sm:$0x7] }
 0x176   : > { %14374 = vmatpush1.msk.msra.mxu0 %vm664_vm0, %v16222_v30  ;;  %6669 = vmatprep.mubr.f32.mxu0 %v15154_v4 }
 0x177   : > { %14376 = vmatprep.subr.msk.mxu0 %vm664_vm0, %v16231_v39 }
 0x179   : > { %14375 = vmatmul.mubr.msk.f32.vlgmr.msra.gmra.mrb[4].mxu0 %vm660_vm1, %v6595_v45 }
 0x17a   : > { %14377 = vmatpush1.msk.msra.mxu0 %vm664_vm0, %v16248_v58  ;;  %6749 = vmatprep.mubr.f32.mxu0 %v15154_v4 }
 0x17b   : > { %14315 = vmatmul.mubr.msk.f32.vlgmr.msra.gmra.mrb[4].mxu1 %vm660_vm1, %v14312_v60  ;;  %14380 = vmatprep.subr.msk.mxu0 %vm664_vm0, %v16253_v34  ;;  %v6547_v60 = vpop.permute.xlu0 %6546 }
 0x17c   : > { %14318 = vmatpush1.msk.msra.mxu1 %vm664_vm0, %v15542_v14  ;;  %5401 = vmatprep.mubr.f32.mxu1 %v15154_v4  ;;  %v14316_v14 = vld [vmem:[%s17512_s3 + $0x74] sm:$0x7] }
 0x17d   : > { %14321 = vmatprep.subr.msk.mxu1 %vm664_vm0, %v15549_v20  ;;  %v6481_v20 = vpop.permute.xlu1 %6480 }
 0x17e   : > { %v6482_v0 = vsel %vm474_vm7, %v6479_v44, %v6481_v20  ;;  %v6483_v35 = vsel %vm474_vm7, %v6481_v20, %v6479_v44 }
 0x17f   : > { %v16309_v45 = vmul.f32 %v6482_v0, %v15492_v54  ;;  %v16334_v57 = vmul.f32 %v6483_v35, %v15521_v63 }
 0x181   : > { %14378 = vmatmul.mubr.msk.f32.vlgmr.msra.gmra.mrb[4].mxu0 %vm660_vm1, %v6594_v1 }
 0x182   : > { %14381 = vmatpush1.msk.msra.mxu0 %vm664_vm0, %v16278_v46  ;;  %6831 = vmatprep.mubr.f32.mxu0 %v15154_v4 }
 0x183   : > { %14319 = vmatmul.mubr.msk.f32.vlgmr.msra.gmra.mrb[4].mxu1 %vm660_vm1, %v14316_v14  ;;  %14384 = vmatprep.subr.msk.mxu0 %vm664_vm0, %v16281_v49  ;;  %v6487_v14 = vpop.permute.xlu0 %6486 }
 0x184   : > { %14322 = vmatpush1.msk.msra.mxu1 %vm664_vm0, %v15605_v47  ;;  %5477 = vmatprep.mubr.f32.mxu1 %v15154_v4  ;;  %v14320_v47 = vld [vmem:[%s17513_s4 + $0x74] sm:$0x7] }
 0x185   : > { %14325 = vmatprep.subr.msk.mxu1 %vm664_vm0, %v15620_v53  ;;  %v6549_v53 = vpop.permute.xlu1 %6548 }
 0x186   : > { %v6550_v42 = vsel %vm474_vm7, %v6547_v60, %v6549_v53  ;;  %v6551_v44 = vsel %vm474_vm7, %v6549_v53, %v6547_v60  ;;  %v15140_v53 = vld [vmem:[%s15254_s14] sm:$0x77] }
 0x187   : > { %v16337_v1 = vmul.f32 %v6550_v42, %v15492_v54  ;;  %v16362_v0 = vmul.f32 %v6551_v44, %v15521_v63  ;;  %v14391_v42 = vld [vmem:[%s17516_s7 + $0x8] sm:$0x7] }
 0x189   : > { %14382 = vmatmul.mubr.msk.f32.vlgmr.msra.gmra.mrb[4].mxu0 %vm660_vm1, %v14379_v29 }
 0x18a   : > { %14385 = vmatpush1.msk.msra.mxu0 %vm664_vm0, %v16306_v28  ;;  %6913 = vmatprep.mubr.f32.mxu0 %v15154_v4 }
 0x18b   : > { %14323 = vmatmul.mubr.msk.f32.vlgmr.msra.gmra.mrb[4].mxu1 %vm660_vm1, %v14320_v47  ;;  %14388 = vmatprep.subr.msk.mxu0 %vm664_vm0, %v16309_v45  ;;  %v6555_v47 = vpop.permute.xlu0 %6554 }
 0x18c   : > { %14326 = vmatpush1.msk.msra.mxu1 %vm664_vm0, %v15680_v32  ;;  %5557 = vmatprep.mubr.f32.mxu1 %v15154_v4  ;;  %v14324_v32 = vld [vmem:[%s17512_s3 + $0x78] sm:$0x7] }
 0x18d   : > { %14329 = vmatprep.subr.msk.mxu1 %vm664_vm0, %v15688_v41  ;;  %v6489_v41 = vpop.permute.xlu1 %6488 }
 0x18e   : > { %v6490_v20 = vsel %vm494_vm10, %v6487_v14, %v6489_v41  ;;  %v6491_v60 = vsel %vm494_vm10, %v6489_v41, %v6487_v14  ;;  %v14332_v14 = vld [vmem:[%s17512_s3 + $0x7c] sm:$0x7]  ;;  %v15141_v41 = vld [vmem:[#allocation2] sm:$0x77] }
 0x18f   : > { %v16365_v29 = vmul.f32 %v6490_v20, %v15569_v26  ;;  %v14395_v20 = vld [vmem:[%s17515_s6 + $0xc] sm:$0x7] }
 0x191   : > { %14386 = vmatmul.mubr.msk.f32.vlgmr.msra.gmra.mrb[4].mxu0 %vm660_vm1, %v14383_v3  ;;  %v16390_v3 = vmul.f32 %v6491_v60, %v15643_v10  ;;  %v6495_v60 = vpop.permute.xlu0 %6494 }
 0x192   : > { %14389 = vmatpush1.msk.msra.mxu0 %vm664_vm0, %v16334_v57  ;;  %6999 = vmatprep.mubr.f32.mxu0 %v15154_v4 }
 0x193   : > { %14327 = vmatmul.mubr.msk.f32.vlgmr.msra.gmra.mrb[4].mxu1 %vm660_vm1, %v14324_v32  ;;  %14392 = vmatprep.subr.msk.mxu0 %vm664_vm0, %v16337_v1 }
 0x194   : > { %14330 = vmatpush1.msk.msra.mxu1 %vm664_vm0, %v15733_v13  ;;  %5633 = vmatprep.mubr.f32.mxu1 %v15154_v4  ;;  %v14328_v13 = vld [vmem:[%s17513_s4 + $0x78] sm:$0x7] }
 0x195   : > { %14333 = vmatprep.subr.msk.mxu1 %vm664_vm0, %v15269_v5  ;;  %v6557_v5 = vpop.permute.xlu1 %6556 }
 0x196   : > { %v6558_v35 = vsel %vm494_vm10, %v6555_v47, %v6557_v5 }
 0x197   : > { %v16393_v32 = vmul.f32 %v6558_v35, %v15569_v26  ;;  %v14403_v35 = vld [vmem:[%s17515_s6 + $0x10] sm:$0x7] }
 0x199   : > { %14390 = vmatmul.mubr.msk.f32.vlgmr.msra.gmra.mrb[4].mxu0 %vm660_vm1, %v14387_v27 }
 0x19a   : > { %14393 = vmatpush1.msk.msra.mxu0 %vm664_vm0, %v16362_v0  ;;  %7081 = vmatprep.mubr.f32.mxu0 %v15154_v4 }
 0x19b   : > { %14331 = vmatmul.mubr.msk.f32.vlgmr.msra.gmra.mrb[4].mxu1 %vm660_vm1, %v14328_v13  ;;  %14396 = vmatprep.subr.msk.mxu0 %vm664_vm0, %v16365_v29 }
 0x19c   : > { %14334 = vmatpush1.msk.msra.mxu1 %vm664_vm0, %v15140_v53  ;;  %5713 = vmatprep.mubr.f32.mxu1 %v15154_v4  ;;  %v16440_v53 = vld [vmem:[%s15354_s17] sm:$0x77] }
 0x19d   : > { %14337 = vmatprep.subr.msk.mxu1 %vm664_vm0, %v15258_v2  ;;  %v6559_v2 = vsel %vm494_vm10, %v6557_v5, %v6555_v47  ;;  %v14336_v47 = vld [vmem:[%s17513_s4 + $0x7c] sm:$0x7]  ;;  %v14340_v5 = vld [vmem:[%s17512_s3 + $0x80] sm:$0x7] }
 0x19e   : > { %v16415_v27 = vmul.f32 %v6559_v2, %v15643_v10  ;;  %v16465_v2 = vld [vmem:[#allocation4] sm:$0x77] }
 0x1a1   : > { %14394 = vmatmul.mubr.msk.f32.vlgmr.msra.gmra.mrb[4].mxu0 %vm660_vm1, %v14391_v42 }
 0x1a2   : > { %14397 = vmatpush1.msk.msra.mxu0 %vm664_vm0, %v16390_v3  ;;  %7167 = vmatprep.mubr.f32.mxu0 %v15154_v4 }
 0x1a3   : > { %14335 = vmatmul.mubr.msk.f32.vlgmr.msra.gmra.mrb[4].mxu1 %vm660_vm1, %v14332_v14  ;;  %14400 = vmatprep.subr.msk.mxu0 %vm664_vm0, %v16393_v32  ;;  %v14344_v14 = vld [vmem:[%s17513_s4 + $0x80] sm:$0x7] }
 0x1a4   : > { %14338 = vmatpush1.msk.msra.mxu1 %vm664_vm0, %v15141_v41  ;;  %5789 = vmatprep.mubr.f32.mxu1 %v15154_v4 }
 0x1a5   : > { %14341 = vmatprep.subr.msk.mxu1 %vm664_vm0, %v15587_v38  ;;  %v14399_v38 = vld [vmem:[%s17516_s7 + $0xc] sm:$0x7] }
 0x1a6   : > { %v1401_v44 = vpop.f32.mrb[0].mxu1 }
 0x1a7   : > { %v1403_v13 = vpop.f32.mrb[1].mxu1 }
 0x1a9   : > { %14398 = vmatmul.mubr.msk.f32.vlgmr.msra.gmra.mrb[4].mxu0 %vm660_vm1, %v14395_v20  ;;  %v14667_v20 = vld [vmem:[%s17517_s8 + $0xc] sm:$0x7] }
 0x1aa   : > { %14401 = vmatpush1.msk.msra.mxu0 %vm664_vm0, %v16415_v27  ;;  %7249 = vmatprep.mubr.f32.mxu0 %v15154_v4 }
 0x1ab   : > { %14339 = vmatmul.mubr.msk.f32.vlgmr.msra.gmra.mrb[4].mxu1 %vm660_vm1, %v14336_v47  ;;  %14404 = vmatprep.subr.msk.mxu0 %vm664_vm0, %v15369_v12 }
 0x1ac   : > { %14342 = vmatpush1.msk.msra.mxu1 %vm664_vm0, %v15584_v36  ;;  %5869 = vmatprep.mubr.f32.mxu1 %v15154_v4  ;;  %v6497_v36 = vpop.permute.xlu1 %6496 }
 0x1ad   : > { %14345 = vmatprep.subr.msk.mxu1 %vm664_vm0, %v15627_v56  ;;  %v6499_v56 = vsel %vm514_vm9, %v6497_v36, %v6495_v60  ;;  %v6498_v41 = vsel %vm514_vm9, %v6495_v60, %v6497_v36  ;;  %12362 = vperm.xlu0 %15068, %v14667_v20  }
 0x1ae   : > { %v16459_v42 = vmul.f32 %v6499_v56, %v15557_v22  ;;  %v14407_v56 = vld [vmem:[%s17516_s7 + $0x10] sm:$0x7] }
 0x1b1   : > { %14402 = vmatmul.mubr.msk.f32.vlgmr.msra.gmra.mrb[4].mxu0 %vm660_vm1, %v14399_v38 }
 0x1b2   : > { %14405 = vmatpush1.msk.msra.mxu0 %vm664_vm0, %v16440_v53  ;;  %7333 = vmatprep.mubr.f32.mxu0 %v15154_v4 }
 0x1b3   : > { %14343 = vmatmul.mubr.msk.f32.vlgmr.msra.gmra.mrb[4].mxu1 %vm660_vm1, %v14340_v5  ;;  %14408 = vmatprep.subr.msk.mxu0 %vm664_vm0, %v15344_v8 }
 0x1b4   : > { %14346 = vmatpush1.msk.msra.mxu1 %vm664_vm0, %v15624_v55  ;;  %5945 = vmatprep.mubr.f32.mxu1 %v15154_v4  ;;  %v6563_v55 = vpop.permute.xlu0 %6562 }
 0x1b5   : > { %14349 = vmatprep.subr.msk.mxu1 %vm664_vm0, %v15659_v16  ;;  %v6565_v16 = vpop.permute.xlu1 %6564 }
 0x1b6   : > { %v6567_v38 = vsel %vm514_vm9, %v6565_v16, %v6563_v55 }
 0x1b9   : > { %14406 = vmatmul.mubr.msk.f32.vlgmr.msra.gmra.mrb[4].mxu0 %vm660_vm1, %v14403_v35  ;;  %v16496_v35 = vmul.f32 %v6567_v38, %v15557_v22 }
 0x1ba   : > { %14409 = vmatpush1.msk.msra.mxu0 %vm664_vm0, %v16465_v2  ;;  %7413 = vmatprep.mubr.f32.mxu0 %v15154_v4 }
 0x1bb   : > { %14347 = vmatmul.mubr.msk.f32.vlgmr.msra.gmra.mrb[4].mxu1 %vm660_vm1, %v14344_v14  ;;  %14412 = vmatprep.subr.msk.mxu0 %vm664_vm0, %v16459_v42  ;;  %v6505_v14 = vpop.permute.xlu1 %6504 }
 0x1bc   : > { %14350 = vmatpush1.msk.msra.mxu1 %vm664_vm0, %v15671_v61  ;;  %v2153_v47 = vpop.f32.mrb[0].mxu0  ;;  %6025 = vmatprep.mubr.f32.mxu1 %v15154_v4  ;;  %v16493_v61 = vmul.f32 %v6498_v41, %v15553_v11  ;;  %v6566_v41 = vsel %vm514_vm9, %v6563_v55, %v6565_v16 }
 0x1bd   : > { %v16483_v5 = vadd.f32 %v2153_v47, %v1401_v44  ;;  %14353 = vmatprep.subr.msk.mxu1 %vm664_vm0, %v15692_v7  ;;  %v2155_v60 = vpop.f32.mrb[1].mxu0  ;;  %v14372_v44 = vld [vmem:[%s17514_s5 + $0xc] sm:$0x7]  ;;  %v14348_v7 = vld [vmem:[%s17512_s3 + $0x84] sm:$0x7]  ;;  %v16524_v55 = vmul.f32 %v6566_v41, %v15553_v11 }
 0x1be   : > { %v16487_v36 = vadd.f32 %v2155_v60, %v1403_v13  ;;  %v6503_v13 = vpop.permute.xlu0 %6502  ;;  %6428 = vperm.xlu0 %15068, %v14372_v44   ;;  %v14411_v47 = vld [vmem:[%s17515_s6 + $0x14] sm:$0x7] }
 0x1bf   : > { %v6507_v20 = vsel %vm534_vm11, %v6505_v14, %v6503_v13  ;;  %v6506_v60 = vsel %vm534_vm11, %v6503_v13, %v6505_v14  ;;  %v14415_v44 = vld [vmem:[%s17516_s7 + $0x14] sm:$0x7] }
 0x1c0   : > { %v16527_v16 = vmul.f32 %v6507_v20, %v15617_v52 }
 0x1c1   : > { %14410 = vmatmul.mubr.msk.f32.vlgmr.msra.gmra.mrb[4].mxu0 %vm660_vm1, %v14407_v56 }
 0x1c2   : > { %14413 = vmatpush1.msk.msra.mxu0 %vm664_vm0, %v16493_v61  ;;  %7499 = vmatprep.mubr.f32.mxu0 %v15154_v4  ;;  %v6571_v38 = vpop.permute.xlu0 %6570 }
 0x1c3   : > { %14351 = vmatmul.mubr.msk.f32.vlgmr.msra.gmra.mrb[4].mxu1 %vm660_vm1, %v14348_v7  ;;  %14416 = vmatprep.subr.msk.mxu0 %vm664_vm0, %v16496_v35  ;;  %v16552_v7 = vmul.f32 %v6506_v60, %v15634_v59 }
 0x1c4   : > { %14354 = vmatpush1.msk.msra.mxu1 %vm664_vm0, %v15724_v9  ;;  %6101 = vmatprep.mubr.f32.mxu1 %v15154_v4  ;;  %v14352_v9 = vld [vmem:[%s17513_s4 + $0x84] sm:$0x7] }
 0x1c5   : > { %14357 = vmatprep.subr.msk.mxu1 %vm664_vm0, %v15730_v6  ;;  %v6573_v6 = vpop.permute.xlu1 %6572 }
 0x1c6   : > { %v6575_v56 = vsel %vm534_vm11, %v6573_v6, %v6571_v38  ;;  %v6511_v14 = vpop.permute.xlu0 %6510  ;;  %v6574_v41 = vsel %vm534_vm11, %v6571_v38, %v6573_v6 }
 0x1c7   : > { %v16555_v13 = vmul.f32 %v6575_v56, %v15617_v52 }
 0x1c9   : > { %14414 = vmatmul.mubr.msk.f32.vlgmr.msra.gmra.mrb[4].mxu0 %vm660_vm1, %v14411_v47  ;;  %v14419_v47 = vld [vmem:[%s17515_s6 + $0x18] sm:$0x7] }
 0x1ca   : > { %14417 = vmatpush1.msk.msra.mxu0 %vm664_vm0, %v16524_v55  ;;  %7581 = vmatprep.mubr.f32.mxu0 %v15154_v4  ;;  %v6579_v6 = vpop.permute.xlu0 %6578 }
 0x1cb   : > { %14355 = vmatmul.mubr.msk.f32.vlgmr.msra.gmra.mrb[4].mxu1 %vm660_vm1, %v14352_v9  ;;  %14420 = vmatprep.subr.msk.mxu0 %vm664_vm0, %v16527_v16  ;;  %v16580_v9 = vmul.f32 %v6574_v41, %v15634_v59 }
 0x1cc   : > { %14358 = vmatpush1.msk.msra.mxu1 %vm664_vm0, %v15765_v43  ;;  %6181 = vmatprep.mubr.f32.mxu1 %v15154_v4  ;;  %v14356_v43 = vld [vmem:[%s17512_s3 + $0x88] sm:$0x7] }
 0x1cd   : > { %14361 = vmatprep.subr.msk.mxu1 %vm664_vm0, %v15768_v50  ;;  %v6513_v50 = vpop.permute.xlu1 %6512 }
 0x1ce   : > { %v6515_v20 = vsel %vm554_vm12, %v6513_v50, %v6511_v14  ;;  %v6514_v60 = vsel %vm554_vm12, %v6511_v14, %v6513_v50  ;;  %v6519_v41 = vpop.permute.xlu0 %6518 }
 0x1cf   : > { %v16583_v38 = vmul.f32 %v6515_v20, %v15705_v51 }
 0x1d1   : > { %14418 = vmatmul.mubr.msk.f32.vlgmr.msra.gmra.mrb[4].mxu0 %vm660_vm1, %v14415_v44  ;;  %v14423_v44 = vld [vmem:[%s17516_s7 + $0x18] sm:$0x7] }
 0x1d2   : > { %14421 = vmatpush1.msk.msra.mxu0 %vm664_vm0, %v16552_v7  ;;  %7667 = vmatprep.mubr.f32.mxu0 %v15154_v4 }
 0x1d3   : > { %14359 = vmatmul.mubr.msk.f32.vlgmr.msra.gmra.mrb[4].mxu1 %vm660_vm1, %v14356_v43  ;;  %14424 = vmatprep.subr.msk.mxu0 %vm664_vm0, %v16555_v13  ;;  %v16608_v43 = vmul.f32 %v6514_v60, %v15744_v62 }
 0x1d4   : > { %14362 = vmatpush1.msk.msra.mxu1 %vm664_vm0, %v15799_v31  ;;  %6257 = vmatprep.mubr.f32.mxu1 %v15154_v4  ;;  %v14360_v31 = vld [vmem:[%s17513_s4 + $0x88] sm:$0x7] }
 0x1d5   : > { %14365 = vmatprep.subr.msk.mxu1 %vm664_vm0, %v15802_v19  ;;  %v6581_v19 = vpop.permute.xlu1 %6580 }
 0x1d6   : > { %v6583_v56 = vsel %vm554_vm12, %v6581_v19, %v6579_v6  ;;  %v6582_v50 = vsel %vm554_vm12, %v6579_v6, %v6581_v19  ;;  %v6587_v19 = vpop.permute.xlu0 %6586 }
 0x1d7   : > { %v16611_v14 = vmul.f32 %v6583_v56, %v15705_v51 }
 0x1d9   : > { %14422 = vmatmul.mubr.msk.f32.vlgmr.msra.gmra.mrb[4].mxu0 %vm660_vm1, %v14419_v47  ;;  %v14427_v47 = vld [vmem:[%s17515_s6 + $0x1c] sm:$0x7] }
 0x1da   : > { %14425 = vmatpush1.msk.msra.mxu0 %vm664_vm0, %v16580_v9  ;;  %7749 = vmatprep.mubr.f32.mxu0 %v15154_v4 }
 0x1db   : > { %14363 = vmatmul.mubr.msk.f32.vlgmr.msra.gmra.mrb[4].mxu1 %vm660_vm1, %v14360_v31  ;;  %14428 = vmatprep.subr.msk.mxu0 %vm664_vm0, %v16583_v38  ;;  %v16636_v31 = vmul.f32 %v6582_v50, %v15744_v62  ;;  %v14431_v50 = vld [vmem:[%s17516_s7 + $0x1c] sm:$0x7] }
 0x1dc   : > { %14366 = vmatpush1.msk.msra.mxu1 %vm664_vm0, %v15830_v15  ;;  %6337 = vmatprep.mubr.f32.mxu1 %v15154_v4  ;;  %v14364_v15 = vld [vmem:[%s17512_s3 + $0x8c] sm:$0x7] }
 0x1dd   : > { %14369 = vmatprep.subr.msk.mxu1 %vm664_vm0, %v15837_v25  ;;  %v6521_v25 = vpop.permute.xlu1 %6520 }
 0x1de   : > { %v6523_v20 = vsel %vm574_vm13, %v6521_v25, %v6519_v41  ;;  %v6522_v56 = vsel %vm574_vm13, %v6519_v41, %v6521_v25 }
 0x1df   : > { %v16639_v6 = vmul.f32 %v6523_v20, %v15786_v21  ;;  %v16664_v25 = vmul.f32 %v6522_v56, %v15809_v48  ;;  %v14435_v56 = vld [vmem:[%s17515_s6 + $0x20] sm:$0x7] }
 0x1e1   : > { %14426 = vmatmul.mubr.msk.f32.vlgmr.msra.gmra.mrb[4].mxu0 %vm660_vm1, %v14423_v44  ;;  %v6589_v60 = vpop.permute.xlu1 %6588  ;;  %v14446_v44 = vld [vmem:[%s17516_s7 + $0x24] sm:$0x7] }
 0x1e2   : > { %14429 = vmatpush1.msk.msra.mxu0 %vm664_vm0, %v16608_v43  ;;  %7835 = vmatprep.mubr.f32.mxu0 %v15154_v4  ;;  %v6590_v20 = vsel %vm574_vm13, %v6587_v19, %v6589_v60 }
 0x1e3   : > { %14367 = vmatmul.mubr.msk.f32.vlgmr.msra.gmra.mrb[4].mxu1 %vm660_vm1, %v14364_v15  ;;  %14432 = vmatprep.subr.msk.mxu0 %vm664_vm0, %v16611_v14  ;;  %v6591_v15 = vsel %vm574_vm13, %v6589_v60, %v6587_v19  ;;  %v14453_v19 = vld [vmem:[%s17515_s6 + $0x28] sm:$0x7]  ;;  %v14439_v60 = vld [vmem:[%s17516_s7 + $0x20] sm:$0x7] }
 0x1e4   : > { %14370 = vmatpush1.msk.msra.mxu1 %vm664_vm0, %v15856_v33  ;;  %6413 = vmatprep.mubr.f32.mxu1 %v15154_v4  ;;  %v14368_v33 = vld [vmem:[%s17513_s4 + $0x8c] sm:$0x7]  ;;  %v16671_v41 = vmul.f32 %v6591_v15, %v15786_v21  ;;  %v14457_v15 = vld [vmem:[%s17516_s7 + $0x28] sm:$0x7] }
 0x1e5   : > { %14447 = vmatprep.subr.msk.mxu1 %vm664_vm0, %v16201_v18 }
 0x1e9   : > { %14430 = vmatmul.mubr.msk.f32.vlgmr.msra.gmra.mrb[4].mxu0 %vm660_vm1, %v14427_v47  ;;  %v14445_v47 = vld [vmem:[%s17515_s6 + $0x24] sm:$0x7] }
 0x1ea   : > { %14433 = vmatpush1.msk.msra.mxu0 %vm664_vm0, %v16636_v31  ;;  %7917 = vmatprep.mubr.f32.mxu0 %v15154_v4 }
 0x1eb   : > { %14371 = vmatmul.mubr.msk.f32.vlgmr.msra.gmra.mrb[4].mxu1 %vm660_vm1, %v14368_v33  ;;  %14436 = vmatprep.subr.msk.mxu0 %vm664_vm0, %v16639_v6  ;;  %v16690_v33 = vmul.f32 %v6590_v20, %v15809_v48  ;;  %v14461_v20 = vld [vmem:[%s17515_s6 + $0x2c] sm:$0x7] }
 0x1ec   : > { %14448 = vmatpush1.msk.msra.mxu1 %vm664_vm0, %v16222_v30  ;;  %8187 = vmatprep.mubr.f32.mxu1 %v15154_v4 }
 0x1ed   : > { %14450 = vmatprep.subr.msk.mxu1 %vm664_vm0, %v16231_v39 }
 0x1ef   : > { %14449 = vmatmul.mubr.msk.f32.vlgmr.msra.gmra.mrb[6].mxu1 %vm660_vm1, %v14446_v44  ;;  %v14521_v44 = vld [vmem:[%s17516_s7 + $0x48] sm:$0x7] }
 0x1f0   : > { %14451 = vmatpush1.msk.msra.mxu1 %vm664_vm0, %v16248_v58  ;;  %8261 = vmatprep.mubr.f32.mxu1 %v15154_v4 }
 0x1f1   : > { %14434 = vmatmul.mubr.msk.f32.vlgmr.msra.gmra.mrb[4].mxu0 %vm660_vm1, %v14431_v50  ;;  %14454 = vmatprep.subr.msk.mxu1 %vm664_vm0, %v16253_v34  ;;  %v14520_v50 = vld [vmem:[%s17515_s6 + $0x48] sm:$0x7] }
 0x1f2   : > { %14437 = vmatpush1.msk.msra.mxu0 %vm664_vm0, %v16664_v25  ;;  %8003 = vmatprep.mubr.f32.mxu0 %v15154_v4 }
 0x1f3   : > { %14440 = vmatprep.subr.msk.mxu0 %vm664_vm0, %v16671_v41 }
 0x1f7   : > { %14452 = vmatmul.mubr.msk.f32.vlgmr.msra.gmra.mrb[6].mxu1 %vm660_vm1, %v14445_v47  ;;  %v14528_v47 = vld [vmem:[%s17515_s6 + $0x4c] sm:$0x7] }
 0x1f8   : > { %14455 = vmatpush1.msk.msra.mxu1 %vm664_vm0, %v16278_v46  ;;  %8337 = vmatprep.mubr.f32.mxu1 %v15154_v4 }
 0x1f9   : > { %14438 = vmatmul.mubr.msk.f32.vlgmr.msra.gmra.mrb[4].mxu0 %vm660_vm1, %v14435_v56  ;;  %14458 = vmatprep.subr.msk.mxu1 %vm664_vm0, %v16281_v49  ;;  %v14465_v56 = vld [vmem:[%s17516_s7 + $0x2c] sm:$0x7] }
 0x1fa   : > { %14441 = vmatpush1.msk.msra.mxu0 %vm664_vm0, %v16690_v33  ;;  %8085 = vmatprep.mubr.f32.mxu0 %v15154_v4 }
 0x1fb   : > { %14522 = vmatprep.subr.msk.mxu0 %vm664_vm0, %v16201_v18 }
 0x1ff   : > { %14456 = vmatmul.mubr.msk.f32.vlgmr.msra.gmra.mrb[6].mxu1 %vm660_vm1, %v14453_v19  ;;  %v14532_v19 = vld [vmem:[%s17516_s7 + $0x4c] sm:$0x7] }
 0x200   : > { %14459 = vmatpush1.msk.msra.mxu1 %vm664_vm0, %v16306_v28  ;;  %8413 = vmatprep.mubr.f32.mxu1 %v15154_v4 }
 0x201   : > { %14442 = vmatmul.mubr.msk.f32.vlgmr.msra.gmra.mrb[4].mxu0 %vm660_vm1, %v14439_v60  ;;  %14462 = vmatprep.subr.msk.mxu1 %vm664_vm0, %v16309_v45  ;;  %v14469_v60 = vld [vmem:[%s17515_s6 + $0x30] sm:$0x7] }
 0x202   : > { %14523 = vmatpush1.msk.msra.mxu0 %vm664_vm0, %v16222_v30  ;;  %9608 = vmatprep.mubr.f32.mxu0 %v15154_v4 }
 0x203   : > { %14525 = vmatprep.subr.msk.mxu0 %vm664_vm0, %v16231_v39 }
 0x205   : > { %14524 = vmatmul.mubr.msk.f32.vlgmr.msra.gmra.mrb[6].mxu0 %vm660_vm1, %v14521_v44  ;;  %v14536_v44 = vld [vmem:[%s17515_s6 + $0x50] sm:$0x7] }
 0x206   : > { %14526 = vmatpush1.msk.msra.mxu0 %vm664_vm0, %v16248_v58  ;;  %9682 = vmatprep.mubr.f32.mxu0 %v15154_v4 }
 0x207   : > { %14529 = vmatprep.subr.msk.mxu0 %vm664_vm0, %v16253_v34  ;;  %14460 = vmatmul.mubr.msk.f32.vlgmr.msra.gmra.mrb[6].mxu1 %vm660_vm1, %v14457_v15  ;;  %v14473_v15 = vld [vmem:[%s17516_s7 + $0x30] sm:$0x7] }
 0x208   : > { %14463 = vmatpush1.msk.msra.mxu1 %vm664_vm0, %v16334_v57  ;;  %8493 = vmatprep.mubr.f32.mxu1 %v15154_v4 }
 0x209   : > { %14466 = vmatprep.subr.msk.mxu1 %vm664_vm0, %v16337_v1 }
 0x20d   : > { %14527 = vmatmul.mubr.msk.f32.vlgmr.msra.gmra.mrb[6].mxu0 %vm660_vm1, %v14520_v50  ;;  %v14540_v50 = vld [vmem:[%s17516_s7 + $0x50] sm:$0x7] }
 0x20e   : > { %14530 = vmatpush1.msk.msra.mxu0 %vm664_vm0, %v16278_v46  ;;  %9758 = vmatprep.mubr.f32.mxu0 %v15154_v4 }
 0x20f   : > { %14533 = vmatprep.subr.msk.mxu0 %vm664_vm0, %v16281_v49  ;;  %14464 = vmatmul.mubr.msk.f32.vlgmr.msra.gmra.mrb[6].mxu1 %vm660_vm1, %v14461_v20  ;;  %v14477_v20 = vld [vmem:[%s17515_s6 + $0x34] sm:$0x7] }
 0x210   : > { %14467 = vmatpush1.msk.msra.mxu1 %vm664_vm0, %v16362_v0  ;;  %8569 = vmatprep.mubr.f32.mxu1 %v15154_v4 }
 0x211   : > { %14470 = vmatprep.subr.msk.mxu1 %vm664_vm0, %v16365_v29 }
 0x215   : > { %14531 = vmatmul.mubr.msk.f32.vlgmr.msra.gmra.mrb[6].mxu0 %vm660_vm1, %v14528_v47 }
 0x216   : > { %14534 = vmatpush1.msk.msra.mxu0 %vm664_vm0, %v16306_v28  ;;  %9834 = vmatprep.mubr.f32.mxu0 %v15154_v4 }
 0x217   : > { %14537 = vmatprep.subr.msk.mxu0 %vm664_vm0, %v16309_v45  ;;  %14468 = vmatmul.mubr.msk.f32.vlgmr.msra.gmra.mrb[6].mxu1 %vm660_vm1, %v14465_v56  ;;  %v14544_v56 = vld [vmem:[%s17515_s6 + $0x54] sm:$0x7] }
 0x218   : > { %14471 = vmatpush1.msk.msra.mxu1 %vm664_vm0, %v16390_v3  ;;  %8649 = vmatprep.mubr.f32.mxu1 %v15154_v4 }
 0x219   : > { %14474 = vmatprep.subr.msk.mxu1 %vm664_vm0, %v16393_v32 }
 0x21d   : > { %14535 = vmatmul.mubr.msk.f32.vlgmr.msra.gmra.mrb[6].mxu0 %vm660_vm1, %v14532_v19 }
 0x21e   : > { %14538 = vmatpush1.msk.msra.mxu0 %vm664_vm0, %v16334_v57  ;;  %9914 = vmatprep.mubr.f32.mxu0 %v15154_v4 }
 0x21f   : > { %14541 = vmatprep.subr.msk.mxu0 %vm664_vm0, %v16337_v1  ;;  %14472 = vmatmul.mubr.msk.f32.vlgmr.msra.gmra.mrb[6].mxu1 %vm660_vm1, %v14469_v60  ;;  %v14481_v60 = vld [vmem:[%s17516_s7 + $0x34] sm:$0x7] }
 0x220   : > { %14475 = vmatpush1.msk.msra.mxu1 %vm664_vm0, %v16415_v27  ;;  %8725 = vmatprep.mubr.f32.mxu1 %v15154_v4 }
 0x221   : > { %14478 = vmatprep.subr.msk.mxu1 %vm664_vm0, %v15369_v12 }
 0x225   : > { %14539 = vmatmul.mubr.msk.f32.vlgmr.msra.gmra.mrb[6].mxu0 %vm660_vm1, %v14536_v44  ;;  %v14548_v44 = vld [vmem:[%s17516_s7 + $0x54] sm:$0x7] }
 0x226   : > { %14542 = vmatpush1.msk.msra.mxu0 %vm664_vm0, %v16362_v0  ;;  %9990 = vmatprep.mubr.f32.mxu0 %v15154_v4 }
 0x227   : > { %14545 = vmatprep.subr.msk.mxu0 %vm664_vm0, %v16365_v29  ;;  %14476 = vmatmul.mubr.msk.f32.vlgmr.msra.gmra.mrb[6].mxu1 %vm660_vm1, %v14473_v15  ;;  %v14485_v15 = vld [vmem:[%s17515_s6 + $0x38] sm:$0x7] }
 0x228   : > { %14479 = vmatpush1.msk.msra.mxu1 %vm664_vm0, %v16440_v53  ;;  %8805 = vmatprep.mubr.f32.mxu1 %v15154_v4 }
 0x229   : > { %14482 = vmatprep.subr.msk.mxu1 %vm664_vm0, %v15344_v8 }
 0x22d   : > { %14543 = vmatmul.mubr.msk.f32.vlgmr.msra.gmra.mrb[6].mxu0 %vm660_vm1, %v14540_v50  ;;  %v14552_v50 = vld [vmem:[%s17515_s6 + $0x58] sm:$0x7] }
 0x22e   : > { %14546 = vmatpush1.msk.msra.mxu0 %vm664_vm0, %v16390_v3  ;;  %10070 = vmatprep.mubr.f32.mxu0 %v15154_v4 }
 0x22f   : > { %14549 = vmatprep.subr.msk.mxu0 %vm664_vm0, %v16393_v32  ;;  %14480 = vmatmul.mubr.msk.f32.vlgmr.msra.gmra.mrb[6].mxu1 %vm660_vm1, %v14477_v20  ;;  %v14489_v20 = vld [vmem:[%s17516_s7 + $0x38] sm:$0x7] }
 0x230   : > { %14483 = vmatpush1.msk.msra.mxu1 %vm664_vm0, %v16465_v2  ;;  %8881 = vmatprep.mubr.f32.mxu1 %v15154_v4 }
 0x231   : > { %14486 = vmatprep.subr.msk.mxu1 %vm664_vm0, %v16459_v42 }
 0x232   : > { %v16833_v47 = vpop.f32.mrb[2].mxu1 }
 0x233   : > { %v16838_v19 = vpop.f32.mrb[3].mxu1 }
 0x235   : > { %14547 = vmatmul.mubr.msk.f32.vlgmr.msra.gmra.mrb[6].mxu0 %vm660_vm1, %v14544_v56 }
 0x236   : > { %14550 = vmatpush1.msk.msra.mxu0 %vm664_vm0, %v16415_v27  ;;  %10146 = vmatprep.mubr.f32.mxu0 %v15154_v4 }
 0x237   : > { %14484 = vmatmul.mubr.msk.f32.vlgmr.msra.gmra.mrb[6].mxu1 %vm660_vm1, %v14481_v60  ;;  %14553 = vmatprep.subr.msk.mxu0 %vm664_vm0, %v15369_v12 }
 0x238   : > { %14487 = vmatpush1.msk.msra.mxu1 %vm664_vm0, %v16493_v61  ;;  %8961 = vmatprep.mubr.f32.mxu1 %v15154_v4 }
 0x239   : > { %14490 = vmatprep.subr.msk.mxu1 %vm664_vm0, %v16496_v35 }
 0x23d   : > { %14551 = vmatmul.mubr.msk.f32.vlgmr.msra.gmra.mrb[6].mxu0 %vm660_vm1, %v14548_v44  ;;  %v14556_v44 = vld [vmem:[%s17516_s7 + $0x58] sm:$0x7] }
 0x23e   : > { %14554 = vmatpush1.msk.msra.mxu0 %vm664_vm0, %v16440_v53  ;;  %10226 = vmatprep.mubr.f32.mxu0 %v15154_v4 }
 0x23f   : > { %14488 = vmatmul.mubr.msk.f32.vlgmr.msra.gmra.mrb[6].mxu1 %vm660_vm1, %v14485_v15  ;;  %14557 = vmatprep.subr.msk.mxu0 %vm664_vm0, %v15344_v8  ;;  %v14493_v15 = vld [vmem:[%s17515_s6 + $0x3c] sm:$0x7] }
 0x240   : > { %14491 = vmatpush1.msk.msra.mxu1 %vm664_vm0, %v16524_v55  ;;  %9037 = vmatprep.mubr.f32.mxu1 %v15154_v4 }
 0x241   : > { %14494 = vmatprep.subr.msk.mxu1 %vm664_vm0, %v16527_v16 }
 0x245   : > { %14555 = vmatmul.mubr.msk.f32.vlgmr.msra.gmra.mrb[6].mxu0 %vm660_vm1, %v14552_v50  ;;  %v14560_v50 = vld [vmem:[%s17515_s6 + $0x5c] sm:$0x7] }
 0x246   : > { %14558 = vmatpush1.msk.msra.mxu0 %vm664_vm0, %v16465_v2  ;;  %10302 = vmatprep.mubr.f32.mxu0 %v15154_v4 }
 0x247   : > { %14561 = vmatprep.subr.msk.mxu0 %vm664_vm0, %v16459_v42  ;;  %14492 = vmatmul.mubr.msk.f32.vlgmr.msra.gmra.mrb[6].mxu1 %vm660_vm1, %v14489_v20  ;;  %v14497_v20 = vld [vmem:[%s17516_s7 + $0x3c] sm:$0x7] }
 0x248   : > { %v16886_v56 = vpop.f32.mrb[2].mxu0  ;;  %14495 = vmatpush1.msk.msra.mxu1 %vm664_vm0, %v16552_v7  ;;  %9117 = vmatprep.mubr.f32.mxu1 %v15154_v4 }
 0x249   : > { %v16891_v60 = vpop.f32.mrb[3].mxu0  ;;  %14498 = vmatprep.subr.msk.mxu1 %vm664_vm0, %v16555_v13 }
 0x24d   : > { %14559 = vmatmul.mubr.msk.f32.vlgmr.msra.gmra.mrb[6].mxu0 %vm660_vm1, %v14556_v44  ;;  %v14564_v44 = vld [vmem:[%s17516_s7 + $0x5c] sm:$0x7] }
 0x24e   : > { %14562 = vmatpush1.msk.msra.mxu0 %vm664_vm0, %v16493_v61  ;;  %10382 = vmatprep.mubr.f32.mxu0 %v15154_v4 }
 0x24f   : > { %14565 = vmatprep.subr.msk.mxu0 %vm664_vm0, %v16496_v35  ;;  %14496 = vmatmul.mubr.msk.f32.vlgmr.msra.gmra.mrb[6].mxu1 %vm660_vm1, %v14493_v15  ;;  %v14501_v15 = vld [vmem:[%s17515_s6 + $0x40] sm:$0x7] }
 0x250   : > { %14499 = vmatpush1.msk.msra.mxu1 %vm664_vm0, %v16580_v9  ;;  %9193 = vmatprep.mubr.f32.mxu1 %v15154_v4 }
 0x251   : > { %14502 = vmatprep.subr.msk.mxu1 %vm664_vm0, %v16583_v38 }
 0x255   : > { %14563 = vmatmul.mubr.msk.f32.vlgmr.msra.gmra.mrb[6].mxu0 %vm660_vm1, %v14560_v50  ;;  %v14568_v50 = vld [vmem:[%s17515_s6 + $0x60] sm:$0x7] }
 0x256   : > { %14566 = vmatpush1.msk.msra.mxu0 %vm664_vm0, %v16524_v55  ;;  %10458 = vmatprep.mubr.f32.mxu0 %v15154_v4 }
 0x257   : > { %14569 = vmatprep.subr.msk.mxu0 %vm664_vm0, %v16527_v16  ;;  %14500 = vmatmul.mubr.msk.f32.vlgmr.msra.gmra.mrb[6].mxu1 %vm660_vm1, %v14497_v20  ;;  %v14505_v20 = vld [vmem:[%s17516_s7 + $0x40] sm:$0x7] }
 0x258   : > { %14503 = vmatpush1.msk.msra.mxu1 %vm664_vm0, %v16608_v43  ;;  %9273 = vmatprep.mubr.f32.mxu1 %v15154_v4 }
 0x259   : > { %14506 = vmatprep.subr.msk.mxu1 %vm664_vm0, %v16611_v14 }
 0x25d   : > { %14567 = vmatmul.mubr.msk.f32.vlgmr.msra.gmra.mrb[6].mxu0 %vm660_vm1, %v14564_v44  ;;  %v14572_v44 = vld [vmem:[%s17516_s7 + $0x60] sm:$0x7] }
 0x25e   : > { %14570 = vmatpush1.msk.msra.mxu0 %vm664_vm0, %v16552_v7  ;;  %10538 = vmatprep.mubr.f32.mxu0 %v15154_v4 }
 0x25f   : > { %14573 = vmatprep.subr.msk.mxu0 %vm664_vm0, %v16555_v13  ;;  %14504 = vmatmul.mubr.msk.f32.vlgmr.msra.gmra.mrb[6].mxu1 %vm660_vm1, %v14501_v15  ;;  %v14509_v15 = vld [vmem:[%s17515_s6 + $0x44] sm:$0x7] }
 0x260   : > { %14507 = vmatpush1.msk.msra.mxu1 %vm664_vm0, %v16636_v31  ;;  %9349 = vmatprep.mubr.f32.mxu1 %v15154_v4 }
 0x261   : > { %14510 = vmatprep.subr.msk.mxu1 %vm664_vm0, %v16639_v6 }
 0x265   : > { %14571 = vmatmul.mubr.msk.f32.vlgmr.msra.gmra.mrb[6].mxu0 %vm660_vm1, %v14568_v50  ;;  %v14576_v50 = vld [vmem:[%s17515_s6 + $0x64] sm:$0x7] }
 0x266   : > { %14574 = vmatpush1.msk.msra.mxu0 %vm664_vm0, %v16580_v9  ;;  %10614 = vmatprep.mubr.f32.mxu0 %v15154_v4 }
 0x267   : > { %14577 = vmatprep.subr.msk.mxu0 %vm664_vm0, %v16583_v38  ;;  %14508 = vmatmul.mubr.msk.f32.vlgmr.msra.gmra.mrb[6].mxu1 %vm660_vm1, %v14505_v20  ;;  %v14513_v20 = vld [vmem:[%s17516_s7 + $0x44] sm:$0x7] }
 0x268   : > { %14511 = vmatpush1.msk.msra.mxu1 %vm664_vm0, %v16664_v25  ;;  %9429 = vmatprep.mubr.f32.mxu1 %v15154_v4 }
 0x269   : > { %14514 = vmatprep.subr.msk.mxu1 %vm664_vm0, %v16671_v41 }
 0x26d   : > { %14575 = vmatmul.mubr.msk.f32.vlgmr.msra.gmra.mrb[6].mxu0 %vm660_vm1, %v14572_v44  ;;  %v14580_v44 = vld [vmem:[%s17516_s7 + $0x64] sm:$0x7] }
 0x26e   : > { %14578 = vmatpush1.msk.msra.mxu0 %vm664_vm0, %v16608_v43  ;;  %10694 = vmatprep.mubr.f32.mxu0 %v15154_v4 }
 0x26f   : > { %14581 = vmatprep.subr.msk.mxu0 %vm664_vm0, %v16611_v14  ;;  %14512 = vmatmul.mubr.msk.f32.vlgmr.msra.gmra.mrb[6].mxu1 %vm660_vm1, %v14509_v15 }
 0x270   : > { %14515 = vmatpush1.msk.msra.mxu1 %vm664_vm0, %v16690_v33  ;;  %9505 = vmatprep.mubr.f32.mxu1 %v15154_v4 }
 0x271   : > { %14597 = vmatprep.subr.msk.mxu1 %vm664_vm0, %v16201_v18  ;;  %v14596_v18 = vld [vmem:[%s17516_s7 + $0x6c] sm:$0x7] }
 0x275   : > { %14579 = vmatmul.mubr.msk.f32.vlgmr.msra.gmra.mrb[6].mxu0 %vm660_vm1, %v14576_v50 }
 0x276   : > { %14582 = vmatpush1.msk.msra.mxu0 %vm664_vm0, %v16636_v31  ;;  %10770 = vmatprep.mubr.f32.mxu0 %v15154_v4 }
 0x277   : > { %14585 = vmatprep.subr.msk.mxu0 %vm664_vm0, %v16639_v6  ;;  %14516 = vmatmul.mubr.msk.f32.vlgmr.msra.gmra.mrb[6].mxu1 %vm660_vm1, %v14513_v20 }
 0x278   : > { %14598 = vmatpush1.msk.msra.mxu1 %vm664_vm0, %v16222_v30  ;;  %11029 = vmatprep.mubr.f32.mxu1 %v15154_v4  ;;  %v14595_v30 = vld [vmem:[%s17515_s6 + $0x6c] sm:$0x7] }
 0x279   : > { %14600 = vmatprep.subr.msk.mxu1 %vm664_vm0, %v16231_v39  ;;  %v14584_v39 = vld [vmem:[%s17515_s6 + $0x68] sm:$0x7] }
 0x27b   : > { %14599 = vmatmul.mubr.msk.f32.vlgmr.msra.gmra.mrb[8].mxu1 %vm660_vm1, %v14596_v18 }
 0x27c   : > { %14601 = vmatpush1.msk.msra.mxu1 %vm664_vm0, %v16248_v58  ;;  %11103 = vmatprep.mubr.f32.mxu1 %v15154_v4  ;;  %v14603_v58 = vld [vmem:[%s17515_s6 + $0x70] sm:$0x7] }
 0x27d   : > { %14604 = vmatprep.subr.msk.mxu1 %vm664_vm0, %v16253_v34  ;;  %14583 = vmatmul.mubr.msk.f32.vlgmr.msra.gmra.mrb[6].mxu0 %vm660_vm1, %v14580_v44  ;;  %v14588_v34 = vld [vmem:[%s17516_s7 + $0x68] sm:$0x7] }
 0x27e   : > { %14586 = vmatpush1.msk.msra.mxu0 %vm664_vm0, %v16664_v25  ;;  %10850 = vmatprep.mubr.f32.mxu0 %v15154_v4 }
 0x27f   : > { %14589 = vmatprep.subr.msk.mxu0 %vm664_vm0, %v16671_v41 }
 0x283   : > { %14602 = vmatmul.mubr.msk.f32.vlgmr.msra.gmra.mrb[8].mxu1 %vm660_vm1, %v14595_v30 }
 0x284   : > { %14605 = vmatpush1.msk.msra.mxu1 %vm664_vm0, %v16278_v46  ;;  %11179 = vmatprep.mubr.f32.mxu1 %v15154_v4  ;;  %v14607_v46 = vld [vmem:[%s17516_s7 + $0x70] sm:$0x7] }
 0x285   : > { %14608 = vmatprep.subr.msk.mxu1 %vm664_vm0, %v16281_v49  ;;  %14587 = vmatmul.mubr.msk.f32.vlgmr.msra.gmra.mrb[6].mxu0 %vm660_vm1, %v14584_v39  ;;  %v14611_v49 = vld [vmem:[%s17515_s6 + $0x74] sm:$0x7] }
 0x286   : > { %14590 = vmatpush1.msk.msra.mxu0 %vm664_vm0, %v16690_v33  ;;  %10926 = vmatprep.mubr.f32.mxu0 %v15154_v4 }
 0x28b   : > { %14606 = vmatmul.mubr.msk.f32.vlgmr.msra.gmra.mrb[8].mxu1 %vm660_vm1, %v14603_v58 }
 0x28c   : > { %14609 = vmatpush1.msk.msra.mxu1 %vm664_vm0, %v16306_v28  ;;  %11255 = vmatprep.mubr.f32.mxu1 %v15154_v4  ;;  %v17063_v28 = vpop.permute.xlu1 %9520 }
 0x28d   : > { %14612 = vmatprep.subr.msk.mxu1 %vm664_vm0, %v16309_v45  ;;  %14591 = vmatmul.mubr.msk.f32.vlgmr.msra.gmra.mrb[6].mxu0 %vm660_vm1, %v14588_v34  ;;  %v17069_v45 = vpop.permute.xlu0 %8099 }
 0x28e   : > { %12596 = vmatprep.mubr.f32.mxu0 %v15154_v4 }
 0x291   : > { %v3587_v20 = vpop.permute.xlu0 %3586 }
 0x292   : > { %v3590_v44 = vadd.f32 %v3587_v20, %v16838_v19 }
 0x293   : > { %14610 = vmatmul.mubr.msk.f32.vlgmr.msra.gmra.mrb[8].mxu1 %vm660_vm1, %v14607_v46 }
 0x294   : > { %14613 = vmatpush1.msk.msra.mxu1 %vm664_vm0, %v16334_v57  ;;  %11335 = vmatprep.mubr.f32.mxu1 %v15154_v4  ;;  %v2166_v57 = vpop.permute.xlu1 %2165  ;;  %v14224_v30 = vmul.f32 -1.442695, %v3590_v44  ;;  %v6435_v44 = vld [vmem:[#allocation3] sm:$0x77] }
 0x295   : > { %14616 = vmatprep.subr.msk.mxu1 %vm664_vm0, %v16337_v1  ;;  %v14615_v1 = vld [vmem:[%s17516_s7 + $0x74] sm:$0x7]  ;;  %v2168_v15 = vadd.f32 %v16483_v5, %v2166_v57  ;;  %v2169_v50 = vadd.f32 %v16487_v36, %v2166_v57  ;;  %v14619_v5 = vld [vmem:[%s17515_s6 + $0x78] sm:$0x7]  ;;  %v17108_v58 = vpop.permute.xlu0 %12362  ;;  %v14627_v57 = vld [vmem:[%s17515_s6 + $0x7c] sm:$0x7] }
 0x297   : > { %v14149_v18 = vmul.f32 -1.442695, %v2169_v50 }
 0x29b   : > { %14614 = vmatmul.mubr.msk.f32.vlgmr.msra.gmra.mrb[8].mxu1 %vm660_vm1, %v14611_v49 }
 0x29c   : > { %14617 = vmatpush1.msk.msra.mxu1 %vm664_vm0, %v16362_v0  ;;  %11411 = vmatprep.mubr.f32.mxu1 %v15154_v4  ;;  %v14148_v0 = vmul.f32 -1.442695, %v2168_v15 }
 0x29d   : > { %14620 = vmatprep.subr.msk.mxu1 %vm664_vm0, %v16365_v29  ;;  %v3589_v29 = vadd.f32 %v3587_v20, %v16833_v47 }
 0x29e   : > { %15076 = vpow2.f32 %v14148_v0 }
 0x29f   : > { %v14223_v36 = vmul.f32 -1.442695, %v3589_v29  ;;  %15078 = vpow2.f32 %v14149_v18  ;;  %v14631_v18 = vld [vmem:[%s17516_s7 + $0x7c] sm:$0x7] }
 0x2a1   : > { %15080 = vpow2.f32 %v14223_v36 }
 0x2a2   : > { %15082 = vpow2.f32 %v14224_v30  ;;  %v14635_v30 = vld [vmem:[%s17515_s6 + $0x80] sm:$0x7] }
 0x2a3   : > { %14618 = vmatmul.mubr.msk.f32.vlgmr.msra.gmra.mrb[8].mxu1 %vm660_vm1, %v14615_v1 }
 0x2a4   : > { %14621 = vmatpush1.msk.msra.mxu1 %vm664_vm0, %v16390_v3  ;;  %11491 = vmatprep.mubr.f32.mxu1 %v15154_v4  ;;  %v17090_v3 = vpop.permute.xlu1 %10941 }
 0x2a5   : > { %14624 = vmatprep.subr.msk.mxu1 %vm664_vm0, %v16393_v32  ;;  %v14623_v32 = vld [vmem:[%s17516_s7 + $0x78] sm:$0x7] }
 0x2a8   : > { %v5008_v47 = vpop.permute.xlu1 %5007  ;;  %v15077_v19 = vpop.eup %15076 }
 0x2a9   : > { %v5010_v39 = vadd.f32 %v5008_v47, %v16886_v56  ;;  %v2176_v34 = vadd.f32 1.0, %v15077_v19  ;;  %v6429_v56 = vpop.permute.xlu0 %6428 }
 0x2ab   : > { %14622 = vmatmul.mubr.msk.f32.vlgmr.msra.gmra.mrb[8].mxu1 %vm660_vm1, %v14619_v5  ;;  %v14298_v1 = vmul.f32 -1.442695, %v5010_v39  ;;  %15084 = vrcp.f32 %v2176_v34 }
 0x2ac   : > { %14625 = vmatpush1.msk.msra.mxu1 %vm664_vm0, %v16415_v27  ;;  %11567 = vmatprep.mubr.f32.mxu1 %v15154_v4  ;;  %v15079_v27 = vpop.eup %15078 }
 0x2ad   : > { %14628 = vmatprep.subr.msk.mxu1 %vm664_vm0, %v15369_v12  ;;  %v5011_v12 = vadd.f32 %v5008_v47, %v16891_v60  ;;  %v15081_v46 = vpop.eup %15080  ;;  %v2177_v49 = vadd.f32 1.0, %v15079_v27  ;;  %v6437_v47 = vcombine.high %v6435_v44, %v6435_v44 }
 0x2ae   : > { %v3597_v50 = vadd.f32 1.0, %v15081_v46 }
 0x2af   : > { %v14299_v15 = vmul.f32 -1.442695, %v5011_v12  ;;  %15086 = vrcp.f32 %v2177_v49 }
 0x2b0   : > { %15088 = vpow2.f32 %v14298_v1  ;;  %v14639_v1 = vld [vmem:[%s17516_s7 + $0x80] sm:$0x7] }
 0x2b1   : > { %15090 = vpow2.f32 %v14299_v15 }
 0x2b2   : > { %15092 = vrcp.f32 %v3597_v50 }
 0x2b3   : > { %14626 = vmatmul.mubr.msk.f32.vlgmr.msra.gmra.mrb[8].mxu1 %vm660_vm1, %v14623_v32 }
 0x2b4   : > { %14629 = vmatpush1.msk.msra.mxu1 %vm664_vm0, %v16440_v53  ;;  %11647 = vmatprep.mubr.f32.mxu1 %v15154_v4  ;;  %v15083_v53 = vpop.eup %15082 }
 0x2b5   : > { %14632 = vmatprep.subr.msk.mxu1 %vm664_vm0, %v15344_v8  ;;  %v3598_v8 = vadd.f32 1.0, %v15083_v53 }
 0x2b7   : > { %15094 = vrcp.f32 %v3598_v8  ;;  %v14643_v8 = vld [vmem:[%s17515_s6 + $0x84] sm:$0x7] }
 0x2bb   : > { %14630 = vmatmul.mubr.msk.f32.vlgmr.msra.gmra.mrb[8].mxu1 %vm660_vm1, %v14627_v57 }
 0x2bc   : > { %14633 = vmatpush1.msk.msra.mxu1 %vm664_vm0, %v16465_v2  ;;  %11723 = vmatprep.mubr.f32.mxu1 %v15154_v4 }
 0x2bd   : > { %14636 = vmatprep.subr.msk.mxu1 %vm664_vm0, %v16459_v42  ;;  %v15085_v42 = vpop.eup %15084 }
 0x2be   : > { %v6415_v60 = vpop.f32.mrb[4].mxu1  ;;  %v15087_v2 = vpop.eup %15086 }
 0x2bf   : > { %v6431_v20 = vadd.f32 %v6429_v56, %v6415_v60  ;;  %v6417_v0 = vpop.f32.mrb[5].mxu1  ;;  %v15089_v5 = vpop.eup %15088 }
 0x2c0   : > { %v6432_v29 = vadd.f32 %v6429_v56, %v6417_v0  ;;  %v15091_v36 = vpop.eup %15090  ;;  %v5018_v27 = vadd.f32 1.0, %v15089_v5 }
 0x2c1   : > { %15096 = vtanh.f32 %v6431_v20  ;;  %v15093_v32 = vpop.eup %15092 }
 0x2c2   : > { %15098 = vtanh.f32 %v6432_v29  ;;  %v15095_v19 = vpop.eup %15094  ;;  %v6439_v34 = vmul.f32 %v15093_v32, %v6435_v44  ;;  %v14647_v29 = vld [vmem:[%s17516_s7 + $0x84] sm:$0x7] }
 0x2c3   : > { %14634 = vmatmul.mubr.msk.f32.vlgmr.msra.gmra.mrb[8].mxu1 %vm660_vm1, %v14631_v18  ;;  %15100 = vrcp.f32 %v5018_v27 }
 0x2c4   : > { %14637 = vmatpush1.msk.msra.mxu1 %vm664_vm0, %v16493_v61  ;;  %11803 = vmatprep.mubr.f32.mxu1 %v15154_v4  ;;  %v5019_v61 = vadd.f32 1.0, %v15091_v36 }
 0x2c5   : > { %14640 = vmatprep.subr.msk.mxu1 %vm664_vm0, %v16496_v35  ;;  %v6440_v35 = vmul.f32 %v15095_v19, %v6437_v47 }
 0x2c6   : > { %15102 = vrcp.f32 %v5019_v61 }
 0x2cb   : > { %v15097_v39 = vpop.eup %15096  ;;  %14638 = vmatmul.mubr.msk.f32.vlgmr.msra.gmra.mrb[8].mxu1 %vm660_vm1, %v14635_v30 }
 0x2cc   : > { %v15099_v12 = vpop.eup %15098  ;;  %v6441_v46 = vmul.f32 %v15097_v39, %v15085_v42  ;;  %14641 = vmatpush1.msk.msra.mxu1 %vm664_vm0, %v16524_v55  ;;  %11879 = vmatprep.mubr.f32.mxu1 %v15154_v4 }
 0x2cd   : > { %v6442_v49 = vmul.f32 %v15099_v12, %v15087_v2  ;;  %14644 = vmatprep.subr.msk.mxu1 %vm664_vm0, %v16527_v16  ;;  %v15101_v50 = vpop.eup %15100 }
 0x2ce   : > { %v6443_v57 = vadd.f32 %v6441_v46, %v6439_v34 }
 0x2cf   : > { %v6444_v53 = vadd.f32 %v6442_v49, %v6440_v35 }
 0x2d0   : > { %15104 = vtanh.f32 %v6443_v57  ;;  %v15103_v56 = vpop.eup %15102 }
 0x2d1   : > { %15106 = vtanh.f32 %v6444_v53  ;;  %v6451_v15 = vcombine.low %v6443_v57, %v6444_v53 }
 0x2d3   : > { %6453 = vst [vmem:[#allocation3] sm:$0x77] %v6451_v15  ;;  %14642 = vmatmul.mubr.msk.f32.vlgmr.msra.gmra.mrb[8].mxu1 %vm660_vm1, %v14639_v1 }
 0x2d4   : > { %14645 = vmatpush1.msk.msra.mxu1 %vm664_vm0, %v16552_v7  ;;  %v8087_v55 = vpop.f32.mrb[4].mxu0  ;;  %11959 = vmatprep.mubr.f32.mxu1 %v15154_v4 }
 0x2d5   : > { %14648 = vmatprep.subr.msk.mxu1 %vm664_vm0, %v16555_v13  ;;  %v8089_v16 = vpop.f32.mrb[5].mxu0  ;;  %v8102_v18 = vadd.f32 %v17069_v45, %v8087_v55  ;;  %v12369_v55 = vld [vmem:[#allocation5] sm:$0x77] }
 0x2d6   : > { %v8103_v42 = vadd.f32 %v17069_v45, %v8089_v16 }
 0x2d7   : > { %v14443_v2 = vmul.f32 -1.442695, %v8102_v18 }
 0x2d9   : > { %15108 = vpow2.f32 %v14443_v2 }
 0x2da   : > { %v15105_v60 = vpop.eup %15104 }
 0x2db   : > { %v15107_v20 = vpop.eup %15106  ;;  %v17149_v0 = vmul.f32 %v15105_v60, %v15101_v50  ;;  %14646 = vmatmul.mubr.msk.f32.vlgmr.msra.gmra.mrb[8].mxu1 %vm660_vm1, %v14643_v8 }
 0x2dc   : > { %v17152_v7 = vmul.f32 %v15107_v20, %v15103_v56  ;;  %14649 = vmatpush1.msk.msra.mxu1 %vm664_vm0, %v16580_v9  ;;  %12035 = vmatprep.mubr.f32.mxu1 %v15154_v4  ;;  %v14651_v9 = vld [vmem:[%s17515_s6 + $0x88] sm:$0x7]  ;;  %v12371_v56 = vcombine.high %v12369_v55, %v12369_v55 }
 0x2dd   : > { %14652 = vmatprep.subr.msk.mxu1 %vm664_vm0, %v16583_v38  ;;  %v14655_v38 = vld [vmem:[%s17516_s7 + $0x88] sm:$0x7] }
 0x2de   : > { %v6456_v13 = vcombine.low %v17149_v0, %v17152_v7 }
 0x2e0   : > { %6458 = vst [vmem:[#allocation2] sm:$0x77] %v6456_v13 }
 0x2e3   : > { %14650 = vmatmul.mubr.msk.f32.vlgmr.msra.gmra.mrb[8].mxu1 %vm660_vm1, %v14647_v29  ;;  %v15109_v32 = vpop.eup %15108 }
 0x2e4   : > { %14653 = vmatpush1.msk.msra.mxu1 %vm664_vm0, %v16608_v43  ;;  %12115 = vmatprep.mubr.f32.mxu1 %v15154_v4  ;;  %v14659_v43 = vld [vmem:[%s17515_s6 + $0x8c] sm:$0x7]  ;;  %v8110_v39 = vadd.f32 1.0, %v15109_v32 }
 0x2e5   : > { %14656 = vmatprep.subr.msk.mxu1 %vm664_vm0, %v16611_v14  ;;  %v14663_v14 = vld [vmem:[%s17516_s7 + $0x8c] sm:$0x7] }
 0x2eb   : > { %14654 = vmatmul.mubr.msk.f32.vlgmr.msra.gmra.mrb[8].mxu1 %vm660_vm1, %v14651_v9 }
 0x2ec   : > { %14657 = vmatpush1.msk.msra.mxu1 %vm664_vm0, %v16636_v31  ;;  %12191 = vmatprep.mubr.f32.mxu1 %v15154_v4 }
 0x2ed   : > { %14660 = vmatprep.subr.msk.mxu1 %vm664_vm0, %v16639_v6 }
 0x2f3   : > { %14658 = vmatmul.mubr.msk.f32.vlgmr.msra.gmra.mrb[8].mxu1 %vm660_vm1, %v14655_v38 }
 0x2f4   : > { %14661 = vmatpush1.msk.msra.mxu1 %vm664_vm0, %v16664_v25  ;;  %12271 = vmatprep.mubr.f32.mxu1 %v15154_v4 }
 0x2f5   : > { %14664 = vmatprep.subr.msk.mxu1 %vm664_vm0, %v16671_v41 }
 0x2fb   : > { %14662 = vmatmul.mubr.msk.f32.vlgmr.msra.gmra.mrb[8].mxu1 %vm660_vm1, %v14659_v43 }
 0x2fc   : > { %14665 = vmatpush1.msk.msra.mxu1 %vm664_vm0, %v16690_v33  ;;  %12347 = vmatprep.mubr.f32.mxu1 %v15154_v4  ;;  %v14444_v33 = vmul.f32 -1.442695, %v8103_v42 }
 0x2fe   : > { %15110 = vpow2.f32 %v14444_v33 }
 0x303   : > { %14666 = vmatmul.mubr.msk.f32.vlgmr.msra.gmra.mrb[8].mxu1 %vm660_vm1, %v14663_v14 }
 0x308   : > { %v15111_v47 = vpop.eup %15110 }
 0x309   : > { %v8111_v61 = vadd.f32 1.0, %v15111_v47 }
 0x34a   : > { %v9507_v31 = vpop.f32.mrb[6].mxu1 }
 0x34b   : > { %v9509_v6 = vpop.f32.mrb[7].mxu1  ;;  %v9523_v44 = vadd.f32 %v17063_v28, %v9507_v31 }
 0x34c   : > { %v9524_v5 = vadd.f32 %v17063_v28, %v9509_v6 }
 0x34d   : > { %v14518_v36 = vmul.f32 -1.442695, %v9523_v44 }
 0x34e   : > { %v14519_v30 = vmul.f32 -1.442695, %v9524_v5 }
 0x34f   : > { %15112 = vpow2.f32 %v14518_v36  ;;  %v14007_v36 = vld [vmem:[%s17520_s11] sm:$0x7] }
 0x350   : > { %15114 = vpow2.f32 %v14519_v30 }
 0x351   : > { %15116 = vrcp.f32 %v8110_v39 }
 0x352   : > { %15118 = vrcp.f32 %v8111_v61  ;;  %v12522_v61 = vld [vmem:[%s17519_s10] sm:$0x7] }
 0x359   : > { %v15113_v45 = vpop.eup %15112 }
 0x35a   : > { %v15115_v12 = vpop.eup %15114  ;;  %v9531_v28 = vadd.f32 1.0, %v15113_v45 }
 0x35b   : > { %v9532_v35 = vadd.f32 1.0, %v15115_v12  ;;  %v15117_v1 = vpop.eup %15116 }
 0x35c   : > { %v15119_v15 = vpop.eup %15118 }
 0x360   : > { %v10928_v25 = vpop.f32.mrb[6].mxu0 }
 0x361   : > { %v10930_v41 = vpop.f32.mrb[7].mxu0  ;;  %v10944_v19 = vadd.f32 %v17090_v3, %v10928_v25 }
 0x362   : > { %v10945_v27 = vadd.f32 %v17090_v3, %v10930_v41 }
 0x363   : > { %v14593_v34 = vmul.f32 -1.442695, %v10944_v19 }
 0x364   : > { %v14594_v46 = vmul.f32 -1.442695, %v10945_v27 }
 0x365   : > { %15120 = vpow2.f32 %v14593_v34 }
 0x366   : > { %15122 = vpow2.f32 %v14594_v46 }
 0x367   : > { %15124 = vrcp.f32 %v9531_v28 }
 0x368   : > { %15126 = vrcp.f32 %v9532_v35 }
 0x36f   : > { %v15121_v16 = vpop.eup %15120 }
 0x370   : > { %v15123_v50 = vpop.eup %15122  ;;  %v10952_v20 = vadd.f32 1.0, %v15121_v16 }
 0x371   : > { %v15125_v8 = vpop.eup %15124  ;;  %v10953_v29 = vadd.f32 1.0, %v15123_v50 }
 0x372   : > { %v15127_v60 = vpop.eup %15126  ;;  %v12373_v38 = vmul.f32 %v15125_v8, %v12369_v55 }
 0x373   : > { %v12374_v14 = vmul.f32 %v15127_v60, %v12371_v56 }
 0x3d6   : > { %v12349_v49 = vpop.f32.mrb[8].mxu1 }
 0x3d7   : > { %v12365_v57 = vadd.f32 %v17108_v58, %v12349_v49  ;;  %v12351_v53 = vpop.f32.mrb[9].mxu1 }
 0x3d8   : > { %v12366_v3 = vadd.f32 %v17108_v58, %v12351_v53 }
 0x3d9   : > { %15128 = vtanh.f32 %v12365_v57 }
 0x3da   : > { %15130 = vtanh.f32 %v12366_v3 }
 0x3db   : > { %15132 = vrcp.f32 %v10952_v20 }
 0x3dc   : > { %15134 = vrcp.f32 %v10953_v29 }
 0x3e3   : > { %v15129_v13 = vpop.eup %15128 }
 0x3e4   : > { %v15131_v9 = vpop.eup %15130  ;;  %v12375_v43 = vmul.f32 %v15129_v13, %v15117_v1 }
 0x3e5   : > { %v12376_v31 = vmul.f32 %v15131_v9, %v15119_v15  ;;  %v15133_v41 = vpop.eup %15132 }
 0x3e6   : > { %v12377_v58 = vadd.f32 %v12375_v43, %v12373_v38  ;;  %v15135_v18 = vpop.eup %15134 }
 0x3e7   : > { %v12378_v6 = vadd.f32 %v12376_v31, %v12374_v14 }
 0x3e8   : > { %15136 = vtanh.f32 %v12377_v58 }
 0x3e9   : > { %15138 = vtanh.f32 %v12378_v6  ;;  %v12385_v25 = vcombine.low %v12377_v58, %v12378_v6 }
 0x3eb   : > { %12387 = vst [vmem:[#allocation5] sm:$0x77] %v12385_v25 }
 0x3f2   : > { %v15137_v42 = vpop.eup %15136 }
 0x3f3   : > { %v15139_v2 = vpop.eup %15138  ;;  %v17207_v44 = vmul.f32 %v15137_v42, %v15133_v41 }
 0x3f4   : > { %v17209_v33 = vmul.f32 %v15139_v2, %v15135_v18 }
 0x3f5   : > { %12457 = vrot.lane.b32.xlu1 %v17207_v44, %s15153_s29 }
 0x3f6   : > { %v12390_v5 = vcombine.low %v17207_v44, %v17209_v33  ;;  %12459 = vrot.lane.b32.xlu0 %v17209_v33, %s15153_s29 }
 0x3f8   : > { %12392 = vst [vmem:[#allocation4] sm:$0x77] %v12390_v5 }
 0x3f9   : > { %12393 = vrot.lane.b32.xlu1 %v17149_v0, %s15153_s29 }
 0x3fa   : > { %12395 = vrot.lane.b32.xlu0 %v17152_v7, %s15153_s29 }
 0x3fd   : > { %12465 = vrot.lane.b32.xlu1 %v17207_v44, %s15155_s15 }
 0x3fe   : > { %12467 = vrot.lane.b32.xlu0 %v17209_v33, %s15155_s15 }
 0x401   : > { %12401 = vrot.lane.b32.xlu1 %v17149_v0, %s15155_s15 }
 0x402   : > { %12403 = vrot.lane.b32.xlu0 %v17152_v7, %s15155_s15 }
 0x405   : > { %12473 = vrot.lane.b32.xlu1 %v17207_v44, %s15156_s16 }
 0x406   : > { %12475 = vrot.lane.b32.xlu0 %v17209_v33, %s15156_s16 }
 0x409   : > { %12409 = vrot.lane.b32.xlu1 %v17149_v0, %s15156_s16 }
 0x40a   : > { %12411 = vrot.lane.b32.xlu0 %v17152_v7, %s15156_s16 }
 0x40d   : > { %12481 = vrot.lane.b32.xlu1 %v17207_v44, %s15157_s19 }
 0x40e   : > { %12483 = vrot.lane.b32.xlu0 %v17209_v33, %s15157_s19 }
 0x411   : > { %12417 = vrot.lane.b32.xlu1 %v17149_v0, %s15157_s19 }
 0x412   : > { %12419 = vrot.lane.b32.xlu0 %v17152_v7, %s15157_s19 }
 0x415   : > { %12489 = vrot.lane.b32.xlu1 %v17207_v44, %s15158_s20 }
 0x416   : > { %12491 = vrot.lane.b32.xlu0 %v17209_v33, %s15158_s20 }
 0x419   : > { %12425 = vrot.lane.b32.xlu1 %v17149_v0, %s15158_s20 }
 0x41a   : > { %12427 = vrot.lane.b32.xlu0 %v17152_v7, %s15158_s20 }
 0x41d   : > { %12497 = vrot.lane.b32.xlu1 %v17207_v44, %s15159_s23 }
 0x41e   : > { %12499 = vrot.lane.b32.xlu0 %v17209_v33, %s15159_s23 }
 0x421   : > { %12433 = vrot.lane.b32.xlu1 %v17149_v0, %s15159_s23 }
 0x422   : > { %12435 = vrot.lane.b32.xlu0 %v17152_v7, %s15159_s23 }
 0x425   : > { %12505 = vrot.lane.b32.xlu1 %v17207_v44, %s17526_s24 }
 0x426   : > { %12507 = vrot.lane.b32.xlu0 %v17209_v33, %s17526_s24 }
 0x429   : > { %12441 = vrot.lane.b32.xlu1 %v17149_v0, %s17526_s24 }
 0x42a   : > { %12443 = vrot.lane.b32.xlu0 %v17152_v7, %s17526_s24 }
 0x42d   : > { %12513 = vrot.lane.b32.xlu1 %v17207_v44, %s17527_s13 }
 0x42e   : > { %12515 = vrot.lane.b32.xlu0 %v17209_v33, %s17527_s13 }
 0x431   : > { %12449 = vrot.lane.b32.xlu1 %v17149_v0, %s17527_s13 }
 0x432   : > { %12451 = vrot.lane.b32.xlu0 %v17152_v7, %s17527_s13 }
 0x435   : > { %14010 = vperm.xlu1 %15069, %v14007_v36  }
 0x467   : > { %v12458_v30 = vpop.permute.xlu1 %12457 }
 0x468   : > { %v12460_v32 = vpop.permute.xlu0 %12459 }
 0x469   : > { %v12461_v47 = vsel %vm434_vm4, %v12458_v30, %v12460_v32  ;;  %v12462_v19 = vsel %vm434_vm4, %v12460_v32, %v12458_v30 }
 0x46a   : > { %v12463_v27 = vmul.f32 %v12462_v19, %v15399_v23  ;;  %v12464_v39 = vmul.f32 %v12461_v47, %v15402_v24 }
 0x46b   : > { %v12394_v45 = vpop.permute.xlu1 %12393 }
 0x46c   : > { %14668 = vmatprep.subr.msk.mxu0 %vm664_vm0, %v12464_v39  ;;  %v12396_v12 = vpop.permute.xlu0 %12395  ;;  %v14691_v39 = vld [vmem:[%s17519_s10 + $0xc] sm:$0x7] }
 0x46d   : > { %v12397_v34 = vsel %vm434_vm4, %v12394_v45, %v12396_v12  ;;  %v12398_v46 = vsel %vm434_vm4, %v12396_v12, %v12394_v45  ;;  %14669 = vmatpush1.msk.msra.mxu0 %vm664_vm0, %v12463_v27 }
 0x46e   : > { %v12399_v28 = vmul.f32 %v12398_v46, %v15399_v23  ;;  %v12400_v35 = vmul.f32 %v12397_v34, %v15402_v24  ;;  %14670 = vmatmul.mubr.msk.f32.vlgmr.msra.gmra.mrb[8].mxu0 %vm660_vm1, %v12522_v61  ;;  %v12521_v24 = vld [vmem:[%s17518_s9] sm:$0x7] }
 0x46f   : > { %v12466_v49 = vpop.permute.xlu1 %12465  ;;  %12676 = vmatprep.mubr.f32.mxu0 %v15154_v4 }
 0x470   : > { %14671 = vmatprep.subr.msk.mxu0 %vm664_vm0, %v12400_v35  ;;  %v12468_v57 = vpop.permute.xlu0 %12467  ;;  %v14698_v35 = vld [vmem:[%s17518_s9 + $0x10] sm:$0x7] }
 0x471   : > { %v12469_v53 = vsel %vm454_vm5, %v12466_v49, %v12468_v57  ;;  %14672 = vmatpush1.msk.msra.mxu0 %vm664_vm0, %v12399_v28  ;;  %v12470_v3 = vsel %vm454_vm5, %v12468_v57, %v12466_v49 }
 0x472   : > { %v12472_v23 = vmul.f32 %v12469_v53, %v15437_v37  ;;  %v12471_v55 = vmul.f32 %v12470_v3, %v15449_v40 }
 0x473   : > { %v12402_v1 = vpop.permute.xlu1 %12401 }
 0x474   : > { %14676 = vmatprep.subr.msk.mxu0 %vm664_vm0, %v12472_v23  ;;  %v12404_v15 = vpop.permute.xlu0 %12403 }
 0x475   : > { %v12405_v16 = vsel %vm454_vm5, %v12402_v1, %v12404_v15  ;;  %v12406_v60 = vsel %vm454_vm5, %v12404_v15, %v12402_v1 }
 0x476   : > { %v12408_v50 = vmul.f32 %v12405_v16, %v15437_v37  ;;  %14673 = vmatmul.mubr.msk.f32.vlgmr.msra.gmra.mrb[8].mxu0 %vm660_vm1, %v12521_v24  ;;  %v14675_v37 = vld [vmem:[%s17519_s10 + $0x4] sm:$0x7]  ;;  %v12407_v13 = vmul.f32 %v12406_v60, %v15449_v40 }
 0x477   : > { %14677 = vmatpush1.msk.msra.mxu0 %vm664_vm0, %v12471_v55  ;;  %12760 = vmatprep.mubr.f32.mxu0 %v15154_v4  ;;  %v12474_v8 = vpop.permute.xlu1 %12473  ;;  %v14674_v40 = vld [vmem:[%s17518_s9 + $0x4] sm:$0x7] }
 0x478   : > { %14679 = vmatprep.subr.msk.mxu0 %vm664_vm0, %v12408_v50  ;;  %v12476_v56 = vpop.permute.xlu0 %12475 }
 0x479   : > { %v12477_v20 = vsel %vm474_vm7, %v12474_v8, %v12476_v56  ;;  %v12478_v43 = vsel %vm474_vm7, %v12476_v56, %v12474_v8 }
 0x47a   : > { %v12480_v29 = vmul.f32 %v12477_v20, %v15492_v54  ;;  %v12479_v31 = vmul.f32 %v12478_v43, %v15521_v63 }
 0x47b   : > { %v12410_v9 = vpop.permute.xlu1 %12409 }
 0x47c   : > { %v12412_v38 = vpop.permute.xlu0 %12411 }
 0x47d   : > { %v12413_v14 = vsel %vm474_vm7, %v12410_v9, %v12412_v38  ;;  %v12414_v41 = vsel %vm474_vm7, %v12412_v38, %v12410_v9 }
 0x47e   : > { %14678 = vmatmul.mubr.msk.f32.vlgmr.msra.gmra.mrb[8].mxu0 %vm660_vm1, %v14675_v37  ;;  %v12416_v58 = vmul.f32 %v12413_v14, %v15492_v54  ;;  %v14683_v54 = vld [vmem:[%s17519_s10 + $0x8] sm:$0x7]  ;;  %v12415_v42 = vmul.f32 %v12414_v41, %v15521_v63 }
 0x47f   : > { %14680 = vmatpush1.msk.msra.mxu0 %vm664_vm0, %v12407_v13  ;;  %12840 = vmatprep.mubr.f32.mxu0 %v15154_v4  ;;  %v12482_v6 = vpop.permute.xlu1 %12481  ;;  %v14682_v63 = vld [vmem:[%s17518_s9 + $0x8] sm:$0x7] }
 0x480   : > { %14684 = vmatprep.subr.msk.mxu0 %vm664_vm0, %v12480_v29  ;;  %v12484_v25 = vpop.permute.xlu0 %12483 }
 0x481   : > { %v12485_v18 = vsel %vm494_vm10, %v12482_v6, %v12484_v25  ;;  %v12486_v30 = vsel %vm494_vm10, %v12484_v25, %v12482_v6 }
 0x482   : > { %v12488_v2 = vmul.f32 %v12485_v18, %v15569_v26  ;;  %v12487_v47 = vmul.f32 %v12486_v30, %v15643_v10 }
 0x483   : > { %v12418_v5 = vpop.permute.xlu1 %12417 }
 0x484   : > { %v12420_v36 = vpop.permute.xlu0 %12419 }
 0x485   : > { %v12421_v32 = vsel %vm494_vm10, %v12418_v5, %v12420_v36  ;;  %v12422_v27 = vsel %vm494_vm10, %v12420_v36, %v12418_v5 }
 0x486   : > { %14681 = vmatmul.mubr.msk.f32.vlgmr.msra.gmra.mrb[8].mxu0 %vm660_vm1, %v14674_v40  ;;  %v12424_v19 = vmul.f32 %v12421_v32, %v15569_v26  ;;  %v12423_v45 = vmul.f32 %v12422_v27, %v15643_v10  ;;  %v14690_v26 = vld [vmem:[%s17518_s9 + $0xc] sm:$0x7] }
 0x487   : > { %14685 = vmatpush1.msk.msra.mxu0 %vm664_vm0, %v12479_v31  ;;  %12926 = vmatprep.mubr.f32.mxu0 %v15154_v4  ;;  %v12490_v10 = vpop.permute.xlu1 %12489 }
 0x488   : > { %14687 = vmatprep.subr.msk.mxu0 %vm664_vm0, %v12416_v58  ;;  %v12492_v61 = vpop.permute.xlu0 %12491 }
 0x489   : > { %v12494_v12 = vsel %vm514_vm9, %v12492_v61, %v12490_v10 }
 0x48a   : > { %v12496_v34 = vmul.f32 %v12494_v12, %v15557_v22 }
 0x48c   : > { %v12428_v46 = vpop.permute.xlu0 %12427 }
 0x48e   : > { %14686 = vmatmul.mubr.msk.f32.vlgmr.msra.gmra.mrb[8].mxu0 %vm660_vm1, %v14683_v54 }
 0x48f   : > { %14688 = vmatpush1.msk.msra.mxu0 %vm664_vm0, %v12415_v42  ;;  %13006 = vmatprep.mubr.f32.mxu0 %v15154_v4 }
 0x490   : > { %14692 = vmatprep.subr.msk.mxu0 %vm664_vm0, %v12488_v2  ;;  %v12500_v53 = vpop.permute.xlu0 %12499 }
 0x494   : > { %v12436_v55 = vpop.permute.xlu0 %12435 }
 0x496   : > { %14689 = vmatmul.mubr.msk.f32.vlgmr.msra.gmra.mrb[8].mxu0 %vm660_vm1, %v14682_v63 }
 0x497   : > { %14693 = vmatpush1.msk.msra.mxu0 %vm664_vm0, %v12487_v47  ;;  %13092 = vmatprep.mubr.f32.mxu0 %v15154_v4 }
 0x498   : > { %14695 = vmatprep.subr.msk.mxu0 %vm664_vm0, %v12424_v19  ;;  %v12508_v20 = vpop.permute.xlu0 %12507  ;;  %v14731_v19 = vld [vmem:[%s17519_s10 + $0x20] sm:$0x7] }
 0x49c   : > { %v12444_v43 = vpop.permute.xlu0 %12443 }
 0x49e   : > { %14694 = vmatmul.mubr.msk.f32.vlgmr.msra.gmra.mrb[8].mxu0 %vm660_vm1, %v14691_v39 }
 0x49f   : > { %14696 = vmatpush1.msk.msra.mxu0 %vm664_vm0, %v12423_v45  ;;  %13172 = vmatprep.mubr.f32.mxu0 %v15154_v4 }
 0x4a0   : > { %14700 = vmatprep.subr.msk.mxu0 %vm664_vm0, %v17209_v33  ;;  %v14699_v33 = vld [vmem:[%s17519_s10 + $0x10] sm:$0x7]  ;;  %v12516_v25 = vpop.permute.xlu0 %12515 }
 0x4a4   : > { %v12452_v5 = vpop.permute.xlu0 %12451 }
 0x4a6   : > { %14697 = vmatmul.mubr.msk.f32.vlgmr.msra.gmra.mrb[8].mxu0 %vm660_vm1, %v14690_v26 }
 0x4a7   : > { %14701 = vmatpush1.msk.msra.mxu0 %vm664_vm0, %v17207_v44  ;;  %13256 = vmatprep.mubr.f32.mxu0 %v15154_v4  ;;  %v12426_v44 = vpop.permute.xlu1 %12425 }
 0x4a8   : > { %14703 = vmatprep.subr.msk.mxu0 %vm664_vm0, %v17152_v7  ;;  %v12493_v7 = vsel %vm514_vm9, %v12490_v10, %v12492_v61  ;;  %v12430_v28 = vsel %vm514_vm9, %v12428_v46, %v12426_v44  ;;  %v12429_v3 = vsel %vm514_vm9, %v12426_v44, %v12428_v46 }
 0x4a9   : > { %v12495_v49 = vmul.f32 %v12493_v7, %v15553_v11  ;;  %v12431_v1 = vmul.f32 %v12429_v3, %v15553_v11  ;;  %v14706_v11 = vld [vmem:[%s17518_s9 + $0x14] sm:$0x7] }
 0x4ab   : > { %v12498_v57 = vpop.permute.xlu1 %12497 }
 0x4ac   : > { %v12502_v23 = vsel %vm534_vm11, %v12500_v53, %v12498_v57  ;;  %v12501_v16 = vsel %vm534_vm11, %v12498_v57, %v12500_v53 }
 0x4ad   : > { %v12504_v24 = vmul.f32 %v12502_v23, %v15617_v52  ;;  %v12503_v8 = vmul.f32 %v12501_v16, %v15634_v59 }
 0x4ae   : > { %14702 = vmatmul.mubr.msk.f32.vlgmr.msra.gmra.mrb[8].mxu0 %vm660_vm1, %v14699_v33 }
 0x4af   : > { %14704 = vmatpush1.msk.msra.mxu0 %vm664_vm0, %v17149_v0  ;;  %13334 = vmatprep.mubr.f32.mxu0 %v15154_v4  ;;  %v12432_v0 = vmul.f32 %v12430_v28, %v15557_v22  ;;  %v14707_v22 = vld [vmem:[%s17519_s10 + $0x14] sm:$0x7]  ;;  %v12434_v15 = vpop.permute.xlu1 %12433 }
 0x4b0   : > { %14708 = vmatprep.subr.msk.mxu0 %vm664_vm0, %v12496_v34  ;;  %v12438_v50 = vsel %vm534_vm11, %v12436_v55, %v12434_v15  ;;  %v12437_v37 = vsel %vm534_vm11, %v12434_v15, %v12436_v55 }
 0x4b1   : > { %v12440_v56 = vmul.f32 %v12438_v50, %v15617_v52  ;;  %v14715_v52 = vld [vmem:[%s17519_s10 + $0x18] sm:$0x7]  ;;  %v12439_v29 = vmul.f32 %v12437_v37, %v15634_v59 }
 0x4b2   : > { %v14714_v59 = vld [vmem:[%s17518_s9 + $0x18] sm:$0x7] }
 0x4b3   : > { %v12506_v60 = vpop.permute.xlu1 %12505 }
 0x4b4   : > { %v12510_v13 = vsel %vm554_vm12, %v12508_v20, %v12506_v60  ;;  %v12509_v14 = vsel %vm554_vm12, %v12506_v60, %v12508_v20 }
 0x4b5   : > { %v12512_v9 = vmul.f32 %v12510_v13, %v15705_v51  ;;  %v12511_v31 = vmul.f32 %v12509_v14, %v15744_v62 }
 0x4b6   : > { %14705 = vmatmul.mubr.msk.f32.vlgmr.msra.gmra.mrb[8].mxu0 %vm660_vm1, %v14698_v35 }
 0x4b7   : > { %14709 = vmatpush1.msk.msra.mxu0 %vm664_vm0, %v12495_v49  ;;  %13420 = vmatprep.mubr.f32.mxu0 %v15154_v4  ;;  %v12442_v38 = vpop.permute.xlu1 %12441 }
 0x4b8   : > { %14711 = vmatprep.subr.msk.mxu0 %vm664_vm0, %v12432_v0  ;;  %v12446_v40 = vsel %vm554_vm12, %v12444_v43, %v12442_v38  ;;  %v12445_v41 = vsel %vm554_vm12, %v12442_v38, %v12444_v43 }
 0x4b9   : > { %v12448_v58 = vmul.f32 %v12446_v40, %v15705_v51  ;;  %v14723_v51 = vld [vmem:[%s17519_s10 + $0x1c] sm:$0x7]  ;;  %v12447_v54 = vmul.f32 %v12445_v41, %v15744_v62 }
 0x4ba   : > { %v14722_v62 = vld [vmem:[%s17518_s9 + $0x1c] sm:$0x7] }
 0x4bb   : > { %v12514_v6 = vpop.permute.xlu1 %12513 }
 0x4bc   : > { %v12518_v18 = vsel %vm574_vm13, %v12516_v25, %v12514_v6  ;;  %v12517_v36 = vsel %vm574_vm13, %v12514_v6, %v12516_v25 }
 0x4bd   : > { %v12520_v42 = vmul.f32 %v12518_v18, %v15786_v21  ;;  %v12519_v32 = vmul.f32 %v12517_v36, %v15809_v48 }
 0x4be   : > { %14710 = vmatmul.mubr.msk.f32.vlgmr.msra.gmra.mrb[8].mxu0 %vm660_vm1, %v14707_v22 }
 0x4bf   : > { %14712 = vmatpush1.msk.msra.mxu0 %vm664_vm0, %v12431_v1  ;;  %13500 = vmatprep.mubr.f32.mxu0 %v15154_v4  ;;  %v12450_v2 = vpop.permute.xlu1 %12449 }
 0x4c0   : > { %14716 = vmatprep.subr.msk.mxu0 %vm664_vm0, %v12504_v24  ;;  %v12454_v30 = vsel %vm574_vm13, %v12452_v5, %v12450_v2  ;;  %v12453_v47 = vsel %vm574_vm13, %v12450_v2, %v12452_v5 }
 0x4c1   : > { %v12456_v63 = vmul.f32 %v12454_v30, %v15786_v21  ;;  %v12455_v27 = vmul.f32 %v12453_v47, %v15809_v48  ;;  %v14730_v21 = vld [vmem:[%s17518_s9 + $0x20] sm:$0x7] }
 0x4c3   : > { %v14011_v17 = vpop.permute.xlu1 %14010 }
 0x4c6   : > { %14713 = vmatmul.mubr.msk.f32.vlgmr.msra.gmra.mrb[8].mxu0 %vm660_vm1, %v14706_v11 }
 0x4c7   : > { %14717 = vmatpush1.msk.msra.mxu0 %vm664_vm0, %v12503_v8  ;;  %13586 = vmatprep.mubr.f32.mxu0 %v15154_v4 }
 0x4c8   : > { %14719 = vmatprep.subr.msk.mxu0 %vm664_vm0, %v12440_v56 }
 0x4ce   : > { %14718 = vmatmul.mubr.msk.f32.vlgmr.msra.gmra.mrb[8].mxu0 %vm660_vm1, %v14715_v52 }
 0x4cf   : > { %14720 = vmatpush1.msk.msra.mxu0 %vm664_vm0, %v12439_v29  ;;  %13666 = vmatprep.mubr.f32.mxu0 %v15154_v4 }
 0x4d0   : > { %14724 = vmatprep.subr.msk.mxu0 %vm664_vm0, %v12512_v9 }
 0x4d6   : > { %14721 = vmatmul.mubr.msk.f32.vlgmr.msra.gmra.mrb[8].mxu0 %vm660_vm1, %v14714_v59 }
 0x4d7   : > { %14725 = vmatpush1.msk.msra.mxu0 %vm664_vm0, %v12511_v31  ;;  %13752 = vmatprep.mubr.f32.mxu0 %v15154_v4 }
 0x4d8   : > { %14727 = vmatprep.subr.msk.mxu0 %vm664_vm0, %v12448_v58 }
 0x4de   : > { %14726 = vmatmul.mubr.msk.f32.vlgmr.msra.gmra.mrb[8].mxu0 %vm660_vm1, %v14723_v51 }
 0x4df   : > { %14728 = vmatpush1.msk.msra.mxu0 %vm664_vm0, %v12447_v54  ;;  %13832 = vmatprep.mubr.f32.mxu0 %v15154_v4 }
 0x4e0   : > { %14732 = vmatprep.subr.msk.mxu0 %vm664_vm0, %v12520_v42 }
 0x4e6   : > { %14729 = vmatmul.mubr.msk.f32.vlgmr.msra.gmra.mrb[8].mxu0 %vm660_vm1, %v14722_v62 }
 0x4e7   : > { %14733 = vmatpush1.msk.msra.mxu0 %vm664_vm0, %v12519_v32  ;;  %13918 = vmatprep.mubr.f32.mxu0 %v15154_v4 }
 0x4e8   : > { %14735 = vmatprep.subr.msk.mxu0 %vm664_vm0, %v12456_v63 }
 0x4ee   : > { %14734 = vmatmul.mubr.msk.f32.vlgmr.msra.gmra.mrb[8].mxu0 %vm660_vm1, %v14731_v19 }
 0x4ef   : > { %14736 = vmatpush1.msk.msra.mxu0 %vm664_vm0, %v12455_v27  ;;  %13998 = vmatprep.mubr.f32.mxu0 %v15154_v4 }
 0x4f6   : > { %14737 = vmatmul.mubr.msk.f32.vlgmr.msra.gmra.mrb[8].mxu0 %vm660_vm1, %v14730_v21 }
 0x5c9   : > { %v14000_v39 = vpop.f32.mrb[8].mxu0 }
 0x5ca   : > { %v14013_v45 = vadd.f32 %v14011_v17, %v14000_v39  ;;  %v14002_v26 = vpop.f32.mrb[9].mxu0 }
 0x5cb   : > { %v14014_v10 = vadd.f32 %v14011_v17, %v14002_v26 }
 0x5cd   : > { %v14017_v61 = vcombine.low %v14013_v45, %v14014_v10 }
 0x5cf   : > { %14019 = vst [vmem:[%s15243_s27] sm:$0x77] %v14017_v61 }
 0x5d0 PF: > { %s22_s21 = sadd.s32 1, %s15150_s21  }
 0x5d1   : > { %p19_p5 = scmp.ge.s32.totalorder %s22_s21, 4  }
 0x5d3   :  { %21 = sbr.rel (!%p19_p5) target bundleno = 1 (0x1), region = 263 }

</bundles_post_ra>
